<compile_context>
chip_gen: v6e
topology: v6e:2x2x1
jax: 0.10.0
libtpu: 0.0.40
codegen_flags: <defaults>
</compile_context>

<pallas_src>
import functools
import numpy as np
import jax
import jax.numpy as jnp
from jax import lax
from jax.experimental import pallas as pl
from jax.experimental.pallas import tpu as pltpu

EPS = 1e-5
PAD_OFF = 8          # sublane-aligned offset of the conv interior in the halo scratch (>= 3)


# ---------------------------------------------------------------------------
# static causal masks -> active tap lists (masked taps are dropped at pack time)
# ---------------------------------------------------------------------------
def spatial_mask(k, mask_type):
    m = np.ones((k, k), np.float32)
    c = k // 2
    if mask_type == "A":
        m[c, c:] = 0.0
    else:  # 'B'
        m[c, c + 1:] = 0.0
    m[c + 1:, :] = 0.0
    return m


def taps_from_mask(m):
    return tuple((int(i), int(j))
                 for i in range(m.shape[0])
                 for j in range(m.shape[1])
                 if m[i, j] > 0.0)


TAPS_A7 = taps_from_mask(spatial_mask(7, "A"))   # 24 taps
TAPS_B7 = taps_from_mask(spatial_mask(7, "B"))   # 25 taps


def _group_size(c):
    # taps per grouped im2col store so each store spans a multiple of 128 lanes
    return max(1, 128 // c)


def _padded_tap_count(n_taps, group):
    return ((n_taps + group - 1) // group) * group


def _pad_taps(taps, n_total):
    taps = list(taps)
    while len(taps) < n_total:
        taps.append(taps[-1])        # dummy taps; their packed weight rows are zero
    return tuple(taps)


# ---------------------------------------------------------------------------
# fused whole-network kernel
# ---------------------------------------------------------------------------
def _pixelrcnn_kernel(idx_ref, emb_ref, w0_ref, b0_ref, g0_ref, be0_ref,
                      w1_ref, b1_ref, w2_ref, b2_ref, w3_ref, b3_ref,
                      g_ref, be_ref, wf1_ref, bf1_ref, gf_ref, bef_ref,
                      wf2_ref, bf2_ref,
                      out_ref,
                      pad_a_ref, pad_b_ref, pat_a_ref, pat_b_ref,
                      *, B, H, W, n_res, taps_a, taps_b, group_a, group_b):
    M = B * H * W
    K = emb_ref.shape[0]
    P = PAD_OFF
    inv_m = 1.0 / M
    ones_row = jnp.ones((1, M), jnp.float32)     # hoisted once; reused by every BN

    def bn_relu(x, g, b):
        # BatchNorm2d training-mode batch stats (biased var) + ReLU.
        # Per-channel sum / sum-of-squares on the MXU (idle here) instead of
        # axis-0 VPU/XLU reductions.
        s1 = jnp.dot(ones_row, x, preferred_element_type=jnp.float32)        # (1, C)
        s2 = jnp.dot(ones_row, x * x, preferred_element_type=jnp.float32)    # (1, C)
        mean = s1 * inv_m
        var = jnp.maximum(s2 * inv_m - mean * mean, 0.0)
        return jnp.maximum((x - mean) * lax.rsqrt(var + EPS) * g + b, 0.0)

    def masked_conv7(x, pad_ref, pat_ref, taps, group, w, bias):
        # x: (M, C) -> (M, Cout). im2col with lane-dense grouped stores
        # (group*C == multiple of 128 lanes), then one MXU matmul against the
        # pre-packed (n_taps*C, Cout) weight (masked taps dropped, K zero-padded).
        C = x.shape[1]
        gw = group * C
        # interior store is sublane-aligned (offset P=8); border stays zero
        pad_ref[:, P:P + H, P:P + W, :] = x.reshape(B, H, W, C)
        # TODO(synk): dx window extraction is still a sublane-unaligned slice; a
        # pltpu.roll-based row-band variant would move that cost to the XLU.
        for gi in range(len(taps) // group):
            wins = [pad_ref[:, dy + P - 3:dy + P - 3 + H,
                            dx + P - 3:dx + P - 3 + W, :]
                    for (dy, dx) in taps[gi * group:(gi + 1) * group]]
            pat_ref[:, :, :, gi * gw:(gi + 1) * gw] = (
                wins[0] if group == 1 else jnp.concatenate(wins, axis=-1))
        patches = pat_ref[...].reshape(M, len(taps) * C)   # free relabel (W == sublane tile)
        return jnp.dot(patches, w, preferred_element_type=jnp.float32) + bias

    # zero the halo scratches once; interiors are fully overwritten on every use
    pad_a_ref[...] = jnp.zeros_like(pad_a_ref)
    pad_b_ref[...] = jnp.zeros_like(pad_b_ref)

    # --- embedding lookup: one-hot(idx) @ table on the MXU ------------------
    # (out-of-range indices map to a zero row; nn.Embedding would raise)
    idx = idx_ref[...]                                               # (M, 1) int32
    onehot = (lax.broadcasted_iota(jnp.int32, (M, K), 1) == idx).astype(jnp.float32)
    h = jnp.dot(onehot, emb_ref[...], preferred_element_type=jnp.float32)   # (M, Cin)

    # --- masked 7x7 conv 'A' + BN + ReLU -------------------------------------
    h = masked_conv7(h, pad_a_ref, pat_a_ref, taps_a, group_a, w0_ref[...], b0_ref[...])
    h = bn_relu(h, g0_ref[...], be0_ref[...])

    # --- residual blocks: rolled loop, stacked weights indexed dynamically ---
    def res_body(r, h):
        t = jnp.maximum(jnp.dot(h, w1_ref[r], preferred_element_type=jnp.float32)
                        + b1_ref[r], 0.0)                            # 1x1 'B' -> half
        t = jnp.maximum(masked_conv7(t, pad_b_ref, pat_b_ref, taps_b, group_b,
                                     w2_ref[r], b2_ref[r]), 0.0)     # 7x7 'B'
        t = jnp.maximum(jnp.dot(t, w3_ref[r], preferred_element_type=jnp.float32)
                        + b3_ref[r], 0.0)                            # 1x1 'B' -> full
        return bn_relu(t + h, g_ref[r], be_ref[r])                   # +x, BN, ReLU

    h = lax.fori_loop(0, n_res, res_body, h, unroll=False)

    # --- head -----------------------------------------------------------------
    h = jnp.dot(h, wf1_ref[...], preferred_element_type=jnp.float32) + bf1_ref[...]
    h = bn_relu(h, gf_ref[...], bef_ref[...])
    out_ref[...] = jnp.dot(h, wf2_ref[...], preferred_element_type=jnp.float32) + bf2_ref[...]


# ---------------------------------------------------------------------------
# wrapper: one pallas_call for the whole forward pass
# ---------------------------------------------------------------------------
def pixel_rcnn_forward(params, x_idx):
    B, H, W = x_idx.shape
    M = B * H * W
    K, cin = params["emb"].shape
    half = params["w1s"].shape[2]
    n_res = params["w1s"].shape[0]

    group_a = _group_size(cin)
    group_b = _group_size(half)
    # padded tap counts are encoded in the packed weight shapes (consistency)
    n_taps_a = params["w0p"].shape[0] // cin
    n_taps_b = params["w2s"].shape[1] // half
    taps_a = _pad_taps(TAPS_A7, n_taps_a)
    taps_b = _pad_taps(TAPS_B7, n_taps_b)

    hp = PAD_OFF + H                               # rows needed by the halo scratch
    wp = ((PAD_OFF + W + 3) + 7) // 8 * 8          # cols (sublane dim), rounded up to 8

    kern = functools.partial(_pixelrcnn_kernel, B=B, H=H, W=W, n_res=n_res,
                             taps_a=taps_a, taps_b=taps_b,
                             group_a=group_a, group_b=group_b)
    idx = x_idx.reshape(M, 1).astype(jnp.int32)

    # TODO(synk): on v7x the second TensorCore stays idle (single fused call);
    # a 2-core split would need a cross-core exchange of BN partial sums.
    # TODO(synk): on v5e the ~2 MB weight load is a serial prelude; a grid over
    # residual blocks with per-iteration weight BlockSpecs would hide it.
    out = pl.pallas_call(
        kern,
        out_shape=jax.ShapeDtypeStruct((M, K), jnp.float32),          # lane-dense output
        scratch_shapes=[
            pltpu.VMEM((B, hp, wp, cin), jnp.float32),                # halo for 7x7 'A'
            pltpu.VMEM((B, hp, wp, half), jnp.float32),               # halo for 7x7 'B'
            pltpu.VMEM((B, H, W, n_taps_a * cin), jnp.float32),       # im2col patch 'A'
            pltpu.VMEM((B, H, W, n_taps_b * half), jnp.float32),      # im2col patch 'B'
        ],
        compiler_params=pltpu.CompilerParams(vmem_limit_bytes=32 * 1024 * 1024),
    )(idx, params["emb"], params["w0p"], params["b0"], params["g0"], params["be0"],
      params["w1s"], params["b1s"], params["w2s"], params["b2s"],
      params["w3s"], params["b3s"], params["gs"], params["bes"],
      params["wf1"], params["bf1"], params["gf"], params["bef"],
      params["wf2"], params["bf2"])

    # NCHW like the PyTorch module
    return jnp.transpose(out.reshape(B, H, W, K), (0, 3, 1, 2))


# ---------------------------------------------------------------------------
# deterministic synthetic parameters (weights pre-packed for the im2col matmuls)
# ---------------------------------------------------------------------------
def init_params(key, in_channels=64, K=128, conv_filters=64, n_res=10):
    half = conv_filters // 2

    def conv_w(k, kh, kw, cin, cout):
        w = jax.random.normal(k, (kh, kw, cin, cout), jnp.float32)
        return w * (1.0 / np.sqrt(kh * kw * cin))

    def pack(w, taps, group):
        # drop masked taps; zero-pad K to a multiple of group*cin so every
        # grouped im2col store and the last MXU K-tile are full 128-lane wide
        cin, cout = w.shape[2], w.shape[3]
        n_pad = _padded_tap_count(len(taps), group)
        blocks = [w[dy, dx] for (dy, dx) in taps]
        if n_pad > len(taps):
            blocks.append(jnp.zeros(((n_pad - len(taps)) * cin, cout), w.dtype))
        return jnp.concatenate(blocks, axis=0)

    keys = iter(jax.random.split(key, 16 + 8 * n_res))
    p = {}
    p["emb"] = jax.random.normal(next(keys), (K, in_channels), jnp.float32)
    p["w0p"] = pack(conv_w(next(keys), 7, 7, in_channels, conv_filters),
                    TAPS_A7, _group_size(in_channels))                       # (1536, 64)
    p["b0"] = 0.01 * jax.random.normal(next(keys), (1, conv_filters), jnp.float32)
    p["g0"] = 1.0 + 0.1 * jax.random.normal(next(keys), (1, conv_filters), jnp.float32)
    p["be0"] = 0.1 * jax.random.normal(next(keys), (1, conv_filters), jnp.float32)

    w1, b1, w2, b2, w3, b3, g, be = ([] for _ in range(8))
    for _ in range(n_res):
        w1.append(conv_w(next(keys), 1, 1, conv_filters, half)[0, 0])        # (CF, half)
        b1.append(0.01 * jax.random.normal(next(keys), (1, half), jnp.float32))
        w2.append(pack(conv_w(next(keys), 7, 7, half, half),
                       TAPS_B7, _group_size(half)))                          # (896, half)
        b2.append(0.01 * jax.random.normal(next(keys), (1, half), jnp.float32))
        w3.append(conv_w(next(keys), 1, 1, half, conv_filters)[0, 0])        # (half, CF)
        b3.append(0.01 * jax.random.normal(next(keys), (1, conv_filters), jnp.float32))
        g.append(1.0 + 0.1 * jax.random.normal(next(keys), (1, conv_filters), jnp.float32))
        be.append(0.1 * jax.random.normal(next(keys), (1, conv_filters), jnp.float32))
    p["w1s"], p["b1s"] = jnp.stack(w1), jnp.stack(b1)
    p["w2s"], p["b2s"] = jnp.stack(w2), jnp.stack(b2)
    p["w3s"], p["b3s"] = jnp.stack(w3), jnp.stack(b3)
    p["gs"], p["bes"] = jnp.stack(g), jnp.stack(be)

    p["wf1"] = conv_w(next(keys), 1, 1, conv_filters, 512)[0, 0]
    p["bf1"] = 0.01 * jax.random.normal(next(keys), (1, 512), jnp.float32)
    p["gf"] = 1.0 + 0.1 * jax.random.normal(next(keys), (1, 512), jnp.float32)
    p["bef"] = 0.1 * jax.random.normal(next(keys), (1, 512), jnp.float32)
    p["wf2"] = conv_w(next(keys), 1, 1, 512, K)[0, 0]
    p["bf2"] = 0.01 * jax.random.normal(next(keys), (1, K), jnp.float32)
    return p


if __name__ == "__main__":
    B, H, W = 2, 8, 8
    in_channels, K, conv_filters, n_res = 64, 128, 64, 10

    key = jax.random.PRNGKey(0)
    pkey, xkey = jax.random.split(key)
    params = init_params(pkey, in_channels, K, conv_filters, n_res)
    x_idx = jax.random.randint(xkey, (B, H, W), 0, K, dtype=jnp.int32)

    fwd = jax.jit(pixel_rcnn_forward)
    out = fwd(params, x_idx)
    jax.block_until_ready(out)
    assert out.shape == (B, K, H, W), out.shape
    assert bool(jnp.all(jnp.isfinite(out)))
    print("KERNEL_OK")
</pallas_src>

<mosaic_0001>
module attributes {stable_mosaic.version = 11 : i64} {
  func.func @_pixelrcnn_kernel(%arg0: memref<128x1xi32, #tpu.memory_space<vmem>>, %arg1: memref<128x64xf32, #tpu.memory_space<vmem>>, %arg2: memref<1536x64xf32, #tpu.memory_space<vmem>>, %arg3: memref<1x64xf32, #tpu.memory_space<vmem>>, %arg4: memref<1x64xf32, #tpu.memory_space<vmem>>, %arg5: memref<1x64xf32, #tpu.memory_space<vmem>>, %arg6: memref<10x64x32xf32, #tpu.memory_space<vmem>>, %arg7: memref<10x1x32xf32, #tpu.memory_space<vmem>>, %arg8: memref<10x896x32xf32, #tpu.memory_space<vmem>>, %arg9: memref<10x1x32xf32, #tpu.memory_space<vmem>>, %arg10: memref<10x32x64xf32, #tpu.memory_space<vmem>>, %arg11: memref<10x1x64xf32, #tpu.memory_space<vmem>>, %arg12: memref<10x1x64xf32, #tpu.memory_space<vmem>>, %arg13: memref<10x1x64xf32, #tpu.memory_space<vmem>>, %arg14: memref<64x512xf32, #tpu.memory_space<vmem>>, %arg15: memref<1x512xf32, #tpu.memory_space<vmem>>, %arg16: memref<1x512xf32, #tpu.memory_space<vmem>>, %arg17: memref<1x512xf32, #tpu.memory_space<vmem>>, %arg18: memref<512x128xf32, #tpu.memory_space<vmem>>, %arg19: memref<1x128xf32, #tpu.memory_space<vmem>>, %arg20: memref<128x128xf32, #tpu.memory_space<vmem>>, %arg21: memref<2x16x24x64xf32, #tpu.memory_space<vmem>>, %arg22: memref<2x16x24x32xf32, #tpu.memory_space<vmem>>, %arg23: memref<2x8x8x1536xf32, #tpu.memory_space<vmem>>, %arg24: memref<2x8x8x896xf32, #tpu.memory_space<vmem>>) attributes {dimension_semantics = [], scalar_prefetch = 0 : i64, scratch_operands = 4 : i64, tpu.core_type = #tpu.core_type<tc>} {
    %cst = arith.constant 1.000000e+00 : f32
    %0 = vector.broadcast %cst : f32 to vector<1x128xf32>
    %cst_0 = arith.constant 0.000000e+00 : f32
    %1 = vector.broadcast %cst_0 : f32 to vector<2x16x24x64xf32>
    %c0 = arith.constant 0 : index
    %c0_1 = arith.constant 0 : index
    %c0_2 = arith.constant 0 : index
    %c0_3 = arith.constant 0 : index
    %2 = vector.load %arg21[%c0, %c0_1, %c0_2, %c0_3] : memref<2x16x24x64xf32, #tpu.memory_space<vmem>>, vector<2x16x24x64xf32>
    tpu.vector_store %arg21[%c0, %c0_1, %c0_2, %c0_3], %1 {strides = array<i32>} : memref<2x16x24x64xf32, #tpu.memory_space<vmem>>, vector<2x16x24x64xf32>,
    %cst_4 = arith.constant 0.000000e+00 : f32
    %3 = vector.broadcast %cst_4 : f32 to vector<2x16x24x32xf32>
    %c0_5 = arith.constant 0 : index
    %c0_6 = arith.constant 0 : index
    %c0_7 = arith.constant 0 : index
    %c0_8 = arith.constant 0 : index
    %4 = vector.load %arg22[%c0_5, %c0_6, %c0_7, %c0_8] : memref<2x16x24x32xf32, #tpu.memory_space<vmem>>, vector<2x16x24x32xf32>
    tpu.vector_store %arg22[%c0_5, %c0_6, %c0_7, %c0_8], %3 {strides = array<i32>} : memref<2x16x24x32xf32, #tpu.memory_space<vmem>>, vector<2x16x24x32xf32>,
    %c0_9 = arith.constant 0 : index
    %c0_10 = arith.constant 0 : index
    %5 = vector.load %arg0[%c0_9, %c0_10] : memref<128x1xi32, #tpu.memory_space<vmem>>, vector<128x1xi32>
    %6 = tpu.iota {dimensions = array<i32: 1>} : vector<128x128xi32>
    %7 = vector.broadcast %5 : vector<128x1xi32> to vector<128x128xi32>
    %8 = arith.cmpi eq, %6, %7 : vector<128x128xi32>
    %9 = arith.extui %8 : vector<128x128xi1> to vector<128x128xi32>
    %10 = arith.sitofp %9 : vector<128x128xi32> to vector<128x128xf32>
    %c0_11 = arith.constant 0 : index
    %c0_12 = arith.constant 0 : index
    %11 = vector.load %arg1[%c0_11, %c0_12] : memref<128x64xf32, #tpu.memory_space<vmem>>, vector<128x64xf32>
    %cst_13 = arith.constant dense<0.000000e+00> : vector<128x64xf32>
    %12 = tpu.matmul %10, %11, %cst_13 {dimension_numbers = #tpu.dot_dimension_numbers<[1], [0], [0], [1], [0, 0, 1, 1], [], []>} : vector<128x128xf32>, vector<128x64xf32>, vector<128x64xf32> -> vector<128x64xf32>
    %c0_14 = arith.constant 0 : index
    %c0_15 = arith.constant 0 : index
    %13 = vector.load %arg2[%c0_14, %c0_15] : memref<1536x64xf32, #tpu.memory_space<vmem>>, vector<1536x64xf32>
    %c0_16 = arith.constant 0 : index
    %c0_17 = arith.constant 0 : index
    %14 = vector.load %arg3[%c0_16, %c0_17] : memref<1x64xf32, #tpu.memory_space<vmem>>, vector<1x64xf32>
    %15 = vector.shape_cast %12 : vector<128x64xf32> to vector<2x8x8x64xf32>
    %c0_18 = arith.constant 0 : index
    %c8 = arith.constant 8 : index
    %c8_19 = arith.constant 8 : index
    %c0_20 = arith.constant 0 : index
    %16 = vector.load %arg21[%c0_18, %c8, %c8_19, %c0_20] : memref<2x16x24x64xf32, #tpu.memory_space<vmem>>, vector<2x8x8x64xf32>
    tpu.vector_store %arg21[%c0_18, %c8, %c8_19, %c0_20], %15 {strides = array<i32>} : memref<2x16x24x64xf32, #tpu.memory_space<vmem>>, vector<2x8x8x64xf32>,
    %c0_21 = arith.constant 0 : index
    %c5 = arith.constant 5 : index
    %c5_22 = arith.constant 5 : index
    %c0_23 = arith.constant 0 : index
    %17 = vector.load %arg21[%c0_21, %c5, %c5_22, %c0_23] : memref<2x16x24x64xf32, #tpu.memory_space<vmem>>, vector<2x8x8x64xf32>
    %c0_24 = arith.constant 0 : index
    %c5_25 = arith.constant 5 : index
    %c6 = arith.constant 6 : index
    %c0_26 = arith.constant 0 : index
    %18 = vector.load %arg21[%c0_24, %c5_25, %c6, %c0_26] : memref<2x16x24x64xf32, #tpu.memory_space<vmem>>, vector<2x8x8x64xf32>
    %19 = tpu.concatenate %17, %18 in 3 : vector<2x8x8x64xf32>, vector<2x8x8x64xf32> -> vector<2x8x8x128xf32>
    %c0_27 = arith.constant 0 : index
    %c0_28 = arith.constant 0 : index
    %c0_29 = arith.constant 0 : index
    %c0_30 = arith.constant 0 : index
    %20 = vector.load %arg23[%c0_27, %c0_28, %c0_29, %c0_30] : memref<2x8x8x1536xf32, #tpu.memory_space<vmem>>, vector<2x8x8x128xf32>
    tpu.vector_store %arg23[%c0_27, %c0_28, %c0_29, %c0_30], %19 {strides = array<i32>} : memref<2x8x8x1536xf32, #tpu.memory_space<vmem>>, vector<2x8x8x128xf32>,
    %c0_31 = arith.constant 0 : index
    %c5_32 = arith.constant 5 : index
    %c7 = arith.constant 7 : index
    %c0_33 = arith.constant 0 : index
    %21 = vector.load %arg21[%c0_31, %c5_32, %c7, %c0_33] : memref<2x16x24x64xf32, #tpu.memory_space<vmem>>, vector<2x8x8x64xf32>
    %c0_34 = arith.constant 0 : index
    %c5_35 = arith.constant 5 : index
    %c8_36 = arith.constant 8 : index
    %c0_37 = arith.constant 0 : index
    %22 = vector.load %arg21[%c0_34, %c5_35, %c8_36, %c0_37] : memref<2x16x24x64xf32, #tpu.memory_space<vmem>>, vector<2x8x8x64xf32>
    %23 = tpu.concatenate %21, %22 in 3 : vector<2x8x8x64xf32>, vector<2x8x8x64xf32> -> vector<2x8x8x128xf32>
    %c0_38 = arith.constant 0 : index
    %c0_39 = arith.constant 0 : index
    %c0_40 = arith.constant 0 : index
    %c128 = arith.constant 128 : index
    %24 = vector.load %arg23[%c0_38, %c0_39, %c0_40, %c128] : memref<2x8x8x1536xf32, #tpu.memory_space<vmem>>, vector<2x8x8x128xf32>
    tpu.vector_store %arg23[%c0_38, %c0_39, %c0_40, %c128], %23 {strides = array<i32>} : memref<2x8x8x1536xf32, #tpu.memory_space<vmem>>, vector<2x8x8x128xf32>,
    %c0_41 = arith.constant 0 : index
    %c5_42 = arith.constant 5 : index
    %c9 = arith.constant 9 : index
    %c0_43 = arith.constant 0 : index
    %25 = vector.load %arg21[%c0_41, %c5_42, %c9, %c0_43] : memref<2x16x24x64xf32, #tpu.memory_space<vmem>>, vector<2x8x8x64xf32>
    %c0_44 = arith.constant 0 : index
    %c5_45 = arith.constant 5 : index
    %c10 = arith.constant 10 : index
    %c0_46 = arith.constant 0 : index
    %26 = vector.load %arg21[%c0_44, %c5_45, %c10, %c0_46] : memref<2x16x24x64xf32, #tpu.memory_space<vmem>>, vector<2x8x8x64xf32>
    %27 = tpu.concatenate %25, %26 in 3 : vector<2x8x8x64xf32>, vector<2x8x8x64xf32> -> vector<2x8x8x128xf32>
    %c0_47 = arith.constant 0 : index
    %c0_48 = arith.constant 0 : index
    %c0_49 = arith.constant 0 : index
    %c256 = arith.constant 256 : index
    %28 = vector.load %arg23[%c0_47, %c0_48, %c0_49, %c256] : memref<2x8x8x1536xf32, #tpu.memory_space<vmem>>, vector<2x8x8x128xf32>
    tpu.vector_store %arg23[%c0_47, %c0_48, %c0_49, %c256], %27 {strides = array<i32>} : memref<2x8x8x1536xf32, #tpu.memory_space<vmem>>, vector<2x8x8x128xf32>,
    %c0_50 = arith.constant 0 : index
    %c5_51 = arith.constant 5 : index
    %c11 = arith.constant 11 : index
    %c0_52 = arith.constant 0 : index
    %29 = vector.load %arg21[%c0_50, %c5_51, %c11, %c0_52] : memref<2x16x24x64xf32, #tpu.memory_space<vmem>>, vector<2x8x8x64xf32>
    %c0_53 = arith.constant 0 : index
    %c6_54 = arith.constant 6 : index
    %c5_55 = arith.constant 5 : index
    %c0_56 = arith.constant 0 : index
    %30 = vector.load %arg21[%c0_53, %c6_54, %c5_55, %c0_56] : memref<2x16x24x64xf32, #tpu.memory_space<vmem>>, vector<2x8x8x64xf32>
    %31 = tpu.concatenate %29, %30 in 3 : vector<2x8x8x64xf32>, vector<2x8x8x64xf32> -> vector<2x8x8x128xf32>
    %c0_57 = arith.constant 0 : index
    %c0_58 = arith.constant 0 : index
    %c0_59 = arith.constant 0 : index
    %c384 = arith.constant 384 : index
    %32 = vector.load %arg23[%c0_57, %c0_58, %c0_59, %c384] : memref<2x8x8x1536xf32, #tpu.memory_space<vmem>>, vector<2x8x8x128xf32>
    tpu.vector_store %arg23[%c0_57, %c0_58, %c0_59, %c384], %31 {strides = array<i32>} : memref<2x8x8x1536xf32, #tpu.memory_space<vmem>>, vector<2x8x8x128xf32>,
    %c0_60 = arith.constant 0 : index
    %c6_61 = arith.constant 6 : index
    %c6_62 = arith.constant 6 : index
    %c0_63 = arith.constant 0 : index
    %33 = vector.load %arg21[%c0_60, %c6_61, %c6_62, %c0_63] : memref<2x16x24x64xf32, #tpu.memory_space<vmem>>, vector<2x8x8x64xf32>
    %c0_64 = arith.constant 0 : index
    %c6_65 = arith.constant 6 : index
    %c7_66 = arith.constant 7 : index
    %c0_67 = arith.constant 0 : index
    %34 = vector.load %arg21[%c0_64, %c6_65, %c7_66, %c0_67] : memref<2x16x24x64xf32, #tpu.memory_space<vmem>>, vector<2x8x8x64xf32>
    %35 = tpu.concatenate %33, %34 in 3 : vector<2x8x8x64xf32>, vector<2x8x8x64xf32> -> vector<2x8x8x128xf32>
    %c0_68 = arith.constant 0 : index
    %c0_69 = arith.constant 0 : index
    %c0_70 = arith.constant 0 : index
    %c512 = arith.constant 512 : index
    %36 = vector.load %arg23[%c0_68, %c0_69, %c0_70, %c512] : memref<2x8x8x1536xf32, #tpu.memory_space<vmem>>, vector<2x8x8x128xf32>
    tpu.vector_store %arg23[%c0_68, %c0_69, %c0_70, %c512], %35 {strides = array<i32>} : memref<2x8x8x1536xf32, #tpu.memory_space<vmem>>, vector<2x8x8x128xf32>,
    %c0_71 = arith.constant 0 : index
    %c6_72 = arith.constant 6 : index
    %c8_73 = arith.constant 8 : index
    %c0_74 = arith.constant 0 : index
    %37 = vector.load %arg21[%c0_71, %c6_72, %c8_73, %c0_74] : memref<2x16x24x64xf32, #tpu.memory_space<vmem>>, vector<2x8x8x64xf32>
    %c0_75 = arith.constant 0 : index
    %c6_76 = arith.constant 6 : index
    %c9_77 = arith.constant 9 : index
    %c0_78 = arith.constant 0 : index
    %38 = vector.load %arg21[%c0_75, %c6_76, %c9_77, %c0_78] : memref<2x16x24x64xf32, #tpu.memory_space<vmem>>, vector<2x8x8x64xf32>
    %39 = tpu.concatenate %37, %38 in 3 : vector<2x8x8x64xf32>, vector<2x8x8x64xf32> -> vector<2x8x8x128xf32>
    %c0_79 = arith.constant 0 : index
    %c0_80 = arith.constant 0 : index
    %c0_81 = arith.constant 0 : index
    %c640 = arith.constant 640 : index
    %40 = vector.load %arg23[%c0_79, %c0_80, %c0_81, %c640] : memref<2x8x8x1536xf32, #tpu.memory_space<vmem>>, vector<2x8x8x128xf32>
    tpu.vector_store %arg23[%c0_79, %c0_80, %c0_81, %c640], %39 {strides = array<i32>} : memref<2x8x8x1536xf32, #tpu.memory_space<vmem>>, vector<2x8x8x128xf32>,
    %c0_82 = arith.constant 0 : index
    %c6_83 = arith.constant 6 : index
    %c10_84 = arith.constant 10 : index
    %c0_85 = arith.constant 0 : index
    %41 = vector.load %arg21[%c0_82, %c6_83, %c10_84, %c0_85] : memref<2x16x24x64xf32, #tpu.memory_space<vmem>>, vector<2x8x8x64xf32>
    %c0_86 = arith.constant 0 : index
    %c6_87 = arith.constant 6 : index
    %c11_88 = arith.constant 11 : index
    %c0_89 = arith.constant 0 : index
    %42 = vector.load %arg21[%c0_86, %c6_87, %c11_88, %c0_89] : memref<2x16x24x64xf32, #tpu.memory_space<vmem>>, vector<2x8x8x64xf32>
    %43 = tpu.concatenate %41, %42 in 3 : vector<2x8x8x64xf32>, vector<2x8x8x64xf32> -> vector<2x8x8x128xf32>
    %c0_90 = arith.constant 0 : index
    %c0_91 = arith.constant 0 : index
    %c0_92 = arith.constant 0 : index
    %c768 = arith.constant 768 : index
    %44 = vector.load %arg23[%c0_90, %c0_91, %c0_92, %c768] : memref<2x8x8x1536xf32, #tpu.memory_space<vmem>>, vector<2x8x8x128xf32>
    tpu.vector_store %arg23[%c0_90, %c0_91, %c0_92, %c768], %43 {strides = array<i32>} : memref<2x8x8x1536xf32, #tpu.memory_space<vmem>>, vector<2x8x8x128xf32>,
    %c0_93 = arith.constant 0 : index
    %c7_94 = arith.constant 7 : index
    %c5_95 = arith.constant 5 : index
    %c0_96 = arith.constant 0 : index
    %45 = vector.load %arg21[%c0_93, %c7_94, %c5_95, %c0_96] : memref<2x16x24x64xf32, #tpu.memory_space<vmem>>, vector<2x8x8x64xf32>
    %c0_97 = arith.constant 0 : index
    %c7_98 = arith.constant 7 : index
    %c6_99 = arith.constant 6 : index
    %c0_100 = arith.constant 0 : index
    %46 = vector.load %arg21[%c0_97, %c7_98, %c6_99, %c0_100] : memref<2x16x24x64xf32, #tpu.memory_space<vmem>>, vector<2x8x8x64xf32>
    %47 = tpu.concatenate %45, %46 in 3 : vector<2x8x8x64xf32>, vector<2x8x8x64xf32> -> vector<2x8x8x128xf32>
    %c0_101 = arith.constant 0 : index
    %c0_102 = arith.constant 0 : index
    %c0_103 = arith.constant 0 : index
    %c896 = arith.constant 896 : index
    %48 = vector.load %arg23[%c0_101, %c0_102, %c0_103, %c896] : memref<2x8x8x1536xf32, #tpu.memory_space<vmem>>, vector<2x8x8x128xf32>
    tpu.vector_store %arg23[%c0_101, %c0_102, %c0_103, %c896], %47 {strides = array<i32>} : memref<2x8x8x1536xf32, #tpu.memory_space<vmem>>, vector<2x8x8x128xf32>,
    %c0_104 = arith.constant 0 : index
    %c7_105 = arith.constant 7 : index
    %c7_106 = arith.constant 7 : index
    %c0_107 = arith.constant 0 : index
    %49 = vector.load %arg21[%c0_104, %c7_105, %c7_106, %c0_107] : memref<2x16x24x64xf32, #tpu.memory_space<vmem>>, vector<2x8x8x64xf32>
    %c0_108 = arith.constant 0 : index
    %c7_109 = arith.constant 7 : index
    %c8_110 = arith.constant 8 : index
    %c0_111 = arith.constant 0 : index
    %50 = vector.load %arg21[%c0_108, %c7_109, %c8_110, %c0_111] : memref<2x16x24x64xf32, #tpu.memory_space<vmem>>, vector<2x8x8x64xf32>
    %51 = tpu.concatenate %49, %50 in 3 : vector<2x8x8x64xf32>, vector<2x8x8x64xf32> -> vector<2x8x8x128xf32>
    %c0_112 = arith.constant 0 : index
    %c0_113 = arith.constant 0 : index
    %c0_114 = arith.constant 0 : index
    %c1024 = arith.constant 1024 : index
    %52 = vector.load %arg23[%c0_112, %c0_113, %c0_114, %c1024] : memref<2x8x8x1536xf32, #tpu.memory_space<vmem>>, vector<2x8x8x128xf32>
    tpu.vector_store %arg23[%c0_112, %c0_113, %c0_114, %c1024], %51 {strides = array<i32>} : memref<2x8x8x1536xf32, #tpu.memory_space<vmem>>, vector<2x8x8x128xf32>,
    %c0_115 = arith.constant 0 : index
    %c7_116 = arith.constant 7 : index
    %c9_117 = arith.constant 9 : index
    %c0_118 = arith.constant 0 : index
    %53 = vector.load %arg21[%c0_115, %c7_116, %c9_117, %c0_118] : memref<2x16x24x64xf32, #tpu.memory_space<vmem>>, vector<2x8x8x64xf32>
    %c0_119 = arith.constant 0 : index
    %c7_120 = arith.constant 7 : index
    %c10_121 = arith.constant 10 : index
    %c0_122 = arith.constant 0 : index
    %54 = vector.load %arg21[%c0_119, %c7_120, %c10_121, %c0_122] : memref<2x16x24x64xf32, #tpu.memory_space<vmem>>, vector<2x8x8x64xf32>
    %55 = tpu.concatenate %53, %54 in 3 : vector<2x8x8x64xf32>, vector<2x8x8x64xf32> -> vector<2x8x8x128xf32>
    %c0_123 = arith.constant 0 : index
    %c0_124 = arith.constant 0 : index
    %c0_125 = arith.constant 0 : index
    %c1152 = arith.constant 1152 : index
    %56 = vector.load %arg23[%c0_123, %c0_124, %c0_125, %c1152] : memref<2x8x8x1536xf32, #tpu.memory_space<vmem>>, vector<2x8x8x128xf32>
    tpu.vector_store %arg23[%c0_123, %c0_124, %c0_125, %c1152], %55 {strides = array<i32>} : memref<2x8x8x1536xf32, #tpu.memory_space<vmem>>, vector<2x8x8x128xf32>,
    %c0_126 = arith.constant 0 : index
    %c7_127 = arith.constant 7 : index
    %c11_128 = arith.constant 11 : index
    %c0_129 = arith.constant 0 : index
    %57 = vector.load %arg21[%c0_126, %c7_127, %c11_128, %c0_129] : memref<2x16x24x64xf32, #tpu.memory_space<vmem>>, vector<2x8x8x64xf32>
    %c0_130 = arith.constant 0 : index
    %c8_131 = arith.constant 8 : index
    %c5_132 = arith.constant 5 : index
    %c0_133 = arith.constant 0 : index
    %58 = vector.load %arg21[%c0_130, %c8_131, %c5_132, %c0_133] : memref<2x16x24x64xf32, #tpu.memory_space<vmem>>, vector<2x8x8x64xf32>
    %59 = tpu.concatenate %57, %58 in 3 : vector<2x8x8x64xf32>, vector<2x8x8x64xf32> -> vector<2x8x8x128xf32>
    %c0_134 = arith.constant 0 : index
    %c0_135 = arith.constant 0 : index
    %c0_136 = arith.constant 0 : index
    %c1280 = arith.constant 1280 : index
    %60 = vector.load %arg23[%c0_134, %c0_135, %c0_136, %c1280] : memref<2x8x8x1536xf32, #tpu.memory_space<vmem>>, vector<2x8x8x128xf32>
    tpu.vector_store %arg23[%c0_134, %c0_135, %c0_136, %c1280], %59 {strides = array<i32>} : memref<2x8x8x1536xf32, #tpu.memory_space<vmem>>, vector<2x8x8x128xf32>,
    %c0_137 = arith.constant 0 : index
    %c8_138 = arith.constant 8 : index
    %c6_139 = arith.constant 6 : index
    %c0_140 = arith.constant 0 : index
    %61 = vector.load %arg21[%c0_137, %c8_138, %c6_139, %c0_140] : memref<2x16x24x64xf32, #tpu.memory_space<vmem>>, vector<2x8x8x64xf32>
    %c0_141 = arith.constant 0 : index
    %c8_142 = arith.constant 8 : index
    %c7_143 = arith.constant 7 : index
    %c0_144 = arith.constant 0 : index
    %62 = vector.load %arg21[%c0_141, %c8_142, %c7_143, %c0_144] : memref<2x16x24x64xf32, #tpu.memory_space<vmem>>, vector<2x8x8x64xf32>
    %63 = tpu.concatenate %61, %62 in 3 : vector<2x8x8x64xf32>, vector<2x8x8x64xf32> -> vector<2x8x8x128xf32>
    %c0_145 = arith.constant 0 : index
    %c0_146 = arith.constant 0 : index
    %c0_147 = arith.constant 0 : index
    %c1408 = arith.constant 1408 : index
    %64 = vector.load %arg23[%c0_145, %c0_146, %c0_147, %c1408] : memref<2x8x8x1536xf32, #tpu.memory_space<vmem>>, vector<2x8x8x128xf32>
    tpu.vector_store %arg23[%c0_145, %c0_146, %c0_147, %c1408], %63 {strides = array<i32>} : memref<2x8x8x1536xf32, #tpu.memory_space<vmem>>, vector<2x8x8x128xf32>,
    %c0_148 = arith.constant 0 : index
    %c0_149 = arith.constant 0 : index
    %c0_150 = arith.constant 0 : index
    %c0_151 = arith.constant 0 : index
    %65 = vector.load %arg23[%c0_148, %c0_149, %c0_150, %c0_151] : memref<2x8x8x1536xf32, #tpu.memory_space<vmem>>, vector<2x8x8x1536xf32>
    %66 = vector.shape_cast %65 : vector<2x8x8x1536xf32> to vector<128x1536xf32>
    %cst_152 = arith.constant dense<0.000000e+00> : vector<128x64xf32>
    %67 = tpu.matmul %66, %13, %cst_152 {dimension_numbers = #tpu.dot_dimension_numbers<[1], [0], [0], [1], [0, 0, 1, 1], [], []>} : vector<128x1536xf32>, vector<1536x64xf32>, vector<128x64xf32> -> vector<128x64xf32>
    %68 = vector.broadcast %14 : vector<1x64xf32> to vector<128x64xf32>
    %69 = arith.addf %67, %68 : vector<128x64xf32>
    %c0_153 = arith.constant 0 : index
    %c0_154 = arith.constant 0 : index
    %70 = vector.load %arg4[%c0_153, %c0_154] : memref<1x64xf32, #tpu.memory_space<vmem>>, vector<1x64xf32>
    %c0_155 = arith.constant 0 : index
    %c0_156 = arith.constant 0 : index
    %71 = vector.load %arg5[%c0_155, %c0_156] : memref<1x64xf32, #tpu.memory_space<vmem>>, vector<1x64xf32>
    %cst_157 = arith.constant dense<0.000000e+00> : vector<1x64xf32>
    %72 = tpu.matmul %0, %69, %cst_157 {dimension_numbers = #tpu.dot_dimension_numbers<[1], [0], [0], [1], [0, 0, 1, 1], [], []>} : vector<1x128xf32>, vector<128x64xf32>, vector<1x64xf32> -> vector<1x64xf32>
    %73 = arith.mulf %69, %69 : vector<128x64xf32>
    %cst_158 = arith.constant dense<0.000000e+00> : vector<1x64xf32>
    %74 = tpu.matmul %0, %73, %cst_158 {dimension_numbers = #tpu.dot_dimension_numbers<[1], [0], [0], [1], [0, 0, 1, 1], [], []>} : vector<1x128xf32>, vector<128x64xf32>, vector<1x64xf32> -> vector<1x64xf32>
    %cst_159 = arith.constant 7.812500e-03 : f32
    %75 = vector.broadcast %cst_159 : f32 to vector<1x64xf32>
    %76 = arith.mulf %72, %75 : vector<1x64xf32>
    %cst_160 = arith.constant 7.812500e-03 : f32
    %77 = vector.broadcast %cst_160 : f32 to vector<1x64xf32>
    %78 = arith.mulf %74, %77 : vector<1x64xf32>
    %79 = arith.mulf %76, %76 : vector<1x64xf32>
    %80 = arith.subf %78, %79 : vector<1x64xf32>
    %cst_161 = arith.constant 0.000000e+00 : f32
    %81 = vector.broadcast %cst_161 : f32 to vector<1x64xf32>
    %82 = arith.maximumf %80, %81 : vector<1x64xf32>
    %83 = vector.broadcast %76 : vector<1x64xf32> to vector<128x64xf32>
    %84 = arith.subf %69, %83 : vector<128x64xf32>
    %cst_162 = arith.constant 9.99999974E-6 : f32
    %85 = vector.broadcast %cst_162 : f32 to vector<1x64xf32>
    %86 = arith.addf %82, %85 : vector<1x64xf32>
    %87 = math.rsqrt %86 : vector<1x64xf32>
    %88 = vector.broadcast %87 : vector<1x64xf32> to vector<128x64xf32>
    %89 = arith.mulf %84, %88 : vector<128x64xf32>
    %90 = vector.broadcast %70 : vector<1x64xf32> to vector<128x64xf32>
    %91 = arith.mulf %89, %90 : vector<128x64xf32>
    %92 = vector.broadcast %71 : vector<1x64xf32> to vector<128x64xf32>
    %93 = arith.addf %91, %92 : vector<128x64xf32>
    %cst_163 = arith.constant 0.000000e+00 : f32
    %94 = vector.broadcast %cst_163 : f32 to vector<128x64xf32>
    %95 = arith.maximumf %93, %94 : vector<128x64xf32>
    %c0_i32 = arith.constant 0 : i32
    %c10_i32 = arith.constant 10 : i32
    %96 = arith.addi %c0_i32, %c10_i32 : i32
    %c1_i32 = arith.constant 1 : i32
    %97 = scf.for %arg25 = %c0_i32 to %96 step %c1_i32 iter_args(%arg26 = %95) -> (vector<128x64xf32>)  : i32 {
      %135 = arith.index_cast %arg25 : i32 to index
      %c0_188 = arith.constant 0 : index
      %c0_189 = arith.constant 0 : index
      %136 = vector.load %arg6[%135, %c0_188, %c0_189] : memref<10x64x32xf32, #tpu.memory_space<vmem>>, vector<1x64x32xf32>
      %137 = vector.shape_cast %136 : vector<1x64x32xf32> to vector<64x32xf32>
      %cst_190 = arith.constant dense<0.000000e+00> : vector<128x32xf32>
      %138 = tpu.matmul %arg26, %137, %cst_190 {dimension_numbers = #tpu.dot_dimension_numbers<[1], [0], [0], [1], [0, 0, 1, 1], [], []>} : vector<128x64xf32>, vector<64x32xf32>, vector<128x32xf32> -> vector<128x32xf32>
      %139 = arith.index_cast %arg25 : i32 to index
      %c0_191 = arith.constant 0 : index
      %c0_192 = arith.constant 0 : index
      %140 = vector.load %arg7[%139, %c0_191, %c0_192] : memref<10x1x32xf32, #tpu.memory_space<vmem>>, vector<1x1x32xf32>
      %141 = vector.shape_cast %140 : vector<1x1x32xf32> to vector<1x32xf32>
      %142 = vector.broadcast %141 : vector<1x32xf32> to vector<128x32xf32>
      %143 = arith.addf %138, %142 : vector<128x32xf32>
      %cst_193 = arith.constant 0.000000e+00 : f32
      %144 = vector.broadcast %cst_193 : f32 to vector<128x32xf32>
      %145 = arith.maximumf %143, %144 : vector<128x32xf32>
      %146 = arith.index_cast %arg25 : i32 to index
      %c0_194 = arith.constant 0 : index
      %c0_195 = arith.constant 0 : index
      %147 = vector.load %arg8[%146, %c0_194, %c0_195] : memref<10x896x32xf32, #tpu.memory_space<vmem>>, vector<1x896x32xf32>
      %148 = vector.shape_cast %147 : vector<1x896x32xf32> to vector<896x32xf32>
      %149 = arith.index_cast %arg25 : i32 to index
      %c0_196 = arith.constant 0 : index
      %c0_197 = arith.constant 0 : index
      %150 = vector.load %arg9[%149, %c0_196, %c0_197] : memref<10x1x32xf32, #tpu.memory_space<vmem>>, vector<1x1x32xf32>
      %151 = vector.shape_cast %150 : vector<1x1x32xf32> to vector<1x32xf32>
      %152 = vector.shape_cast %145 : vector<128x32xf32> to vector<2x8x8x32xf32>
      %c0_198 = arith.constant 0 : index
      %c8_199 = arith.constant 8 : index
      %c8_200 = arith.constant 8 : index
      %c0_201 = arith.constant 0 : index
      %153 = vector.load %arg22[%c0_198, %c8_199, %c8_200, %c0_201] : memref<2x16x24x32xf32, #tpu.memory_space<vmem>>, vector<2x8x8x32xf32>
      tpu.vector_store %arg22[%c0_198, %c8_199, %c8_200, %c0_201], %152 {strides = array<i32>} : memref<2x16x24x32xf32, #tpu.memory_space<vmem>>, vector<2x8x8x32xf32>,
      %c0_202 = arith.constant 0 : index
      %c5_203 = arith.constant 5 : index
      %c5_204 = arith.constant 5 : index
      %c0_205 = arith.constant 0 : index
      %154 = vector.load %arg22[%c0_202, %c5_203, %c5_204, %c0_205] : memref<2x16x24x32xf32, #tpu.memory_space<vmem>>, vector<2x8x8x32xf32>
      %c0_206 = arith.constant 0 : index
      %c5_207 = arith.constant 5 : index
      %c6_208 = arith.constant 6 : index
      %c0_209 = arith.constant 0 : index
      %155 = vector.load %arg22[%c0_206, %c5_207, %c6_208, %c0_209] : memref<2x16x24x32xf32, #tpu.memory_space<vmem>>, vector<2x8x8x32xf32>
      %c0_210 = arith.constant 0 : index
      %c5_211 = arith.constant 5 : index
      %c7_212 = arith.constant 7 : index
      %c0_213 = arith.constant 0 : index
      %156 = vector.load %arg22[%c0_210, %c5_211, %c7_212, %c0_213] : memref<2x16x24x32xf32, #tpu.memory_space<vmem>>, vector<2x8x8x32xf32>
      %c0_214 = arith.constant 0 : index
      %c5_215 = arith.constant 5 : index
      %c8_216 = arith.constant 8 : index
      %c0_217 = arith.constant 0 : index
      %157 = vector.load %arg22[%c0_214, %c5_215, %c8_216, %c0_217] : memref<2x16x24x32xf32, #tpu.memory_space<vmem>>, vector<2x8x8x32xf32>
      %158 = tpu.concatenate %154, %155, %156, %157 in 3 : vector<2x8x8x32xf32>, vector<2x8x8x32xf32>, vector<2x8x8x32xf32>, vector<2x8x8x32xf32> -> vector<2x8x8x128xf32>
      %c0_218 = arith.constant 0 : index
      %c0_219 = arith.constant 0 : index
      %c0_220 = arith.constant 0 : index
      %c0_221 = arith.constant 0 : index
      %159 = vector.load %arg24[%c0_218, %c0_219, %c0_220, %c0_221] : memref<2x8x8x896xf32, #tpu.memory_space<vmem>>, vector<2x8x8x128xf32>
      tpu.vector_store %arg24[%c0_218, %c0_219, %c0_220, %c0_221], %158 {strides = array<i32>} : memref<2x8x8x896xf32, #tpu.memory_space<vmem>>, vector<2x8x8x128xf32>,
      %c0_222 = arith.constant 0 : index
      %c5_223 = arith.constant 5 : index
      %c9_224 = arith.constant 9 : index
      %c0_225 = arith.constant 0 : index
      %160 = vector.load %arg22[%c0_222, %c5_223, %c9_224, %c0_225] : memref<2x16x24x32xf32, #tpu.memory_space<vmem>>, vector<2x8x8x32xf32>
      %c0_226 = arith.constant 0 : index
      %c5_227 = arith.constant 5 : index
      %c10_228 = arith.constant 10 : index
      %c0_229 = arith.constant 0 : index
      %161 = vector.load %arg22[%c0_226, %c5_227, %c10_228, %c0_229] : memref<2x16x24x32xf32, #tpu.memory_space<vmem>>, vector<2x8x8x32xf32>
      %c0_230 = arith.constant 0 : index
      %c5_231 = arith.constant 5 : index
      %c11_232 = arith.constant 11 : index
      %c0_233 = arith.constant 0 : index
      %162 = vector.load %arg22[%c0_230, %c5_231, %c11_232, %c0_233] : memref<2x16x24x32xf32, #tpu.memory_space<vmem>>, vector<2x8x8x32xf32>
      %c0_234 = arith.constant 0 : index
      %c6_235 = arith.constant 6 : index
      %c5_236 = arith.constant 5 : index
      %c0_237 = arith.constant 0 : index
      %163 = vector.load %arg22[%c0_234, %c6_235, %c5_236, %c0_237] : memref<2x16x24x32xf32, #tpu.memory_space<vmem>>, vector<2x8x8x32xf32>
      %164 = tpu.concatenate %160, %161, %162, %163 in 3 : vector<2x8x8x32xf32>, vector<2x8x8x32xf32>, vector<2x8x8x32xf32>, vector<2x8x8x32xf32> -> vector<2x8x8x128xf32>
      %c0_238 = arith.constant 0 : index
      %c0_239 = arith.constant 0 : index
      %c0_240 = arith.constant 0 : index
      %c128_241 = arith.constant 128 : index
      %165 = vector.load %arg24[%c0_238, %c0_239, %c0_240, %c128_241] : memref<2x8x8x896xf32, #tpu.memory_space<vmem>>, vector<2x8x8x128xf32>
      tpu.vector_store %arg24[%c0_238, %c0_239, %c0_240, %c128_241], %164 {strides = array<i32>} : memref<2x8x8x896xf32, #tpu.memory_space<vmem>>, vector<2x8x8x128xf32>,
      %c0_242 = arith.constant 0 : index
      %c6_243 = arith.constant 6 : index
      %c6_244 = arith.constant 6 : index
      %c0_245 = arith.constant 0 : index
      %166 = vector.load %arg22[%c0_242, %c6_243, %c6_244, %c0_245] : memref<2x16x24x32xf32, #tpu.memory_space<vmem>>, vector<2x8x8x32xf32>
      %c0_246 = arith.constant 0 : index
      %c6_247 = arith.constant 6 : index
      %c7_248 = arith.constant 7 : index
      %c0_249 = arith.constant 0 : index
      %167 = vector.load %arg22[%c0_246, %c6_247, %c7_248, %c0_249] : memref<2x16x24x32xf32, #tpu.memory_space<vmem>>, vector<2x8x8x32xf32>
      %c0_250 = arith.constant 0 : index
      %c6_251 = arith.constant 6 : index
      %c8_252 = arith.constant 8 : index
      %c0_253 = arith.constant 0 : index
      %168 = vector.load %arg22[%c0_250, %c6_251, %c8_252, %c0_253] : memref<2x16x24x32xf32, #tpu.memory_space<vmem>>, vector<2x8x8x32xf32>
      %c0_254 = arith.constant 0 : index
      %c6_255 = arith.constant 6 : index
      %c9_256 = arith.constant 9 : index
      %c0_257 = arith.constant 0 : index
      %169 = vector.load %arg22[%c0_254, %c6_255, %c9_256, %c0_257] : memref<2x16x24x32xf32, #tpu.memory_space<vmem>>, vector<2x8x8x32xf32>
      %170 = tpu.concatenate %166, %167, %168, %169 in 3 : vector<2x8x8x32xf32>, vector<2x8x8x32xf32>, vector<2x8x8x32xf32>, vector<2x8x8x32xf32> -> vector<2x8x8x128xf32>
      %c0_258 = arith.constant 0 : index
      %c0_259 = arith.constant 0 : index
      %c0_260 = arith.constant 0 : index
      %c256_261 = arith.constant 256 : index
      %171 = vector.load %arg24[%c0_258, %c0_259, %c0_260, %c256_261] : memref<2x8x8x896xf32, #tpu.memory_space<vmem>>, vector<2x8x8x128xf32>
      tpu.vector_store %arg24[%c0_258, %c0_259, %c0_260, %c256_261], %170 {strides = array<i32>} : memref<2x8x8x896xf32, #tpu.memory_space<vmem>>, vector<2x8x8x128xf32>,
      %c0_262 = arith.constant 0 : index
      %c6_263 = arith.constant 6 : index
      %c10_264 = arith.constant 10 : index
      %c0_265 = arith.constant 0 : index
      %172 = vector.load %arg22[%c0_262, %c6_263, %c10_264, %c0_265] : memref<2x16x24x32xf32, #tpu.memory_space<vmem>>, vector<2x8x8x32xf32>
      %c0_266 = arith.constant 0 : index
      %c6_267 = arith.constant 6 : index
      %c11_268 = arith.constant 11 : index
      %c0_269 = arith.constant 0 : index
      %173 = vector.load %arg22[%c0_266, %c6_267, %c11_268, %c0_269] : memref<2x16x24x32xf32, #tpu.memory_space<vmem>>, vector<2x8x8x32xf32>
      %c0_270 = arith.constant 0 : index
      %c7_271 = arith.constant 7 : index
      %c5_272 = arith.constant 5 : index
      %c0_273 = arith.constant 0 : index
      %174 = vector.load %arg22[%c0_270, %c7_271, %c5_272, %c0_273] : memref<2x16x24x32xf32, #tpu.memory_space<vmem>>, vector<2x8x8x32xf32>
      %c0_274 = arith.constant 0 : index
      %c7_275 = arith.constant 7 : index
      %c6_276 = arith.constant 6 : index
      %c0_277 = arith.constant 0 : index
      %175 = vector.load %arg22[%c0_274, %c7_275, %c6_276, %c0_277] : memref<2x16x24x32xf32, #tpu.memory_space<vmem>>, vector<2x8x8x32xf32>
      %176 = tpu.concatenate %172, %173, %174, %175 in 3 : vector<2x8x8x32xf32>, vector<2x8x8x32xf32>, vector<2x8x8x32xf32>, vector<2x8x8x32xf32> -> vector<2x8x8x128xf32>
      %c0_278 = arith.constant 0 : index
      %c0_279 = arith.constant 0 : index
      %c0_280 = arith.constant 0 : index
      %c384_281 = arith.constant 384 : index
      %177 = vector.load %arg24[%c0_278, %c0_279, %c0_280, %c384_281] : memref<2x8x8x896xf32, #tpu.memory_space<vmem>>, vector<2x8x8x128xf32>
      tpu.vector_store %arg24[%c0_278, %c0_279, %c0_280, %c384_281], %176 {strides = array<i32>} : memref<2x8x8x896xf32, #tpu.memory_space<vmem>>, vector<2x8x8x128xf32>,
      %c0_282 = arith.constant 0 : index
      %c7_283 = arith.constant 7 : index
      %c7_284 = arith.constant 7 : index
      %c0_285 = arith.constant 0 : index
      %178 = vector.load %arg22[%c0_282, %c7_283, %c7_284, %c0_285] : memref<2x16x24x32xf32, #tpu.memory_space<vmem>>, vector<2x8x8x32xf32>
      %c0_286 = arith.constant 0 : index
      %c7_287 = arith.constant 7 : index
      %c8_288 = arith.constant 8 : index
      %c0_289 = arith.constant 0 : index
      %179 = vector.load %arg22[%c0_286, %c7_287, %c8_288, %c0_289] : memref<2x16x24x32xf32, #tpu.memory_space<vmem>>, vector<2x8x8x32xf32>
      %c0_290 = arith.constant 0 : index
      %c7_291 = arith.constant 7 : index
      %c9_292 = arith.constant 9 : index
      %c0_293 = arith.constant 0 : index
      %180 = vector.load %arg22[%c0_290, %c7_291, %c9_292, %c0_293] : memref<2x16x24x32xf32, #tpu.memory_space<vmem>>, vector<2x8x8x32xf32>
      %c0_294 = arith.constant 0 : index
      %c7_295 = arith.constant 7 : index
      %c10_296 = arith.constant 10 : index
      %c0_297 = arith.constant 0 : index
      %181 = vector.load %arg22[%c0_294, %c7_295, %c10_296, %c0_297] : memref<2x16x24x32xf32, #tpu.memory_space<vmem>>, vector<2x8x8x32xf32>
      %182 = tpu.concatenate %178, %179, %180, %181 in 3 : vector<2x8x8x32xf32>, vector<2x8x8x32xf32>, vector<2x8x8x32xf32>, vector<2x8x8x32xf32> -> vector<2x8x8x128xf32>
      %c0_298 = arith.constant 0 : index
      %c0_299 = arith.constant 0 : index
      %c0_300 = arith.constant 0 : index
      %c512_301 = arith.constant 512 : index
      %183 = vector.load %arg24[%c0_298, %c0_299, %c0_300, %c512_301] : memref<2x8x8x896xf32, #tpu.memory_space<vmem>>, vector<2x8x8x128xf32>
      tpu.vector_store %arg24[%c0_298, %c0_299, %c0_300, %c512_301], %182 {strides = array<i32>} : memref<2x8x8x896xf32, #tpu.memory_space<vmem>>, vector<2x8x8x128xf32>,
      %c0_302 = arith.constant 0 : index
      %c7_303 = arith.constant 7 : index
      %c11_304 = arith.constant 11 : index
      %c0_305 = arith.constant 0 : index
      %184 = vector.load %arg22[%c0_302, %c7_303, %c11_304, %c0_305] : memref<2x16x24x32xf32, #tpu.memory_space<vmem>>, vector<2x8x8x32xf32>
      %c0_306 = arith.constant 0 : index
      %c8_307 = arith.constant 8 : index
      %c5_308 = arith.constant 5 : index
      %c0_309 = arith.constant 0 : index
      %185 = vector.load %arg22[%c0_306, %c8_307, %c5_308, %c0_309] : memref<2x16x24x32xf32, #tpu.memory_space<vmem>>, vector<2x8x8x32xf32>
      %c0_310 = arith.constant 0 : index
      %c8_311 = arith.constant 8 : index
      %c6_312 = arith.constant 6 : index
      %c0_313 = arith.constant 0 : index
      %186 = vector.load %arg22[%c0_310, %c8_311, %c6_312, %c0_313] : memref<2x16x24x32xf32, #tpu.memory_space<vmem>>, vector<2x8x8x32xf32>
      %c0_314 = arith.constant 0 : index
      %c8_315 = arith.constant 8 : index
      %c7_316 = arith.constant 7 : index
      %c0_317 = arith.constant 0 : index
      %187 = vector.load %arg22[%c0_314, %c8_315, %c7_316, %c0_317] : memref<2x16x24x32xf32, #tpu.memory_space<vmem>>, vector<2x8x8x32xf32>
      %188 = tpu.concatenate %184, %185, %186, %187 in 3 : vector<2x8x8x32xf32>, vector<2x8x8x32xf32>, vector<2x8x8x32xf32>, vector<2x8x8x32xf32> -> vector<2x8x8x128xf32>
      %c0_318 = arith.constant 0 : index
      %c0_319 = arith.constant 0 : index
      %c0_320 = arith.constant 0 : index
      %c640_321 = arith.constant 640 : index
      %189 = vector.load %arg24[%c0_318, %c0_319, %c0_320, %c640_321] : memref<2x8x8x896xf32, #tpu.memory_space<vmem>>, vector<2x8x8x128xf32>
      tpu.vector_store %arg24[%c0_318, %c0_319, %c0_320, %c640_321], %188 {strides = array<i32>} : memref<2x8x8x896xf32, #tpu.memory_space<vmem>>, vector<2x8x8x128xf32>,
      %c0_322 = arith.constant 0 : index
      %c8_323 = arith.constant 8 : index
      %c8_324 = arith.constant 8 : index
      %c0_325 = arith.constant 0 : index
      %190 = vector.load %arg22[%c0_322, %c8_323, %c8_324, %c0_325] : memref<2x16x24x32xf32, #tpu.memory_space<vmem>>, vector<2x8x8x32xf32>
      %c0_326 = arith.constant 0 : index
      %c8_327 = arith.constant 8 : index
      %c8_328 = arith.constant 8 : index
      %c0_329 = arith.constant 0 : index
      %191 = vector.load %arg22[%c0_326, %c8_327, %c8_328, %c0_329] : memref<2x16x24x32xf32, #tpu.memory_space<vmem>>, vector<2x8x8x32xf32>
      %c0_330 = arith.constant 0 : index
      %c8_331 = arith.constant 8 : index
      %c8_332 = arith.constant 8 : index
      %c0_333 = arith.constant 0 : index
      %192 = vector.load %arg22[%c0_330, %c8_331, %c8_332, %c0_333] : memref<2x16x24x32xf32, #tpu.memory_space<vmem>>, vector<2x8x8x32xf32>
      %c0_334 = arith.constant 0 : index
      %c8_335 = arith.constant 8 : index
      %c8_336 = arith.constant 8 : index
      %c0_337 = arith.constant 0 : index
      %193 = vector.load %arg22[%c0_334, %c8_335, %c8_336, %c0_337] : memref<2x16x24x32xf32, #tpu.memory_space<vmem>>, vector<2x8x8x32xf32>
      %194 = tpu.concatenate %190, %191, %192, %193 in 3 : vector<2x8x8x32xf32>, vector<2x8x8x32xf32>, vector<2x8x8x32xf32>, vector<2x8x8x32xf32> -> vector<2x8x8x128xf32>
      %c0_338 = arith.constant 0 : index
      %c0_339 = arith.constant 0 : index
      %c0_340 = arith.constant 0 : index
      %c768_341 = arith.constant 768 : index
      %195 = vector.load %arg24[%c0_338, %c0_339, %c0_340, %c768_341] : memref<2x8x8x896xf32, #tpu.memory_space<vmem>>, vector<2x8x8x128xf32>
      tpu.vector_store %arg24[%c0_338, %c0_339, %c0_340, %c768_341], %194 {strides = array<i32>} : memref<2x8x8x896xf32, #tpu.memory_space<vmem>>, vector<2x8x8x128xf32>,
      %c0_342 = arith.constant 0 : index
      %c0_343 = arith.constant 0 : index
      %c0_344 = arith.constant 0 : index
      %c0_345 = arith.constant 0 : index
      %196 = vector.load %arg24[%c0_342, %c0_343, %c0_344, %c0_345] : memref<2x8x8x896xf32, #tpu.memory_space<vmem>>, vector<2x8x8x896xf32>
      %197 = vector.shape_cast %196 : vector<2x8x8x896xf32> to vector<128x896xf32>
      %cst_346 = arith.constant dense<0.000000e+00> : vector<128x32xf32>
      %198 = tpu.matmul %197, %148, %cst_346 {dimension_numbers = #tpu.dot_dimension_numbers<[1], [0], [0], [1], [0, 0, 1, 1], [], []>} : vector<128x896xf32>, vector<896x32xf32>, vector<128x32xf32> -> vector<128x32xf32>
      %199 = vector.broadcast %151 : vector<1x32xf32> to vector<128x32xf32>
      %200 = arith.addf %198, %199 : vector<128x32xf32>
      %cst_347 = arith.constant 0.000000e+00 : f32
      %201 = vector.broadcast %cst_347 : f32 to vector<128x32xf32>
      %202 = arith.maximumf %200, %201 : vector<128x32xf32>
      %203 = arith.index_cast %arg25 : i32 to index
      %c0_348 = arith.constant 0 : index
      %c0_349 = arith.constant 0 : index
      %204 = vector.load %arg10[%203, %c0_348, %c0_349] : memref<10x32x64xf32, #tpu.memory_space<vmem>>, vector<1x32x64xf32>
      %205 = vector.shape_cast %204 : vector<1x32x64xf32> to vector<32x64xf32>
      %cst_350 = arith.constant dense<0.000000e+00> : vector<128x64xf32>
      %206 = tpu.matmul %202, %205, %cst_350 {dimension_numbers = #tpu.dot_dimension_numbers<[1], [0], [0], [1], [0, 0, 1, 1], [], []>} : vector<128x32xf32>, vector<32x64xf32>, vector<128x64xf32> -> vector<128x64xf32>
      %207 = arith.index_cast %arg25 : i32 to index
      %c0_351 = arith.constant 0 : index
      %c0_352 = arith.constant 0 : index
      %208 = vector.load %arg11[%207, %c0_351, %c0_352] : memref<10x1x64xf32, #tpu.memory_space<vmem>>, vector<1x1x64xf32>
      %209 = vector.shape_cast %208 : vector<1x1x64xf32> to vector<1x64xf32>
      %210 = vector.broadcast %209 : vector<1x64xf32> to vector<128x64xf32>
      %211 = arith.addf %206, %210 : vector<128x64xf32>
      %cst_353 = arith.constant 0.000000e+00 : f32
      %212 = vector.broadcast %cst_353 : f32 to vector<128x64xf32>
      %213 = arith.maximumf %211, %212 : vector<128x64xf32>
      %214 = arith.addf %213, %arg26 : vector<128x64xf32>
      %215 = arith.index_cast %arg25 : i32 to index
      %c0_354 = arith.constant 0 : index
      %c0_355 = arith.constant 0 : index
      %216 = vector.load %arg12[%215, %c0_354, %c0_355] : memref<10x1x64xf32, #tpu.memory_space<vmem>>, vector<1x1x64xf32>
      %217 = vector.shape_cast %216 : vector<1x1x64xf32> to vector<1x64xf32>
      %218 = arith.index_cast %arg25 : i32 to index
      %c0_356 = arith.constant 0 : index
      %c0_357 = arith.constant 0 : index
      %219 = vector.load %arg13[%218, %c0_356, %c0_357] : memref<10x1x64xf32, #tpu.memory_space<vmem>>, vector<1x1x64xf32>
      %220 = vector.shape_cast %219 : vector<1x1x64xf32> to vector<1x64xf32>
      %cst_358 = arith.constant dense<0.000000e+00> : vector<1x64xf32>
      %221 = tpu.matmul %0, %214, %cst_358 {dimension_numbers = #tpu.dot_dimension_numbers<[1], [0], [0], [1], [0, 0, 1, 1], [], []>} : vector<1x128xf32>, vector<128x64xf32>, vector<1x64xf32> -> vector<1x64xf32>
      %222 = arith.mulf %214, %214 : vector<128x64xf32>
      %cst_359 = arith.constant dense<0.000000e+00> : vector<1x64xf32>
      %223 = tpu.matmul %0, %222, %cst_359 {dimension_numbers = #tpu.dot_dimension_numbers<[1], [0], [0], [1], [0, 0, 1, 1], [], []>} : vector<1x128xf32>, vector<128x64xf32>, vector<1x64xf32> -> vector<1x64xf32>
      %cst_360 = arith.constant 7.812500e-03 : f32
      %224 = vector.broadcast %cst_360 : f32 to vector<1x64xf32>
      %225 = arith.mulf %221, %224 : vector<1x64xf32>
      %cst_361 = arith.constant 7.812500e-03 : f32
      %226 = vector.broadcast %cst_361 : f32 to vector<1x64xf32>
      %227 = arith.mulf %223, %226 : vector<1x64xf32>
      %228 = arith.mulf %225, %225 : vector<1x64xf32>
      %229 = arith.subf %227, %228 : vector<1x64xf32>
      %cst_362 = arith.constant 0.000000e+00 : f32
      %230 = vector.broadcast %cst_362 : f32 to vector<1x64xf32>
      %231 = arith.maximumf %229, %230 : vector<1x64xf32>
      %232 = vector.broadcast %225 : vector<1x64xf32> to vector<128x64xf32>
      %233 = arith.subf %214, %232 : vector<128x64xf32>
      %cst_363 = arith.constant 9.99999974E-6 : f32
      %234 = vector.broadcast %cst_363 : f32 to vector<1x64xf32>
      %235 = arith.addf %231, %234 : vector<1x64xf32>
      %236 = math.rsqrt %235 : vector<1x64xf32>
      %237 = vector.broadcast %236 : vector<1x64xf32> to vector<128x64xf32>
      %238 = arith.mulf %233, %237 : vector<128x64xf32>
      %239 = vector.broadcast %217 : vector<1x64xf32> to vector<128x64xf32>
      %240 = arith.mulf %238, %239 : vector<128x64xf32>
      %241 = vector.broadcast %220 : vector<1x64xf32> to vector<128x64xf32>
      %242 = arith.addf %240, %241 : vector<128x64xf32>
      %cst_364 = arith.constant 0.000000e+00 : f32
      %243 = vector.broadcast %cst_364 : f32 to vector<128x64xf32>
      %244 = arith.maximumf %242, %243 : vector<128x64xf32>
      scf.yield %244 : vector<128x64xf32>
    }
    %c10_i32_164 = arith.constant 10 : i32
    %c0_165 = arith.constant 0 : index
    %c0_166 = arith.constant 0 : index
    %98 = vector.load %arg14[%c0_165, %c0_166] : memref<64x512xf32, #tpu.memory_space<vmem>>, vector<64x512xf32>
    %cst_167 = arith.constant dense<0.000000e+00> : vector<128x512xf32>
    %99 = tpu.matmul %97, %98, %cst_167 {dimension_numbers = #tpu.dot_dimension_numbers<[1], [0], [0], [1], [0, 0, 1, 1], [], []>} : vector<128x64xf32>, vector<64x512xf32>, vector<128x512xf32> -> vector<128x512xf32>
    %c0_168 = arith.constant 0 : index
    %c0_169 = arith.constant 0 : index
    %100 = vector.load %arg15[%c0_168, %c0_169] : memref<1x512xf32, #tpu.memory_space<vmem>>, vector<1x512xf32>
    %101 = vector.broadcast %100 : vector<1x512xf32> to vector<128x512xf32>
    %102 = arith.addf %99, %101 : vector<128x512xf32>
    %c0_170 = arith.constant 0 : index
    %c0_171 = arith.constant 0 : index
    %103 = vector.load %arg16[%c0_170, %c0_171] : memref<1x512xf32, #tpu.memory_space<vmem>>, vector<1x512xf32>
    %c0_172 = arith.constant 0 : index
    %c0_173 = arith.constant 0 : index
    %104 = vector.load %arg17[%c0_172, %c0_173] : memref<1x512xf32, #tpu.memory_space<vmem>>, vector<1x512xf32>
    %cst_174 = arith.constant dense<0.000000e+00> : vector<1x512xf32>
    %105 = tpu.matmul %0, %102, %cst_174 {dimension_numbers = #tpu.dot_dimension_numbers<[1], [0], [0], [1], [0, 0, 1, 1], [], []>} : vector<1x128xf32>, vector<128x512xf32>, vector<1x512xf32> -> vector<1x512xf32>
    %106 = arith.mulf %102, %102 : vector<128x512xf32>
    %cst_175 = arith.constant dense<0.000000e+00> : vector<1x512xf32>
    %107 = tpu.matmul %0, %106, %cst_175 {dimension_numbers = #tpu.dot_dimension_numbers<[1], [0], [0], [1], [0, 0, 1, 1], [], []>} : vector<1x128xf32>, vector<128x512xf32>, vector<1x512xf32> -> vector<1x512xf32>
    %cst_176 = arith.constant 7.812500e-03 : f32
    %108 = vector.broadcast %cst_176 : f32 to vector<1x512xf32>
    %109 = arith.mulf %105, %108 : vector<1x512xf32>
    %cst_177 = arith.constant 7.812500e-03 : f32
    %110 = vector.broadcast %cst_177 : f32 to vector<1x512xf32>
    %111 = arith.mulf %107, %110 : vector<1x512xf32>
    %112 = arith.mulf %109, %109 : vector<1x512xf32>
    %113 = arith.subf %111, %112 : vector<1x512xf32>
    %cst_178 = arith.constant 0.000000e+00 : f32
    %114 = vector.broadcast %cst_178 : f32 to vector<1x512xf32>
    %115 = arith.maximumf %113, %114 : vector<1x512xf32>
    %116 = vector.broadcast %109 : vector<1x512xf32> to vector<128x512xf32>
    %117 = arith.subf %102, %116 : vector<128x512xf32>
    %cst_179 = arith.constant 9.99999974E-6 : f32
    %118 = vector.broadcast %cst_179 : f32 to vector<1x512xf32>
    %119 = arith.addf %115, %118 : vector<1x512xf32>
    %120 = math.rsqrt %119 : vector<1x512xf32>
    %121 = vector.broadcast %120 : vector<1x512xf32> to vector<128x512xf32>
    %122 = arith.mulf %117, %121 : vector<128x512xf32>
    %123 = vector.broadcast %103 : vector<1x512xf32> to vector<128x512xf32>
    %124 = arith.mulf %122, %123 : vector<128x512xf32>
    %125 = vector.broadcast %104 : vector<1x512xf32> to vector<128x512xf32>
    %126 = arith.addf %124, %125 : vector<128x512xf32>
    %cst_180 = arith.constant 0.000000e+00 : f32
    %127 = vector.broadcast %cst_180 : f32 to vector<128x512xf32>
    %128 = arith.maximumf %126, %127 : vector<128x512xf32>
    %c0_181 = arith.constant 0 : index
    %c0_182 = arith.constant 0 : index
    %129 = vector.load %arg18[%c0_181, %c0_182] : memref<512x128xf32, #tpu.memory_space<vmem>>, vector<512x128xf32>
    %cst_183 = arith.constant dense<0.000000e+00> : vector<128x128xf32>
    %130 = tpu.matmul %128, %129, %cst_183 {dimension_numbers = #tpu.dot_dimension_numbers<[1], [0], [0], [1], [0, 0, 1, 1], [], []>} : vector<128x512xf32>, vector<512x128xf32>, vector<128x128xf32> -> vector<128x128xf32>
    %c0_184 = arith.constant 0 : index
    %c0_185 = arith.constant 0 : index
    %131 = vector.load %arg19[%c0_184, %c0_185] : memref<1x128xf32, #tpu.memory_space<vmem>>, vector<1x128xf32>
    %132 = vector.broadcast %131 : vector<1x128xf32> to vector<128x128xf32>
    %133 = arith.addf %130, %132 : vector<128x128xf32>
    %c0_186 = arith.constant 0 : index
    %c0_187 = arith.constant 0 : index
    %134 = vector.load %arg20[%c0_186, %c0_187] : memref<128x128xf32, #tpu.memory_space<vmem>>, vector<128x128xf32>
    tpu.vector_store %arg20[%c0_186, %c0_187], %133 {strides = array<i32>} : memref<128x128xf32, #tpu.memory_space<vmem>>, vector<128x128xf32>,
    return
  }
}

</mosaic_0001>

<bundles_post_ra>
// kernel: pixel_rcnn_forward.1
= control target key start
LH: loop header
LB: loop body
LE: loop exit
PB: predicated region body
PF: predicated region fallthrough
CT: control target
= control target key end

     0   :  { %s18064_s0 = inlined_call_operand.vmem [shape: s32[128,1], index: 0, kind: input, shape index: {}]   ;;  %s18065_s1 = inlined_call_operand.vmem [shape: f32[128,64], index: 1, kind: input, shape index: {}]   ;;  %s18066_s2 = inlined_call_operand.vmem [shape: f32[1536,64], index: 2, kind: input, shape index: {}]   ;;  %s18067_s3 = inlined_call_operand.vmem [shape: f32[1,64], index: 3, kind: input, shape index: {}]   ;;  %s18068_s4 = inlined_call_operand.vmem [shape: f32[1,64], index: 4, kind: input, shape index: {}]   ;;  %s18069_s5 = inlined_call_operand.vmem [shape: f32[1,64], index: 5, kind: input, shape index: {}]   ;;  %s18070_s6 = inlined_call_operand.vmem [shape: f32[10,64,32], index: 6, kind: input, shape index: {}]   ;;  %s18071_s7 = inlined_call_operand.vmem [shape: f32[10,1,32], index: 7, kind: input, shape index: {}]   ;;  %s18072_s8 = inlined_call_operand.vmem [shape: f32[10,896,32], index: 8, kind: input, shape index: {}]   ;;  %s18073_s9 = inlined_call_operand.vmem [shape: f32[10,1,32], index: 9, kind: input, shape index: {}]   ;;  %s18074_s10 = inlined_call_operand.vmem [shape: f32[10,32,64], index: 10, kind: input, shape index: {}]   ;;  %s18075_s11 = inlined_call_operand.vmem [shape: f32[10,1,64], index: 11, kind: input, shape index: {}]   ;;  %s18076_s12 = inlined_call_operand.vmem [shape: f32[10,1,64], index: 12, kind: input, shape index: {}]   ;;  %s18077_s13 = inlined_call_operand.vmem [shape: f32[10,1,64], index: 13, kind: input, shape index: {}]   ;;  %s18078_s14 = inlined_call_operand.vmem [shape: f32[64,512], index: 14, kind: input, shape index: {}]   ;;  %s18079_s15 = inlined_call_operand.vmem [shape: f32[1,512], index: 15, kind: input, shape index: {}]   ;;  %s18080_s16 = inlined_call_operand.vmem [shape: f32[1,512], index: 16, kind: input, shape index: {}]   ;;  %s18081_s17 = inlined_call_operand.vmem [shape: f32[1,512], index: 17, kind: input, shape index: {}]   ;;  %s18082_s18 = inlined_call_operand.vmem [shape: f32[512,128], index: 18, kind: input, shape index: {}]   ;;  %s18083_s19 = inlined_call_operand.vmem [shape: f32[1,128], index: 19, kind: input, shape index: {}]   ;;  %s18084_s20 = inlined_call_operand.hbm [shape: f32[128,128], index: 20, kind: output, shape index: {}]  }
   0x1   :  { %18239 = sst [smem:[#allocation105_spill]] %s18064_s0 }
   0x2   :  { %18240 = sst [smem:[#allocation106_spill]] %s18065_s1 }
   0x3   :  { %18241 = sst [smem:[#allocation107_spill]] %s18066_s2 }
   0x4   :  { %18242 = sst [smem:[#allocation108_spill]] %s18067_s3 }
   0x5   :  { %18243 = sst [smem:[#allocation109_spill]] %s18068_s4 }
   0x6   :  { %s18244_s23 = sld [smem:[#allocation105_spill]]  ;;  %v12195_v2 = vmov 0  }
   0x7   :  { %10674 = vset.pattern.permute.xlu1 %v12195_v2  ;;  %10673 = vset.pattern.permute.xlu0 %v12195_v2 }
   0xc   :  { %v262_v0 = vld [vmem:[%s18244_s23 + $0x10] sm:$0xff]  ;;  %v260_v1 = vld [vmem:[%s18244_s23] sm:$0xff]  ;;  %v263_v3 = vld [vmem:[%s18244_s23 + $0x18] sm:$0xff] }
   0xd   :  { %285 = vperm.xlu1 %10674, %v262_v0   ;;  %279 = vperm.xlu0 %10673, %v260_v1   ;;  %v261_v4 = vld [vmem:[%s18244_s23 + $0x8] sm:$0xff] }
   0xe   :  { %25 = vsyncpa [#allocation7], 0  ;;  %s18245_s29 = sld [smem:[#allocation106_spill]]  ;;  %v265_v7 = vld [vmem:[%s18244_s23 + $0x28] sm:$0xff]  ;;  %v264_v8 = vld [vmem:[%s18244_s23 + $0x20] sm:$0xff]  ;;  %vm163_vm0 = vcmask 261120   ;;  %v18089_v34 = vlaneseq }
   0xf   :  { %v267_v10 = vld [vmem:[%s18244_s23 + $0x38] sm:$0xff]  ;;  %v266_v11 = vld [vmem:[%s18244_s23 + $0x30] sm:$0xff]  ;;  %v269_v14 = vld [vmem:[%s18244_s23 + $0x48] sm:$0xff]  ;;  %vm66_vm1 = vcmask 523264   ;;  %v18093_v29 = vmov 0.0   ;;  %v18090_v38 = vmov 1.0  }
  0x10   :  { %v268_v15 = vld [vmem:[%s18244_s23 + $0x40] sm:$0xff]  ;;  %v271_v17 = vld [vmem:[%s18244_s23 + $0x58] sm:$0xff]  ;;  %v270_v18 = vld [vmem:[%s18244_s23 + $0x50] sm:$0xff]  ;;  %95 = vst.msk [vmem:[#allocation2 + $0xe0] sm:$0xff] %vm66_vm1, %v18093_v29  ;;  %v277_v35 = vand.u32 127, %v18089_v34  ;;  %s18246_s1 = sld [smem:[#allocation107_spill]] }
  0x11   :  { %288 = vperm.xlu1 %10674, %v263_v3   ;;  %282 = vperm.xlu0 %10673, %v261_v4   ;;  %v273_v21 = vld [vmem:[%s18244_s23 + $0x68] sm:$0xff]  ;;  %v272_v22 = vld [vmem:[%s18244_s23 + $0x60] sm:$0xff]  ;;  %v275_v24 = vld [vmem:[%s18244_s23 + $0x78] sm:$0xff]  ;;  %179 = vst.msk [vmem:[#allocation3 + $0x78] sm:$0xff] %vm163_vm0, %v18093_v29  ;;  %s18264_s28 = sld [smem:[#allocation108_spill]] }
  0x12   :  { %v274_v25 = vld [vmem:[%s18244_s23 + $0x70] sm:$0xff]  ;;  %180 = vst.msk [vmem:[#allocation3 + $0x80] sm:$0xff] %vm163_vm0, %v18093_v29  ;;  %181 = vst.msk [vmem:[#allocation3 + $0x88] sm:$0xff] %vm163_vm0, %v18093_v29  ;;  %s18298_s30 = sld [smem:[#allocation109_spill]] }
  0x13   :  { %182 = vst.msk [vmem:[#allocation3 + $0x90] sm:$0xff] %vm163_vm0, %v18093_v29  ;;  %183 = vst.msk [vmem:[#allocation3 + $0x98] sm:$0xff] %vm163_vm0, %v18093_v29 }
  0x14   :  { %v389_v5 = vld [vmem:[%s18245_s29 + $0x78] sm:$0xff]  ;;  %v388_v6 = vld [vmem:[%s18245_s29 + $0x70] sm:$0xff]  ;;  %v387_v9 = vld [vmem:[%s18245_s29 + $0x68] sm:$0xff]  ;;  %184 = vst.msk [vmem:[#allocation3 + $0xa0] sm:$0xff] %vm163_vm0, %v18093_v29 }
  0x15   :  { %10199 = vmatprep.subr.mxu0 %v389_v5  ;;  %294 = vperm.xlu1 %10674, %v265_v7   ;;  %v386_v12 = vld [vmem:[%s18245_s29 + $0x60] sm:$0xff]  ;;  %v385_v13 = vld [vmem:[%s18245_s29 + $0x58] sm:$0xff]  ;;  %v384_v16 = vld [vmem:[%s18245_s29 + $0x50] sm:$0xff]  ;;  %185 = vst.msk [vmem:[#allocation3 + $0xa8] sm:$0xff] %vm163_vm0, %v18093_v29 }
  0x16   :  { %10200 = vmatpush3.msra.mxu0 %v389_v5  ;;  %291 = vperm.xlu0 %10673, %v264_v8   ;;  %v383_v19 = vld [vmem:[%s18245_s29 + $0x48] sm:$0xff]  ;;  %v382_v20 = vld [vmem:[%s18245_s29 + $0x40] sm:$0xff]  ;;  %v381_v23 = vld [vmem:[%s18245_s29 + $0x38] sm:$0xff]  ;;  %186 = vst.msk [vmem:[#allocation3 + $0xb0] sm:$0xff] %vm163_vm0, %v18093_v29 }
  0x17   :  { %10201 = vmatprep.subr.mxu0 %v388_v6  ;;  %v380_v26 = vld [vmem:[%s18245_s29 + $0x30] sm:$0xff]  ;;  %v12395_v27 = vld [vmem:[%s18245_s29 + $0x28] sm:$0xff]  ;;  %v12400_v28 = vld [vmem:[%s18245_s29 + $0x20] sm:$0xff]  ;;  %187 = vst.msk [vmem:[#allocation3 + $0xb8] sm:$0xff] %vm163_vm0, %v18093_v29 }
  0x18   :  { %10202 = vmatpush3.msra.mxu0 %v388_v6  ;;  %188 = vst.msk [vmem:[#allocation3 + $0xc0] sm:$0xff] %vm163_vm0, %v18093_v29  ;;  %189 = vst.msk [vmem:[#allocation3 + $0xc8] sm:$0xff] %vm163_vm0, %v18093_v29  ;;  %v377_v30 = vld [vmem:[%s18245_s29 + $0x18] sm:$0xff]  ;;  %v376_v31 = vld [vmem:[%s18245_s29 + $0x10] sm:$0xff] }
  0x19   :  { %10203 = vmatprep.subr.mxu0 %v387_v9  ;;  %300 = vperm.xlu1 %10674, %v267_v10   ;;  %190 = vst.msk [vmem:[#allocation3 + $0xd0] sm:$0xff] %vm163_vm0, %v18093_v29  ;;  %191 = vst.msk [vmem:[#allocation3 + $0xd8] sm:$0xff] %vm163_vm0, %v18093_v29  ;;  %v375_v32 = vld [vmem:[%s18245_s29 + $0x8] sm:$0xff]  ;;  %v374_v33 = vld [vmem:[%s18245_s29] sm:$0xff]  ;;  %s12198_s29 = smov 64  }
  0x1a   :  { %10204 = vmatpush3.msra.mxu0 %v387_v9  ;;  %297 = vperm.xlu0 %10673, %v266_v11   ;;  %192 = vst.msk [vmem:[#allocation3 + $0xe0] sm:$0xff] %vm163_vm0, %v18093_v29  ;;  %193 = vst.msk [vmem:[#allocation3 + $0xe8] sm:$0xff] %vm163_vm0, %v18093_v29  ;;  %v566_v9 = vld [vmem:[%s18246_s1 + $0xf8] sm:$0xff]  ;;  %v565_v11 = vld [vmem:[%s18246_s1 + $0xf0] sm:$0xff] }
  0x1b   :  { %10205 = vmatprep.subr.mxu0 %v386_v12  ;;  %194 = vst.msk [vmem:[#allocation3 + $0xf0] sm:$0xff] %vm163_vm0, %v18093_v29  ;;  %195 = vst.msk [vmem:[#allocation3 + $0xf8] sm:$0xff] %vm163_vm0, %v18093_v29  ;;  %v550_v10 = vld [vmem:[%s18246_s1 + $0x78] sm:$0xff]  ;;  %9175 = vmatprep.subr.mxu1 %v566_v9 }
  0x1c   :  { %10206 = vmatpush3.msra.mxu0 %v386_v12  ;;  %196 = vst.msk [vmem:[#allocation3 + $0x100] sm:$0xff] %vm163_vm0, %v18093_v29  ;;  %197 = vst.msk [vmem:[#allocation3 + $0x108] sm:$0xff] %vm163_vm0, %v18093_v29  ;;  %v598_v12 = vld [vmem:[%s18246_s1 + $0x1f8] sm:$0xff]  ;;  %9176 = vmatpush3.msra.mxu1 %v550_v10  ;;  %v552_v10 = vld [vmem:[%s18246_s1 + $0x88] sm:$0xff] }
  0x1d   :  { %10207 = vmatprep.subr.mxu0 %v385_v13  ;;  %306 = vperm.xlu1 %10674, %v269_v14   ;;  %198 = vst.msk [vmem:[#allocation3 + $0x110] sm:$0xff] %vm163_vm0, %v18093_v29  ;;  %199 = vst.msk [vmem:[#allocation3 + $0x118] sm:$0xff] %vm163_vm0, %v18093_v29  ;;  %v582_v14 = vld [vmem:[%s18246_s1 + $0x178] sm:$0xff] }
  0x1e   :  { %303 = vperm.xlu0 %10673, %v268_v15   ;;  %10208 = vmatpush3.msra.mxu0 %v385_v13  ;;  %200 = vst.msk [vmem:[#allocation3 + $0x120] sm:$0xff] %vm163_vm0, %v18093_v29  ;;  %201 = vst.msk [vmem:[#allocation3 + $0x128] sm:$0xff] %vm163_vm0, %v18093_v29  ;;  %v549_v13 = vld [vmem:[%s18246_s1 + $0x70] sm:$0xff]  ;;  %v564_v15 = vld [vmem:[%s18246_s1 + $0xe8] sm:$0xff] }
  0x1f   :  { %10209 = vmatprep.subr.mxu0 %v384_v16  ;;  %202 = vst.msk [vmem:[#allocation3 + $0x130] sm:$0xff] %vm163_vm0, %v18093_v29  ;;  %203 = vst.msk [vmem:[#allocation3 + $0x138] sm:$0xff] %vm163_vm0, %v18093_v29  ;;  %9177 = vmatprep.subr.mxu1 %v565_v11  ;;  %v570_v9 = vld [vmem:[%s18246_s1 + $0x118] sm:$0xff] }
  0x20   :  { %10210 = vmatpush3.msra.mxu0 %v384_v16  ;;  %204 = vst.msk [vmem:[#allocation3 + $0x140] sm:$0xff] %vm163_vm0, %v18093_v29  ;;  %205 = vst.msk [vmem:[#allocation3 + $0x148] sm:$0xff] %vm163_vm0, %v18093_v29  ;;  %9178 = vmatpush3.msra.mxu1 %v549_v13  ;;  %v597_v16 = vld [vmem:[%s18246_s1 + $0x1f0] sm:$0xff]  ;;  %v536_v13 = vld [vmem:[%s18246_s1 + $0x8] sm:$0xff] }
  0x21   :  { %312 = vperm.xlu1 %10674, %v271_v17   ;;  %10211 = vmatprep.subr.mxu0 %v383_v19  ;;  %206 = vst.msk [vmem:[#allocation3 + $0x150] sm:$0xff] %vm163_vm0, %v18093_v29  ;;  %207 = vst.msk [vmem:[#allocation3 + $0x158] sm:$0xff] %vm163_vm0, %v18093_v29  ;;  %v548_v17 = vld [vmem:[%s18246_s1 + $0x68] sm:$0xff] }
  0x22   :  { %309 = vperm.xlu0 %10673, %v270_v18   ;;  %10212 = vmatpush3.msra.mxu0 %v383_v19  ;;  %208 = vst.msk [vmem:[#allocation3 + $0x160] sm:$0xff] %vm163_vm0, %v18093_v29  ;;  %209 = vst.msk [vmem:[#allocation3 + $0x168] sm:$0xff] %vm163_vm0, %v18093_v29  ;;  %v581_v18 = vld [vmem:[%s18246_s1 + $0x170] sm:$0xff]  ;;  %v563_v19 = vld [vmem:[%s18246_s1 + $0xe0] sm:$0xff] }
  0x23   :  { %10213 = vmatprep.subr.mxu0 %v382_v20  ;;  %210 = vst.msk [vmem:[#allocation3 + $0x170] sm:$0xff] %vm163_vm0, %v18093_v29  ;;  %227 = vst.msk [vmem:[#allocation3 + $0x1f8] sm:$0xff] %vm163_vm0, %v18093_v29  ;;  %9179 = vmatprep.subr.mxu1 %v564_v15 }
  0x24   :  { %10214 = vmatpush3.msra.mxu0 %v382_v20  ;;  %228 = vst.msk [vmem:[#allocation3 + $0x200] sm:$0xff] %vm163_vm0, %v18093_v29  ;;  %229 = vst.msk [vmem:[#allocation3 + $0x208] sm:$0xff] %vm163_vm0, %v18093_v29  ;;  %v596_v20 = vld [vmem:[%s18246_s1 + $0x1e8] sm:$0xff]  ;;  %9180 = vmatpush3.msra.mxu1 %v548_v17  ;;  %v551_v17 = vld [vmem:[%s18246_s1 + $0x80] sm:$0xff] }
  0x25   :  { %318 = vperm.xlu1 %10674, %v273_v21   ;;  %10215 = vmatprep.subr.mxu0 %v381_v23  ;;  %230 = vst.msk [vmem:[#allocation3 + $0x210] sm:$0xff] %vm163_vm0, %v18093_v29  ;;  %231 = vst.msk [vmem:[#allocation3 + $0x218] sm:$0xff] %vm163_vm0, %v18093_v29  ;;  %v547_v21 = vld [vmem:[%s18246_s1 + $0x60] sm:$0xff] }
  0x26   :  { %315 = vperm.xlu0 %10673, %v272_v22   ;;  %10216 = vmatpush3.msra.mxu0 %v381_v23  ;;  %232 = vst.msk [vmem:[#allocation3 + $0x220] sm:$0xff] %vm163_vm0, %v18093_v29  ;;  %233 = vst.msk [vmem:[#allocation3 + $0x228] sm:$0xff] %vm163_vm0, %v18093_v29  ;;  %v580_v22 = vld [vmem:[%s18246_s1 + $0x168] sm:$0xff]  ;;  %v562_v23 = vld [vmem:[%s18246_s1 + $0xd8] sm:$0xff] }
  0x27   :  { %10217 = vmatprep.subr.mxu0 %v380_v26  ;;  %234 = vst.msk [vmem:[#allocation3 + $0x230] sm:$0xff] %vm163_vm0, %v18093_v29  ;;  %235 = vst.msk [vmem:[#allocation3 + $0x238] sm:$0xff] %vm163_vm0, %v18093_v29  ;;  %9181 = vmatprep.subr.mxu1 %v563_v19 }
  0x28   :  { %10218 = vmatpush3.msra.mxu0 %v380_v26  ;;  %236 = vst.msk [vmem:[#allocation3 + $0x240] sm:$0xff] %vm163_vm0, %v18093_v29  ;;  %237 = vst.msk [vmem:[#allocation3 + $0x248] sm:$0xff] %vm163_vm0, %v18093_v29  ;;  %9182 = vmatpush3.msra.mxu1 %v547_v21  ;;  %v579_v26 = vld [vmem:[%s18246_s1 + $0x160] sm:$0xff] }
  0x29   :  { %324 = vperm.xlu1 %10674, %v275_v24   ;;  %238 = vst.msk [vmem:[#allocation3 + $0x250] sm:$0xff] %vm163_vm0, %v18093_v29  ;;  %239 = vst.msk [vmem:[#allocation3 + $0x258] sm:$0xff] %vm163_vm0, %v18093_v29  ;;  %10219 = vmatprep.subr.mxu0 %v12395_v27  ;;  %v595_v24 = vld [vmem:[%s18246_s1 + $0x1e0] sm:$0xff] }
  0x2a   :  { %321 = vperm.xlu0 %10673, %v274_v25   ;;  %240 = vst.msk [vmem:[#allocation3 + $0x260] sm:$0xff] %vm163_vm0, %v18093_v29  ;;  %241 = vst.msk [vmem:[#allocation3 + $0x268] sm:$0xff] %vm163_vm0, %v18093_v29  ;;  %10220 = vmatpush3.msra.mxu0 %v12395_v27  ;;  %v546_v25 = vld [vmem:[%s18246_s1 + $0x58] sm:$0xff]  ;;  %v561_v27 = vld [vmem:[%s18246_s1 + $0xd0] sm:$0xff] }
  0x2b   :  { %242 = vst.msk [vmem:[#allocation3 + $0x270] sm:$0xff] %vm163_vm0, %v18093_v29  ;;  %243 = vst.msk [vmem:[#allocation3 + $0x278] sm:$0xff] %vm163_vm0, %v18093_v29  ;;  %10221 = vmatprep.subr.mxu0 %v12400_v28  ;;  %9183 = vmatprep.subr.mxu1 %v562_v23  ;;  %v535_v21 = vld [vmem:[%s18246_s1] sm:$0xff] }
  0x2c   :  { %244 = vst.msk [vmem:[#allocation3 + $0x280] sm:$0xff] %vm163_vm0, %v18093_v29  ;;  %245 = vst.msk [vmem:[#allocation3 + $0x288] sm:$0xff] %vm163_vm0, %v18093_v29  ;;  %10222 = vmatpush3.msra.mxu0 %v12400_v28  ;;  %v594_v28 = vld [vmem:[%s18246_s1 + $0x1d8] sm:$0xff]  ;;  %9184 = vmatpush3.msra.mxu1 %v546_v25 }
  0x2d   :  { %246 = vst.msk [vmem:[#allocation3 + $0x290] sm:$0xff] %vm163_vm0, %v18093_v29  ;;  %247 = vst.msk [vmem:[#allocation3 + $0x298] sm:$0xff] %vm163_vm0, %v18093_v29  ;;  %10223 = vmatprep.subr.mxu0 %v377_v30  ;;  %9185 = vmatprep.subr.mxu1 %v561_v27 }
  0x2e   :  { %248 = vst.msk [vmem:[#allocation3 + $0x2a0] sm:$0xff] %vm163_vm0, %v18093_v29  ;;  %249 = vst.msk [vmem:[#allocation3 + $0x2a8] sm:$0xff] %vm163_vm0, %v18093_v29  ;;  %10224 = vmatpush3.msra.mxu0 %v377_v30  ;;  %v545_v30 = vld [vmem:[%s18246_s1 + $0x50] sm:$0xff] }
  0x2f   :  { %250 = vst.msk [vmem:[#allocation3 + $0x2b0] sm:$0xff] %vm163_vm0, %v18093_v29  ;;  %251 = vst.msk [vmem:[#allocation3 + $0x2b8] sm:$0xff] %vm163_vm0, %v18093_v29  ;;  %10225 = vmatprep.subr.mxu0 %v376_v31  ;;  %9186 = vmatpush3.msra.mxu1 %v545_v30  ;;  %v567_v30 = vld [vmem:[%s18246_s1 + $0x100] sm:$0xff] }
  0x30   :  { %252 = vst.msk [vmem:[#allocation3 + $0x2c0] sm:$0xff] %vm163_vm0, %v18093_v29  ;;  %253 = vst.msk [vmem:[#allocation3 + $0x2c8] sm:$0xff] %vm163_vm0, %v18093_v29  ;;  %10226 = vmatpush3.msra.mxu0 %v376_v31  ;;  %v578_v31 = vld [vmem:[%s18246_s1 + $0x158] sm:$0xff] }
  0x31   :  { %254 = vst.msk [vmem:[#allocation3 + $0x2d0] sm:$0xff] %vm163_vm0, %v18093_v29  ;;  %255 = vst.msk [vmem:[#allocation3 + $0x2d8] sm:$0xff] %vm163_vm0, %v18093_v29  ;;  %10227 = vmatprep.subr.mxu0 %v375_v32 }
  0x32   :  { %256 = vst.msk [vmem:[#allocation3 + $0x2e0] sm:$0xff] %vm163_vm0, %v18093_v29  ;;  %257 = vst.msk [vmem:[#allocation3 + $0x2e8] sm:$0xff] %vm163_vm0, %v18093_v29  ;;  %10228 = vmatpush3.msra.mxu0 %v375_v32  ;;  %v560_v32 = vld [vmem:[%s18246_s1 + $0xc8] sm:$0xff] }
  0x33   :  { %258 = vst.msk [vmem:[#allocation3 + $0x2f0] sm:$0xff] %vm163_vm0, %v18093_v29  ;;  %10229 = vmatprep.subr.mxu0 %v374_v33  ;;  %9187 = vmatprep.subr.mxu1 %v560_v32 }
  0x34   :  { %82 = vst.msk [vmem:[#allocation2 + $0x78] sm:$0xff] %vm66_vm1, %v18093_v29  ;;  %83 = vst.msk [vmem:[#allocation2 + $0x80] sm:$0xff] %vm66_vm1, %v18093_v29  ;;  %10230 = vmatpush3.msra.mxu0 %v374_v33  ;;  %v593_v33 = vld [vmem:[%s18246_s1 + $0x1d0] sm:$0xff] }
  0x35   :  { %84 = vst.msk [vmem:[#allocation2 + $0x88] sm:$0xff] %vm66_vm1, %v18093_v29  ;;  %85 = vst.msk [vmem:[#allocation2 + $0x90] sm:$0xff] %vm66_vm1, %v18093_v29  ;;  %9255 = vmatprep.subr.mxu0 %v598_v12  ;;  %v585_v12 = vld [vmem:[%s18246_s1 + $0x190] sm:$0xff] }
  0x36   :  { %86 = vst.msk [vmem:[#allocation2 + $0x98] sm:$0xff] %vm66_vm1, %v18093_v29  ;;  %87 = vst.msk [vmem:[#allocation2 + $0xa0] sm:$0xff] %vm66_vm1, %v18093_v29 }
  0x37   :  { %88 = vst.msk [vmem:[#allocation2 + $0xa8] sm:$0xff] %vm66_vm1, %v18093_v29  ;;  %89 = vst.msk [vmem:[#allocation2 + $0xb0] sm:$0xff] %vm66_vm1, %v18093_v29 }
  0x38   :  { %90 = vst.msk [vmem:[#allocation2 + $0xb8] sm:$0xff] %vm66_vm1, %v18093_v29  ;;  %91 = vst.msk [vmem:[#allocation2 + $0xc0] sm:$0xff] %vm66_vm1, %v18093_v29 }
  0x39   :  { %92 = vst.msk [vmem:[#allocation2 + $0xc8] sm:$0xff] %vm66_vm1, %v18093_v29  ;;  %93 = vst.msk [vmem:[#allocation2 + $0xd0] sm:$0xff] %vm66_vm1, %v18093_v29 }
  0x3a   :  { %94 = vst.msk [vmem:[#allocation2 + $0xd8] sm:$0xff] %vm66_vm1, %v18093_v29  ;;  %96 = vst.msk [vmem:[#allocation2 + $0xe8] sm:$0xff] %vm66_vm1, %v18093_v29 }
  0x3b   :  { %97 = vst.msk [vmem:[#allocation2 + $0xf0] sm:$0xff] %vm66_vm1, %v18093_v29  ;;  %98 = vst.msk [vmem:[#allocation2 + $0xf8] sm:$0xff] %vm66_vm1, %v18093_v29  ;;  %v762_v53 = vld [vmem:[#allocation2 + $0x7e] sm:$0xff] }
  0x3c   :  { %99 = vst.msk [vmem:[#allocation2 + $0x100] sm:$0xff] %vm66_vm1, %v18093_v29  ;;  %100 = vst.msk [vmem:[#allocation2 + $0x108] sm:$0xff] %vm66_vm1, %v18093_v29  ;;  %v890_v54 = vld [vmem:[#allocation2 + $0x80] sm:$0xff] }
  0x3d   :  { %101 = vst.msk [vmem:[#allocation2 + $0x110] sm:$0xff] %vm66_vm1, %v18093_v29  ;;  %102 = vst.msk [vmem:[#allocation2 + $0x118] sm:$0xff] %vm66_vm1, %v18093_v29  ;;  %v10675_v55 = vpack.i.bf16 %v762_v53, %v890_v54  ;;  %v1018_v56 = vld [vmem:[#allocation2 + $0x82] sm:$0xff]  ;;  %v12691_v57 = vld [vmem:[#allocation2 + $0x95] sm:$0xff] }
  0x3e   :  { %103 = vst.msk [vmem:[#allocation2 + $0x120] sm:$0xff] %vm66_vm1, %v18093_v29  ;;  %104 = vst.msk [vmem:[#allocation2 + $0x128] sm:$0xff] %vm66_vm1, %v18093_v29  ;;  %v10680_v58 = vpack.i.bf16 %v1018_v56, %v12691_v57  ;;  %v763_v59 = vld [vmem:[#allocation2 + $0x96] sm:$0xff]  ;;  %v12696_v63 = vld [vmem:[#allocation2 + $0xad] sm:$0xff] }
  0x3f   :  { %105 = vst.msk [vmem:[#allocation2 + $0x130] sm:$0xff] %vm66_vm1, %v18093_v29  ;;  %106 = vst.msk [vmem:[#allocation2 + $0x138] sm:$0xff] %vm66_vm1, %v18093_v29  ;;  %10676 = vrot.lane.b32.xlu0 %v10675_v55, %s12198_s29  ;;  %v891_v60 = vld [vmem:[#allocation2 + $0x98] sm:$0xff]  ;;  %v12700_v1 = vld [vmem:[#allocation2 + $0xae] sm:$0xff] }
  0x40   :  { %107 = vst.msk [vmem:[#allocation2 + $0x140] sm:$0xff] %vm66_vm1, %v18093_v29  ;;  %108 = vst.msk [vmem:[#allocation2 + $0x148] sm:$0xff] %vm66_vm1, %v18093_v29  ;;  %10681 = vrot.lane.b32.xlu1 %v10680_v58, %s12198_s29  ;;  %v10685_v61 = vpack.i.bf16 %v763_v59, %v891_v60  ;;  %v1019_v62 = vld [vmem:[#allocation2 + $0x9a] sm:$0xff]  ;;  %v892_v2 = vld [vmem:[#allocation2 + $0xb0] sm:$0xff] }
  0x41   :  { %109 = vst.msk [vmem:[#allocation2 + $0x150] sm:$0xff] %vm66_vm1, %v18093_v29  ;;  %110 = vst.msk [vmem:[#allocation2 + $0x158] sm:$0xff] %vm66_vm1, %v18093_v29  ;;  %v10690_v0 = vpack.i.bf16 %v1019_v62, %v12696_v63  ;;  %v10695_v3 = vpack.i.bf16 %v12700_v1, %v892_v2  ;;  %v12705_v4 = vld [vmem:[#allocation2 + $0x97] sm:$0xff]  ;;  %v555_v54 = vld [vmem:[%s18246_s1 + $0xa0] sm:$0xff] }
  0x42   :  { %111 = vst.msk [vmem:[#allocation2 + $0x160] sm:$0xff] %vm66_vm1, %v18093_v29  ;;  %112 = vst.msk [vmem:[#allocation2 + $0x168] sm:$0xff] %vm66_vm1, %v18093_v29  ;;  %v12707_v5 = vld [vmem:[#allocation2 + $0x99] sm:$0xff]  ;;  %v573_v53 = vld [vmem:[%s18246_s1 + $0x130] sm:$0xff] }
  0x43   :  { %113 = vst.msk [vmem:[#allocation2 + $0x170] sm:$0xff] %vm66_vm1, %v18093_v29  ;;  %130 = vst.msk [vmem:[#allocation2 + $0x1f8] sm:$0xff] %vm66_vm1, %v18093_v29  ;;  %10686 = vrot.lane.b32.xlu0 %v10685_v61, %s12198_s29  ;;  %v10830_v6 = vpack.i.bf16 %v12705_v4, %v12707_v5  ;;  %v12711_v7 = vld [vmem:[#allocation2 + $0x9b] sm:$0xff]  ;;  %v588_v55 = vld [vmem:[%s18246_s1 + $0x1a8] sm:$0xff] }
  0x44   :  { %131 = vst.msk [vmem:[#allocation2 + $0x200] sm:$0xff] %vm66_vm1, %v18093_v29  ;;  %132 = vst.msk [vmem:[#allocation2 + $0x208] sm:$0xff] %vm66_vm1, %v18093_v29  ;;  %10691 = vrot.lane.b32.xlu1 %v10690_v0, %s12198_s29  ;;  %v10840_v8 = vpack.i.bf16 %v12711_v7, %v12700_v1  ;;  %v539_v56 = vld [vmem:[%s18246_s1 + $0x20] sm:$0xff]  ;;  %v572_v58 = vld [vmem:[%s18246_s1 + $0x128] sm:$0xff] }
  0x45   :  { %133 = vst.msk [vmem:[#allocation2 + $0x210] sm:$0xff] %vm66_vm1, %v18093_v29  ;;  %134 = vst.msk [vmem:[#allocation2 + $0x218] sm:$0xff] %vm66_vm1, %v18093_v29  ;;  %v554_v59 = vld [vmem:[%s18246_s1 + $0x98] sm:$0xff]  ;;  %v587_v60 = vld [vmem:[%s18246_s1 + $0x1a0] sm:$0xff] }
  0x46   :  { %135 = vst.msk [vmem:[#allocation2 + $0x220] sm:$0xff] %vm66_vm1, %v18093_v29  ;;  %136 = vst.msk [vmem:[#allocation2 + $0x228] sm:$0xff] %vm66_vm1, %v18093_v29  ;;  %v538_v61 = vld [vmem:[%s18246_s1 + $0x18] sm:$0xff]  ;;  %v571_v62 = vld [vmem:[%s18246_s1 + $0x120] sm:$0xff] }
  0x47   :  { %137 = vst.msk [vmem:[#allocation2 + $0x230] sm:$0xff] %vm66_vm1, %v18093_v29  ;;  %138 = vst.msk [vmem:[#allocation2 + $0x238] sm:$0xff] %vm66_vm1, %v18093_v29  ;;  %10696 = vrot.lane.b32.xlu0 %v10695_v3, %s12198_s29  ;;  %v553_v0 = vld [vmem:[%s18246_s1 + $0x90] sm:$0xff]  ;;  %v586_v2 = vld [vmem:[%s18246_s1 + $0x198] sm:$0xff] }
  0x48   :  { %139 = vst.msk [vmem:[#allocation2 + $0x240] sm:$0xff] %vm66_vm1, %v18093_v29  ;;  %140 = vst.msk [vmem:[#allocation2 + $0x248] sm:$0xff] %vm66_vm1, %v18093_v29  ;;  %v537_v3 = vld [vmem:[%s18246_s1 + $0x10] sm:$0xff]  ;;  %v874_v23 = vld [vmem:[#allocation2 + $0x7f] sm:$0xff] }
  0x49   :  { %141 = vst.msk [vmem:[#allocation2 + $0x250] sm:$0xff] %vm66_vm1, %v18093_v29  ;;  %142 = vst.msk [vmem:[#allocation2 + $0x258] sm:$0xff] %vm66_vm1, %v18093_v29  ;;  %v746_v27 = vld [vmem:[#allocation2 + $0x7d] sm:$0xff] }
  0x4a   :  { %143 = vst.msk [vmem:[#allocation2 + $0x260] sm:$0xff] %vm66_vm1, %v18093_v29  ;;  %144 = vst.msk [vmem:[#allocation2 + $0x268] sm:$0xff] %vm66_vm1, %v18093_v29 }
  0x4b   :  { %145 = vst.msk [vmem:[#allocation2 + $0x270] sm:$0xff] %vm66_vm1, %v18093_v29  ;;  %146 = vst.msk [vmem:[#allocation2 + $0x278] sm:$0xff] %vm66_vm1, %v18093_v29 }
  0x4c   :  { %147 = vst.msk [vmem:[#allocation2 + $0x280] sm:$0xff] %vm66_vm1, %v18093_v29  ;;  %148 = vst.msk [vmem:[#allocation2 + $0x288] sm:$0xff] %vm66_vm1, %v18093_v29 }
  0x4d   :  { %149 = vst.msk [vmem:[#allocation2 + $0x290] sm:$0xff] %vm66_vm1, %v18093_v29  ;;  %150 = vst.msk [vmem:[#allocation2 + $0x298] sm:$0xff] %vm66_vm1, %v18093_v29 }
  0x4e   :  { %151 = vst.msk [vmem:[#allocation2 + $0x2a0] sm:$0xff] %vm66_vm1, %v18093_v29  ;;  %152 = vst.msk [vmem:[#allocation2 + $0x2a8] sm:$0xff] %vm66_vm1, %v18093_v29 }
  0x4f   :  { %153 = vst.msk [vmem:[#allocation2 + $0x2b0] sm:$0xff] %vm66_vm1, %v18093_v29  ;;  %154 = vst.msk [vmem:[#allocation2 + $0x2b8] sm:$0xff] %vm66_vm1, %v18093_v29 }
  0x50   :  { %155 = vst.msk [vmem:[#allocation2 + $0x2c0] sm:$0xff] %vm66_vm1, %v18093_v29  ;;  %156 = vst.msk [vmem:[#allocation2 + $0x2c8] sm:$0xff] %vm66_vm1, %v18093_v29 }
  0x51   :  { %157 = vst.msk [vmem:[#allocation2 + $0x2d0] sm:$0xff] %vm66_vm1, %v18093_v29  ;;  %158 = vst.msk [vmem:[#allocation2 + $0x2d8] sm:$0xff] %vm66_vm1, %v18093_v29 }
  0x52   :  { %159 = vst.msk [vmem:[#allocation2 + $0x2e0] sm:$0xff] %vm66_vm1, %v18093_v29  ;;  %160 = vst.msk [vmem:[#allocation2 + $0x2e8] sm:$0xff] %vm66_vm1, %v18093_v29 }
  0x53   :  { %161 = vst.msk [vmem:[#allocation2 + $0x2f0] sm:$0xff] %vm66_vm1, %v18093_v29 }
  0x88   :  { %v286_v36 = vpop.permute.xlu1 %285  ;;  %v280_v37 = vpop.permute.xlu0 %279 }
  0x89   :  { %vm326_vm2 = vcmp.eq.s32.totalorder %v277_v35, %v280_v37  ;;  %vm328_vm3 = vcmp.eq.s32.totalorder %v277_v35, %v286_v36  ;;  %v577_v36 = vld [vmem:[%s18246_s1 + $0x150] sm:$0xff]  ;;  %v559_v37 = vld [vmem:[%s18246_s1 + $0xc0] sm:$0xff] }
  0x8a   :  { %10231 = vmatprep.mubr.msk.f32.mxu0 %vm326_vm2, %v18090_v38 }
  0x8c   :  { %v289_v39 = vpop.permute.xlu1 %288  ;;  %v283_v40 = vpop.permute.xlu0 %282 }
  0x8d   :  { %vm327_vm4 = vcmp.eq.s32.totalorder %v277_v35, %v283_v40  ;;  %vm329_vm5 = vcmp.eq.s32.totalorder %v277_v35, %v289_v39  ;;  %v592_v39 = vld [vmem:[%s18246_s1 + $0x1c8] sm:$0xff]  ;;  %v543_v40 = vld [vmem:[%s18246_s1 + $0x40] sm:$0xff] }
  0x8e   :  { %10232 = vmatmul.mubr.msk.f32.vlgmr.msra.gmra.mxu0 %vm327_vm4, %v18090_v38  ;;  %vm12199_vm4 = vmmov 0  }
  0x8f   :  { %10234 = vmatprep.mubr.msk.f32.mxu0 %vm328_vm3, %v18090_v38  ;;  %9256 = vmatpush3.msra.mxu0 %v582_v14  ;;  %v569_v14 = vld [vmem:[%s18246_s1 + $0x110] sm:$0xff] }
  0x90   :  { %v295_v41 = vpop.permute.xlu1 %294  ;;  %9257 = vmatprep.subr.mxu0 %v597_v16 }
  0x91   :  { %v292_v42 = vpop.permute.xlu0 %291  ;;  %vm331_vm7 = vcmp.eq.s32.totalorder %v277_v35, %v295_v41  ;;  %9258 = vmatpush3.msra.mxu0 %v581_v18  ;;  %v576_v41 = vld [vmem:[%s18246_s1 + $0x148] sm:$0xff] }
  0x92   :  { %vm330_vm6 = vcmp.eq.s32.totalorder %v277_v35, %v292_v42  ;;  %10235 = vmatmul.mubr.msk.f32.gmra.mxu0 %vm329_vm5, %v18090_v38  ;;  %9259 = vmatprep.subr.mxu0 %v596_v20  ;;  %v558_v42 = vld [vmem:[%s18246_s1 + $0xb8] sm:$0xff]  ;;  %v584_v18 = vld [vmem:[%s18246_s1 + $0x188] sm:$0xff] }
  0x93   :  { %10237 = vmatprep.mubr.msk.f32.mxu0 %vm330_vm6, %v18090_v38  ;;  %9260 = vmatpush3.msra.mxu0 %v580_v22  ;;  %v568_v22 = vld [vmem:[%s18246_s1 + $0x108] sm:$0xff] }
  0x94   :  { %v301_v43 = vpop.permute.xlu1 %300  ;;  %9261 = vmatprep.subr.mxu0 %v595_v24 }
  0x95   :  { %v298_v44 = vpop.permute.xlu0 %297  ;;  %vm333_vm9 = vcmp.eq.s32.totalorder %v277_v35, %v301_v43  ;;  %9262 = vmatpush3.msra.mxu0 %v579_v26  ;;  %v591_v43 = vld [vmem:[%s18246_s1 + $0x1c0] sm:$0xff] }
  0x96   :  { %vm332_vm8 = vcmp.eq.s32.totalorder %v277_v35, %v298_v44  ;;  %10238 = vmatmul.mubr.msk.f32.gmra.mxu0 %vm331_vm7, %v18090_v38  ;;  %9263 = vmatprep.subr.mxu0 %v594_v28  ;;  %v542_v44 = vld [vmem:[%s18246_s1 + $0x38] sm:$0xff]  ;;  %v583_v28 = vld [vmem:[%s18246_s1 + $0x180] sm:$0xff] }
  0x97   :  { %10240 = vmatprep.mubr.msk.f32.mxu0 %vm332_vm8, %v18090_v38  ;;  %9264 = vmatpush3.msra.mxu0 %v578_v31 }
  0x98   :  { %v307_v45 = vpop.permute.xlu1 %306  ;;  %9265 = vmatprep.subr.mxu0 %v593_v33 }
  0x99   :  { %v304_v46 = vpop.permute.xlu0 %303  ;;  %vm335_vm11 = vcmp.eq.s32.totalorder %v277_v35, %v307_v45  ;;  %9266 = vmatpush3.msra.mxu0 %v577_v36  ;;  %v575_v45 = vld [vmem:[%s18246_s1 + $0x140] sm:$0xff] }
  0x9a   :  { %vm334_vm10 = vcmp.eq.s32.totalorder %v277_v35, %v304_v46  ;;  %10241 = vmatmul.mubr.msk.f32.gmra.mxu0 %vm333_vm9, %v18090_v38  ;;  %9267 = vmatprep.subr.mxu0 %v592_v39  ;;  %v557_v46 = vld [vmem:[%s18246_s1 + $0xb0] sm:$0xff] }
  0x9b   :  { %10243 = vmatprep.mubr.msk.f32.mxu0 %vm334_vm10, %v18090_v38  ;;  %9268 = vmatpush3.msra.mxu0 %v576_v41  ;;  %v1002_v41 = vld [vmem:[#allocation2 + $0x81] sm:$0xff] }
  0x9c   :  { %v313_v47 = vpop.permute.xlu1 %312  ;;  %9269 = vmatprep.subr.mxu0 %v591_v43 }
  0x9d   :  { %v310_v48 = vpop.permute.xlu0 %309  ;;  %vm337_vm13 = vcmp.eq.s32.totalorder %v277_v35, %v313_v47  ;;  %v590_v47 = vld [vmem:[%s18246_s1 + $0x1b8] sm:$0xff]  ;;  %9270 = vmatpush3.msra.mxu0 %v575_v45 }
  0x9e   :  { %vm336_vm12 = vcmp.eq.s32.totalorder %v277_v35, %v310_v48  ;;  %10244 = vmatmul.mubr.msk.f32.gmra.mxu0 %vm335_vm11, %v18090_v38  ;;  %v541_v48 = vld [vmem:[%s18246_s1 + $0x30] sm:$0xff]  ;;  %9271 = vmatprep.subr.mxu0 %v590_v47 }
  0x9f   :  { %10246 = vmatprep.mubr.msk.f32.mxu0 %vm336_vm12, %v18090_v38 }
  0xa0   :  { %v319_v49 = vpop.permute.xlu1 %318 }
  0xa1   :  { %v316_v50 = vpop.permute.xlu0 %315  ;;  %vm339_vm15 = vcmp.eq.s32.totalorder %v277_v35, %v319_v49  ;;  %v574_v49 = vld [vmem:[%s18246_s1 + $0x138] sm:$0xff] }
  0xa2   :  { %vm338_vm14 = vcmp.eq.s32.totalorder %v277_v35, %v316_v50  ;;  %10247 = vmatmul.mubr.msk.f32.gmra.mxu0 %vm337_vm13, %v18090_v38  ;;  %v556_v50 = vld [vmem:[%s18246_s1 + $0xa8] sm:$0xff] }
  0xa3   :  { %10249 = vmatprep.mubr.msk.f32.mxu0 %vm338_vm14, %v18090_v38  ;;  %9272 = vmatpush3.msra.mxu0 %v574_v49 }
  0xa4   :  { %v325_v52 = vpop.permute.xlu1 %324 }
  0xa5   :  { %v322_v51 = vpop.permute.xlu0 %321  ;;  %vm341_vm3 = vcmp.eq.s32.totalorder %v277_v35, %v325_v52  ;;  %v540_v52 = vld [vmem:[%s18246_s1 + $0x28] sm:$0xff] }
  0xa6   :  { %vm340_vm2 = vcmp.eq.s32.totalorder %v277_v35, %v322_v51  ;;  %10250 = vmatmul.mubr.msk.f32.gmra.mxu0 %vm339_vm15, %v18090_v38  ;;  %v544_v35 = vld [vmem:[%s18246_s1 + $0x48] sm:$0xff]  ;;  %v589_v51 = vld [vmem:[%s18246_s1 + $0x1b0] sm:$0xff] }
  0xa7   :  { %10252 = vmatprep.mubr.msk.f32.mxu0 %vm340_vm2, %v18090_v38  ;;  %9188 = vmatpush3.msra.mxu1 %v544_v35  ;;  %v1130_v35 = vld [vmem:[#allocation2 + $0x83] sm:$0xff] }
  0xa8   :  { %9189 = vmatprep.subr.mxu1 %v559_v37  ;;  %9273 = vmatprep.subr.mxu0 %v589_v51 }
  0xa9   :  { %9190 = vmatpush3.msra.mxu1 %v543_v40  ;;  %9274 = vmatpush3.msra.mxu0 %v573_v53 }
  0xaa   :  { %10253 = vmatmul.mubr.msk.f32.gmra.mxu0 %vm341_vm3, %v18090_v38  ;;  %9191 = vmatprep.subr.mxu1 %v558_v42 }
  0xab   :  { %9192 = vmatpush3.msra.mxu1 %v542_v44  ;;  %9275 = vmatprep.subr.mxu0 %v588_v55 }
  0xac   :  { %9193 = vmatprep.subr.mxu1 %v557_v46  ;;  %9276 = vmatpush3.msra.mxu0 %v572_v58  ;;  %v12929_v58 = vld [vmem:[#allocation2 + $0xb2] sm:$0xff] }
  0xad   :  { %9194 = vmatpush3.msra.mxu1 %v541_v48  ;;  %9277 = vmatprep.subr.mxu0 %v587_v60  ;;  %v12917_v48 = vld [vmem:[#allocation2 + $0xaf] sm:$0xff] }
  0xae   :  { %9195 = vmatprep.subr.mxu1 %v556_v50  ;;  %9278 = vmatpush3.msra.mxu0 %v571_v62 }
  0xaf   :  { %9196 = vmatpush3.msra.mxu1 %v540_v52  ;;  %9279 = vmatprep.subr.mxu0 %v586_v2 }
  0xb0   :  { %9197 = vmatprep.subr.mxu1 %v555_v54  ;;  %9280 = vmatpush3.msra.mxu0 %v570_v9 }
  0xb1   :  { %9198 = vmatpush3.msra.mxu1 %v539_v56  ;;  %v10677_v11 = vpop.permute.xlu0 %10676  ;;  %9281 = vmatprep.subr.mxu0 %v585_v12 }
  0xb2   :  { %9199 = vmatprep.subr.mxu1 %v554_v59  ;;  %v10679_v15 = vunpack.i.h.bf16 %v10677_v11  ;;  %v10678_v16 = vunpack.i.l.bf16 %v10677_v11  ;;  %v10682_v19 = vpop.permute.xlu1 %10681  ;;  %9282 = vmatpush3.msra.mxu0 %v569_v14 }
  0xb3   :  { %9200 = vmatpush3.msra.mxu1 %v538_v61  ;;  %v10683_v20 = vunpack.i.l.bf16 %v10682_v19  ;;  %v10684_v24 = vunpack.i.h.bf16 %v10682_v19  ;;  %9283 = vmatprep.subr.mxu0 %v584_v18 }
  0xb4   :  { %9201 = vmatprep.subr.mxu1 %v553_v0  ;;  %v970_v26 = vsel %vm66_vm1, %v874_v23, %v10678_v16  ;;  %9284 = vmatpush3.msra.mxu0 %v568_v22  ;;  %v842_v33 = vsel %vm66_vm1, %v746_v27, %v10679_v15 }
  0xb5   :  { %9202 = vmatpush3.msra.mxu1 %v537_v3  ;;  %v10687_v25 = vpop.permute.xlu0 %10686  ;;  %2546 = vmatprep.mubr.f32.mxu1 %v970_v26  ;;  %v1227_v37 = vsel %vm66_vm1, %v1130_v35, %v10683_v20  ;;  %v1098_v44 = vsel %vm66_vm1, %v1002_v41, %v10684_v24 }
  0xb6   :  { %9203 = vmatprep.subr.mxu1 %v552_v10  ;;  %v10689_v31 = vunpack.i.h.bf16 %v10687_v25  ;;  %v10688_v32 = vunpack.i.l.bf16 %v10687_v25  ;;  %9285 = vmatprep.subr.mxu0 %v583_v28  ;;  %v10692_v36 = vpop.permute.xlu1 %10691 }
  0xb7   :  { %9204 = vmatpush3.msra.mxu1 %v536_v13  ;;  %9286 = vmatpush3.msra.mxu0 %v567_v30  ;;  %v10694_v39 = vunpack.i.h.bf16 %v10692_v36  ;;  %v10693_v40 = vunpack.i.l.bf16 %v10692_v36 }
  0xb8   :  { %9205 = vmatprep.subr.mxu1 %v551_v17  ;;  %2691 = vmatprep.mubr.f32.mxu0 %v1227_v37  ;;  %v971_v42 = vsel %vm66_vm1, %v12705_v4, %v10688_v32  ;;  %v843_v43 = vsel %vm66_vm1, %v12691_v57, %v10689_v31  ;;  %v603_v4 = vld [vmem:[%s18246_s1 + $0x220] sm:$0xff] }
  0xb9   :  { %9206 = vmatpush3.msra.mxu1 %v535_v21  ;;  %v10697_v45 = vpop.permute.xlu0 %10696  ;;  %2692 = vmatmul.mubr.f32.vlgmr.msra.gmra.mxu0 %v1098_v44  ;;  %v1228_v47 = vsel %vm66_vm1, %v12711_v7, %v10693_v40  ;;  %v1099_v50 = vsel %vm66_vm1, %v12707_v5, %v10694_v39  ;;  %v636_v5 = vld [vmem:[%s18246_s1 + $0x328] sm:$0xff] }
  0xba   :  { %2547 = vmatmul.mubr.f32.vlgmr.msra.gmra.mxu1 %v842_v33  ;;  %v10698_v46 = vunpack.i.l.bf16 %v10697_v45  ;;  %v10699_v49 = vunpack.i.h.bf16 %v10697_v45  ;;  %2696 = vmatprep.mubr.f32.mxu0 %v1228_v47  ;;  %v898_v47 = vld [vmem:[#allocation2 + $0x200] sm:$0xff] }
  0xbb   :  { %2551 = vmatprep.mubr.f32.mxu1 %v971_v42 }
  0xbc   :  { %v972_v57 = vsel %vm66_vm1, %v12917_v48, %v10698_v46  ;;  %v844_v52 = vsel %vm66_vm1, %v12696_v63, %v10699_v49  ;;  %v770_v46 = vld [vmem:[#allocation2 + $0x1fe] sm:$0xff] }
  0xbd   :  { %2697 = vmatmul.mubr.f32.gmra.mxu0 %v1099_v50 }
  0xbe   :  { %2552 = vmatmul.mubr.f32.gmra.mxu1 %v843_v43 }
  0xbf   :  { %2556 = vmatprep.mubr.f32.mxu1 %v972_v57 }
  0xc2   :  { %2557 = vmatmul.mubr.f32.gmra.mxu1 %v844_v52  ;;  %v1026_v52 = vld [vmem:[#allocation2 + $0x202] sm:$0xff] }
 0x14e   :  { %v10233_v51 = vpop.f32.mrf.mxu0 }
 0x14f   :  { %730 = vst.msk [vmem:[#allocation2 + $0xe0] sm:$0xff] %vm66_vm1, %v10233_v51  ;;  %v10750_v51 = vpack.i.bf16 %v770_v46, %v898_v47  ;;  %v613_v46 = vld [vmem:[%s18246_s1 + $0x270] sm:$0xff]  ;;  %v628_v47 = vld [vmem:[%s18246_s1 + $0x2e8] sm:$0xff] }
 0x150   :  { %v456_v53 = vpop.f32.mrf.mxu0 }
 0x151   :  { %729 = vst.msk [vmem:[#allocation2 + $0xc8] sm:$0xff] %vm66_vm1, %v456_v53  ;;  %v1155_v53 = vld [vmem:[#allocation2 + $0x215] sm:$0xff] }
 0x152   :  { %v10236_v54 = vpop.f32.mrf.mxu0 }
 0x153   :  { %732 = vst.msk [vmem:[#allocation2 + $0x110] sm:$0xff] %vm66_vm1, %v10236_v54 }
 0x154   :  { %v466_v55 = vpop.f32.mrf.mxu0 }
 0x155   :  { %731 = vst.msk [vmem:[#allocation2 + $0xf8] sm:$0xff] %vm66_vm1, %v466_v55 }
 0x156   :  { %v10239_v56 = vpop.f32.mrf.mxu0  ;;  %v12931_v59 = vld [vmem:[#allocation2 + $0xe0] sm:$0xff] }
 0x157   :  { %734 = vst.msk [vmem:[#allocation2 + $0x140] sm:$0xff] %vm66_vm1, %v10239_v56  ;;  %v12934_v63 = vld [vmem:[#allocation2 + $0xe2] sm:$0xff]  ;;  %v771_v56 = vld [vmem:[#allocation2 + $0x216] sm:$0xff] }
 0x158   :  { %v476_v60 = vpop.f32.mrf.mxu0  ;;  %v12936_v61 = vld [vmem:[#allocation2 + $0xc5] sm:$0xff]  ;;  %v12962_v17 = vld [vmem:[#allocation2 + $0xdd] sm:$0xff] }
 0x159   :  { %v12938_v62 = vld [vmem:[#allocation2 + $0xc6] sm:$0xff]  ;;  %733 = vst.msk [vmem:[#allocation2 + $0x128] sm:$0xff] %vm66_vm1, %v476_v60  ;;  %v10700_v3 = vpack.i.bf16 %v12929_v58, %v12936_v61  ;;  %v12951_v12 = vld [vmem:[#allocation2 + $0xde] sm:$0xff] }
 0x15a   :  { %v12940_v0 = vld [vmem:[#allocation2 + $0xc8] sm:$0xff]  ;;  %v10242_v11 = vpop.f32.mrf.mxu0  ;;  %v12953_v13 = vld [vmem:[#allocation2 + $0x110] sm:$0xff]  ;;  %v10710_v21 = vpack.i.bf16 %v12951_v12, %v12931_v59  ;;  %v899_v60 = vld [vmem:[#allocation2 + $0x218] sm:$0xff] }
 0x15b   :  { %v10705_v9 = vpack.i.bf16 %v12938_v62, %v12940_v0  ;;  %v12949_v10 = vld [vmem:[#allocation2 + $0xca] sm:$0xff]  ;;  %736 = vst.msk [vmem:[#allocation2 + $0x170] sm:$0xff] %vm66_vm1, %v10242_v11  ;;  %10701 = vrot.lane.b32.xlu1 %v10700_v3, %s12198_s29  ;;  %v12960_v15 = vld [vmem:[#allocation2 + $0x112] sm:$0xff]  ;;  %v10765_v11 = vpack.i.bf16 %v771_v56, %v899_v60  ;;  %v13234_v7 = vld [vmem:[#allocation2 + $0xe1] sm:$0xff] }
 0x15c   :  { %v486_v16 = vpop.f32.mrf.mxu0  ;;  %v12964_v18 = vld [vmem:[#allocation2 + $0xf8] sm:$0xff]  ;;  %v10715_v20 = vpack.i.bf16 %v12949_v10, %v12962_v17  ;;  %v12993_v35 = vld [vmem:[#allocation2 + $0x10e] sm:$0xff] }
 0x15d   :  { %10706 = vrot.lane.b32.xlu0 %v10705_v9, %s12198_s29  ;;  %735 = vst.msk [vmem:[#allocation2 + $0x158] sm:$0xff] %vm66_vm1, %v486_v16  ;;  %v12973_v22 = vld [vmem:[#allocation2 + $0xfa] sm:$0xff]  ;;  %v13000_v39 = vld [vmem:[#allocation2 + $0x10d] sm:$0xff]  ;;  %v10730_v41 = vpack.i.bf16 %v12993_v35, %v12953_v13  ;;  %v10760_v9 = vpack.i.bf16 %v1026_v52, %v1155_v53 }
 0x15e   :  { %v10245_v23 = vpop.f32.mrf.mxu0  ;;  %v12975_v24 = vld [vmem:[#allocation2 + $0xf5] sm:$0xff]  ;;  %v10735_v40 = vpack.i.bf16 %v12973_v22, %v13000_v39  ;;  %v1154_v55 = vld [vmem:[#allocation2 + $0x13d] sm:$0xff] }
 0x15f   :  { %v12977_v25 = vld [vmem:[#allocation2 + $0xf6] sm:$0xff]  ;;  %738 = vst.msk [vmem:[#allocation2 + $0x260] sm:$0xff] %vm66_vm1, %v10245_v23  ;;  %10716 = vrot.lane.b32.xlu1 %v10715_v20, %s12198_s29  ;;  %v10720_v30 = vpack.i.bf16 %v12934_v63, %v12975_v24  ;;  %v1156_v20 = vld [vmem:[#allocation2 + $0x22d] sm:$0xff] }
 0x160   :  { %v496_v27 = vpop.f32.mrf.mxu0  ;;  %v12984_v28 = vld [vmem:[#allocation2 + $0x128] sm:$0xff]  ;;  %v10725_v31 = vpack.i.bf16 %v12977_v25, %v12964_v18  ;;  %v1027_v16 = vld [vmem:[#allocation2 + $0x21a] sm:$0xff]  ;;  %v900_v23 = vld [vmem:[#allocation2 + $0x230] sm:$0xff] }
 0x161   :  { %10711 = vrot.lane.b32.xlu0 %v10710_v21, %s12198_s29  ;;  %737 = vst.msk [vmem:[#allocation2 + $0x248] sm:$0xff] %vm66_vm1, %v496_v27  ;;  %v12991_v32 = vld [vmem:[#allocation2 + $0x12a] sm:$0xff]  ;;  %v10770_v27 = vpack.i.bf16 %v1027_v16, %v1156_v20 }
 0x162   :  { %v10248_v33 = vpop.f32.mrf.mxu0  ;;  %v13007_v43 = vld [vmem:[#allocation2 + $0x125] sm:$0xff]  ;;  %v10755_v3 = vpack.i.bf16 %v12991_v32, %v1154_v55  ;;  %v13026_v21 = vld [vmem:[#allocation2 + $0x22e] sm:$0xff] }
 0x163   :  { %740 = vst.msk [vmem:[#allocation2 + $0x290] sm:$0xff] %vm66_vm1, %v10248_v33  ;;  %10721 = vrot.lane.b32.xlu1 %v10720_v30, %s12198_s29  ;;  %v13009_v44 = vld [vmem:[#allocation2 + $0x126] sm:$0xff]  ;;  %v10740_v49 = vpack.i.bf16 %v12960_v15, %v13007_v43  ;;  %v10775_v30 = vpack.i.bf16 %v13026_v21, %v900_v23  ;;  %v630_v33 = vld [vmem:[%s18246_s1 + $0x2f8] sm:$0xff]  ;;  %v645_v56 = vld [vmem:[%s18246_s1 + $0x370] sm:$0xff] }
 0x164   :  { %v506_v37 = vpop.f32.mrf.mxu0  ;;  %v10745_v50 = vpack.i.bf16 %v13009_v44, %v12984_v28  ;;  %9335 = vmatprep.subr.mxu1 %v630_v33  ;;  %v612_v55 = vld [vmem:[%s18246_s1 + $0x268] sm:$0xff]  ;;  %v626_v33 = vld [vmem:[%s18246_s1 + $0x2d8] sm:$0xff] }
 0x165   :  { %10726 = vrot.lane.b32.xlu0 %v10725_v31, %s12198_s29  ;;  %739 = vst.msk [vmem:[#allocation2 + $0x278] sm:$0xff] %vm66_vm1, %v506_v37  ;;  %v1028_v31 = vld [vmem:[#allocation2 + $0x232] sm:$0xff]  ;;  %v644_v16 = vld [vmem:[%s18246_s1 + $0x368] sm:$0xff] }
 0x166   :  { %v10251_v42 = vpop.f32.mrf.mxu0  ;;  %v614_v37 = vld [vmem:[%s18246_s1 + $0x278] sm:$0xff] }
 0x167   :  { %742 = vst.msk [vmem:[#allocation2 + $0x2c0] sm:$0xff] %vm66_vm1, %v10251_v42  ;;  %10736 = vrot.lane.b32.xlu1 %v10735_v40, %s12198_s29  ;;  %v629_v42 = vld [vmem:[%s18246_s1 + $0x2f0] sm:$0xff]  ;;  %9336 = vmatpush3.msra.mxu1 %v614_v37  ;;  %v1158_v20 = vld [vmem:[#allocation2 + $0x25d] sm:$0xff] }
 0x168   :  { %v516_v45 = vpop.f32.mrf.mxu0  ;;  %v1157_v40 = vld [vmem:[#allocation2 + $0x245] sm:$0xff]  ;;  %9337 = vmatprep.subr.mxu1 %v629_v42  ;;  %v610_v42 = vld [vmem:[%s18246_s1 + $0x258] sm:$0xff] }
 0x169   :  { %10731 = vrot.lane.b32.xlu0 %v10730_v41, %s12198_s29  ;;  %741 = vst.msk [vmem:[#allocation2 + $0x2a8] sm:$0xff] %vm66_vm1, %v516_v45  ;;  %v13037_v41 = vld [vmem:[#allocation2 + $0x246] sm:$0xff]  ;;  %v10780_v52 = vpack.i.bf16 %v1028_v31, %v1157_v40  ;;  %9338 = vmatpush3.msra.mxu1 %v613_v46  ;;  %v625_v46 = vld [vmem:[%s18246_s1 + $0x2d0] sm:$0xff] }
 0x16a   :  { %v10254_v57 = vpop.f32.mrf.mxu0  ;;  %v901_v45 = vld [vmem:[#allocation2 + $0x248] sm:$0xff]  ;;  %9339 = vmatprep.subr.mxu1 %v628_v47  ;;  %v659_v37 = vld [vmem:[%s18246_s1 + $0x3e0] sm:$0xff]  ;;  %v658_v47 = vld [vmem:[%s18246_s1 + $0x3d8] sm:$0xff] }
 0x16b   :  { %744 = vst.msk [vmem:[#allocation2 + $0x2f0] sm:$0xff] %vm66_vm1, %v10254_v57  ;;  %10741 = vrot.lane.b32.xlu1 %v10740_v49, %s12198_s29  ;;  %v662_v49 = vld [vmem:[%s18246_s1 + $0x3f8] sm:$0xff]  ;;  %v10785_v53 = vpack.i.bf16 %v13037_v41, %v901_v45  ;;  %v1029_v60 = vld [vmem:[#allocation2 + $0x24a] sm:$0xff]  ;;  %9340 = vmatpush3.msra.mxu1 %v612_v55  ;;  %v643_v45 = vld [vmem:[%s18246_s1 + $0x360] sm:$0xff] }
 0x16c   :  { %v526_v54 = vpop.f32.mrf.mxu0  ;;  %v13056_v57 = vld [vmem:[#allocation2 + $0x25e] sm:$0xff]  ;;  %9415 = vmatprep.subr.mxu0 %v662_v49  ;;  %v1159_v23 = vld [vmem:[#allocation2 + $0x275] sm:$0xff] }
 0x16d   :  { %10746 = vrot.lane.b32.xlu0 %v10745_v50, %s12198_s29  ;;  %743 = vst.msk [vmem:[#allocation2 + $0x2d8] sm:$0xff] %vm66_vm1, %v526_v54  ;;  %v646_v50 = vld [vmem:[%s18246_s1 + $0x378] sm:$0xff]  ;;  %v902_v54 = vld [vmem:[#allocation2 + $0x260] sm:$0xff]  ;;  %v13394_v34 = vld [vmem:[#allocation2 + $0x28f] sm:$0xff] }
 0x16e   :  { %9416 = vmatpush3.msra.mxu0 %v646_v50  ;;  %v13083_v31 = vld [vmem:[#allocation2 + $0x276] sm:$0xff]  ;;  %v1030_v49 = vld [vmem:[#allocation2 + $0x262] sm:$0xff]  ;;  %v13105_v50 = vld [vmem:[#allocation2 + $0x28e] sm:$0xff]  ;;  %18249 = vst [vmem:[#allocation11_spill] sm:$0xff] %v13394_v34 }
 0x16f   :  { %10756 = vrot.lane.b32.xlu1 %v10755_v3, %s12198_s29  ;;  %v627_v3 = vld [vmem:[%s18246_s1 + $0x2e0] sm:$0xff]  ;;  %v903_v40 = vld [vmem:[#allocation2 + $0x278] sm:$0xff] }
 0x170   :  { %9341 = vmatprep.subr.mxu1 %v627_v3  ;;  %v642_v55 = vld [vmem:[%s18246_s1 + $0x358] sm:$0xff]  ;;  %v657_v3 = vld [vmem:[%s18246_s1 + $0x3d0] sm:$0xff]  ;;  %v1418_v26 = vld [vmem:[#allocation2 + $0x2c1] sm:$0xff] }
 0x171   :  { %10751 = vrot.lane.b32.xlu0 %v10750_v51, %s12198_s29  ;;  %v661_v51 = vld [vmem:[%s18246_s1 + $0x3f0] sm:$0xff]  ;;  %v1674_v2 = vld [vmem:[#allocation2 + $0x2be] sm:$0xff] }
 0x172   :  { %9417 = vmatprep.subr.mxu0 %v661_v51  ;;  %v10800_v51 = vpack.i.bf16 %v1030_v49, %v1159_v23  ;;  %v1032_v49 = vld [vmem:[#allocation2 + $0x292] sm:$0xff]  ;;  %v1417_v29 = vld [vmem:[#allocation2 + $0x2a9] sm:$0xff] }
 0x173   :  { %10761 = vrot.lane.b32.xlu1 %v10760_v9, %s12198_s29  ;;  %v660_v9 = vld [vmem:[%s18246_s1 + $0x3e8] sm:$0xff]  ;;  %9418 = vmatpush3.msra.mxu0 %v645_v56  ;;  %v1031_v56 = vld [vmem:[#allocation2 + $0x27a] sm:$0xff]  ;;  %v13396_v38 = vld [vmem:[#allocation2 + $0x291] sm:$0xff] }
 0x174   :  { %9419 = vmatprep.subr.mxu0 %v660_v9  ;;  %v608_v9 = vld [vmem:[%s18246_s1 + $0x248] sm:$0xff]  ;;  %18250 = vst [vmem:[#allocation12_spill] sm:$0xff] %v13396_v38  ;;  %v13408_v36 = vld [vmem:[#allocation2 + $0x293] sm:$0xff] }
 0x175   :  { %10766 = vrot.lane.b32.xlu0 %v10765_v11, %s12198_s29  ;;  %v611_v11 = vld [vmem:[%s18246_s1 + $0x260] sm:$0xff]  ;;  %9420 = vmatpush3.msra.mxu0 %v644_v16  ;;  %v1160_v16 = vld [vmem:[#allocation2 + $0x28d] sm:$0xff]  ;;  %18252 = vst [vmem:[#allocation14_spill] sm:$0xff] %v13408_v36  ;;  %v1675_v14 = vld [vmem:[#allocation2 + $0x2d6] sm:$0xff] }
 0x176   :  { %9342 = vmatpush3.msra.mxu1 %v611_v11  ;;  %9421 = vmatprep.subr.mxu0 %v659_v37  ;;  %v641_v11 = vld [vmem:[%s18246_s1 + $0x350] sm:$0xff]  ;;  %v10815_v23 = vpack.i.bf16 %v1031_v56, %v1160_v16  ;;  %v656_v37 = vld [vmem:[%s18246_s1 + $0x3c8] sm:$0xff] }
 0x177   :  { %10771 = vrot.lane.b32.xlu1 %v10770_v27, %s12198_s29  ;;  %v10795_v27 = vpack.i.bf16 %v1029_v60, %v1158_v20  ;;  %9343 = vmatprep.subr.mxu1 %v626_v33  ;;  %v624_v60 = vld [vmem:[%s18246_s1 + $0x2c8] sm:$0xff]  ;;  %v623_v33 = vld [vmem:[%s18246_s1 + $0x2c0] sm:$0xff]  ;;  %v621_v56 = vld [vmem:[%s18246_s1 + $0x2b0] sm:$0xff] }
 0x178   :  { %9344 = vmatpush3.msra.mxu1 %v610_v42  ;;  %9422 = vmatpush3.msra.mxu0 %v643_v45  ;;  %v1161_v20 = vld [vmem:[#allocation2 + $0x2a5] sm:$0xff]  ;;  %v13172_v16 = vld [vmem:[#allocation2 + $0xb1] sm:$0xff] }
 0x179   :  { %10776 = vrot.lane.b32.xlu0 %v10775_v30, %s12198_s29  ;;  %v10790_v30 = vpack.i.bf16 %v13056_v57, %v902_v54  ;;  %v609_v54 = vld [vmem:[%s18246_s1 + $0x250] sm:$0xff]  ;;  %9345 = vmatprep.subr.mxu1 %v625_v46  ;;  %v607_v42 = vld [vmem:[%s18246_s1 + $0x240] sm:$0xff]  ;;  %v640_v45 = vld [vmem:[%s18246_s1 + $0x348] sm:$0xff] }
 0x17a   :  { %9423 = vmatprep.subr.mxu0 %v658_v47  ;;  %9346 = vmatpush3.msra.mxu1 %v609_v54  ;;  %v622_v46 = vld [vmem:[%s18246_s1 + $0x2b8] sm:$0xff]  ;;  %v655_v47 = vld [vmem:[%s18246_s1 + $0x3c0] sm:$0xff]  ;;  %v13413_v19 = vld [vmem:[#allocation2 + $0x2ab] sm:$0xff] }
 0x17b   :  { %10781 = vrot.lane.b32.xlu1 %v10780_v52, %s12198_s29  ;;  %v10805_v52 = vpack.i.bf16 %v13083_v31, %v903_v40  ;;  %9424 = vmatpush3.msra.mxu0 %v642_v55  ;;  %v905_v40 = vld [vmem:[#allocation2 + $0x2a8] sm:$0xff]  ;;  %v639_v54 = vld [vmem:[%s18246_s1 + $0x340] sm:$0xff] }
 0x17c   :  { %9347 = vmatprep.subr.mxu1 %v624_v60  ;;  %9425 = vmatprep.subr.mxu0 %v657_v3  ;;  %v1033_v55 = vld [vmem:[#allocation2 + $0x2aa] sm:$0xff]  ;;  %v654_v60 = vld [vmem:[%s18246_s1 + $0x3b8] sm:$0xff] }
 0x17d   :  { %10786 = vrot.lane.b32.xlu0 %v10785_v53, %s12198_s29  ;;  %v904_v53 = vld [vmem:[#allocation2 + $0x290] sm:$0xff]  ;;  %9348 = vmatpush3.msra.mxu1 %v608_v9  ;;  %v638_v9 = vld [vmem:[%s18246_s1 + $0x338] sm:$0xff] }
 0x17e   :  { %9426 = vmatpush3.msra.mxu0 %v641_v11  ;;  %9349 = vmatprep.subr.mxu1 %v623_v33  ;;  %v605_v3 = vld [vmem:[%s18246_s1 + $0x230] sm:$0xff]  ;;  %v1162_v11 = vld [vmem:[#allocation2 + $0x2bd] sm:$0xff]  ;;  %v604_v33 = vld [vmem:[%s18246_s1 + $0x228] sm:$0xff] }
 0x17f   :  { %10796 = vrot.lane.b32.xlu1 %v10795_v27, %s12198_s29  ;;  %v10810_v27 = vpack.i.bf16 %v13105_v50, %v904_v53  ;;  %9427 = vmatprep.subr.mxu0 %v656_v37  ;;  %v606_v53 = vld [vmem:[%s18246_s1 + $0x238] sm:$0xff]  ;;  %v637_v37 = vld [vmem:[%s18246_s1 + $0x330] sm:$0xff] }
 0x180   :  { %9350 = vmatpush3.msra.mxu1 %v607_v42  ;;  %9428 = vmatpush3.msra.mxu0 %v640_v45  ;;  %v619_v42 = vld [vmem:[%s18246_s1 + $0x2a0] sm:$0xff]  ;;  %v652_v45 = vld [vmem:[%s18246_s1 + $0x3a8] sm:$0xff] }
 0x181   :  { %10791 = vrot.lane.b32.xlu0 %v10790_v30, %s12198_s29  ;;  %v13129_v30 = vld [vmem:[#allocation2 + $0x2a6] sm:$0xff]  ;;  %9351 = vmatprep.subr.mxu1 %v622_v46  ;;  %v13199_v46 = vld [vmem:[#allocation2 + $0xb3] sm:$0xff] }
 0x182   :  { %9429 = vmatprep.subr.mxu0 %v655_v47  ;;  %9352 = vmatpush3.msra.mxu1 %v606_v53  ;;  %v13201_v47 = vld [vmem:[#allocation2 + $0xc7] sm:$0xff]  ;;  %v13228_v53 = vld [vmem:[#allocation2 + $0xdf] sm:$0xff] }
 0x183   :  { %10801 = vrot.lane.b32.xlu1 %v10800_v51, %s12198_s29  ;;  %v10820_v51 = vpack.i.bf16 %v1032_v49, %v1161_v20  ;;  %9430 = vmatpush3.msra.mxu0 %v639_v54  ;;  %v10835_v20 = vpack.i.bf16 %v1033_v55, %v1162_v11  ;;  %v651_v49 = vld [vmem:[%s18246_s1 + $0x3a0] sm:$0xff]  ;;  %v10850_v54 = vpack.i.bf16 %v13199_v46, %v12938_v62  ;;  %v650_v55 = vld [vmem:[%s18246_s1 + $0x398] sm:$0xff]  ;;  %v601_v62 = vld [vmem:[%s18246_s1 + $0x210] sm:$0xff] }
 0x184   :  { %9353 = vmatprep.subr.mxu1 %v621_v56  ;;  %9431 = vmatprep.subr.mxu0 %v654_v60  ;;  %v13242_v56 = vld [vmem:[#allocation2 + $0xcb] sm:$0xff]  ;;  %v634_v60 = vld [vmem:[%s18246_s1 + $0x318] sm:$0xff] }
 0x185   :  { %10806 = vrot.lane.b32.xlu0 %v10805_v52, %s12198_s29  ;;  %v10825_v52 = vpack.i.bf16 %v13129_v30, %v905_v40  ;;  %9354 = vmatpush3.msra.mxu1 %v605_v3  ;;  %v10845_v40 = vpack.i.bf16 %v12917_v48, %v13172_v16  ;;  %v618_v48 = vld [vmem:[%s18246_s1 + $0x298] sm:$0xff]  ;;  %v616_v3 = vld [vmem:[%s18246_s1 + $0x288] sm:$0xff]  ;;  %v10860_v11 = vpack.i.bf16 %v13242_v56, %v12951_v12  ;;  %v615_v12 = vld [vmem:[%s18246_s1 + $0x280] sm:$0xff] }
 0x186   :  { %9432 = vmatpush3.msra.mxu0 %v638_v9  ;;  %v649_v9 = vld [vmem:[%s18246_s1 + $0x390] sm:$0xff] }
 0x187   :  { %10816 = vrot.lane.b32.xlu1 %v10815_v23, %s12198_s29  ;;  %v620_v23 = vld [vmem:[%s18246_s1 + $0x2a8] sm:$0xff] }
 0x188   :  { %9355 = vmatprep.subr.mxu1 %v620_v23  ;;  %v13262_v23 = vld [vmem:[#allocation2 + $0xf7] sm:$0xff] }
 0x189   :  { %10811 = vrot.lane.b32.xlu0 %v10810_v27, %s12198_s29  ;;  %v653_v27 = vld [vmem:[%s18246_s1 + $0x3b0] sm:$0xff]  ;;  %9356 = vmatpush3.msra.mxu1 %v604_v33 }
 0x18a   :  { %9433 = vmatprep.subr.mxu0 %v653_v27  ;;  %9357 = vmatprep.subr.mxu1 %v619_v42  ;;  %v600_v27 = vld [vmem:[%s18246_s1 + $0x208] sm:$0xff]  ;;  %v633_v33 = vld [vmem:[%s18246_s1 + $0x310] sm:$0xff]  ;;  %v599_v42 = vld [vmem:[%s18246_s1 + $0x200] sm:$0xff] }
 0x18b   :  { %10821 = vrot.lane.b32.xlu1 %v10820_v51, %s12198_s29  ;;  %9434 = vmatpush3.msra.mxu0 %v637_v37  ;;  %v602_v51 = vld [vmem:[%s18246_s1 + $0x218] sm:$0xff] }
 0x18c   :  { %9435 = vmatprep.subr.mxu0 %v652_v45  ;;  %9358 = vmatpush3.msra.mxu1 %v603_v4  ;;  %v13270_v37 = vld [vmem:[#allocation2 + $0xf9] sm:$0xff]  ;;  %v632_v45 = vld [vmem:[%s18246_s1 + $0x308] sm:$0xff] }
 0x18d   :  { %10826 = vrot.lane.b32.xlu0 %v10825_v52, %s12198_s29  ;;  %v635_v52 = vld [vmem:[%s18246_s1 + $0x320] sm:$0xff]  ;;  %9436 = vmatpush3.msra.mxu0 %v636_v5 }
 0x18e   :  { %9359 = vmatprep.subr.mxu1 %v618_v48  ;;  %9437 = vmatprep.subr.mxu0 %v651_v49  ;;  %v13286_v4 = vld [vmem:[#allocation2 + $0xe3] sm:$0xff]  ;;  %v10875_v48 = vpack.i.bf16 %v13262_v23, %v13270_v37  ;;  %v13292_v49 = vld [vmem:[#allocation2 + $0xfb] sm:$0xff] }
 0x18f   :  { %10836 = vrot.lane.b32.xlu1 %v10835_v20, %s12198_s29  ;;  %9360 = vmatpush3.msra.mxu1 %v602_v51  ;;  %v10865_v20 = vpack.i.bf16 %v13228_v53, %v13234_v7  ;;  %v10870_v5 = vpack.i.bf16 %v13286_v4, %v12977_v25  ;;  %v647_v51 = vld [vmem:[%s18246_s1 + $0x380] sm:$0xff] }
 0x190   :  { %9438 = vmatpush3.msra.mxu0 %v635_v52  ;;  %v13297_v52 = vld [vmem:[#allocation2 + $0x10f] sm:$0xff]  ;;  %v631_v25 = vld [vmem:[%s18246_s1 + $0x300] sm:$0xff] }
 0x191   :  { %10831 = vrot.lane.b32.xlu0 %v10830_v6, %s12198_s29  ;;  %v13209_v6 = vld [vmem:[#allocation2 + $0xc9] sm:$0xff]  ;;  %9439 = vmatprep.subr.mxu0 %v650_v55 }
 0x192   :  { %v10855_v1 = vpack.i.bf16 %v13201_v47, %v13209_v6  ;;  %9440 = vmatpush3.msra.mxu0 %v634_v60  ;;  %v13310_v55 = vld [vmem:[#allocation2 + $0x127] sm:$0xff]  ;;  %v13316_v60 = vld [vmem:[#allocation2 + $0x113] sm:$0xff] }
 0x193   :  { %10841 = vrot.lane.b32.xlu1 %v10840_v8, %s12198_s29  ;;  %v617_v8 = vld [vmem:[%s18246_s1 + $0x290] sm:$0xff]  ;;  %9441 = vmatprep.subr.mxu0 %v649_v9 }
 0x194   :  { %9361 = vmatprep.subr.mxu1 %v617_v8  ;;  %9442 = vmatpush3.msra.mxu0 %v633_v33  ;;  %v13322_v9 = vld [vmem:[#allocation2 + $0x12b] sm:$0xff]  ;;  %v1666_v33 = vld [vmem:[#allocation2 + $0x13e] sm:$0xff] }
 0x195   :  { %10846 = vrot.lane.b32.xlu0 %v10845_v40, %s12198_s29  ;;  %9362 = vmatpush3.msra.mxu1 %v601_v62  ;;  %v648_v40 = vld [vmem:[%s18246_s1 + $0x388] sm:$0xff] }
 0x196   :  { %9363 = vmatprep.subr.mxu1 %v616_v3  ;;  %9443 = vmatprep.subr.mxu0 %v648_v40  ;;  %v13312_v62 = vld [vmem:[#allocation2 + $0x129] sm:$0xff]  ;;  %v10890_v3 = vpack.i.bf16 %v13316_v60, %v13009_v44  ;;  %v13333_v44 = vld [vmem:[#allocation2 + $0x219] sm:$0xff]  ;;  %v10900_v40 = vpack.i.bf16 %v13322_v9, %v1666_v33 }
 0x197   :  { %10851 = vrot.lane.b32.xlu1 %v10850_v54, %s12198_s29  ;;  %9364 = vmatpush3.msra.mxu1 %v600_v27  ;;  %v13299_v54 = vld [vmem:[#allocation2 + $0x111] sm:$0xff]  ;;  %v13358_v33 = vld [vmem:[#allocation2 + $0x247] sm:$0xff] }
 0x198   :  { %9365 = vmatprep.subr.mxu1 %v615_v12  ;;  %9444 = vmatpush3.msra.mxu0 %v632_v45  ;;  %v10885_v8 = vpack.i.bf16 %v13297_v52, %v13299_v54  ;;  %v694_v27 = vld [vmem:[%s18246_s1 + $0x4f8] sm:$0xff] }
 0x199   :  { %10856 = vrot.lane.b32.xlu0 %v10855_v1, %s12198_s29  ;;  %9366 = vmatpush3.msra.mxu1 %v599_v42  ;;  %v10880_v1 = vpack.i.bf16 %v13292_v49, %v12993_v35  ;;  %v10895_v35 = vpack.i.bf16 %v13310_v55, %v13312_v62  ;;  %v13331_v12 = vld [vmem:[#allocation2 + $0x217] sm:$0xff] }
 0x19a   :  { %9445 = vmatprep.subr.mxu0 %v647_v51  ;;  %9495 = vmatprep.subr.mxu1 %v694_v27  ;;  %v1667_v45 = vld [vmem:[#allocation2 + $0x156] sm:$0xff] }
 0x19b   :  { %10861 = vrot.lane.b32.xlu1 %v10860_v11, %s12198_s29  ;;  %9446 = vmatpush3.msra.mxu0 %v631_v25  ;;  %v13324_v11 = vld [vmem:[#allocation2 + $0x13f] sm:$0xff]  ;;  %v13356_v27 = vld [vmem:[#allocation2 + $0x233] sm:$0xff] }
 0x19c   :  { %v726_v51 = vld [vmem:[%s18246_s1 + $0x5f8] sm:$0xff]  ;;  %v1538_v25 = vld [vmem:[#allocation2 + $0x143] sm:$0xff] }
 0x19d   :  { %10866 = vrot.lane.b32.xlu0 %v10865_v20, %s12198_s29  ;;  %v1410_v20 = vld [vmem:[#allocation2 + $0x141] sm:$0xff]  ;;  %9575 = vmatprep.subr.mxu0 %v726_v51 }
 0x19e   :  { %v10905_v42 = vpack.i.bf16 %v13324_v11, %v1410_v20  ;;  %v13372_v51 = vld [vmem:[#allocation2 + $0x261] sm:$0xff] }
 0x19f   :  { %10871 = vrot.lane.b32.xlu1 %v10870_v5, %s12198_s29  ;;  %v10915_v5 = vpack.i.bf16 %v13331_v12, %v13333_v44 }
 0x1a1   :  { %10876 = vrot.lane.b32.xlu0 %v10875_v48, %s12198_s29  ;;  %v13341_v48 = vld [vmem:[#allocation2 + $0x21b] sm:$0xff] }
 0x1a3   :  { %10881 = vrot.lane.b32.xlu1 %v10880_v1, %s12198_s29  ;;  %v13346_v1 = vld [vmem:[#allocation2 + $0x22f] sm:$0xff] }
 0x1a5   :  { %10886 = vrot.lane.b32.xlu0 %v10885_v8, %s12198_s29  ;;  %v13348_v8 = vld [vmem:[#allocation2 + $0x231] sm:$0xff] }
 0x1a6   :  { %v10925_v20 = vpack.i.bf16 %v13346_v1, %v13348_v8 }
 0x1a7   :  { %10891 = vrot.lane.b32.xlu1 %v10890_v3, %s12198_s29  ;;  %v10910_v3 = vpack.i.bf16 %v1538_v25, %v1667_v45 }
 0x1a9   :  { %10896 = vrot.lane.b32.xlu0 %v10895_v35, %s12198_s29  ;;  %v10920_v35 = vpack.i.bf16 %v13341_v48, %v13026_v21  ;;  %v13368_v21 = vld [vmem:[#allocation2 + $0x24b] sm:$0xff] }
 0x1aa   :  { %v10940_v25 = vpack.i.bf16 %v13368_v21, %v13056_v57  ;;  %v13392_v57 = vld [vmem:[#allocation2 + $0x27b] sm:$0xff] }
 0x1ab   :  { %10901 = vrot.lane.b32.xlu1 %v10900_v40, %s12198_s29  ;;  %v13360_v40 = vld [vmem:[#allocation2 + $0x249] sm:$0xff]  ;;  %18248 = vst [vmem:[#allocation10_spill] sm:$0xff] %v13392_v57 }
 0x1ac   :  { %v10935_v45 = vpack.i.bf16 %v13358_v33, %v13360_v40 }
 0x1ad   :  { %10906 = vrot.lane.b32.xlu0 %v10905_v42, %s12198_s29  ;;  %v10930_v42 = vpack.i.bf16 %v13356_v27, %v13037_v41  ;;  %v13380_v41 = vld [vmem:[#allocation2 + $0x277] sm:$0xff] }
 0x1af   :  { %10911 = vrot.lane.b32.xlu1 %v10910_v3, %s12198_s29 }
 0x1b1   :  { %10916 = vrot.lane.b32.xlu0 %v10915_v5, %s12198_s29  ;;  %v13370_v5 = vld [vmem:[#allocation2 + $0x25f] sm:$0xff] }
 0x1b2   :  { %v10945_v3 = vpack.i.bf16 %v13370_v5, %v13372_v51 }
 0x1b3   :  { %10921 = vrot.lane.b32.xlu1 %v10920_v35, %s12198_s29  ;;  %v13382_v35 = vld [vmem:[#allocation2 + $0x279] sm:$0xff] }
 0x1b4   :  { %18247 = vst [vmem:[#allocation9_spill] sm:$0xff] %v13382_v35 }
 0x1b5   :  { %10926 = vrot.lane.b32.xlu0 %v10925_v20, %s12198_s29  ;;  %v13386_v20 = vld [vmem:[#allocation2 + $0x263] sm:$0xff] }
 0x1b7   :  { %10931 = vrot.lane.b32.xlu1 %v10930_v42, %s12198_s29  ;;  %v10950_v42 = vpack.i.bf16 %v13386_v20, %v13083_v31  ;;  %v13404_v31 = vld [vmem:[#allocation2 + $0x2a7] sm:$0xff] }
 0x1b8   :  { %18251 = vst [vmem:[#allocation13_spill] sm:$0xff] %v13404_v31 }
 0x1b9   :  { %10936 = vrot.lane.b32.xlu0 %v10935_v45, %s12198_s29  ;;  %v10955_v45 = vpack.i.bf16 %v13380_v41, %v13382_v35 }
 0x1bb   :  { %10941 = vrot.lane.b32.xlu1 %v10940_v25, %s12198_s29  ;;  %v10960_v25 = vpack.i.bf16 %v13392_v57, %v13105_v50  ;;  %v13415_v50 = vld [vmem:[#allocation2 + $0x2bf] sm:$0xff] }
 0x1bd   :  { %10946 = vrot.lane.b32.xlu0 %v10945_v3, %s12198_s29  ;;  %v10965_v3 = vpack.i.bf16 %v13394_v34, %v13396_v38  ;;  %v1546_v38 = vld [vmem:[#allocation2 + $0x2c3] sm:$0xff] }
 0x1be   :  { %v10995_v35 = vpack.i.bf16 %v1546_v38, %v1675_v14 }
 0x1bf   :  { %10951 = vrot.lane.b32.xlu1 %v10950_v42, %s12198_s29  ;;  %v10970_v42 = vpack.i.bf16 %v13408_v36, %v13129_v30 }
 0x1c1   :  { %10956 = vrot.lane.b32.xlu0 %v10955_v45, %s12198_s29  ;;  %v10975_v45 = vpack.i.bf16 %v13404_v31, %v1417_v29  ;;  %v11157_v29 = vld [vmem:[#allocation2 + $0xb0] sm:$0xff] }
 0x1c2   :  { %v10985_v30 = vpack.i.bf16 %v11157_v29, %v12929_v58 }
 0x1c3   :  { %10961 = vrot.lane.b32.xlu1 %v10960_v25, %s12198_s29  ;;  %v10990_v25 = vpack.i.bf16 %v13413_v19, %v1674_v2 }
 0x1c5   :  { %10966 = vrot.lane.b32.xlu0 %v10965_v3, %s12198_s29  ;;  %v10980_v3 = vpack.i.bf16 %v13415_v50, %v1418_v26 }
 0x1c7   :  { %10971 = vrot.lane.b32.xlu1 %v10970_v42, %s12198_s29 }
 0x1c9   :  { %10976 = vrot.lane.b32.xlu0 %v10975_v45, %s12198_s29 }
 0x1cb   :  { %10991 = vrot.lane.b32.xlu1 %v10990_v25, %s12198_s29 }
 0x1cd   :  { %10981 = vrot.lane.b32.xlu0 %v10980_v3, %s12198_s29  ;;  %v10702_v31 = vpop.permute.xlu1 %10701 }
 0x1ce   :  { %v10704_v42 = vunpack.i.h.bf16 %v10702_v31  ;;  %v10703_v34 = vunpack.i.l.bf16 %v10702_v31 }
 0x1cf   :  { %v10707_v36 = vpop.permute.xlu0 %10706  ;;  %10996 = vrot.lane.b32.xlu1 %v10995_v35, %s12198_s29 }
 0x1d0   :  { %v10709_v45 = vunpack.i.h.bf16 %v10707_v36  ;;  %v10708_v57 = vunpack.i.l.bf16 %v10707_v36  ;;  %v1229_v2 = vsel %vm66_vm1, %v13199_v46, %v10703_v34  ;;  %v1100_v38 = vsel %vm66_vm1, %v13172_v16, %v10704_v42 }
 0x1d1   :  { %10986 = vrot.lane.b32.xlu0 %v10985_v30, %s12198_s29  ;;  %v10717_v14 = vpop.permute.xlu1 %10716  ;;  %2701 = vmatprep.mubr.f32.mxu0 %v1229_v2  ;;  %v11000_v36 = vpack.i.bf16 %v12936_v61, %v13201_v47  ;;  %v18253_v46 = vpack.i.bf16 %v12940_v0, %v12949_v10  ;;  %v11010_v0 = vpack.i.bf16 %v12962_v17, %v13228_v53 }
 0x1d2   :  { %v973_v26 = vsel %vm66_vm1, %v13201_v47, %v10708_v57  ;;  %v845_v58 = vsel %vm66_vm1, %v12936_v61, %v10709_v45  ;;  %v10719_v35 = vunpack.i.h.bf16 %v10717_v14  ;;  %v10718_v25 = vunpack.i.l.bf16 %v10717_v14  ;;  %2702 = vmatmul.mubr.f32.gmra.mxu0 %v1100_v38 }
 0x1d3   :  { %v10712_v31 = vpop.permute.xlu0 %10711  ;;  %2561 = vmatprep.mubr.f32.mxu1 %v973_v26  ;;  %11001 = vrot.lane.b32.xlu1 %v11000_v36, %s12198_s29  ;;  %v18254_v2 = vpack.i.bf16 %v12931_v59, %v12934_v63  ;;  %v11020_v59 = vpack.i.bf16 %v12975_v24, %v13262_v23  ;;  %v18255_v36 = vpack.i.bf16 %v12964_v18, %v12973_v22 }
 0x1d4   :  { %v10714_v3 = vunpack.i.h.bf16 %v10712_v31  ;;  %v10713_v34 = vunpack.i.l.bf16 %v10712_v31  ;;  %2562 = vmatmul.mubr.f32.gmra.mxu1 %v845_v58  ;;  %v1230_v16 = vsel %vm66_vm1, %v13242_v56, %v10718_v25  ;;  %v1101_v47 = vsel %vm66_vm1, %v13209_v6, %v10719_v35 }
 0x1d5   :  { %11006 = vrot.lane.b32.xlu0 %v18253_v46, %s12198_s29  ;;  %v10722_v29 = vpop.permute.xlu1 %10721  ;;  %2706 = vmatprep.mubr.f32.mxu0 %v1230_v16  ;;  %v11030_v18 = vpack.i.bf16 %v13000_v39, %v13297_v52  ;;  %v18256_v16 = vpack.i.bf16 %v12953_v13, %v12960_v15  ;;  %v11040_v13 = vpack.i.bf16 %v13007_v43, %v13310_v55  ;;  %v882_v15 = vld [vmem:[#allocation2 + $0x1ff] sm:$0xff] }
 0x1d6   :  { %v974_v57 = vsel %vm66_vm1, %v13228_v53, %v10713_v34  ;;  %v846_v61 = vsel %vm66_vm1, %v12962_v17, %v10714_v3  ;;  %v10724_v10 = vunpack.i.h.bf16 %v10722_v29  ;;  %v10723_v42 = vunpack.i.l.bf16 %v10722_v29  ;;  %2707 = vmatmul.mubr.f32.gmra.mxu0 %v1101_v47  ;;  %v754_v29 = vld [vmem:[#allocation2 + $0x1fd] sm:$0xff] }
 0x1d7   :  { %v10727_v30 = vpop.permute.xlu0 %10726  ;;  %2566 = vmatprep.mubr.f32.mxu1 %v974_v57  ;;  %11011 = vrot.lane.b32.xlu1 %v11010_v0, %s12198_s29 }
 0x1d8   :  { %v10729_v45 = vunpack.i.h.bf16 %v10727_v30  ;;  %v10728_v56 = vunpack.i.l.bf16 %v10727_v30  ;;  %2567 = vmatmul.mubr.f32.gmra.mxu1 %v846_v61  ;;  %v1231_v6 = vsel %vm66_vm1, %v13286_v4, %v10723_v42  ;;  %v1102_v53 = vsel %vm66_vm1, %v13234_v7, %v10724_v10  ;;  %v13496_v42 = vld [vmem:[#allocation2 + $0x13d] sm:$0xff] }
 0x1d9   :  { %11016 = vrot.lane.b32.xlu0 %v18254_v2, %s12198_s29  ;;  %v10737_v58 = vpop.permute.xlu1 %10736  ;;  %2711 = vmatprep.mubr.f32.mxu0 %v1231_v6 }
 0x1da   :  { %v975_v26 = vsel %vm66_vm1, %v13262_v23, %v10728_v56  ;;  %v847_v17 = vsel %vm66_vm1, %v12975_v24, %v10729_v45  ;;  %v10739_v63 = vunpack.i.h.bf16 %v10737_v58  ;;  %v10738_v14 = vunpack.i.l.bf16 %v10737_v58  ;;  %2712 = vmatmul.mubr.f32.gmra.mxu0 %v1102_v53  ;;  %v13498_v45 = vld [vmem:[#allocation2 + $0x140] sm:$0xff]  ;;  %v755_v58 = vld [vmem:[#allocation2 + $0x215] sm:$0xff] }
 0x1db   :  { %v10732_v38 = vpop.permute.xlu0 %10731  ;;  %2571 = vmatprep.mubr.f32.mxu1 %v975_v26  ;;  %11021 = vrot.lane.b32.xlu1 %v11020_v59, %s12198_s29  ;;  %v13513_v26 = vld [vmem:[#allocation2 + $0x155] sm:$0xff] }
 0x1dc   :  { %v10734_v31 = vunpack.i.h.bf16 %v10732_v38  ;;  %v10733_v4 = vunpack.i.l.bf16 %v10732_v38  ;;  %2572 = vmatmul.mubr.f32.gmra.mxu1 %v847_v17  ;;  %v1232_v7 = vsel %vm66_vm1, %v13292_v49, %v10738_v14  ;;  %v1103_v23 = vsel %vm66_vm1, %v13270_v37, %v10739_v63  ;;  %v1010_v38 = vld [vmem:[#allocation2 + $0x201] sm:$0xff] }
 0x1dd   :  { %11026 = vrot.lane.b32.xlu0 %v18255_v36, %s12198_s29  ;;  %v10742_v25 = vpop.permute.xlu1 %10741  ;;  %2716 = vmatprep.mubr.f32.mxu0 %v1232_v7  ;;  %v1923_v36 = vld [vmem:[#allocation2 + $0x15a] sm:$0xff] }
 0x1de   :  { %v976_v35 = vsel %vm66_vm1, %v13297_v52, %v10733_v4  ;;  %v848_v24 = vsel %vm66_vm1, %v13000_v39, %v10734_v31  ;;  %v10744_v22 = vunpack.i.h.bf16 %v10742_v25  ;;  %v10743_v34 = vunpack.i.l.bf16 %v10742_v25  ;;  %2717 = vmatmul.mubr.f32.gmra.mxu0 %v1103_v23  ;;  %v1795_v4 = vld [vmem:[#allocation2 + $0x158] sm:$0xff]  ;;  %v13526_v23 = vld [vmem:[#allocation2 + $0x230] sm:$0xff] }
 0x1df   :  { %v10747_v3 = vpop.permute.xlu0 %10746  ;;  %2576 = vmatprep.mubr.f32.mxu1 %v976_v35  ;;  %11031 = vrot.lane.b32.xlu1 %v11030_v18, %s12198_s29  ;;  %v13528_v25 = vld [vmem:[#allocation2 + $0x232] sm:$0xff] }
 0x1e0   :  { %v10749_v46 = vunpack.i.h.bf16 %v10747_v3  ;;  %v10748_v49 = vunpack.i.l.bf16 %v10747_v3  ;;  %2577 = vmatmul.mubr.f32.gmra.mxu1 %v848_v24  ;;  %v1233_v37 = vsel %vm66_vm1, %v13316_v60, %v10743_v34  ;;  %v1104_v52 = vsel %vm66_vm1, %v13299_v54, %v10744_v22  ;;  %v13500_v54 = vld [vmem:[#allocation2 + $0x142] sm:$0xff] }
 0x1e1   :  { %11036 = vrot.lane.b32.xlu0 %v18256_v16, %s12198_s29  ;;  %v10757_v61 = vpop.permute.xlu1 %10756  ;;  %2721 = vmatprep.mubr.f32.mxu0 %v1233_v37  ;;  %v11065_v34 = vpack.i.bf16 %v1795_v4, %v1923_v36 }
 0x1e2   :  { %v977_v57 = vsel %vm66_vm1, %v13310_v55, %v10748_v49  ;;  %v849_v39 = vsel %vm66_vm1, %v13007_v43, %v10749_v46  ;;  %v10759_v30 = vunpack.i.h.bf16 %v10757_v61  ;;  %v10758_v60 = vunpack.i.l.bf16 %v10757_v61  ;;  %2722 = vmatmul.mubr.f32.gmra.mxu0 %v1104_v52  ;;  %v13531_v46 = vld [vmem:[#allocation2 + $0x22d] sm:$0xff] }
 0x1e3   :  { %v10752_v47 = vpop.permute.xlu0 %10751  ;;  %2581 = vmatprep.mubr.f32.mxu1 %v977_v57  ;;  %11041 = vrot.lane.b32.xlu1 %v11040_v13, %s12198_s29  ;;  %v18257_v43 = vpack.i.bf16 %v12984_v28, %v12991_v32  ;;  %v11050_v28 = vpack.i.bf16 %v13496_v42, %v13324_v11  ;;  %v11055_v32 = vpack.i.bf16 %v13498_v45, %v13500_v54  ;;  %v2051_v57 = vld [vmem:[#allocation2 + $0x16d] sm:$0xff] }
 0x1e4   :  { %v10754_v0 = vunpack.i.h.bf16 %v10752_v47  ;;  %v10753_v10 = vunpack.i.l.bf16 %v10752_v47  ;;  %2582 = vmatmul.mubr.f32.gmra.mxu1 %v849_v39  ;;  %v1234_v55 = vsel %vm66_vm1, %v13322_v9, %v10758_v60  ;;  %v1105_v6 = vsel %vm66_vm1, %v13312_v62, %v10759_v30  ;;  %v1138_v9 = vld [vmem:[#allocation2 + $0x203] sm:$0xff]  ;;  %v2178_v62 = vld [vmem:[#allocation2 + $0x157] sm:$0xff]  ;;  %v2179_v39 = vld [vmem:[#allocation2 + $0x16f] sm:$0xff] }
 0x1e5   :  { %11046 = vrot.lane.b32.xlu0 %v18257_v43, %s12198_s29  ;;  %v10762_v17 = vpop.permute.xlu1 %10761  ;;  %2726 = vmatprep.mubr.f32.mxu0 %v1234_v55  ;;  %v11060_v22 = vpack.i.bf16 %v13513_v26, %v2178_v62  ;;  %v11075_v52 = vpack.i.bf16 %v13526_v23, %v13528_v25  ;;  %v11070_v60 = vpack.i.bf16 %v2051_v57, %v2179_v39 }
 0x1e6   :  { %v978_v56 = vsel %vm66_vm1, %v882_v15, %v10753_v10  ;;  %v850_v2 = vsel %vm66_vm1, %v754_v29, %v10754_v0  ;;  %v10764_v59 = vunpack.i.h.bf16 %v10762_v17  ;;  %v10763_v63 = vunpack.i.l.bf16 %v10762_v17  ;;  %2727 = vmatmul.mubr.f32.gmra.mxu0 %v1105_v6 }
 0x1e7   :  { %v10767_v53 = vpop.permute.xlu0 %10766  ;;  %2586 = vmatprep.mubr.f32.mxu1 %v978_v56  ;;  %11051 = vrot.lane.b32.xlu1 %v11050_v28, %s12198_s29  ;;  %v13549_v56 = vld [vmem:[#allocation2 + $0x24a] sm:$0xff] }
 0x1e8   :  { %v10769_v14 = vunpack.i.h.bf16 %v10767_v53  ;;  %v10768_v31 = vunpack.i.l.bf16 %v10767_v53  ;;  %2587 = vmatmul.mubr.f32.gmra.mxu1 %v850_v2  ;;  %v1235_v11 = vsel %vm66_vm1, %v1138_v9, %v10763_v63  ;;  %v1106_v24 = vsel %vm66_vm1, %v1010_v38, %v10764_v59  ;;  %v13565_v63 = vld [vmem:[#allocation2 + $0x25d] sm:$0xff] }
 0x1e9   :  { %11056 = vrot.lane.b32.xlu0 %v11055_v32, %s12198_s29  ;;  %v10772_v3 = vpop.permute.xlu1 %10771  ;;  %2731 = vmatprep.mubr.f32.mxu0 %v1235_v11 }
 0x1ea   :  { %v979_v7 = vsel %vm66_vm1, %v13331_v12, %v10768_v31  ;;  %v851_v35 = vsel %vm66_vm1, %v755_v58, %v10769_v14  ;;  %v10774_v49 = vunpack.i.h.bf16 %v10772_v3  ;;  %v10773_v16 = vunpack.i.l.bf16 %v10772_v3  ;;  %2732 = vmatmul.mubr.f32.gmra.mxu0 %v1106_v24  ;;  %v13567_v14 = vld [vmem:[#allocation2 + $0x260] sm:$0xff] }
 0x1eb   :  { %v10777_v18 = vpop.permute.xlu0 %10776  ;;  %2591 = vmatprep.mubr.f32.mxu1 %v979_v7  ;;  %11061 = vrot.lane.b32.xlu1 %v11060_v22, %s12198_s29  ;;  %v11090_v7 = vpack.i.bf16 %v13565_v63, %v13370_v5  ;;  %v13585_v22 = vld [vmem:[#allocation2 + $0x275] sm:$0xff] }
 0x1ec   :  { %v10779_v12 = vunpack.i.h.bf16 %v10777_v18  ;;  %v10778_v37 = vunpack.i.l.bf16 %v10777_v18  ;;  %2592 = vmatmul.mubr.f32.gmra.mxu1 %v851_v35  ;;  %v1236_v61 = vsel %vm66_vm1, %v13341_v48, %v10773_v16  ;;  %v1107_v15 = vsel %vm66_vm1, %v13333_v44, %v10774_v49  ;;  %v13545_v48 = vld [vmem:[#allocation2 + $0x245] sm:$0xff] }
 0x1ed   :  { %11066 = vrot.lane.b32.xlu0 %v11065_v34, %s12198_s29  ;;  %v10782_v29 = vpop.permute.xlu1 %10781  ;;  %2736 = vmatprep.mubr.f32.mxu0 %v1236_v61  ;;  %v11080_v32 = vpack.i.bf16 %v13545_v48, %v13358_v33  ;;  %v13587_v34 = vld [vmem:[#allocation2 + $0x278] sm:$0xff]  ;;  %v11100_v39 = vpack.i.bf16 %v13585_v22, %v13380_v41 }
 0x1ee   :  { %v980_v47 = vsel %vm66_vm1, %v13346_v1, %v10778_v37  ;;  %v852_v13 = vsel %vm66_vm1, %v13531_v46, %v10779_v12  ;;  %v10784_v0 = vunpack.i.h.bf16 %v10782_v29  ;;  %v10783_v10 = vunpack.i.l.bf16 %v10782_v29  ;;  %2737 = vmatmul.mubr.f32.gmra.mxu0 %v1107_v15  ;;  %v13547_v1 = vld [vmem:[#allocation2 + $0x248] sm:$0xff]  ;;  %v13607_v29 = vld [vmem:[#allocation2 + $0x290] sm:$0xff] }
 0x1ef   :  { %v10787_v30 = vpop.permute.xlu0 %10786  ;;  %2596 = vmatprep.mubr.f32.mxu1 %v980_v47  ;;  %11071 = vrot.lane.b32.xlu1 %v11070_v60, %s12198_s29  ;;  %v11085_v9 = vpack.i.bf16 %v13547_v1, %v13549_v56  ;;  %v13605_v15 = vld [vmem:[#allocation2 + $0x28d] sm:$0xff] }
 0x1f0   :  { %v10789_v43 = vunpack.i.h.bf16 %v10787_v30  ;;  %v10788_v55 = vunpack.i.l.bf16 %v10787_v30  ;;  %2597 = vmatmul.mubr.f32.gmra.mxu1 %v852_v13  ;;  %v1237_v44 = vsel %vm66_vm1, %v13356_v27, %v10783_v10  ;;  %v1108_v17 = vsel %vm66_vm1, %v13348_v8, %v10784_v0  ;;  %v13569_v8 = vld [vmem:[#allocation2 + $0x262] sm:$0xff]  ;;  %v18259_v60 = vld [vmem:[#allocation11_spill] sm:$0xff] }
 0x1f1   :  { %11076 = vrot.lane.b32.xlu0 %v11075_v52, %s12198_s29  ;;  %v10797_v53 = vpop.permute.xlu1 %10796  ;;  %2741 = vmatprep.mubr.f32.mxu0 %v1237_v44  ;;  %v11095_v35 = vpack.i.bf16 %v13567_v14, %v13569_v8 }
 0x1f2   :  { %v981_v2 = vsel %vm66_vm1, %v13358_v33, %v10788_v55  ;;  %v853_v6 = vsel %vm66_vm1, %v13545_v48, %v10789_v43  ;;  %v10799_v27 = vunpack.i.h.bf16 %v10797_v53  ;;  %v10798_v58 = vunpack.i.l.bf16 %v10797_v53  ;;  %2742 = vmatmul.mubr.f32.gmra.mxu0 %v1108_v17  ;;  %v18260_v43 = vld [vmem:[#allocation9_spill] sm:$0xff] }
 0x1f3   :  { %v10792_v28 = vpop.permute.xlu0 %10791  ;;  %2601 = vmatprep.mubr.f32.mxu1 %v981_v2  ;;  %11081 = vrot.lane.b32.xlu1 %v11080_v32, %s12198_s29 }
 0x1f4   :  { %v10794_v38 = vunpack.i.h.bf16 %v10792_v28  ;;  %v10793_v59 = vunpack.i.l.bf16 %v10792_v28  ;;  %2602 = vmatmul.mubr.f32.gmra.mxu1 %v853_v6  ;;  %v1238_v33 = vsel %vm66_vm1, %v13368_v21, %v10798_v58  ;;  %v1109_v4 = vsel %vm66_vm1, %v13360_v40, %v10799_v27  ;;  %v13589_v40 = vld [vmem:[#allocation2 + $0x27a] sm:$0xff]  ;;  %v13625_v27 = vld [vmem:[#allocation2 + $0x2a5] sm:$0xff] }
 0x1f5   :  { %11086 = vrot.lane.b32.xlu0 %v11085_v9, %s12198_s29  ;;  %v10802_v36 = vpop.permute.xlu1 %10801  ;;  %2746 = vmatprep.mubr.f32.mxu0 %v1238_v33  ;;  %v11105_v52 = vpack.i.bf16 %v13587_v34, %v13589_v40  ;;  %v11110_v6 = vpack.i.bf16 %v13605_v15, %v18259_v60  ;;  %v13627_v58 = vld [vmem:[#allocation2 + $0x2a8] sm:$0xff] }
 0x1f6   :  { %v982_v31 = vsel %vm66_vm1, %v13370_v5, %v10793_v59  ;;  %v854_v62 = vsel %vm66_vm1, %v13565_v63, %v10794_v38  ;;  %v10804_v21 = vunpack.i.h.bf16 %v10802_v36  ;;  %v10803_v24 = vunpack.i.l.bf16 %v10802_v36  ;;  %2747 = vmatmul.mubr.f32.gmra.mxu0 %v1109_v4  ;;  %v13629_v38 = vld [vmem:[#allocation2 + $0x2aa] sm:$0xff]  ;;  %v18263_v36 = vld [vmem:[#allocation12_spill] sm:$0xff] }
 0x1f7   :  { %v10807_v11 = vpop.permute.xlu0 %10806  ;;  %2606 = vmatprep.mubr.f32.mxu1 %v982_v31  ;;  %11091 = vrot.lane.b32.xlu1 %v11090_v7, %s12198_s29  ;;  %v18261_v59 = vld [vmem:[#allocation14_spill] sm:$0xff]  ;;  %v18262_v31 = vld [vmem:[#allocation13_spill] sm:$0xff] }
 0x1f8   :  { %v10809_v3 = vunpack.i.h.bf16 %v10807_v11  ;;  %v10808_v18 = vunpack.i.l.bf16 %v10807_v11  ;;  %2607 = vmatmul.mubr.f32.gmra.mxu1 %v854_v62  ;;  %v1239_v5 = vsel %vm66_vm1, %v13386_v20, %v10803_v24  ;;  %v1110_v12 = vsel %vm66_vm1, %v13372_v51, %v10804_v21  ;;  %v13609_v51 = vld [vmem:[#allocation2 + $0x292] sm:$0xff] }
 0x1f9   :  { %11096 = vrot.lane.b32.xlu0 %v11095_v35, %s12198_s29  ;;  %v10817_v37 = vpop.permute.xlu1 %10816  ;;  %2751 = vmatprep.mubr.f32.mxu0 %v1239_v5  ;;  %v11115_v17 = vpack.i.bf16 %v13607_v29, %v13609_v51  ;;  %v11120_v21 = vpack.i.bf16 %v13625_v27, %v18262_v31  ;;  %v11125_v24 = vpack.i.bf16 %v13627_v58, %v13629_v38 }
 0x1fa   :  { %v983_v49 = vsel %vm66_vm1, %v13380_v41, %v10808_v18  ;;  %v855_v16 = vsel %vm66_vm1, %v13585_v22, %v10809_v3  ;;  %v10819_v20 = vunpack.i.h.bf16 %v10817_v37  ;;  %v10818_v61 = vunpack.i.l.bf16 %v10817_v37  ;;  %2752 = vmatmul.mubr.f32.gmra.mxu0 %v1110_v12  ;;  %v18258_v41 = vld [vmem:[#allocation10_spill] sm:$0xff]  ;;  %v1387_v3 = vld [vmem:[#allocation2 + $0x98] sm:$0xff] }
 0x1fb   :  { %v10812_v57 = vpop.permute.xlu0 %10811  ;;  %2611 = vmatprep.mubr.f32.mxu1 %v983_v49  ;;  %11101 = vrot.lane.b32.xlu1 %v11100_v39, %s12198_s29  ;;  %v1259_v18 = vld [vmem:[#allocation2 + $0x96] sm:$0xff]  ;;  %v13649_v39 = vld [vmem:[#allocation2 + $0x2c2] sm:$0xff] }
 0x1fc   :  { %v10814_v47 = vunpack.i.h.bf16 %v10812_v57  ;;  %v10813_v13 = vunpack.i.l.bf16 %v10812_v57  ;;  %2612 = vmatmul.mubr.f32.gmra.mxu1 %v855_v16  ;;  %v1240_v30 = vsel %vm66_vm1, %v18258_v41, %v10818_v61  ;;  %v1111_v55 = vsel %vm66_vm1, %v18260_v43, %v10819_v20  ;;  %v13645_v37 = vld [vmem:[#allocation2 + $0x2bd] sm:$0xff]  ;;  %v1644_v41 = vld [vmem:[#allocation2 + $0xad] sm:$0xff] }
 0x1fd   :  { %11106 = vrot.lane.b32.xlu0 %v11105_v52, %s12198_s29  ;;  %v10822_v44 = vpop.permute.xlu1 %10821  ;;  %2756 = vmatprep.mubr.f32.mxu0 %v1240_v30  ;;  %v13647_v57 = vld [vmem:[#allocation2 + $0x2c0] sm:$0xff]  ;;  %v1017_v52 = vld [vmem:[#allocation2 + $0x2a9] sm:$0xff]  ;;  %v11130_v43 = vpack.i.bf16 %v13645_v37, %v13415_v50 }
 0x1fe   :  { %v984_v0 = vsel %vm66_vm1, %v18259_v60, %v10813_v13  ;;  %v856_v10 = vsel %vm66_vm1, %v13605_v15, %v10814_v47  ;;  %v10824_v53 = vunpack.i.h.bf16 %v10822_v44  ;;  %v10823_v28 = vunpack.i.l.bf16 %v10822_v44  ;;  %2757 = vmatmul.mubr.f32.gmra.mxu0 %v1111_v55  ;;  %v1388_v30 = vld [vmem:[#allocation2 + $0xb0] sm:$0xff] }
 0x1ff   :  { %v10827_v2 = vpop.permute.xlu0 %10826  ;;  %2616 = vmatprep.mubr.f32.mxu1 %v984_v0  ;;  %11111 = vrot.lane.b32.xlu1 %v11110_v6, %s12198_s29  ;;  %v1260_v60 = vld [vmem:[#allocation2 + $0xae] sm:$0xff]  ;;  %v11135_v55 = vpack.i.bf16 %v13647_v57, %v13649_v39 }
 0x200   :  { %v10829_v32 = vunpack.i.h.bf16 %v10827_v2  ;;  %v10828_v9 = vunpack.i.l.bf16 %v10827_v2  ;;  %2617 = vmatmul.mubr.f32.gmra.mxu1 %v856_v10  ;;  %v1241_v33 = vsel %vm66_vm1, %v18261_v59, %v10823_v28  ;;  %v1112_v11 = vsel %vm66_vm1, %v18263_v36, %v10824_v53  ;;  %v13662_v44 = vld [vmem:[#allocation2 + $0x2d5] sm:$0xff] }
 0x201   :  { %11116 = vrot.lane.b32.xlu0 %v11115_v17, %s12198_s29  ;;  %v10837_v7 = vpop.permute.xlu1 %10836  ;;  %2761 = vmatprep.mubr.f32.mxu0 %v1241_v33  ;;  %v678_v2 = vld [vmem:[%s18246_s1 + $0x478] sm:$0xff] }
 0x202   :  { %v985_v62 = vsel %vm66_vm1, %v18262_v31, %v10828_v9  ;;  %v857_v4 = vsel %vm66_vm1, %v13625_v27, %v10829_v32  ;;  %v10839_v5 = vunpack.i.h.bf16 %v10837_v7  ;;  %v10838_v49 = vunpack.i.l.bf16 %v10837_v7  ;;  %2762 = vmatmul.mubr.f32.gmra.mxu0 %v1112_v11  ;;  %v2186_v32 = vld [vmem:[#allocation2 + $0x2d7] sm:$0xff] }
 0x203   :  { %v10832_v35 = vpop.permute.xlu0 %10831  ;;  %2621 = vmatprep.mubr.f32.mxu1 %v985_v62  ;;  %11121 = vrot.lane.b32.xlu1 %v11120_v21, %s12198_s29  ;;  %v1803_v9 = vld [vmem:[#allocation2 + $0x2d8] sm:$0xff]  ;;  %v11140_v11 = vpack.i.bf16 %v13662_v44, %v2186_v32  ;;  %v693_v21 = vld [vmem:[%s18246_s1 + $0x4f0] sm:$0xff] }
 0x204   :  { %v10834_v16 = vunpack.i.h.bf16 %v10832_v35  ;;  %v10833_v12 = vunpack.i.l.bf16 %v10832_v35  ;;  %2622 = vmatmul.mubr.f32.gmra.mxu1 %v857_v4  ;;  %v1242_v20 = vsel %vm66_vm1, %v13413_v19, %v10838_v49  ;;  %v1113_v47 = vsel %vm66_vm1, %v1017_v52, %v10839_v5  ;;  %v1515_v19 = vld [vmem:[#allocation2 + $0x9a] sm:$0xff]  ;;  %v1516_v35 = vld [vmem:[#allocation2 + $0xb2] sm:$0xff]  ;;  %v1645_v52 = vld [vmem:[#allocation2 + $0xc5] sm:$0xff] }
 0x205   :  { %11126 = vrot.lane.b32.xlu0 %v11125_v24, %s12198_s29  ;;  %v10842_v0 = vpop.permute.xlu1 %10841  ;;  %2766 = vmatprep.mubr.f32.mxu0 %v1242_v20  ;;  %v1931_v59 = vld [vmem:[#allocation2 + $0x2da] sm:$0xff]  ;;  %v2059_v49 = vld [vmem:[#allocation2 + $0x2ed] sm:$0xff] }
 0x206   :  { %v1483_v61 = vsel %vm66_vm1, %v1387_v3, %v10833_v12  ;;  %v1355_v13 = vsel %vm66_vm1, %v1259_v18, %v10834_v16  ;;  %v10844_v6 = vunpack.i.h.bf16 %v10842_v0  ;;  %v10843_v17 = vunpack.i.l.bf16 %v10842_v0  ;;  %2767 = vmatmul.mubr.f32.gmra.mxu0 %v1113_v47  ;;  %v2187_v16 = vld [vmem:[#allocation2 + $0x2ef] sm:$0xff]  ;;  %v9207_v12 = vpop.f32.mrf.mxu1 }
 0x207   :  { %v10847_v10 = vpop.permute.xlu0 %10846  ;;  %2836 = vmatprep.mubr.f32.mxu1 %v1483_v61  ;;  %11131 = vrot.lane.b32.xlu1 %v11130_v43, %s12198_s29  ;;  %v11145_v7 = vpack.i.bf16 %v1803_v9, %v1931_v59  ;;  %v1389_v20 = vld [vmem:[#allocation2 + $0xc8] sm:$0xff]  ;;  %v11150_v43 = vpack.i.bf16 %v2059_v49, %v2187_v16  ;;  %v9287_v9 = vpop.f32.mrf.mxu0  ;;  %v1390_v59 = vld [vmem:[#allocation2 + $0xe0] sm:$0xff] }
 0x208   :  { %v10849_v53 = vunpack.i.h.bf16 %v10847_v10  ;;  %v10848_v28 = vunpack.i.l.bf16 %v10847_v10  ;;  %2837 = vmatmul.mubr.f32.vlgmr.msra.gmra.mxu1 %v1355_v13  ;;  %v1740_v50 = vsel %vm66_vm1, %v1644_v41, %v10843_v17  ;;  %v1611_v62 = vsel %vm66_vm1, %v1515_v19, %v10844_v6  ;;  %v13679_v61 = vld [vmem:[#allocation2 + $0xc6] sm:$0xff]  ;;  %v9208_v32 = vpop.f32.mrf.mxu1 }
 0x209   :  { %11136 = vrot.lane.b32.xlu0 %v11135_v55, %s12198_s29  ;;  %9496 = vmatpush3.msra.mxu1 %v678_v2  ;;  %v10852_v4 = vpop.permute.xlu1 %10851  ;;  %v692_v55 = vld [vmem:[%s18246_s1 + $0x4e8] sm:$0xff] }
 0x20a   :  { %v1484_v33 = vsel %vm66_vm1, %v1388_v30, %v10848_v28  ;;  %v1356_v31 = vsel %vm66_vm1, %v1260_v60, %v10849_v53  ;;  %2981 = vmatprep.mubr.f32.mxu0 %v1740_v50  ;;  %v10854_v24 = vunpack.i.h.bf16 %v10852_v4  ;;  %v10853_v3 = vunpack.i.l.bf16 %v10852_v4  ;;  %9497 = vmatprep.subr.mxu1 %v693_v21  ;;  %v677_v60 = vld [vmem:[%s18246_s1 + $0x470] sm:$0xff]  ;;  %v1646_v53 = vld [vmem:[#allocation2 + $0xdd] sm:$0xff]  ;;  %v9210_v21 = vpop.f32.mrf.mxu1 }
 0x20b   :  { %v10857_v36 = vpop.permute.xlu0 %10856  ;;  %2841 = vmatprep.mubr.f32.mxu1 %v1484_v33  ;;  %2982 = vmatmul.mubr.f32.vlgmr.msra.gmra.mxu0 %v1611_v62  ;;  %v9068_v28 = vld [vmem:[%s18264_s28] ss:$0 sm:$0xff]  ;;  %v1517_v33 = vld [vmem:[#allocation2 + $0xca] sm:$0xff] }
 0x20c   :  { %v10859_v18 = vunpack.i.h.bf16 %v10857_v36  ;;  %v10858_v5 = vunpack.i.l.bf16 %v10857_v36  ;;  %2842 = vmatmul.mubr.f32.gmra.mxu1 %v1356_v31  ;;  %11141 = vrot.lane.b32.xlu1 %v11140_v11, %s12198_s29  ;;  %v1741_v47 = vsel %vm66_vm1, %v1645_v52, %v10853_v3  ;;  %v1612_v30 = vsel %vm66_vm1, %v1516_v35, %v10854_v24  ;;  %v13696_v50 = vld [vmem:[#allocation2 + $0xde] sm:$0xff]  ;;  %v9288_v24 = vpop.f32.mrf.mxu0 }
 0x20d   :  { %11146 = vrot.lane.b32.xlu0 %v11145_v7, %s12198_s29  ;;  %v10862_v0 = vpop.permute.xlu1 %10861  ;;  %2986 = vmatprep.mubr.f32.mxu0 %v1741_v47  ;;  %v9209_v31 = vadd.f32 %v9208_v32, %v9207_v12  ;;  %v676_v7 = vld [vmem:[%s18246_s1 + $0x468] sm:$0xff]  ;;  %v710_v35 = vld [vmem:[%s18246_s1 + $0x578] sm:$0xff]  ;;  %v9289_v16 = vadd.f32 %v9288_v24, %v9287_v9  ;;  %v675_v32 = vld [vmem:[%s18246_s1 + $0x460] sm:$0xff] }
 0x20e   :  { %v1485_v13 = vsel %vm66_vm1, %v1389_v20, %v10858_v5  ;;  %v1357_v41 = vsel %vm66_vm1, %v13679_v61, %v10859_v18  ;;  %v10864_v19 = vunpack.i.h.bf16 %v10862_v0  ;;  %v10863_v2 = vunpack.i.l.bf16 %v10862_v0  ;;  %9498 = vmatpush3.msra.mxu1 %v677_v60  ;;  %v691_v5 = vld [vmem:[%s18246_s1 + $0x4e0] sm:$0xff]  ;;  %v1391_v60 = vld [vmem:[#allocation2 + $0xf8] sm:$0xff]  ;;  %9576 = vmatpush3.msra.mxu0 %v710_v35  ;;  %v1392_v24 = vld [vmem:[#allocation2 + $0x110] sm:$0xff] }
 0x20f   :  { %v10867_v10 = vpop.permute.xlu0 %10866  ;;  %2846 = vmatprep.mubr.f32.mxu1 %v1485_v13  ;;  %2987 = vmatmul.mubr.f32.gmra.mxu0 %v1612_v30  ;;  %v2549_v49 = vadd.f32 %v9209_v31, %v9068_v28  ;;  %v1647_v13 = vld [vmem:[#allocation2 + $0xf5] sm:$0xff]  ;;  %v9290_v30 = vpop.f32.mrf.mxu0 }
 0x210   :  { %v10869_v6 = vunpack.i.h.bf16 %v10867_v10  ;;  %v10868_v17 = vunpack.i.l.bf16 %v10867_v10  ;;  %2847 = vmatmul.mubr.f32.gmra.mxu1 %v1357_v41  ;;  %11151 = vrot.lane.b32.xlu1 %v11150_v43, %s12198_s29  ;;  %v1742_v62 = vsel %vm66_vm1, %v1646_v53, %v10863_v2  ;;  %v1613_v11 = vsel %vm66_vm1, %v1517_v33, %v10864_v19  ;;  %v9211_v41 = vpop.f32.mrf.mxu1  ;;  %v13712_v0 = vld [vmem:[#allocation2 + $0xf6] sm:$0xff]  ;;  %v1518_v10 = vld [vmem:[#allocation2 + $0xe2] sm:$0xff] }
 0x211   :  { %9499 = vmatprep.subr.mxu1 %v692_v55  ;;  %v10872_v3 = vpop.permute.xlu1 %10871  ;;  %2991 = vmatprep.mubr.f32.mxu0 %v1742_v62  ;;  %v13714_v43 = vadd.f32 %v9289_v16, %v2549_v49  ;;  %v9212_v55 = vadd.f32 %v9211_v41, %v9210_v21  ;;  %v725_v53 = vld [vmem:[%s18246_s1 + $0x5f0] sm:$0xff]  ;;  %v9291_v9 = vpop.f32.mrf.mxu0  ;;  %v674_v41 = vld [vmem:[%s18246_s1 + $0x458] sm:$0xff] }
 0x212   :  { %v1486_v4 = vsel %vm66_vm1, %v1390_v59, %v10868_v17  ;;  %v1358_v36 = vsel %vm66_vm1, %v13696_v50, %v10869_v6  ;;  %v10874_v12 = vunpack.i.h.bf16 %v10872_v3  ;;  %v10873_v52 = vunpack.i.l.bf16 %v10872_v3  ;;  %9500 = vmatpush3.msra.mxu1 %v676_v7  ;;  %v709_v31 = vld [vmem:[%s18246_s1 + $0x570] sm:$0xff]  ;;  %9577 = vmatprep.subr.mxu0 %v725_v53 }
 0x213   :  { %v10877_v18 = vpop.permute.xlu0 %10876  ;;  %2851 = vmatprep.mubr.f32.mxu1 %v1486_v4  ;;  %2992 = vmatmul.mubr.f32.gmra.mxu0 %v1613_v11  ;;  %v2554_v62 = vadd.f32 %v9212_v55, %v9068_v28  ;;  %v9292_v4 = vadd.f32 %v9291_v9, %v9290_v30  ;;  %v1648_v21 = vld [vmem:[#allocation2 + $0x10d] sm:$0xff] }
 0x214   :  { %v10879_v20 = vunpack.i.h.bf16 %v10877_v18  ;;  %v10878_v47 = vunpack.i.l.bf16 %v10877_v18  ;;  %2852 = vmatmul.mubr.f32.gmra.mxu1 %v1358_v36  ;;  %v1743_v19 = vsel %vm66_vm1, %v1647_v13, %v10873_v52  ;;  %v1614_v17 = vsel %vm66_vm1, %v1518_v10, %v10874_v12  ;;  %9501 = vmatprep.subr.mxu1 %v691_v5  ;;  %v13730_v3 = vld [vmem:[#allocation2 + $0x10e] sm:$0xff]  ;;  %v1519_v18 = vld [vmem:[#allocation2 + $0xfa] sm:$0xff] }
 0x215   :  { %v10882_v59 = vpop.permute.xlu1 %10881  ;;  %2996 = vmatprep.mubr.f32.mxu0 %v1743_v19  ;;  %9502 = vmatpush3.msra.mxu1 %v675_v32  ;;  %v13732_v5 = vadd.f32 %v9292_v4, %v2554_v62  ;;  %v690_v52 = vld [vmem:[%s18246_s1 + $0x4d8] sm:$0xff]  ;;  %v1649_v19 = vld [vmem:[#allocation2 + $0x125] sm:$0xff] }
 0x216   :  { %v1487_v2 = vsel %vm66_vm1, %v1391_v60, %v10878_v47  ;;  %v1359_v6 = vsel %vm66_vm1, %v13712_v0, %v10879_v20  ;;  %v10884_v36 = vunpack.i.h.bf16 %v10882_v59  ;;  %v10883_v11 = vunpack.i.l.bf16 %v10882_v59  ;;  %9578 = vmatpush3.msra.mxu0 %v709_v31  ;;  %v724_v20 = vld [vmem:[%s18246_s1 + $0x5e8] sm:$0xff]  ;;  %9503 = vmatprep.subr.mxu1 %v690_v52  ;;  %v689_v31 = vld [vmem:[%s18246_s1 + $0x4d0] sm:$0xff]  ;;  %v707_v52 = vld [vmem:[%s18246_s1 + $0x560] sm:$0xff] }
 0x217   :  { %v10887_v33 = vpop.permute.xlu0 %10886  ;;  %2856 = vmatprep.mubr.f32.mxu1 %v1487_v2  ;;  %2997 = vmatmul.mubr.f32.gmra.mxu0 %v1614_v17  ;;  %v1393_v2 = vld [vmem:[#allocation2 + $0x128] sm:$0xff]  ;;  %v1520_v17 = vld [vmem:[#allocation2 + $0x112] sm:$0xff] }
 0x218   :  { %v10889_v7 = vunpack.i.h.bf16 %v10887_v33  ;;  %v10888_v35 = vunpack.i.l.bf16 %v10887_v33  ;;  %2857 = vmatmul.mubr.f32.gmra.mxu1 %v1359_v6  ;;  %v1744_v49 = vsel %vm66_vm1, %v1648_v21, %v10883_v11  ;;  %v1615_v12 = vsel %vm66_vm1, %v1519_v18, %v10884_v36  ;;  %v13748_v6 = vld [vmem:[#allocation2 + $0x126] sm:$0xff]  ;;  %9579 = vmatprep.subr.mxu0 %v724_v20  ;;  %v673_v20 = vld [vmem:[%s18246_s1 + $0x450] sm:$0xff] }
 0x219   :  { %v10892_v47 = vpop.permute.xlu1 %10891  ;;  %3001 = vmatprep.mubr.f32.mxu0 %v1744_v49  ;;  %9504 = vmatpush3.msra.mxu1 %v674_v41  ;;  %v708_v33 = vld [vmem:[%s18246_s1 + $0x568] sm:$0xff]  ;;  %v723_v36 = vld [vmem:[%s18246_s1 + $0x5e0] sm:$0xff] }
 0x21a   :  { %v1488_v28 = vsel %vm66_vm1, %v1392_v24, %v10888_v35  ;;  %v1360_v16 = vsel %vm66_vm1, %v13730_v3, %v10889_v7  ;;  %v10894_v30 = vunpack.i.h.bf16 %v10892_v47  ;;  %v10893_v60 = vunpack.i.l.bf16 %v10892_v47  ;;  %v13764_v24 = vld [vmem:[#allocation2 + $0x13e] sm:$0xff]  ;;  %v1521_v18 = vld [vmem:[#allocation2 + $0x12a] sm:$0xff]  ;;  %9580 = vmatpush3.msra.mxu0 %v708_v33  ;;  %9505 = vmatprep.subr.mxu1 %v689_v31 }
 0x21b   :  { %v10897_v13 = vpop.permute.xlu0 %10896  ;;  %2861 = vmatprep.mubr.f32.mxu1 %v1488_v28  ;;  %3002 = vmatmul.mubr.f32.gmra.mxu0 %v1615_v12  ;;  %v688_v41 = vld [vmem:[%s18246_s1 + $0x4c8] sm:$0xff]  ;;  %v1523_v31 = vld [vmem:[#allocation2 + $0x21a] sm:$0xff] }
 0x21c   :  { %v10899_v10 = vunpack.i.h.bf16 %v10897_v13  ;;  %v10898_v55 = vunpack.i.l.bf16 %v10897_v13  ;;  %2862 = vmatmul.mubr.f32.gmra.mxu1 %v1360_v16  ;;  %v1745_v53 = vsel %vm66_vm1, %v1649_v19, %v10893_v60  ;;  %v1616_v59 = vsel %vm66_vm1, %v1520_v17, %v10894_v30  ;;  %9581 = vmatprep.subr.mxu0 %v723_v36  ;;  %v1395_v13 = vld [vmem:[#allocation2 + $0x218] sm:$0xff] }
 0x21d   :  { %v10902_v62 = vpop.permute.xlu1 %10901  ;;  %3006 = vmatprep.mubr.f32.mxu0 %v1745_v53  ;;  %9582 = vmatpush3.msra.mxu0 %v707_v52 }
 0x21e   :  { %v1489_v32 = vsel %vm66_vm1, %v1393_v2, %v10898_v55  ;;  %v1361_v9 = vsel %vm66_vm1, %v13748_v6, %v10899_v10  ;;  %v10904_v11 = vunpack.i.h.bf16 %v10902_v62  ;;  %v10903_v7 = vunpack.i.l.bf16 %v10902_v62  ;;  %9506 = vmatpush3.msra.mxu1 %v673_v20  ;;  %v706_v62 = vld [vmem:[%s18246_s1 + $0x558] sm:$0xff] }
 0x21f   :  { %v10907_v4 = vpop.permute.xlu0 %10906  ;;  %2866 = vmatprep.mubr.f32.mxu1 %v1489_v32  ;;  %3007 = vmatmul.mubr.f32.gmra.mxu0 %v1616_v59  ;;  %v722_v32 = vld [vmem:[%s18246_s1 + $0x5d8] sm:$0xff] }
 0x220   :  { %v10909_v35 = vunpack.i.h.bf16 %v10907_v4  ;;  %v10908_v21 = vunpack.i.l.bf16 %v10907_v4  ;;  %2867 = vmatmul.mubr.f32.gmra.mxu1 %v1361_v9  ;;  %v1746_v49 = vsel %vm66_vm1, %v13496_v42, %v10903_v7  ;;  %v1617_v12 = vsel %vm66_vm1, %v1521_v18, %v10904_v11  ;;  %9507 = vmatprep.subr.mxu1 %v688_v41  ;;  %v672_v9 = vld [vmem:[%s18246_s1 + $0x448] sm:$0xff] }
 0x221   :  { %v10912_v47 = vpop.permute.xlu1 %10911  ;;  %3011 = vmatprep.mubr.f32.mxu0 %v1746_v49  ;;  %9583 = vmatprep.subr.mxu0 %v722_v32  ;;  %v687_v49 = vld [vmem:[%s18246_s1 + $0x4c0] sm:$0xff] }
 0x222   :  { %v1490_v28 = vsel %vm66_vm1, %v13498_v45, %v10908_v21  ;;  %v1362_v16 = vsel %vm66_vm1, %v13764_v24, %v10909_v35  ;;  %v1267_v45 = vld [vmem:[#allocation2 + $0x216] sm:$0xff]  ;;  %v10914_v30 = vunpack.i.h.bf16 %v10912_v47  ;;  %v10913_v60 = vunpack.i.l.bf16 %v10912_v47  ;;  %9508 = vmatpush3.msra.mxu1 %v672_v9  ;;  %9584 = vmatpush3.msra.mxu0 %v706_v62 }
 0x223   :  { %v10917_v42 = vpop.permute.xlu0 %10916  ;;  %2871 = vmatprep.mubr.f32.mxu1 %v1490_v28  ;;  %3012 = vmatmul.mubr.f32.gmra.mxu0 %v1617_v12  ;;  %v721_v28 = vld [vmem:[%s18246_s1 + $0x5d0] sm:$0xff] }
 0x224   :  { %v10919_v10 = vunpack.i.h.bf16 %v10917_v42  ;;  %v10918_v55 = vunpack.i.l.bf16 %v10917_v42  ;;  %2872 = vmatmul.mubr.f32.gmra.mxu1 %v1362_v16  ;;  %v1747_v19 = vsel %vm66_vm1, %v13513_v26, %v10913_v60  ;;  %v1618_v53 = vsel %vm66_vm1, %v13500_v54, %v10914_v30  ;;  %v1268_v26 = vld [vmem:[#allocation2 + $0x22e] sm:$0xff]  ;;  %v13812_v42 = vld [vmem:[#allocation2 + $0x246] sm:$0xff]  ;;  %9509 = vmatprep.subr.mxu1 %v687_v49 }
 0x225   :  { %v10922_v59 = vpop.permute.xlu1 %10921  ;;  %3016 = vmatprep.mubr.f32.mxu0 %v1747_v19  ;;  %9585 = vmatprep.subr.mxu0 %v721_v28  ;;  %v671_v60 = vld [vmem:[%s18246_s1 + $0x440] sm:$0xff]  ;;  %v669_v28 = vld [vmem:[%s18246_s1 + $0x430] sm:$0xff] }
 0x226   :  { %v1491_v2 = vsel %vm66_vm1, %v1395_v13, %v10918_v55  ;;  %v1363_v17 = vsel %vm66_vm1, %v1267_v45, %v10919_v10  ;;  %v10924_v54 = vunpack.i.h.bf16 %v10922_v59  ;;  %v10923_v4 = vunpack.i.l.bf16 %v10922_v59  ;;  %v720_v10 = vld [vmem:[%s18246_s1 + $0x5c8] sm:$0xff]  ;;  %9510 = vmatpush3.msra.mxu1 %v671_v60  ;;  %v719_v49 = vld [vmem:[%s18246_s1 + $0x5c0] sm:$0xff] }
 0x227   :  { %v10927_v33 = vpop.permute.xlu0 %10926  ;;  %2876 = vmatprep.mubr.f32.mxu1 %v1491_v2  ;;  %3017 = vmatmul.mubr.f32.gmra.mxu0 %v1618_v53  ;;  %v13831_v53 = vld [vmem:[#allocation2 + $0x25e] sm:$0xff] }
 0x228   :  { %v10929_v36 = vunpack.i.h.bf16 %v10927_v33  ;;  %v10928_v11 = vunpack.i.l.bf16 %v10927_v33  ;;  %2877 = vmatmul.mubr.f32.gmra.mxu1 %v1363_v17  ;;  %v1748_v7 = vsel %vm66_vm1, %v13531_v46, %v10923_v4  ;;  %v1619_v18 = vsel %vm66_vm1, %v1523_v31, %v10924_v54  ;;  %v704_v31 = vld [vmem:[%s18246_s1 + $0x548] sm:$0xff] }
 0x229   :  { %v10932_v16 = vpop.permute.xlu1 %10931  ;;  %3021 = vmatprep.mubr.f32.mxu0 %v1748_v7 }
 0x22a   :  { %v1492_v35 = vsel %vm66_vm1, %v13526_v23, %v10928_v11  ;;  %v1364_v21 = vsel %vm66_vm1, %v1268_v26, %v10929_v36  ;;  %v705_v23 = vld [vmem:[%s18246_s1 + $0x550] sm:$0xff]  ;;  %v10934_v46 = vunpack.i.h.bf16 %v10932_v16  ;;  %v10933_v52 = vunpack.i.l.bf16 %v10932_v16  ;;  %v670_v26 = vld [vmem:[%s18246_s1 + $0x438] sm:$0xff] }
 0x22b   :  { %v10937_v12 = vpop.permute.xlu0 %10936  ;;  %2881 = vmatprep.mubr.f32.mxu1 %v1492_v35  ;;  %3022 = vmatmul.mubr.f32.gmra.mxu0 %v1619_v18  ;;  %v13850_v11 = vld [vmem:[#allocation2 + $0x276] sm:$0xff] }
 0x22c   :  { %v10939_v20 = vunpack.i.h.bf16 %v10937_v12  ;;  %v10938_v47 = vunpack.i.l.bf16 %v10937_v12  ;;  %2882 = vmatmul.mubr.f32.gmra.mxu1 %v1364_v21  ;;  %v1749_v13 = vsel %vm66_vm1, %v13545_v48, %v10933_v52  ;;  %v1620_v30 = vsel %vm66_vm1, %v13528_v25, %v10934_v46  ;;  %9586 = vmatpush3.msra.mxu0 %v705_v23  ;;  %v13869_v52 = vld [vmem:[#allocation2 + $0x28e] sm:$0xff] }
 0x22d   :  { %v10942_v55 = vpop.permute.xlu1 %10941  ;;  %3026 = vmatprep.mubr.f32.mxu0 %v1749_v13  ;;  %9587 = vmatprep.subr.mxu0 %v720_v10 }
 0x22e   :  { %v1493_v45 = vsel %vm66_vm1, %v13547_v1, %v10938_v47  ;;  %v1365_v41 = vsel %vm66_vm1, %v13812_v42, %v10939_v20  ;;  %v686_v1 = vld [vmem:[%s18246_s1 + $0x4b8] sm:$0xff]  ;;  %v10944_v19 = vunpack.i.h.bf16 %v10942_v55  ;;  %v10943_v2 = vunpack.i.l.bf16 %v10942_v55  ;;  %9588 = vmatpush3.msra.mxu0 %v704_v31 }
 0x22f   :  { %v10947_v48 = vpop.permute.xlu0 %10946  ;;  %2886 = vmatprep.mubr.f32.mxu1 %v1493_v45  ;;  %3027 = vmatmul.mubr.f32.gmra.mxu0 %v1620_v30  ;;  %v718_v30 = vld [vmem:[%s18246_s1 + $0x5b8] sm:$0xff] }
 0x230   :  { %v10949_v25 = vunpack.i.h.bf16 %v10947_v48  ;;  %v10948_v17 = vunpack.i.l.bf16 %v10947_v48  ;;  %2887 = vmatmul.mubr.f32.gmra.mxu1 %v1365_v41  ;;  %v1750_v32 = vsel %vm66_vm1, %v13565_v63, %v10943_v2  ;;  %v1621_v33 = vsel %vm66_vm1, %v13549_v56, %v10944_v19  ;;  %9511 = vmatprep.subr.mxu1 %v686_v1  ;;  %v684_v41 = vld [vmem:[%s18246_s1 + $0x4a8] sm:$0xff]  ;;  %v683_v19 = vld [vmem:[%s18246_s1 + $0x4a0] sm:$0xff]  ;;  %v717_v2 = vld [vmem:[%s18246_s1 + $0x5b0] sm:$0xff] }
 0x231   :  { %v10952_v62 = vpop.permute.xlu1 %10951  ;;  %3031 = vmatprep.mubr.f32.mxu0 %v1750_v32  ;;  %9512 = vmatpush3.msra.mxu1 %v670_v26 }
 0x232   :  { %v1494_v9 = vsel %vm66_vm1, %v13567_v14, %v10948_v17  ;;  %v1366_v59 = vsel %vm66_vm1, %v13831_v53, %v10949_v25  ;;  %v685_v14 = vld [vmem:[%s18246_s1 + $0x4b0] sm:$0xff]  ;;  %v10954_v54 = vunpack.i.h.bf16 %v10952_v62  ;;  %v10953_v4 = vunpack.i.l.bf16 %v10952_v62  ;;  %9589 = vmatprep.subr.mxu0 %v719_v49 }
 0x233   :  { %v10957_v63 = vpop.permute.xlu0 %10956  ;;  %2891 = vmatprep.mubr.f32.mxu1 %v1494_v9  ;;  %3032 = vmatmul.mubr.f32.gmra.mxu0 %v1621_v33  ;;  %v701_v25 = vld [vmem:[%s18246_s1 + $0x530] sm:$0xff]  ;;  %v667_v9 = vld [vmem:[%s18246_s1 + $0x420] sm:$0xff] }
 0x234   :  { %v10959_v56 = vunpack.i.h.bf16 %v10957_v63  ;;  %v10958_v36 = vunpack.i.l.bf16 %v10957_v63  ;;  %2892 = vmatmul.mubr.f32.gmra.mxu1 %v1366_v59  ;;  %v1751_v7 = vsel %vm66_vm1, %v13585_v22, %v10953_v4  ;;  %v1622_v18 = vsel %vm66_vm1, %v13569_v8, %v10954_v54  ;;  %9513 = vmatprep.subr.mxu1 %v685_v14  ;;  %v13907_v59 = vld [vmem:[#allocation2 + $0x2a6] sm:$0xff]  ;;  %v682_v63 = vld [vmem:[%s18246_s1 + $0x498] sm:$0xff] }
 0x235   :  { %v10962_v16 = vpop.permute.xlu1 %10961  ;;  %3036 = vmatprep.mubr.f32.mxu0 %v1751_v7  ;;  %9514 = vmatpush3.msra.mxu1 %v669_v28  ;;  %v716_v14 = vld [vmem:[%s18246_s1 + $0x5a8] sm:$0xff]  ;;  %v715_v7 = vld [vmem:[%s18246_s1 + $0x5a0] sm:$0xff] }
 0x236   :  { %v1495_v35 = vsel %vm66_vm1, %v13587_v34, %v10958_v36  ;;  %v1367_v21 = vsel %vm66_vm1, %v13850_v11, %v10959_v56  ;;  %v703_v34 = vld [vmem:[%s18246_s1 + $0x540] sm:$0xff]  ;;  %v10964_v12 = vunpack.i.h.bf16 %v10962_v16  ;;  %v10963_v23 = vunpack.i.l.bf16 %v10962_v16  ;;  %9515 = vmatprep.subr.mxu1 %v684_v41  ;;  %v700_v56 = vld [vmem:[%s18246_s1 + $0x528] sm:$0xff]  ;;  %v681_v36 = vld [vmem:[%s18246_s1 + $0x490] sm:$0xff] }
 0x237   :  { %v10967_v22 = vpop.permute.xlu0 %10966  ;;  %2896 = vmatprep.mubr.f32.mxu1 %v1495_v35  ;;  %3037 = vmatmul.mubr.f32.gmra.mxu0 %v1622_v18  ;;  %v699_v18 = vld [vmem:[%s18246_s1 + $0x520] sm:$0xff]  ;;  %v665_v16 = vld [vmem:[%s18246_s1 + $0x410] sm:$0xff] }
 0x238   :  { %v10969_v8 = vunpack.i.h.bf16 %v10967_v22  ;;  %v10968_v46 = vunpack.i.l.bf16 %v10967_v22  ;;  %2897 = vmatmul.mubr.f32.gmra.mxu1 %v1367_v21  ;;  %v1752_v20 = vsel %vm66_vm1, %v13605_v15, %v10963_v23  ;;  %9590 = vmatpush3.msra.mxu0 %v703_v34  ;;  %v1623_v45 = vsel %vm66_vm1, %v13589_v40, %v10964_v12  ;;  %v702_v40 = vld [vmem:[%s18246_s1 + $0x538] sm:$0xff] }
 0x239   :  { %v10972_v60 = vpop.permute.xlu1 %10971  ;;  %3041 = vmatprep.mubr.f32.mxu0 %v1752_v20  ;;  %9591 = vmatprep.subr.mxu0 %v718_v30  ;;  %v13941_v22 = vld [vmem:[#allocation2 + $0x2be] sm:$0xff]  ;;  %v1900_v41 = vld [vmem:[#allocation2 + $0xb1] sm:$0xff] }
 0x23a   :  { %v1496_v47 = vsel %vm66_vm1, %v13607_v29, %v10968_v46  ;;  %v1368_v13 = vsel %vm66_vm1, %v13869_v52, %v10969_v8  ;;  %v668_v29 = vld [vmem:[%s18246_s1 + $0x428] sm:$0xff]  ;;  %v10974_v10 = vunpack.i.h.bf16 %v10972_v60  ;;  %v10973_v55 = vunpack.i.l.bf16 %v10972_v60  ;;  %9592 = vmatpush3.msra.mxu0 %v702_v40  ;;  %v714_v8 = vld [vmem:[%s18246_s1 + $0x598] sm:$0xff]  ;;  %v679_v30 = vld [vmem:[%s18246_s1 + $0x480] sm:$0xff] }
 0x23b   :  { %v10977_v15 = vpop.permute.xlu0 %10976  ;;  %2901 = vmatprep.mubr.f32.mxu1 %v1496_v47  ;;  %3042 = vmatmul.mubr.f32.gmra.mxu0 %v1623_v45  ;;  %v664_v47 = vld [vmem:[%s18246_s1 + $0x408] sm:$0xff]  ;;  %v713_v60 = vld [vmem:[%s18246_s1 + $0x590] sm:$0xff] }
 0x23c   :  { %v10979_v48 = vunpack.i.h.bf16 %v10977_v15  ;;  %v10978_v1 = vunpack.i.l.bf16 %v10977_v15  ;;  %2902 = vmatmul.mubr.f32.gmra.mxu1 %v1368_v13  ;;  %v1753_v17 = vsel %vm66_vm1, %v13625_v27, %v10973_v55  ;;  %9593 = vmatprep.subr.mxu0 %v717_v2  ;;  %v1624_v62 = vsel %vm66_vm1, %v13609_v51, %v10974_v10  ;;  %v666_v51 = vld [vmem:[%s18246_s1 + $0x418] sm:$0xff]  ;;  %v697_v10 = vld [vmem:[%s18246_s1 + $0x510] sm:$0xff] }
 0x23d   :  { %9516 = vmatpush3.msra.mxu1 %v668_v29  ;;  %v10992_v33 = vpop.permute.xlu1 %10991  ;;  %3046 = vmatprep.mubr.f32.mxu0 %v1753_v17  ;;  %v1772_v29 = vld [vmem:[#allocation2 + $0xaf] sm:$0xff] }
 0x23e   :  { %v1497_v32 = vsel %vm66_vm1, %v13627_v58, %v10978_v1  ;;  %9517 = vmatprep.subr.mxu1 %v683_v19  ;;  %v1369_v31 = vsel %vm66_vm1, %v13907_v59, %v10979_v48  ;;  %v10993_v27 = vunpack.i.l.bf16 %v10992_v33  ;;  %9594 = vmatpush3.msra.mxu0 %v701_v25  ;;  %v10994_v54 = vunpack.i.h.bf16 %v10992_v33  ;;  %v663_v48 = vld [vmem:[%s18246_s1 + $0x400] sm:$0xff] }
 0x23f   :  { %v10982_v26 = vpop.permute.xlu0 %10981  ;;  %2906 = vmatprep.mubr.f32.mxu1 %v1497_v32  ;;  %9518 = vmatpush3.msra.mxu1 %v667_v9  ;;  %v712_v9 = vld [vmem:[%s18246_s1 + $0x588] sm:$0xff] }
 0x240   :  { %v10983_v58 = vunpack.i.l.bf16 %v10982_v26  ;;  %v10984_v4 = vunpack.i.h.bf16 %v10982_v26  ;;  %2907 = vmatmul.mubr.f32.gmra.mxu1 %v1369_v31  ;;  %3047 = vmatmul.mubr.f32.gmra.mxu0 %v1624_v62  ;;  %v1754_v21 = vsel %vm66_vm1, %v13645_v37, %v10993_v27  ;;  %v1625_v12 = vsel %vm66_vm1, %v13629_v38, %v10994_v54  ;;  %v698_v38 = vld [vmem:[%s18246_s1 + $0x518] sm:$0xff]  ;;  %v1901_v31 = vld [vmem:[#allocation2 + $0xc9] sm:$0xff] }
 0x241   :  { %9519 = vmatprep.subr.mxu1 %v682_v63  ;;  %9595 = vmatprep.subr.mxu0 %v716_v14  ;;  %v10997_v35 = vpop.permute.xlu1 %10996  ;;  %v711_v63 = vld [vmem:[%s18246_s1 + $0x580] sm:$0xff] }
 0x242   :  { %9520 = vmatpush3.msra.mxu1 %v666_v51  ;;  %9596 = vmatpush3.msra.mxu0 %v700_v56  ;;  %v1498_v28 = vsel %vm66_vm1, %v13647_v57, %v10983_v58  ;;  %v10998_v34 = vunpack.i.l.bf16 %v10997_v35  ;;  %v1370_v37 = vsel %vm66_vm1, %v13941_v22, %v10984_v4  ;;  %v680_v57 = vld [vmem:[%s18246_s1 + $0x488] sm:$0xff]  ;;  %v10999_v46 = vunpack.i.h.bf16 %v10997_v35  ;;  %v2028_v58 = vld [vmem:[#allocation2 + $0xb3] sm:$0xff] }
 0x243   :  { %v10987_v49 = vpop.permute.xlu0 %10986  ;;  %9521 = vmatprep.subr.mxu1 %v681_v36  ;;  %9597 = vmatprep.subr.mxu0 %v715_v7  ;;  %v1773_v14 = vld [vmem:[#allocation2 + $0xc7] sm:$0xff] }
 0x244   :  { %3051 = vmatprep.mubr.f32.mxu0 %v1754_v21  ;;  %9598 = vmatpush3.msra.mxu0 %v699_v18  ;;  %v10988_v23 = vunpack.i.l.bf16 %v10987_v49  ;;  %v10989_v20 = vunpack.i.h.bf16 %v10987_v49  ;;  %v1755_v40 = vsel %vm66_vm1, %v13662_v44, %v10998_v34  ;;  %v1626_v2 = vsel %vm66_vm1, %v13649_v39, %v10999_v46  ;;  %v696_v39 = vld [vmem:[%s18246_s1 + $0x508] sm:$0xff]  ;;  %v1774_v34 = vld [vmem:[#allocation2 + $0xdf] sm:$0xff] }
 0x245   :  { %2911 = vmatprep.mubr.f32.mxu1 %v1498_v28  ;;  %9522 = vmatpush3.msra.mxu1 %v665_v16  ;;  %v11002_v13 = vpop.permute.xlu1 %11001  ;;  %v1902_v36 = vld [vmem:[#allocation2 + $0xe1] sm:$0xff]  ;;  %v18265_v16 = vmov 0.0   ;;  %v1903_v46 = vld [vmem:[#allocation2 + $0xf9] sm:$0xff] }
 0x246   :  { %2912 = vmatmul.mubr.f32.gmra.mxu1 %v1370_v37  ;;  %3052 = vmatmul.mubr.f32.gmra.mxu0 %v1625_v12  ;;  %v11003_v15 = vunpack.i.l.bf16 %v11002_v13  ;;  %v1996_v1 = vsel %vm66_vm1, %v1900_v41, %v10988_v23  ;;  %v1868_v44 = vsel %vm66_vm1, %v1772_v29, %v10989_v20  ;;  %v11004_v32 = vunpack.i.h.bf16 %v11002_v13  ;;  %v2029_v23 = vld [vmem:[#allocation2 + $0xcb] sm:$0xff]  ;;  %v1775_v41 = vld [vmem:[#allocation2 + $0xf7] sm:$0xff] }
 0x247   :  { %v11007_v45 = vpop.permute.xlu0 %11006  ;;  %9523 = vmatprep.subr.mxu1 %v680_v57  ;;  %9599 = vmatprep.subr.mxu0 %v714_v8 }
 0x248   :  { %v11008_v55 = vunpack.i.l.bf16 %v11007_v45  ;;  %9524 = vmatpush3.msra.mxu1 %v664_v47  ;;  %9600 = vmatpush3.msra.mxu0 %v698_v38  ;;  %v11009_v19 = vunpack.i.h.bf16 %v11007_v45  ;;  %v2252_v33 = vsel %vm66_vm1, %v13679_v61, %v11003_v15  ;;  %v695_v61 = vld [vmem:[%s18246_s1 + $0x500] sm:$0xff]  ;;  %v2124_v35 = vsel %vm66_vm1, %v2028_v58, %v11004_v32 }
 0x249   :  { %9525 = vmatprep.subr.mxu1 %v679_v30  ;;  %9601 = vmatprep.subr.mxu0 %v713_v60  ;;  %v11012_v25 = vpop.permute.xlu1 %11011  ;;  %v2030_v15 = vld [vmem:[#allocation2 + $0xe3] sm:$0xff]  ;;  %v2031_v32 = vld [vmem:[#allocation2 + $0xfb] sm:$0xff] }
 0x24a   :  { %3056 = vmatprep.mubr.f32.mxu0 %v1755_v40  ;;  %9602 = vmatpush3.msra.mxu0 %v697_v10  ;;  %v11013_v62 = vunpack.i.l.bf16 %v11012_v25  ;;  %v1997_v27 = vsel %vm66_vm1, %v1901_v31, %v11008_v55  ;;  %v1869_v4 = vsel %vm66_vm1, %v1773_v14, %v11009_v19  ;;  %v11014_v7 = vunpack.i.h.bf16 %v11012_v25  ;;  %v1904_v10 = vld [vmem:[#allocation2 + $0x111] sm:$0xff] }
 0x24b   :  { %v11017_v17 = vpop.permute.xlu0 %11016  ;;  %9526 = vmatpush3.msra.mxu1 %v663_v48  ;;  %3126 = vmatprep.mubr.f32.mxu1 %v1996_v1 }
 0x24c   :  { %v11018_v26 = vunpack.i.l.bf16 %v11017_v17  ;;  %3057 = vmatmul.mubr.f32.gmra.mxu0 %v1626_v2  ;;  %3127 = vmatmul.mubr.f32.vlgmr.msra.gmra.mxu1 %v1868_v44  ;;  %v11019_v54 = vunpack.i.h.bf16 %v11017_v17  ;;  %v2253_v28 = vsel %vm66_vm1, %v13696_v50, %v11013_v62  ;;  %v2125_v47 = vsel %vm66_vm1, %v2029_v23, %v11014_v7  ;;  %v1776_v44 = vld [vmem:[#allocation2 + $0x10f] sm:$0xff] }
 0x24d   :  { %9603 = vmatprep.subr.mxu0 %v712_v9  ;;  %3271 = vmatprep.mubr.f32.mxu0 %v2252_v33  ;;  %v11022_v51 = vpop.permute.xlu1 %11021 }
 0x24e   :  { %9604 = vmatpush3.msra.mxu0 %v696_v39  ;;  %3131 = vmatprep.mubr.f32.mxu1 %v1997_v27  ;;  %v1998_v18 = vsel %vm66_vm1, %v1902_v36, %v11018_v26  ;;  %v11023_v49 = vunpack.i.l.bf16 %v11022_v51  ;;  %v1870_v12 = vsel %vm66_vm1, %v1774_v34, %v11019_v54  ;;  %v11024_v20 = vunpack.i.h.bf16 %v11022_v51  ;;  %v1905_v26 = vld [vmem:[#allocation2 + $0x129] sm:$0xff]  ;;  %v2032_v54 = vld [vmem:[#allocation2 + $0x113] sm:$0xff] }
 0x24f   :  { %v11027_v56 = vpop.permute.xlu0 %11026  ;;  %9605 = vmatprep.subr.mxu0 %v711_v63  ;;  %10255 = vmatprep.subr.mxu1 %v18265_v16  ;;  %v1777_v63 = vld [vmem:[#allocation2 + $0x127] sm:$0xff] }
 0x250   :  { %v11028_v21 = vunpack.i.l.bf16 %v11027_v56  ;;  %9606 = vmatpush3.msra.mxu0 %v695_v61  ;;  %3132 = vmatmul.mubr.f32.gmra.mxu1 %v1869_v4  ;;  %v11029_v37 = vunpack.i.h.bf16 %v11027_v56  ;;  %v2254_v45 = vsel %vm66_vm1, %v13712_v0, %v11023_v49  ;;  %v2126_v48 = vsel %vm66_vm1, %v2030_v15, %v11024_v20  ;;  %v1906_v56 = vld [vmem:[#allocation2 + $0x141] sm:$0xff]  ;;  %v2162_v20 = vld [vmem:[#allocation2 + $0x156] sm:$0xff] }
 0x251   :  { %3272 = vmatmul.mubr.f32.vlgmr.msra.gmra.mxu0 %v2124_v35  ;;  %3136 = vmatprep.mubr.f32.mxu1 %v1998_v18  ;;  %v11032_v57 = vpop.permute.xlu1 %11031  ;;  %v1778_v49 = vld [vmem:[#allocation2 + $0x13f] sm:$0xff] }
 0x252   :  { %3276 = vmatprep.mubr.f32.mxu0 %v2253_v28  ;;  %v1999_v50 = vsel %vm66_vm1, %v1903_v46, %v11028_v21  ;;  %10290 = vmatprep.subr.mxu0 %v18265_v16  ;;  %v11033_v13 = vunpack.i.l.bf16 %v11032_v57  ;;  %v1871_v60 = vsel %vm66_vm1, %v1775_v41, %v11029_v37  ;;  %v11034_v55 = vunpack.i.h.bf16 %v11032_v57  ;;  %v2033_v37 = vld [vmem:[#allocation2 + $0x12b] sm:$0xff]  ;;  %v1907_v57 = vld [vmem:[#allocation2 + $0x159] sm:$0xff] }
 0x253   :  { %v11037_v8 = vpop.permute.xlu0 %11036 }
 0x254   :  { %v11038_v38 = vunpack.i.l.bf16 %v11037_v8  ;;  %3137 = vmatmul.mubr.f32.gmra.mxu1 %v1870_v12  ;;  %v11039_v30 = vunpack.i.h.bf16 %v11037_v8  ;;  %v2255_v0 = vsel %vm66_vm1, %v13730_v3, %v11033_v13  ;;  %v2127_v39 = vsel %vm66_vm1, %v2031_v32, %v11034_v55  ;;  %v1908_v13 = vld [vmem:[#allocation2 + $0x231] sm:$0xff] }
 0x255   :  { %3277 = vmatmul.mubr.f32.gmra.mxu0 %v2125_v47  ;;  %3141 = vmatprep.mubr.f32.mxu1 %v1999_v50  ;;  %v11042_v29 = vpop.permute.xlu1 %11041  ;;  %v2163_v55 = vld [vmem:[#allocation2 + $0x16e] sm:$0xff] }
 0x256   :  { %3281 = vmatprep.mubr.f32.mxu0 %v2254_v45  ;;  %v2000_v19 = vsel %vm66_vm1, %v1904_v10, %v11038_v38  ;;  %v11043_v2 = vunpack.i.l.bf16 %v11042_v29  ;;  %v1872_v17 = vsel %vm66_vm1, %v1776_v44, %v11039_v30  ;;  %v11044_v31 = vunpack.i.h.bf16 %v11042_v29  ;;  %v1779_v45 = vld [vmem:[#allocation2 + $0x157] sm:$0xff] }
 0x257   :  { %v11047_v40 = vpop.permute.xlu0 %11046 }
 0x258   :  { %v11048_v1 = vunpack.i.l.bf16 %v11047_v40  ;;  %3142 = vmatmul.mubr.f32.gmra.mxu1 %v1871_v60  ;;  %v11049_v25 = vunpack.i.h.bf16 %v11047_v40  ;;  %v2256_v3 = vsel %vm66_vm1, %v13748_v6, %v11043_v2  ;;  %v2128_v7 = vsel %vm66_vm1, %v2032_v54, %v11044_v31  ;;  %v2034_v60 = vld [vmem:[#allocation2 + $0x143] sm:$0xff] }
 0x259   :  { %3282 = vmatmul.mubr.f32.gmra.mxu0 %v2126_v48  ;;  %3146 = vmatprep.mubr.f32.mxu1 %v2000_v19  ;;  %v11052_v9 = vpop.permute.xlu1 %11051  ;;  %v1780_v19 = vld [vmem:[#allocation2 + $0x22f] sm:$0xff] }
 0x25a   :  { %3286 = vmatprep.mubr.f32.mxu0 %v2255_v0  ;;  %v2001_v27 = vsel %vm66_vm1, %v1905_v26, %v11048_v1  ;;  %v11053_v58 = vunpack.i.l.bf16 %v11052_v9  ;;  %v1873_v61 = vsel %vm66_vm1, %v1777_v63, %v11049_v25  ;;  %v11054_v36 = vunpack.i.h.bf16 %v11052_v9  ;;  %v1781_v63 = vld [vmem:[#allocation2 + $0x247] sm:$0xff] }
 0x25b   :  { %v11057_v33 = vpop.permute.xlu0 %11056 }
 0x25c   :  { %v11058_v62 = vunpack.i.l.bf16 %v11057_v33  ;;  %3147 = vmatmul.mubr.f32.gmra.mxu1 %v1872_v17  ;;  %v11059_v14 = vunpack.i.h.bf16 %v11057_v33  ;;  %v2257_v6 = vsel %vm66_vm1, %v13764_v24, %v11053_v58  ;;  %v2129_v46 = vsel %vm66_vm1, %v2033_v37, %v11054_v36  ;;  %v2035_v17 = vld [vmem:[#allocation2 + $0x15b] sm:$0xff]  ;;  %v1909_v33 = vld [vmem:[#allocation2 + $0x249] sm:$0xff] }
 0x25d   :  { %3287 = vmatmul.mubr.f32.gmra.mxu0 %v2127_v39  ;;  %3151 = vmatprep.mubr.f32.mxu1 %v2001_v27  ;;  %v11062_v4 = vpop.permute.xlu1 %11061 }
 0x25e   :  { %3291 = vmatprep.mubr.f32.mxu0 %v2256_v3  ;;  %v2002_v21 = vsel %vm66_vm1, %v1906_v56, %v11058_v62  ;;  %v11063_v18 = vunpack.i.l.bf16 %v11062_v4  ;;  %v1874_v34 = vsel %vm66_vm1, %v1778_v49, %v11059_v14  ;;  %v11064_v8 = vunpack.i.h.bf16 %v11062_v4  ;;  %v2036_v3 = vld [vmem:[#allocation2 + $0x233] sm:$0xff] }
 0x25f   :  { %v11067_v51 = vpop.permute.xlu0 %11066 }
 0x260   :  { %v11068_v35 = vunpack.i.l.bf16 %v11067_v51  ;;  %3152 = vmatmul.mubr.f32.gmra.mxu1 %v1873_v61  ;;  %v11069_v28 = vunpack.i.h.bf16 %v11067_v51  ;;  %v2258_v50 = vsel %vm66_vm1, %v2162_v20, %v11063_v18  ;;  %v2130_v10 = vsel %vm66_vm1, %v2034_v60, %v11064_v8  ;;  %v1910_v51 = vld [vmem:[#allocation2 + $0x261] sm:$0xff] }
 0x261   :  { %3292 = vmatmul.mubr.f32.gmra.mxu0 %v2128_v7  ;;  %3156 = vmatprep.mubr.f32.mxu1 %v2002_v21  ;;  %v11072_v12 = vpop.permute.xlu1 %11071  ;;  %v1782_v18 = vld [vmem:[#allocation2 + $0x25f] sm:$0xff] }
 0x262   :  { %3296 = vmatprep.mubr.f32.mxu0 %v2257_v6  ;;  %v2003_v38 = vsel %vm66_vm1, %v1907_v57, %v11068_v35  ;;  %v11073_v24 = vunpack.i.l.bf16 %v11072_v12  ;;  %v1875_v30 = vsel %vm66_vm1, %v1779_v45, %v11069_v28  ;;  %v11074_v40 = vunpack.i.h.bf16 %v11072_v12  ;;  %v2037_v28 = vld [vmem:[#allocation2 + $0x24b] sm:$0xff]  ;;  %v1911_v12 = vld [vmem:[#allocation2 + $0x279] sm:$0xff] }
 0x263   :  { %v11077_v23 = vpop.permute.xlu0 %11076 }
 0x264   :  { %v11078_v47 = vunpack.i.l.bf16 %v11077_v23  ;;  %3157 = vmatmul.mubr.f32.gmra.mxu1 %v1874_v34  ;;  %v11079_v41 = vunpack.i.h.bf16 %v11077_v23  ;;  %v2259_v0 = vsel %vm66_vm1, %v2163_v55, %v11073_v24  ;;  %v2131_v31 = vsel %vm66_vm1, %v2035_v17, %v11074_v40 }
 0x265   :  { %3297 = vmatmul.mubr.f32.gmra.mxu0 %v2129_v46  ;;  %3161 = vmatprep.mubr.f32.mxu1 %v2003_v38  ;;  %v11082_v15 = vpop.permute.xlu1 %11081 }
 0x266   :  { %3301 = vmatprep.mubr.f32.mxu0 %v2258_v50  ;;  %v2004_v1 = vsel %vm66_vm1, %v1908_v13, %v11078_v47  ;;  %v11083_v2 = vunpack.i.l.bf16 %v11082_v15  ;;  %v1876_v25 = vsel %vm66_vm1, %v1780_v19, %v11079_v41  ;;  %v11084_v26 = vunpack.i.h.bf16 %v11082_v15  ;;  %v1783_v47 = vld [vmem:[#allocation2 + $0x277] sm:$0xff]  ;;  %v2038_v50 = vld [vmem:[#allocation2 + $0x263] sm:$0xff] }
 0x267   :  { %v11087_v29 = vpop.permute.xlu0 %11086  ;;  %v1912_v41 = vld [vmem:[#allocation2 + $0x291] sm:$0xff] }
 0x268   :  { %v11088_v48 = vunpack.i.l.bf16 %v11087_v29  ;;  %3162 = vmatmul.mubr.f32.gmra.mxu1 %v1875_v30  ;;  %v11089_v44 = vunpack.i.h.bf16 %v11087_v29  ;;  %v2260_v58 = vsel %vm66_vm1, %v13812_v42, %v11083_v2  ;;  %v2132_v36 = vsel %vm66_vm1, %v2036_v3, %v11084_v26 }
 0x269   :  { %3302 = vmatmul.mubr.f32.gmra.mxu0 %v2130_v10  ;;  %3166 = vmatprep.mubr.f32.mxu1 %v2004_v1  ;;  %v11092_v32 = vpop.permute.xlu1 %11091  ;;  %v1784_v10 = vld [vmem:[#allocation2 + $0x28f] sm:$0xff]  ;;  %v2039_v1 = vld [vmem:[#allocation2 + $0x27b] sm:$0xff] }
 0x26a   :  { %3306 = vmatprep.mubr.f32.mxu0 %v2259_v0  ;;  %v2005_v62 = vsel %vm66_vm1, %v1909_v33, %v11088_v48  ;;  %v11093_v27 = vunpack.i.l.bf16 %v11092_v32  ;;  %v1877_v61 = vsel %vm66_vm1, %v1781_v63, %v11089_v44  ;;  %v11094_v56 = vunpack.i.h.bf16 %v11092_v32  ;;  %v1913_v0 = vld [vmem:[#allocation2 + $0x2a9] sm:$0xff] }
 0x26b   :  { %v11097_v9 = vpop.permute.xlu0 %11096  ;;  %v1785_v33 = vld [vmem:[#allocation2 + $0x2a7] sm:$0xff] }
 0x26c   :  { %v11098_v39 = vunpack.i.l.bf16 %v11097_v9  ;;  %3167 = vmatmul.mubr.f32.gmra.mxu1 %v1876_v25  ;;  %v11099_v14 = vunpack.i.h.bf16 %v11097_v9  ;;  %v2261_v42 = vsel %vm66_vm1, %v13831_v53, %v11093_v27  ;;  %v2133_v57 = vsel %vm66_vm1, %v2037_v28, %v11094_v56  ;;  %v1787_v28 = vld [vmem:[#allocation2 + $0x2d7] sm:$0xff] }
 0x26d   :  { %3307 = vmatmul.mubr.f32.gmra.mxu0 %v2131_v31  ;;  %3171 = vmatprep.mubr.f32.mxu1 %v2005_v62  ;;  %v11102_v54 = vpop.permute.xlu1 %11101 }
 0x26e   :  { %3311 = vmatprep.mubr.f32.mxu0 %v2260_v58  ;;  %v2006_v35 = vsel %vm66_vm1, %v1910_v51, %v11098_v39  ;;  %v11103_v21 = vunpack.i.l.bf16 %v11102_v54  ;;  %v1878_v49 = vsel %vm66_vm1, %v1782_v18, %v11099_v14  ;;  %v11104_v23 = vunpack.i.h.bf16 %v11102_v54  ;;  %v2040_v39 = vld [vmem:[#allocation2 + $0x293] sm:$0xff]  ;;  %v1914_v58 = vld [vmem:[#allocation2 + $0x2c1] sm:$0xff] }
 0x26f   :  { %v11107_v4 = vpop.permute.xlu0 %11106 }
 0x270   :  { %v11108_v7 = vunpack.i.l.bf16 %v11107_v4  ;;  %3172 = vmatmul.mubr.f32.gmra.mxu1 %v1877_v61  ;;  %v11109_v6 = vunpack.i.h.bf16 %v11107_v4  ;;  %v2262_v53 = vsel %vm66_vm1, %v13850_v11, %v11103_v21  ;;  %v2134_v60 = vsel %vm66_vm1, %v2038_v50, %v11104_v23  ;;  %v1786_v4 = vld [vmem:[#allocation2 + $0x2bf] sm:$0xff] }
 0x271   :  { %3312 = vmatmul.mubr.f32.gmra.mxu0 %v2132_v36  ;;  %3176 = vmatprep.mubr.f32.mxu1 %v2006_v35  ;;  %v11112_v34 = vpop.permute.xlu1 %11111  ;;  %v2041_v36 = vld [vmem:[#allocation2 + $0x2ab] sm:$0xff]  ;;  %v1915_v35 = vld [vmem:[#allocation2 + $0x2d9] sm:$0xff] }
 0x272   :  { %3316 = vmatprep.mubr.f32.mxu0 %v2261_v42  ;;  %v2007_v46 = vsel %vm66_vm1, %v1911_v12, %v11108_v7  ;;  %v11113_v20 = vunpack.i.l.bf16 %v11112_v34  ;;  %v1879_v24 = vsel %vm66_vm1, %v1783_v47, %v11109_v6  ;;  %v11114_v30 = vunpack.i.h.bf16 %v11112_v34  ;;  %v2170_v6 = vld [vmem:[#allocation2 + $0x2d6] sm:$0xff] }
 0x273   :  { %v11117_v37 = vpop.permute.xlu0 %11116 }
 0x274   :  { %v11118_v8 = vunpack.i.l.bf16 %v11117_v37  ;;  %3177 = vmatmul.mubr.f32.gmra.mxu1 %v1878_v49  ;;  %v11119_v38 = vunpack.i.h.bf16 %v11117_v37  ;;  %v2263_v11 = vsel %vm66_vm1, %v13869_v52, %v11113_v20  ;;  %v2135_v25 = vsel %vm66_vm1, %v2039_v1, %v11114_v30  ;;  %v2042_v37 = vld [vmem:[#allocation2 + $0x2c3] sm:$0xff] }
 0x275   :  { %3317 = vmatmul.mubr.f32.gmra.mxu0 %v2133_v57  ;;  %3181 = vmatprep.mubr.f32.mxu1 %v2007_v46  ;;  %v11122_v13 = vpop.permute.xlu1 %11121  ;;  %v2171_v57 = vld [vmem:[#allocation2 + $0x2ee] sm:$0xff]  ;;  %v2043_v46 = vld [vmem:[#allocation2 + $0x2db] sm:$0xff] }
 0x276   :  { %3321 = vmatprep.mubr.f32.mxu0 %v2262_v53  ;;  %v2008_v29 = vsel %vm66_vm1, %v1912_v41, %v11118_v8  ;;  %v11123_v40 = vunpack.i.l.bf16 %v11122_v13  ;;  %v1880_v48 = vsel %vm66_vm1, %v1784_v10, %v11119_v38  ;;  %v11124_v44 = vunpack.i.h.bf16 %v11122_v13  ;;  %v9213_v53 = vpop.f32.mrf.mxu1  ;;  %v14068_v41 = vld [vmem:[%s18264_s28] ss:$0 sm:$0xff] }
 0x277   :  { %v11127_v45 = vpop.permute.xlu0 %11126 }
 0x278   :  { %v11128_v15 = vunpack.i.l.bf16 %v11127_v45  ;;  %3182 = vmatmul.mubr.f32.gmra.mxu1 %v1879_v24  ;;  %v11129_v55 = vunpack.i.h.bf16 %v11127_v45  ;;  %v2264_v52 = vsel %vm66_vm1, %v13907_v59, %v11123_v40  ;;  %v2136_v63 = vsel %vm66_vm1, %v2040_v39, %v11124_v44  ;;  %v9214_v47 = vpop.f32.mrf.mxu1 }
 0x279   :  { %3322 = vmatmul.mubr.f32.gmra.mxu0 %v2134_v60  ;;  %3186 = vmatprep.mubr.f32.mxu1 %v2008_v29  ;;  %v11132_v19 = vpop.permute.xlu1 %11131  ;;  %v9215_v38 = vadd.f32 %v9214_v47, %v9213_v53 }
 0x27a   :  { %3326 = vmatprep.mubr.f32.mxu0 %v2263_v11  ;;  %v2009_v32 = vsel %vm66_vm1, %v1913_v0, %v11128_v15  ;;  %v11133_v9 = vunpack.i.l.bf16 %v11132_v19  ;;  %v1881_v31 = vsel %vm66_vm1, %v1785_v33, %v11129_v55  ;;  %v11134_v3 = vunpack.i.h.bf16 %v11132_v19 }
 0x27b   :  { %v11137_v2 = vpop.permute.xlu0 %11136  ;;  %v2559_v30 = vadd.f32 %v14068_v41, %v9215_v38 }
 0x27c   :  { %v11138_v17 = vunpack.i.l.bf16 %v11137_v2  ;;  %3187 = vmatmul.mubr.f32.gmra.mxu1 %v1880_v48  ;;  %v11139_v26 = vunpack.i.h.bf16 %v11137_v2  ;;  %v2265_v59 = vsel %vm66_vm1, %v13941_v22, %v11133_v9  ;;  %v2137_v42 = vsel %vm66_vm1, %v2041_v36, %v11134_v3 }
 0x27d   :  { %3327 = vmatmul.mubr.f32.gmra.mxu0 %v2135_v25  ;;  %3191 = vmatprep.mubr.f32.mxu1 %v2009_v32 }
 0x27e   :  { %v11142_v62 = vpop.permute.xlu1 %11141  ;;  %3331 = vmatprep.mubr.f32.mxu0 %v2264_v52  ;;  %v2010_v61 = vsel %vm66_vm1, %v1914_v58, %v11138_v17  ;;  %v1882_v56 = vsel %vm66_vm1, %v1786_v4, %v11139_v26 }
 0x27f   :  { %v11147_v27 = vpop.permute.xlu0 %11146  ;;  %v11143_v54 = vunpack.i.l.bf16 %v11142_v62  ;;  %v11144_v21 = vunpack.i.h.bf16 %v11142_v62 }
 0x280   :  { %v11148_v14 = vunpack.i.l.bf16 %v11147_v27  ;;  %3192 = vmatmul.mubr.f32.gmra.mxu1 %v1881_v31  ;;  %v11149_v51 = vunpack.i.h.bf16 %v11147_v27 }
 0x281   :  { %3332 = vmatmul.mubr.f32.gmra.mxu0 %v2136_v63  ;;  %3196 = vmatprep.mubr.f32.mxu1 %v2010_v61  ;;  %v2266_v22 = vsel %vm66_vm1, %v2170_v6, %v11143_v54  ;;  %v2138_v23 = vsel %vm66_vm1, %v2042_v37, %v11144_v21 }
 0x282   :  { %v11152_v7 = vpop.permute.xlu1 %11151  ;;  %3336 = vmatprep.mubr.f32.mxu0 %v2265_v59  ;;  %v2011_v18 = vsel %vm66_vm1, %v1915_v35, %v11148_v14  ;;  %v1883_v34 = vsel %vm66_vm1, %v1787_v28, %v11149_v51 }
 0x283   :  { %v11153_v49 = vunpack.i.l.bf16 %v11152_v7  ;;  %v11154_v12 = vunpack.i.h.bf16 %v11152_v7 }
 0x284   :  { %3197 = vmatmul.mubr.f32.gmra.mxu1 %v1882_v56 }
 0x285   :  { %3337 = vmatmul.mubr.f32.gmra.mxu0 %v2137_v42  ;;  %3201 = vmatprep.mubr.f32.mxu1 %v2011_v18  ;;  %v2267_v8 = vsel %vm66_vm1, %v2171_v57, %v11153_v49  ;;  %v2139_v20 = vsel %vm66_vm1, %v2043_v46, %v11154_v12 }
 0x286   :  { %3341 = vmatprep.mubr.f32.mxu0 %v2266_v22 }
 0x288   :  { %3202 = vmatmul.mubr.f32.gmra.mxu1 %v1883_v34 }
 0x289   :  { %3342 = vmatmul.mubr.f32.gmra.mxu0 %v2138_v23  ;;  %10287 = vmatprep.mubr.msk.f32.mxu1 %vm12199_vm4, %v18265_v16 }
 0x28a   :  { %3346 = vmatprep.mubr.f32.mxu0 %v2267_v8 }
 0x28d   :  { %3347 = vmatmul.mubr.f32.gmra.mxu0 %v2139_v20 }
 0x28e   :  { %10322 = vmatprep.mubr.msk.f32.mxu0 %vm12199_vm4, %v18265_v16 }
 0x292   :  { %v9293_v50 = vpop.f32.mrf.mxu0 }
 0x294   :  { %v9216_v24 = vpop.f32.mrf.mxu1  ;;  %v9294_v45 = vpop.f32.mrf.mxu0 }
 0x295   :  { %v9295_v15 = vadd.f32 %v9294_v45, %v9293_v50 }
 0x296   :  { %v9217_v13 = vpop.f32.mrf.mxu1  ;;  %v9296_v40 = vpop.f32.mrf.mxu0 }
 0x297   :  { %v9218_v60 = vadd.f32 %v9217_v13, %v9216_v24  ;;  %v14071_v11 = vadd.f32 %v9295_v15, %v2559_v30 }
 0x298   :  { %v9219_v29 = vpop.f32.mrf.mxu1  ;;  %v9297_v55 = vpop.f32.mrf.mxu0 }
 0x299   :  { %v2564_v48 = vadd.f32 %v14068_v41, %v9218_v60  ;;  %v9298_v19 = vadd.f32 %v9297_v55, %v9296_v40 }
 0x29a   :  { %v9220_v10 = vpop.f32.mrf.mxu1  ;;  %v9299_v0 = vpop.f32.mrf.mxu0 }
 0x29b   :  { %v9221_v1 = vadd.f32 %v9220_v10, %v9219_v29  ;;  %v14074_v44 = vadd.f32 %v9298_v19, %v2564_v48 }
 0x29c   :  { %v9222_v2 = vpop.f32.mrf.mxu1  ;;  %v9300_v17 = vpop.f32.mrf.mxu0 }
 0x29d   :  { %v2569_v32 = vadd.f32 %v14068_v41, %v9221_v1  ;;  %v9301_v52 = vadd.f32 %v9300_v17, %v9299_v0 }
 0x29e   :  { %v9223_v25 = vpop.f32.mrf.mxu1  ;;  %v9302_v26 = vpop.f32.mrf.mxu0 }
 0x29f   :  { %v9224_v9 = vadd.f32 %v9223_v25, %v9222_v2  ;;  %v14077_v31 = vadd.f32 %v9301_v52, %v2569_v32 }
 0x2a0   :  { %v9225_v33 = vpop.f32.mrf.mxu1  ;;  %v9303_v62 = vpop.f32.mrf.mxu0 }
 0x2a1   :  { %v2574_v27 = vadd.f32 %v14068_v41, %v9224_v9  ;;  %v9304_v3 = vadd.f32 %v9303_v62, %v9302_v26 }
 0x2a2   :  { %v9226_v39 = vpop.f32.mrf.mxu1  ;;  %v9305_v14 = vpop.f32.mrf.mxu0 }
 0x2a3   :  { %v9227_v58 = vadd.f32 %v9226_v39, %v9225_v33  ;;  %v14080_v61 = vadd.f32 %v9304_v3, %v2574_v27 }
 0x2a4   :  { %v9228_v63 = vpop.f32.mrf.mxu1  ;;  %v9306_v59 = vpop.f32.mrf.mxu0 }
 0x2a5   :  { %v2579_v4 = vadd.f32 %v14068_v41, %v9227_v58  ;;  %v9307_v56 = vadd.f32 %v9306_v59, %v9305_v14 }
 0x2a6   :  { %v9229_v54 = vpop.f32.mrf.mxu1  ;;  %v9308_v7 = vpop.f32.mrf.mxu0 }
 0x2a7   :  { %v9230_v51 = vadd.f32 %v9229_v54, %v9228_v63  ;;  %v14083_v35 = vadd.f32 %v9307_v56, %v2579_v4 }
 0x2a8   :  { %v9231_v36 = vpop.f32.mrf.mxu1  ;;  %v9309_v42 = vpop.f32.mrf.mxu0 }
 0x2a9   :  { %v2584_v18 = vadd.f32 %v14068_v41, %v9230_v51  ;;  %v9310_v49 = vadd.f32 %v9309_v42, %v9308_v7 }
 0x2aa   :  { %v9232_v21 = vpop.f32.mrf.mxu1  ;;  %v9311_v28 = vpop.f32.mrf.mxu0 }
 0x2ab   :  { %v9233_v6 = vadd.f32 %v9232_v21, %v9231_v36  ;;  %v14086_v34 = vadd.f32 %v9310_v49, %v2584_v18 }
 0x2ac   :  { %v9234_v22 = vpop.f32.mrf.mxu1  ;;  %v9312_v12 = vpop.f32.mrf.mxu0 }
 0x2ad   :  { %v2589_v23 = vadd.f32 %v14068_v41, %v9233_v6  ;;  %v9313_v8 = vadd.f32 %v9312_v12, %v9311_v28 }
 0x2ae   :  { %v9235_v37 = vpop.f32.mrf.mxu1  ;;  %v9314_v20 = vpop.f32.mrf.mxu0 }
 0x2af   :  { %v9236_v57 = vadd.f32 %v9235_v37, %v9234_v22  ;;  %v14089_v53 = vadd.f32 %v9313_v8, %v2589_v23 }
 0x2b0   :  { %v9237_v46 = vpop.f32.mrf.mxu1  ;;  %v9315_v38 = vpop.f32.mrf.mxu0 }
 0x2b1   :  { %v2594_v24 = vadd.f32 %v14068_v41, %v9236_v57  ;;  %v9316_v13 = vadd.f32 %v9315_v38, %v9314_v20 }
 0x2b2   :  { %v9238_v47 = vpop.f32.mrf.mxu1  ;;  %v9317_v30 = vpop.f32.mrf.mxu0 }
 0x2b3   :  { %v9239_v50 = vadd.f32 %v9238_v47, %v9237_v46  ;;  %v14092_v60 = vadd.f32 %v9316_v13, %v2594_v24 }
 0x2b4   :  { %v9240_v45 = vpop.f32.mrf.mxu1  ;;  %v9318_v29 = vpop.f32.mrf.mxu0 }
 0x2b5   :  { %v2599_v40 = vadd.f32 %v14068_v41, %v9239_v50  ;;  %v9319_v55 = vadd.f32 %v9318_v29, %v9317_v30 }
 0x2b6   :  { %v9241_v15 = vpop.f32.mrf.mxu1  ;;  %v9320_v1 = vpop.f32.mrf.mxu0 }
 0x2b7   :  { %v9242_v10 = vadd.f32 %v9241_v15, %v9240_v45  ;;  %v14095_v19 = vadd.f32 %v9319_v55, %v2599_v40 }
 0x2b8   :  { %v9243_v48 = vpop.f32.mrf.mxu1  ;;  %v9321_v0 = vpop.f32.mrf.mxu0 }
 0x2b9   :  { %v2604_v25 = vadd.f32 %v14068_v41, %v9242_v10  ;;  %v9322_v32 = vadd.f32 %v9321_v0, %v9320_v1 }
 0x2ba   :  { %v9244_v2 = vpop.f32.mrf.mxu1  ;;  %v9323_v52 = vpop.f32.mrf.mxu0 }
 0x2bb   :  { %v9245_v17 = vadd.f32 %v9244_v2, %v9243_v48  ;;  %v14098_v33 = vadd.f32 %v9322_v32, %v2604_v25 }
 0x2bc   :  { %v9246_v9 = vpop.f32.mrf.mxu1  ;;  %v9324_v39 = vpop.f32.mrf.mxu0 }
 0x2bd   :  { %v2609_v62 = vadd.f32 %v14068_v41, %v9245_v17  ;;  %v9325_v58 = vadd.f32 %v9324_v39, %v9323_v52 }
 0x2be   :  { %v9247_v26 = vpop.f32.mrf.mxu1  ;;  %v9326_v63 = vpop.f32.mrf.mxu0 }
 0x2bf   :  { %v9248_v27 = vadd.f32 %v9247_v26, %v9246_v9  ;;  %v14101_v14 = vadd.f32 %v9325_v58, %v2609_v62 }
 0x2c0   :  { %v9249_v3 = vpop.f32.mrf.mxu1  ;;  %v9327_v59 = vpop.f32.mrf.mxu0 }
 0x2c1   :  { %v2614_v4 = vadd.f32 %v14068_v41, %v9248_v27  ;;  %v9328_v56 = vadd.f32 %v9327_v59, %v9326_v63 }
 0x2c2   :  { %v9250_v54 = vpop.f32.mrf.mxu1  ;;  %v9329_v7 = vpop.f32.mrf.mxu0 }
 0x2c3   :  { %v9251_v51 = vadd.f32 %v9250_v54, %v9249_v3  ;;  %v14104_v21 = vadd.f32 %v9328_v56, %v2614_v4 }
 0x2c4   :  { %v9252_v36 = vpop.f32.mrf.mxu1  ;;  %v9330_v18 = vpop.f32.mrf.mxu0 }
 0x2c5   :  { %v2619_v6 = vadd.f32 %v14068_v41, %v9251_v51  ;;  %v9331_v22 = vadd.f32 %v9330_v18, %v9329_v7 }
 0x2c6   :  { %v9253_v42 = vpop.f32.mrf.mxu1  ;;  %v9332_v28 = vpop.f32.mrf.mxu0 }
 0x2c7   :  { %v9254_v49 = vadd.f32 %v9253_v42, %v9252_v36  ;;  %v14107_v12 = vadd.f32 %v9331_v22, %v2619_v6 }
 0x2c8   :  { %v9367_v37 = vpop.f32.mrf.mxu1  ;;  %v9333_v23 = vpop.f32.mrf.mxu0 }
 0x2c9   :  { %v2624_v8 = vadd.f32 %v14068_v41, %v9254_v49  ;;  %v9334_v46 = vadd.f32 %v9333_v23, %v9332_v28 }
 0x2ca   :  { %v9368_v57 = vpop.f32.mrf.mxu1 }
 0x2cb   :  { %v9369_v20 = vadd.f32 %v9368_v57, %v9367_v37  ;;  %v9447_v38 = vpop.f32.mrf.mxu0  ;;  %v14110_v24 = vadd.f32 %v9334_v46, %v2624_v8 }
 0x2cc   :  { %v9370_v47 = vpop.f32.mrf.mxu1 }
 0x2cd   :  { %v2839_v50 = vadd.f32 %v9369_v20, %v13714_v43  ;;  %v9448_v45 = vpop.f32.mrf.mxu0 }
 0x2ce   :  { %v9371_v13 = vpop.f32.mrf.mxu1  ;;  %v9449_v15 = vadd.f32 %v9448_v45, %v9447_v38 }
 0x2cf   :  { %v9372_v30 = vadd.f32 %v9371_v13, %v9370_v47  ;;  %v9450_v40 = vpop.f32.mrf.mxu0 }
 0x2d0   :  { %v9373_v29 = vpop.f32.mrf.mxu1  ;;  %v14114_v55 = vadd.f32 %v9449_v15, %v2839_v50 }
 0x2d1   :  { %v2844_v10 = vadd.f32 %v9372_v30, %v13732_v5  ;;  %v9451_v41 = vpop.f32.mrf.mxu0 }
 0x2d2   :  { %v9374_v48 = vpop.f32.mrf.mxu1  ;;  %v9452_v2 = vadd.f32 %v9451_v41, %v9450_v40 }
 0x2d3   :  { %v9375_v1 = vadd.f32 %v9374_v48, %v9373_v29  ;;  %v9453_v25 = vpop.f32.mrf.mxu0 }
 0x2d4   :  { %v9376_v0 = vpop.f32.mrf.mxu1  ;;  %v14117_v32 = vadd.f32 %v9452_v2, %v2844_v10 }
 0x2d5   :  { %v2849_v17 = vadd.f32 %v9375_v1, %v14071_v11  ;;  %v9454_v9 = vpop.f32.mrf.mxu0 }
 0x2d6   :  { %v9377_v43 = vpop.f32.mrf.mxu1  ;;  %v9455_v26 = vadd.f32 %v9454_v9, %v9453_v25 }
 0x2d7   :  { %v9378_v52 = vadd.f32 %v9377_v43, %v9376_v0  ;;  %v9456_v62 = vpop.f32.mrf.mxu0 }
 0x2d8   :  { %v9379_v39 = vpop.f32.mrf.mxu1  ;;  %v14120_v27 = vadd.f32 %v9455_v26, %v2849_v17 }
 0x2d9   :  { %v2854_v5 = vadd.f32 %v9378_v52, %v14074_v44  ;;  %v9457_v3 = vpop.f32.mrf.mxu0 }
 0x2da   :  { %v9380_v58 = vpop.f32.mrf.mxu1  ;;  %v9458_v54 = vadd.f32 %v9457_v3, %v9456_v62 }
 0x2db   :  { %v9381_v63 = vadd.f32 %v9380_v58, %v9379_v39  ;;  %v9459_v4 = vpop.f32.mrf.mxu0 }
 0x2dc   :  { %v9382_v59 = vpop.f32.mrf.mxu1  ;;  %v14123_v51 = vadd.f32 %v9458_v54, %v2854_v5 }
 0x2dd   :  { %v2859_v11 = vadd.f32 %v9381_v63, %v14077_v31  ;;  %v9460_v36 = vpop.f32.mrf.mxu0 }
 0x2de   :  { %v9383_v56 = vpop.f32.mrf.mxu1  ;;  %v9461_v42 = vadd.f32 %v9460_v36, %v9459_v4 }
 0x2df   :  { %v9384_v7 = vadd.f32 %v9383_v56, %v9382_v59  ;;  %v9462_v6 = vpop.f32.mrf.mxu0 }
 0x2e0   :  { %v9385_v18 = vpop.f32.mrf.mxu1  ;;  %v14126_v49 = vadd.f32 %v9461_v42, %v2859_v11 }
 0x2e1   :  { %v2864_v44 = vadd.f32 %v9384_v7, %v14080_v61  ;;  %v9463_v28 = vpop.f32.mrf.mxu0 }
 0x2e2   :  { %v9386_v22 = vpop.f32.mrf.mxu1  ;;  %v9464_v23 = vadd.f32 %v9463_v28, %v9462_v6 }
 0x2e3   :  { %v9387_v37 = vadd.f32 %v9386_v22, %v9385_v18  ;;  %v9465_v8 = vpop.f32.mrf.mxu0 }
 0x2e4   :  { %v9388_v57 = vpop.f32.mrf.mxu1  ;;  %v14129_v46 = vadd.f32 %v9464_v23, %v2864_v44 }
 0x2e5   :  { %v2869_v31 = vadd.f32 %v9387_v37, %v14083_v35  ;;  %v9466_v47 = vpop.f32.mrf.mxu0 }
 0x2e6   :  { %18266 = vst [vmem:[#allocation10_spill] sm:$0xff] %v14129_v46  ;;  %v9389_v20 = vpop.f32.mrf.mxu1  ;;  %v9467_v50 = vadd.f32 %v9466_v47, %v9465_v8 }
 0x2e7   :  { %v9390_v38 = vadd.f32 %v9389_v20, %v9388_v57  ;;  %v9468_v45 = vpop.f32.mrf.mxu0 }
 0x2e8   :  { %v9391_v13 = vpop.f32.mrf.mxu1  ;;  %v14132_v30 = vadd.f32 %v9467_v50, %v2869_v31 }
 0x2e9   :  { %v2874_v61 = vadd.f32 %v9390_v38, %v14086_v34  ;;  %v9469_v29 = vpop.f32.mrf.mxu0 }
 0x2ea   :  { %18267 = vst [vmem:[#allocation11_spill] sm:$0xff] %v14132_v30  ;;  %v9392_v15 = vpop.f32.mrf.mxu1  ;;  %v9470_v10 = vadd.f32 %v9469_v29, %v9468_v45 }
 0x2eb   :  { %v9393_v40 = vadd.f32 %v9392_v15, %v9391_v13  ;;  %v9471_v41 = vpop.f32.mrf.mxu0 }
 0x2ec   :  { %v9394_v48 = vpop.f32.mrf.mxu1  ;;  %v14135_v1 = vadd.f32 %v9470_v10, %v2874_v61 }
 0x2ed   :  { %v2879_v35 = vadd.f32 %v9393_v40, %v14089_v53  ;;  %v9472_v0 = vpop.f32.mrf.mxu0 }
 0x2ee   :  { %18268 = vst [vmem:[#allocation9_spill] sm:$0xff] %v14135_v1  ;;  %v9395_v2 = vpop.f32.mrf.mxu1  ;;  %v9473_v17 = vadd.f32 %v9472_v0, %v9471_v41 }
 0x2ef   :  { %v9396_v25 = vadd.f32 %v9395_v2, %v9394_v48  ;;  %v9474_v9 = vpop.f32.mrf.mxu0 }
 0x2f0   :  { %v9397_v43 = vpop.f32.mrf.mxu1  ;;  %v14138_v52 = vadd.f32 %v9473_v17, %v2879_v35 }
 0x2f1   :  { %v2884_v34 = vadd.f32 %v9396_v25, %v14092_v60  ;;  %v9475_v39 = vpop.f32.mrf.mxu0 }
 0x2f2   :  { %v9398_v26 = vpop.f32.mrf.mxu1  ;;  %v9476_v5 = vadd.f32 %v9475_v39, %v9474_v9 }
 0x2f3   :  { %v9399_v62 = vadd.f32 %v9398_v26, %v9397_v43  ;;  %v9477_v3 = vpop.f32.mrf.mxu0 }
 0x2f4   :  { %v9400_v58 = vpop.f32.mrf.mxu1  ;;  %v14141_v63 = vadd.f32 %v9476_v5, %v2884_v34 }
 0x2f5   :  { %v2889_v53 = vadd.f32 %v9399_v62, %v14095_v19  ;;  %v9478_v59 = vpop.f32.mrf.mxu0 }
 0x2f6   :  { %v9401_v54 = vpop.f32.mrf.mxu1  ;;  %v9479_v4 = vadd.f32 %v9478_v59, %v9477_v3 }
 0x2f7   :  { %v9402_v60 = vadd.f32 %v9401_v54, %v9400_v58  ;;  %v9480_v56 = vpop.f32.mrf.mxu0 }
 0x2f8   :  { %v9403_v11 = vpop.f32.mrf.mxu1  ;;  %v14146_v7 = vadd.f32 %v9479_v4, %v2889_v53 }
 0x2f9   :  { %v2894_v36 = vadd.f32 %v9402_v60, %v14098_v33  ;;  %v9481_v18 = vpop.f32.mrf.mxu0 }
 0x2fa   :  { %v9404_v42 = vpop.f32.mrf.mxu1  ;;  %v9482_v6 = vadd.f32 %v9481_v18, %v9480_v56 }
 0x2fb   :  { %v9405_v19 = vadd.f32 %v9404_v42, %v9403_v11  ;;  %v9483_v22 = vpop.f32.mrf.mxu0 }
 0x2fc   :  { %v9406_v44 = vpop.f32.mrf.mxu1  ;;  %v14149_v37 = vadd.f32 %v9482_v6, %v2894_v36 }
 0x2fd   :  { %v2899_v28 = vadd.f32 %v9405_v19, %v14101_v14  ;;  %v9484_v57 = vpop.f32.mrf.mxu0 }
 0x2fe   :  { %v9407_v23 = vpop.f32.mrf.mxu1  ;;  %v9485_v31 = vadd.f32 %v9484_v57, %v9483_v22 }
 0x2ff   :  { %v9408_v8 = vadd.f32 %v9407_v23, %v9406_v44 }
 0x300   :  { %v14152_v47 = vadd.f32 %v9485_v31, %v2899_v28  ;;  %v9409_v33 = vpop.f32.mrf.mxu1  ;;  %v9486_v38 = vpop.f32.mrf.mxu0 }
 0x301   :  { %v2904_v20 = vadd.f32 %v9408_v8, %v14104_v21 }
 0x302   :  { %v9410_v50 = vpop.f32.mrf.mxu1  ;;  %v9487_v13 = vpop.f32.mrf.mxu0 }
 0x303   :  { %v9411_v45 = vadd.f32 %v9410_v50, %v9409_v33  ;;  %v9488_v61 = vadd.f32 %v9487_v13, %v9486_v38 }
 0x305   :  { %v2909_v15 = vadd.f32 %v9411_v45, %v14107_v12  ;;  %v14155_v29 = vadd.f32 %v9488_v61, %v2904_v20 }
 0x306   :  { %v14157_v14 = vpop.f32.mrf.mxu1  ;;  %v9489_v40 = vpop.f32.mrf.mxu0 }
 0x308   :  { %v14159_v10 = vpop.f32.mrf.mxu1  ;;  %v9490_v48 = vpop.f32.mrf.mxu0 }
 0x309   :  { %v9491_v41 = vadd.f32 %v9490_v48, %v9489_v40 }
 0x30b   :  { %v14161_v21 = vadd.f32 %v9491_v41, %v2909_v15 }
 0x30c   :  { %v14163_v35 = vpop.f32.mrf.mxu0  ;;  %v9527_v2 = vpop.f32.mrf.mxu1 }
 0x30e   :  { %v14165_v0 = vpop.f32.mrf.mxu0  ;;  %v9528_v25 = vpop.f32.mrf.mxu1 }
 0x30f   :  { %v9529_v17 = vadd.f32 %v9528_v25, %v9527_v2 }
 0x310   :  { %v9530_v43 = vpop.f32.mrf.mxu1 }
 0x311   :  { %v3129_v12 = vadd.f32 %v9529_v17, %v14114_v55  ;;  %v9607_v9 = vpop.f32.mrf.mxu0 }
 0x312   :  { %v9531_v34 = vpop.f32.mrf.mxu1 }
 0x313   :  { %v9532_v26 = vadd.f32 %v9531_v34, %v9530_v43  ;;  %v9608_v39 = vpop.f32.mrf.mxu0 }
 0x314   :  { %v9609_v62 = vadd.f32 %v9608_v39, %v9607_v9  ;;  %v9533_v5 = vpop.f32.mrf.mxu1 }
 0x315   :  { %v3134_v58 = vadd.f32 %v9532_v26, %v14117_v32  ;;  %v9610_v3 = vpop.f32.mrf.mxu0 }
 0x316   :  { %v14169_v53 = vadd.f32 %v9609_v62, %v3129_v12  ;;  %v9534_v54 = vpop.f32.mrf.mxu1 }
 0x317   :  { %v9535_v59 = vadd.f32 %v9534_v54, %v9533_v5  ;;  %v9611_v60 = vpop.f32.mrf.mxu0 }
 0x318   :  { %18269 = vst [vmem:[#allocation14_spill] sm:$0xff] %v14169_v53  ;;  %v9612_v4 = vadd.f32 %v9611_v60, %v9610_v3  ;;  %v9536_v11 = vpop.f32.mrf.mxu1 }
 0x319   :  { %v3139_v56 = vadd.f32 %v9535_v59, %v14120_v27  ;;  %v9613_v36 = vpop.f32.mrf.mxu0 }
 0x31a   :  { %v14172_v55 = vadd.f32 %v9612_v4, %v3134_v58  ;;  %v9537_v42 = vpop.f32.mrf.mxu1 }
 0x31b   :  { %v9538_v18 = vadd.f32 %v9537_v42, %v9536_v11  ;;  %v9614_v19 = vpop.f32.mrf.mxu0 }
 0x31c   :  { %18270 = vst [vmem:[#allocation13_spill] sm:$0xff] %v14172_v55  ;;  %v9615_v6 = vadd.f32 %v9614_v19, %v9613_v36  ;;  %v9539_v44 = vpop.f32.mrf.mxu1 }
 0x31d   :  { %v3144_v32 = vadd.f32 %v9538_v18, %v14123_v51  ;;  %v9616_v22 = vpop.f32.mrf.mxu0 }
 0x31e   :  { %v14175_v28 = vadd.f32 %v9615_v6, %v3139_v56  ;;  %v9540_v23 = vpop.f32.mrf.mxu1 }
 0x31f   :  { %v9541_v57 = vadd.f32 %v9540_v23, %v9539_v44  ;;  %v9617_v8 = vpop.f32.mrf.mxu0 }
 0x320   :  { %18271 = vst [vmem:[#allocation12_spill] sm:$0xff] %v14175_v28  ;;  %v9618_v31 = vadd.f32 %v9617_v8, %v9616_v22  ;;  %v14177_v20 = vpop.f32.mrf.mxu1 }
 0x321   :  { %18272 = vst [vmem:[#allocation15_spill] sm:$0xff] %v14177_v20  ;;  %v3149_v27 = vadd.f32 %v9541_v57, %v14126_v49  ;;  %v9619_v33 = vpop.f32.mrf.mxu0 }
 0x322   :  { %v14180_v38 = vadd.f32 %v9618_v31, %v3144_v32  ;;  %v14182_v50 = vpop.f32.mrf.mxu1  ;;  %v9414_v31 = vadd.f32 %v14159_v10, %v14157_v14 }
 0x323   :  { %18274 = vst [vmem:[#allocation17_spill] sm:$0xff] %v14182_v50  ;;  %v9620_v13 = vpop.f32.mrf.mxu0 }
 0x324   :  { %18273 = vst [vmem:[#allocation16_spill] sm:$0xff] %v14180_v38  ;;  %v9621_v45 = vadd.f32 %v9620_v13, %v9619_v33  ;;  %v14184_v61 = vpop.f32.mrf.mxu1  ;;  %v9494_v13 = vadd.f32 %v14165_v0, %v14163_v35  ;;  %v2914_v55 = vadd.f32 %v9414_v31, %v14110_v24 }
 0x325   :  { %v14186_v51 = vpop.f32.mrf.mxu0 }
 0x326   :  { %18275 = vst [vmem:[#allocation18_spill] sm:$0xff] %v14186_v51  ;;  %v14188_v15 = vadd.f32 %v9621_v45, %v3149_v27  ;;  %v14190_v40 = vpop.f32.mrf.mxu1  ;;  %v3059_v46 = vadd.f32 %v9494_v13, %v2914_v55 }
 0x327   :  { %v14192_v48 = vpop.f32.mrf.mxu0 }
 0x328   :  { %18276 = vst [vmem:[#allocation19_spill] sm:$0xff] %v14188_v15  ;;  %18277 = vst [vmem:[#allocation20_spill] sm:$0xff] %v14192_v48  ;;  %v14194_v41 = vpop.f32.mrf.mxu1 }
 0x329   :  { %v14196_v49 = vpop.f32.mrf.mxu0 }
 0x32a   :  { %18278 = vst [vmem:[#allocation21_spill] sm:$0xff] %v14196_v49  ;;  %v14198_v2 = vpop.f32.mrf.mxu1 }
 0x32b   :  { %v14200_v25 = vpop.f32.mrf.mxu0  ;;  %v18290_v31 = vld [vmem:[#allocation16_spill] sm:$0xff] }
 0x32c   :  { %18279 = vst [vmem:[#allocation22_spill] sm:$0xff] %v14200_v25  ;;  %v14202_v17 = vpop.f32.mrf.mxu1 }
 0x32d   :  { %v14204_v43 = vpop.f32.mrf.mxu0 }
 0x32e   :  { %v14206_v12 = vpop.f32.mrf.mxu1 }
 0x32f   :  { %v14208_v9 = vpop.f32.mrf.mxu0 }
 0x330   :  { %v9554_v34 = vpop.f32.mrf.mxu1 }
 0x331   :  { %v14210_v26 = vpop.f32.mrf.mxu0 }
 0x332   :  { %v9555_v39 = vpop.f32.mrf.mxu1 }
 0x333   :  { %v14212_v62 = vpop.f32.mrf.mxu0 }
 0x334   :  { %v9557_v5 = vpop.f32.mrf.mxu1 }
 0x335   :  { %v9634_v58 = vpop.f32.mrf.mxu0 }
 0x336   :  { %v9558_v3 = vpop.f32.mrf.mxu1 }
 0x337   :  { %v9635_v54 = vpop.f32.mrf.mxu0 }
 0x338   :  { %v9560_v59 = vpop.f32.mrf.mxu1 }
 0x339   :  { %v9637_v60 = vpop.f32.mrf.mxu0 }
 0x33a   :  { %v9561_v4 = vpop.f32.mrf.mxu1 }
 0x33b   :  { %v9638_v11 = vpop.f32.mrf.mxu0  ;;  %v9562_v50 = vadd.f32 %v9561_v4, %v9560_v59  ;;  %v18287_v59 = vld [vmem:[#allocation11_spill] sm:$0xff] }
 0x33c   :  { %v9563_v56 = vpop.f32.mrf.mxu1 }
 0x33d   :  { %v9640_v36 = vpop.f32.mrf.mxu0 }
 0x33e   :  { %v9564_v42 = vpop.f32.mrf.mxu1 }
 0x33f   :  { %v9641_v18 = vpop.f32.mrf.mxu0  ;;  %v9565_v51 = vadd.f32 %v9564_v42, %v9563_v56  ;;  %v18288_v56 = vld [vmem:[#allocation10_spill] sm:$0xff] }
 0x340   :  { %v9566_v19 = vpop.f32.mrf.mxu1 }
 0x341   :  { %v9643_v6 = vpop.f32.mrf.mxu0  ;;  %v3189_v55 = vadd.f32 %v9565_v51, %v14152_v47  ;;  %v9553_v47 = vadd.f32 %v14206_v12, %v14202_v17 }
 0x342   :  { %v9567_v44 = vpop.f32.mrf.mxu1 }
 0x343   :  { %v9644_v32 = vpop.f32.mrf.mxu0  ;;  %v9568_v30 = vadd.f32 %v9567_v44, %v9566_v19  ;;  %v9642_v19 = vadd.f32 %v9641_v18, %v9640_v36 }
 0x344   :  { %v9569_v22 = vpop.f32.mrf.mxu1  ;;  %v9645_v0 = vadd.f32 %v9644_v32, %v9643_v6 }
 0x345   :  { %v9646_v23 = vpop.f32.mrf.mxu0  ;;  %v3194_v35 = vadd.f32 %v9568_v30, %v14155_v29  ;;  %v3184_v30 = vadd.f32 %v9562_v50, %v14149_v37  ;;  %v9550_v50 = vadd.f32 %v14198_v2, %v14194_v41  ;;  %v9547_v41 = vadd.f32 %v14190_v40, %v14184_v61  ;;  %v18282_v40 = vld [vmem:[#allocation21_spill] sm:$0xff] }
 0x346   :  { %v9570_v57 = vpop.f32.mrf.mxu1  ;;  %v14233_v29 = vadd.f32 %v9645_v0, %v3189_v55  ;;  %v9630_v2 = vadd.f32 %v14208_v9, %v14204_v43  ;;  %v18284_v9 = vld [vmem:[#allocation9_spill] sm:$0xff]  ;;  %v18294_v0 = vmov 1.0  }
 0x347   :  { %v9647_v8 = vpop.f32.mrf.mxu0  ;;  %v9571_v28 = vadd.f32 %v9570_v57, %v9569_v22  ;;  %v9559_v22 = vadd.f32 %v9558_v3, %v9557_v5  ;;  %v18286_v3 = vld [vmem:[#allocation20_spill] sm:$0xff]  ;;  %v18289_v57 = vld [vmem:[#allocation19_spill] sm:$0xff] }
 0x348   :  { %v9572_v27 = vpop.f32.mrf.mxu1  ;;  %v9648_v14 = vadd.f32 %v9647_v8, %v9646_v23  ;;  %v3428_v8 = vmul.f32 %v18289_v57, %v18289_v57 }
 0x349   :  { %v9649_v33 = vpop.f32.mrf.mxu0  ;;  %v3199_v25 = vadd.f32 %v9571_v28, %v14161_v21  ;;  %v3179_v51 = vadd.f32 %v9559_v22, %v14146_v7 }
 0x34a   :  { %v9573_v45 = vpop.f32.mrf.mxu1 }
 0x34b   :  { %v9650_v53 = vpop.f32.mrf.mxu0  ;;  %v9574_v38 = vadd.f32 %v9573_v45, %v9572_v27  ;;  %v3427_v27 = vmul.f32 %v18290_v31, %v18290_v31  ;;  %v18292_v45 = vld [vmem:[#allocation13_spill] sm:$0xff] }
 0x34c   :  { %v9651_v48 = vadd.f32 %v9650_v53, %v9649_v33  ;;  %v14226_v53 = vadd.f32 %v9648_v14, %v3194_v35  ;;  %v18291_v33 = vld [vmem:[#allocation12_spill] sm:$0xff]  ;;  %v3425_v14 = vmul.f32 %v18292_v45, %v18292_v45 }
 0x34d   :  { %v9652_v15 = vpop.f32.mrf.mxu0  ;;  %v3204_v10 = vadd.f32 %v9574_v38, %v3059_v46  ;;  %v9556_v46 = vadd.f32 %v9555_v39, %v9554_v34  ;;  %v9636_v38 = vadd.f32 %v9635_v54, %v9634_v58  ;;  %v18280_v34 = vld [vmem:[#allocation15_spill] sm:$0xff]  ;;  %v18283_v39 = vld [vmem:[#allocation22_spill] sm:$0xff]  ;;  %v3426_v13 = vmul.f32 %v18291_v33, %v18291_v33 }
 0x34e   :  { %v14221_v20 = vadd.f32 %v9651_v48, %v3199_v25  ;;  %v3437_v37 = vmul.f32 %v14226_v53, %v14226_v53  ;;  %v9633_v48 = vadd.f32 %v14212_v62, %v14210_v26  ;;  %v3436_v25 = vmul.f32 %v14233_v29, %v14233_v29  ;;  %v18281_v26 = vld [vmem:[#allocation17_spill] sm:$0xff]  ;;  %v18285_v58 = vld [vmem:[#allocation18_spill] sm:$0xff] }
 0x34f   :  { %v9653_v1 = vpop.f32.mrf.mxu0  ;;  %v3174_v7 = vadd.f32 %v9556_v46, %v14141_v63  ;;  %v3169_v63 = vadd.f32 %v9553_v47, %v14138_v52  ;;  %v9544_v61 = vadd.f32 %v18281_v26, %v18280_v34  ;;  %v9627_v43 = vadd.f32 %v18283_v39, %v18282_v40 }
 0x350   :  { %v9654_v49 = vadd.f32 %v9653_v1, %v9652_v15  ;;  %v9639_v1 = vadd.f32 %v9638_v11, %v9637_v60  ;;  %v3438_v28 = vmul.f32 %v14221_v20, %v14221_v20  ;;  %v14243_v15 = vadd.f32 %v9642_v19, %v3184_v30 }
 0x351   :  { %v14267_v17 = vadd.f32 %v9636_v38, %v3174_v7  ;;  %v3164_v52 = vadd.f32 %v9550_v50, %v18284_v9  ;;  %v14279_v62 = vadd.f32 %v9633_v48, %v3169_v63  ;;  %v9624_v54 = vadd.f32 %v18286_v3, %v18285_v58 }
 0x352   :  { %v14223_v24 = vadd.f32 %v9654_v49, %v3204_v10  ;;  %v14255_v49 = vadd.f32 %v9639_v1, %v3179_v51  ;;  %v3435_v12 = vmul.f32 %v14243_v15, %v14243_v15  ;;  %v3159_v60 = vadd.f32 %v9547_v41, %v18287_v59  ;;  %v18293_v10 = vld [vmem:[#allocation14_spill] sm:$0xff] }
 0x353   :  { %v14289_v4 = vadd.f32 %v9630_v2, %v3164_v52  ;;  %v3433_v11 = vmul.f32 %v14267_v17, %v14267_v17  ;;  %v3154_v36 = vadd.f32 %v9544_v61, %v18288_v56  ;;  %v3432_v18 = vmul.f32 %v14279_v62, %v14279_v62 }
 0x354   :  { %v3439_v21 = vmul.f32 %v14223_v24, %v14223_v24  ;;  %10256 = vmatpush3.msra.mxu1 %v14223_v24  ;;  %v3434_v5 = vmul.f32 %v14255_v49, %v14255_v49  ;;  %v14297_v42 = vadd.f32 %v9627_v43, %v3159_v60  ;;  %v3424_v35 = vmul.f32 %v18293_v10, %v18293_v10 }
 0x355   :  { %10257 = vmatprep.subr.mxu1 %v18265_v16  ;;  %v14304_v6 = vadd.f32 %v9624_v54, %v3154_v36  ;;  %v3431_v44 = vmul.f32 %v14289_v4, %v14289_v4  ;;  %v18295_v51 = vlaneseq }
 0x356   :  { %10258 = vmatpush3.msra.mxu1 %v14221_v20  ;;  %10291 = vmatpush3.msra.mxu0 %v3439_v21  ;;  %v3430_v32 = vmul.f32 %v14297_v42, %v14297_v42 }
 0x357   :  { %10259 = vmatprep.subr.mxu1 %v18265_v16  ;;  %10292 = vmatprep.subr.mxu0 %v18265_v16  ;;  %v3429_v23 = vmul.f32 %v14304_v6, %v14304_v6 }
 0x358   :  { %10260 = vmatpush3.msra.mxu1 %v14226_v53  ;;  %10293 = vmatpush3.msra.mxu0 %v3438_v28 }
 0x359   :  { %10261 = vmatprep.subr.mxu1 %v18265_v16  ;;  %10294 = vmatprep.subr.mxu0 %v18265_v16 }
 0x35a   :  { %10262 = vmatpush3.msra.mxu1 %v14233_v29  ;;  %10295 = vmatpush3.msra.mxu0 %v3437_v37  ;;  %v14348_v37 = vshrl.u32 %v18295_v51, 7 }
 0x35b   :  { %10263 = vmatprep.subr.mxu1 %v18265_v16  ;;  %10296 = vmatprep.subr.mxu0 %v18265_v16 }
 0x35c   :  { %10264 = vmatpush3.msra.mxu1 %v14243_v15  ;;  %10297 = vmatpush3.msra.mxu0 %v3436_v25  ;;  %18296 = vst [vmem:[#allocation15_spill] sm:$0xff] %v14348_v37  ;;  %v14351_v50 = vsub.s32 0, %v14348_v37 }
 0x35d   :  { %10265 = vmatprep.subr.mxu1 %v18265_v16  ;;  %10298 = vmatprep.subr.mxu0 %v18265_v16 }
 0x35e   :  { %10266 = vmatpush3.msra.mxu1 %v14255_v49  ;;  %10299 = vmatpush3.msra.mxu0 %v3435_v12  ;;  %18297 = vst [vmem:[#allocation17_spill] sm:$0xff] %v14351_v50 }
 0x35f   :  { %10267 = vmatprep.subr.mxu1 %v18265_v16  ;;  %10300 = vmatprep.subr.mxu0 %v18265_v16 }
 0x360   :  { %10268 = vmatpush3.msra.mxu1 %v14267_v17  ;;  %10301 = vmatpush3.msra.mxu0 %v3434_v5 }
 0x361   :  { %10269 = vmatprep.subr.mxu1 %v18265_v16  ;;  %10302 = vmatprep.subr.mxu0 %v18265_v16 }
 0x362   :  { %10270 = vmatpush3.msra.mxu1 %v14279_v62  ;;  %10303 = vmatpush3.msra.mxu0 %v3433_v11 }
 0x363   :  { %10271 = vmatprep.subr.mxu1 %v18265_v16  ;;  %10304 = vmatprep.subr.mxu0 %v18265_v16 }
 0x364   :  { %10272 = vmatpush3.msra.mxu1 %v14289_v4  ;;  %10305 = vmatpush3.msra.mxu0 %v3432_v18 }
 0x365   :  { %10273 = vmatprep.subr.mxu1 %v18265_v16  ;;  %10306 = vmatprep.subr.mxu0 %v18265_v16 }
 0x366   :  { %10274 = vmatpush3.msra.mxu1 %v14297_v42  ;;  %10307 = vmatpush3.msra.mxu0 %v3431_v44 }
 0x367   :  { %10275 = vmatprep.subr.mxu1 %v18265_v16  ;;  %10308 = vmatprep.subr.mxu0 %v18265_v16 }
 0x368   :  { %10276 = vmatpush3.msra.mxu1 %v14304_v6  ;;  %10309 = vmatpush3.msra.mxu0 %v3430_v32 }
 0x369   :  { %10277 = vmatprep.subr.mxu1 %v18265_v16  ;;  %10310 = vmatprep.subr.mxu0 %v18265_v16 }
 0x36a   :  { %10278 = vmatpush3.msra.mxu1 %v18289_v57  ;;  %10311 = vmatpush3.msra.mxu0 %v3429_v23 }
 0x36b   :  { %10279 = vmatprep.subr.mxu1 %v18265_v16  ;;  %10312 = vmatprep.subr.mxu0 %v18265_v16 }
 0x36c   :  { %10280 = vmatpush3.msra.mxu1 %v18290_v31  ;;  %10313 = vmatpush3.msra.mxu0 %v3428_v8 }
 0x36d   :  { %10281 = vmatprep.subr.mxu1 %v18265_v16  ;;  %10314 = vmatprep.subr.mxu0 %v18265_v16 }
 0x36e   :  { %10282 = vmatpush3.msra.mxu1 %v18291_v33  ;;  %10315 = vmatpush3.msra.mxu0 %v3427_v27 }
 0x36f   :  { %10283 = vmatprep.subr.mxu1 %v18265_v16  ;;  %10316 = vmatprep.subr.mxu0 %v18265_v16 }
 0x370   :  { %10284 = vmatpush3.msra.mxu1 %v18292_v45  ;;  %10317 = vmatpush3.msra.mxu0 %v3426_v13 }
 0x371   :  { %10285 = vmatprep.subr.mxu1 %v18265_v16  ;;  %10318 = vmatprep.subr.mxu0 %v18265_v16 }
 0x372   :  { %10286 = vmatpush3.msra.mxu1 %v18293_v10  ;;  %10319 = vmatpush3.msra.mxu0 %v3425_v14 }
 0x373   :  { %10288 = vmatmul.mubr.f32.vlgmr.msra.gmra.mxu1 %v18294_v0  ;;  %10320 = vmatprep.subr.mxu0 %v18265_v16 }
 0x374   :  { %10321 = vmatpush3.msra.mxu0 %v3424_v35 }
 0x375   :  { %10323 = vmatmul.mubr.f32.vlgmr.msra.gmra.mxu0 %v18294_v0 }
 0x433   :  { %v3420_v22 = vpop.f32.mrf.mxu1 }
 0x434   :  { %v3510_v55 = vmul.f32 0.0078125, %v3420_v22 }
 0x435   :  { %v3506_v19 = vpop.f32.mrf.mxu0  ;;  %v10289_v21 = vpop.f32.mrf.mxu1 }
 0x436   :  { %v3512_v1 = vmul.f32 %v3510_v55, %v3510_v55  ;;  %v3511_v30 = vmul.f32 0.0078125, %v3506_v19  ;;  %v3518_v16 = vrot.slane %v3510_v55, %v14351_v50 }
 0x437   :  { %v10324_v46 = vpop.f32.mrf.mxu0 }
 0x438   :  { %v3513_v28 = vsub.f32 %v3511_v30, %v3512_v1  ;;  %v3519_v48 = vsub.f32 %v18293_v10, %v3518_v16  ;;  %v3520_v7 = vsub.f32 %v18292_v45, %v3518_v16  ;;  %v3521_v25 = vsub.f32 %v18291_v33, %v3518_v16 }
 0x439   :  { %v3522_v41 = vsub.f32 %v18290_v31, %v3518_v16  ;;  %v3523_v2 = vsub.f32 %v18289_v57, %v3518_v16  ;;  %v3524_v12 = vsub.f32 %v14304_v6, %v3518_v16  ;;  %v3525_v34 = vsub.f32 %v14297_v42, %v3518_v16  ;;  %v9070_v57 = vld [vmem:[%s18069_s5] ss:$0 sm:$0xff]  ;;  %s14409_s5 = smov 0  }
 0x43a   :  { %v3514_v47 = vmax.f32 %v3513_v28, 0.0  ;;  %v3526_v26 = vsub.f32 %v14289_v4, %v3518_v16  ;;  %v3527_v61 = vsub.f32 %v14279_v62, %v3518_v16  ;;  %v3528_v40 = vsub.f32 %v14267_v17, %v3518_v16 }
 0x43b   :  { %v3529_v39 = vsub.f32 %v14255_v49, %v3518_v16  ;;  %v3530_v43 = vsub.f32 %v14243_v15, %v3518_v16  ;;  %v3531_v52 = vsub.f32 %v14233_v29, %v3518_v16  ;;  %v3532_v5 = vsub.f32 %v14226_v53, %v3518_v16  ;;  %v9069_v49 = vld [vmem:[%s18298_s30] ss:$0 sm:$0xff] }
 0x43c   :  { %v3535_v38 = vadd.f32 1e-05, %v3514_v47  ;;  %v3533_v58 = vsub.f32 %v14221_v20, %v3518_v16  ;;  %v3534_v3 = vsub.f32 %v14223_v24, %v3518_v16 }
 0x43e   :  { %11155 = vrsqrt.f32 %v3535_v38 }
 0x44b   :  { %v11156_v63 = vpop.eup %11155 }
 0x44c   :  { %v3540_v9 = vrot.slane %v11156_v63, %v14351_v50 }
 0x44e   :  { %v3541_v54 = vmul.f32 %v3540_v9, %v3519_v48  ;;  %v3542_v59 = vmul.f32 %v3540_v9, %v3520_v7  ;;  %v3543_v60 = vmul.f32 %v3540_v9, %v3521_v25  ;;  %v3544_v62 = vmul.f32 %v3540_v9, %v3522_v41 }
 0x44f   :  { %v3545_v17 = vmul.f32 %v3540_v9, %v3523_v2  ;;  %v3546_v15 = vmul.f32 %v3540_v9, %v3524_v12  ;;  %v3547_v4 = vmul.f32 %v3540_v9, %v3525_v34  ;;  %v3548_v11 = vmul.f32 %v3540_v9, %v3526_v26 }
 0x450   :  { %v3549_v56 = vmul.f32 %v3540_v9, %v3527_v61  ;;  %v3550_v29 = vmul.f32 %v3540_v9, %v3528_v40  ;;  %v3551_v36 = vmul.f32 %v3540_v9, %v3529_v39  ;;  %v3552_v53 = vmul.f32 %v3540_v9, %v3530_v43 }
 0x451   :  { %v3553_v42 = vmul.f32 %v3540_v9, %v3531_v52  ;;  %v3554_v20 = vmul.f32 %v3540_v9, %v3532_v5  ;;  %v3555_v18 = vmul.f32 %v3540_v9, %v3533_v58  ;;  %v3556_v24 = vmul.f32 %v3540_v9, %v3534_v3 }
 0x452   :  { %v3563_v6 = vmul.f32 %v9069_v49, %v3541_v54  ;;  %v3564_v44 = vmul.f32 %v9069_v49, %v3542_v59  ;;  %v3565_v32 = vmul.f32 %v9069_v49, %v3543_v60  ;;  %v3566_v23 = vmul.f32 %v9069_v49, %v3544_v62 }
 0x453   :  { %v3567_v8 = vmul.f32 %v9069_v49, %v3545_v17  ;;  %v3568_v31 = vmul.f32 %v9069_v49, %v3546_v15  ;;  %v3569_v27 = vmul.f32 %v9069_v49, %v3547_v4  ;;  %v3570_v33 = vmul.f32 %v9069_v49, %v3548_v11 }
 0x454   :  { %v3571_v13 = vmul.f32 %v9069_v49, %v3549_v56  ;;  %v3572_v45 = vmul.f32 %v9069_v49, %v3550_v29  ;;  %v3573_v14 = vmul.f32 %v9069_v49, %v3551_v36  ;;  %v3574_v10 = vmul.f32 %v9069_v49, %v3552_v53 }
 0x455   :  { %v3575_v35 = vmul.f32 %v9069_v49, %v3553_v42  ;;  %v3576_v0 = vmul.f32 %v9069_v49, %v3554_v20  ;;  %v3577_v22 = vmul.f32 %v9069_v49, %v3555_v18  ;;  %v3578_v55 = vmul.f32 %v9069_v49, %v3556_v24 }
 0x456   :  { %v3585_v19 = vadd.f32 %v9070_v57, %v3563_v6  ;;  %v3586_v21 = vadd.f32 %v9070_v57, %v3564_v44  ;;  %v3587_v46 = vadd.f32 %v9070_v57, %v3565_v32  ;;  %v3588_v1 = vadd.f32 %v9070_v57, %v3566_v23 }
 0x457   :  { %v3589_v30 = vadd.f32 %v9070_v57, %v3567_v8  ;;  %v3590_v28 = vadd.f32 %v9070_v57, %v3568_v31  ;;  %v3591_v47 = vadd.f32 %v9070_v57, %v3569_v27  ;;  %v3592_v38 = vadd.f32 %v9070_v57, %v3570_v33 }
 0x458   :  { %v3593_v51 = vadd.f32 %v9070_v57, %v3571_v13  ;;  %v3594_v16 = vadd.f32 %v9070_v57, %v3572_v45  ;;  %v3595_v48 = vadd.f32 %v9070_v57, %v3573_v14  ;;  %v3596_v7 = vadd.f32 %v9070_v57, %v3574_v10 }
 0x459   :  { %v3597_v25 = vadd.f32 %v9070_v57, %v3575_v35  ;;  %v3598_v41 = vadd.f32 %v9070_v57, %v3576_v0  ;;  %v3599_v2 = vadd.f32 %v9070_v57, %v3577_v22  ;;  %v3600_v63 = vadd.f32 %v9070_v57, %v3578_v55 }
 0x45a   :  { %v3601_v12 = vmax.f32 %v3585_v19, 0.0   ;;  %v3602_v34 = vmax.f32 %v3586_v21, 0.0   ;;  %v3603_v26 = vmax.f32 %v3587_v46, 0.0   ;;  %v3604_v61 = vmax.f32 %v3588_v1, 0.0  }
 0x45b   :  { %v3605_v40 = vmax.f32 %v3589_v30, 0.0   ;;  %v3606_v39 = vmax.f32 %v3590_v28, 0.0   ;;  %v3607_v43 = vmax.f32 %v3591_v47, 0.0   ;;  %v3608_v9 = vmax.f32 %v3592_v38, 0.0  }
 0x45c   :  { %v3609_v52 = vmax.f32 %v3593_v51, 0.0   ;;  %v3610_v5 = vmax.f32 %v3594_v16, 0.0   ;;  %v3611_v58 = vmax.f32 %v3595_v48, 0.0   ;;  %v3612_v3 = vmax.f32 %v3596_v7, 0.0  }
 0x45d   :  { %v3613_v54 = vmax.f32 %v3597_v25, 0.0   ;;  %v3614_v59 = vmax.f32 %v3598_v41, 0.0   ;;  %v3615_v60 = vmax.f32 %v3599_v2, 0.0   ;;  %v3616_v62 = vmax.f32 %v3600_v63, 0.0  }
 0x45e LB: > { %18299 = vst [vmem:[#allocation23_spill] sm:$0xff] %v12129_v62  ;;  %18300 = vst [vmem:[#allocation24_spill] sm:$0xff] %v12133_v60  ;;  %s9071_s21 = sshll.u32 %s12193_s5, 6  ;;  %10341 = vmatprep.mubr.msk.f32.mxu0 %vm66_vm1, %v12189_v12  ;;  %v4016_v49 = vld [vmem:[#allocation3 + $0x7e] sm:$0xff]  ;;  %v4370_v4 = vld [vmem:[#allocation3 + $0x95] sm:$0xff]  ;;  %s12200_s2 = smov 32   ;;  %s12193_s5 = sphi %s14409_s5, %s3622_s5   ;;  %v12189_v12 = vphi %v3601_v12, %v18475_v12   ;;  %v12185_v34 = vphi %v3602_v34, %v18474_v34   ;;  %v12181_v26 = vphi %v3603_v26, %v18473_v26   ;;  %v12177_v61 = vphi %v3604_v61, %v18472_v61   ;;  %v12173_v40 = vphi %v3605_v40, %v18471_v40   ;;  %v12169_v39 = vphi %v3606_v39, %v18470_v39   ;;  %v12165_v43 = vphi %v3607_v43, %v18469_v43   ;;  %v12161_v9 = vphi %v3608_v9, %v18468_v9   ;;  %v12157_v52 = vphi %v3609_v52, %v18467_v52   ;;  %v12153_v5 = vphi %v3610_v5, %v18466_v5   ;;  %v12149_v58 = vphi %v3611_v58, %v18465_v58   ;;  %v12145_v3 = vphi %v3612_v3, %v18464_v3   ;;  %v12141_v54 = vphi %v3613_v54, %v18463_v54   ;;  %v12137_v59 = vphi %v3614_v59, %v18462_v59   ;;  %v12133_v60 = vphi %v3615_v60, %v18461_v60   ;;  %v12129_v62 = vphi %v3616_v62, %v18460_v62  }
 0x45f   : > { %18301 = vst [vmem:[#allocation25_spill] sm:$0xff] %v12137_v59  ;;  %18302 = vst [vmem:[#allocation26_spill] sm:$0xff] %v12141_v54  ;;  %s14468_s23 = scalar_lea.vmem %s18070_s6, %s9071_s21  ;;  %v4337_v17 = vld [vmem:[#allocation3 + $0x82] sm:$0xff]  ;;  %v14473_v18 = vld [vmem:[#allocation3 + $0x96] sm:$0xff]  ;;  %s12201_s25 = smov 96   ;;  %vm4288_vm5 = vcmask 785408  }
 0x460   : > { %18303 = vst [vmem:[#allocation27_spill] sm:$0xff] %v12145_v3  ;;  %18304 = vst [vmem:[#allocation28_spill] sm:$0xff] %v12149_v58  ;;  %v4048_v15 = vld [vmem:[#allocation3 + $0x80] sm:$0xff]  ;;  %v3648_v11 = vld [vmem:[%s14468_s23 + $0x38] sm:$0xff]  ;;  %v11159_v42 = vpack.i.bf16 %v4016_v49, %v4337_v17  ;;  %s12202_s3 = smov 64   ;;  %s3866_s26 = smul.u32 896, %s12193_s5 }
 0x461   : > { %18305 = vst [vmem:[#allocation29_spill] sm:$0xff] %v12153_v5  ;;  %18306 = vst [vmem:[#allocation30_spill] sm:$0xff] %v12157_v52  ;;  %v3647_v56 = vld [vmem:[%s14468_s23 + $0x30] sm:$0xff]  ;;  %10325 = vmatprep.subr.mxu0 %v3648_v11  ;;  %v4032_v29 = vld [vmem:[#allocation3 + $0x7f] sm:$0xff]  ;;  %v11169_v20 = vpack.i.bf16 %v4048_v15, %v4370_v4  ;;  %s3649_s29 = scalar_lea.vmem %s18071_s7, %s12193_s5  ;;  %s9090_s0 = sshll.u32 %s12193_s5, 5  ;;  %vm12204_vm6 = vmmov 0  }
 0x462   : > { %18307 = vst [vmem:[#allocation31_spill] sm:$0xff] %v12161_v9  ;;  %18308 = vst [vmem:[#allocation32_spill] sm:$0xff] %v12165_v43  ;;  %v4353_v36 = vld [vmem:[#allocation3 + $0x83] sm:$0xff]  ;;  %10326 = vmatpush3.msra.mxu0 %v3648_v11  ;;  %v14475_v24 = vld [vmem:[#allocation3 + $0x9a] sm:$0xff]  ;;  %11160 = vrot.lane.b32.xlu0 %v11159_v42, %s12200_s2  ;;  %s14569_s28 = scalar_lea.vmem %s18072_s8, %s3866_s26  ;;  %s6878_s24 = scalar_lea.vmem %s18074_s10, %s9090_s0 }
 0x463   : > { %18309 = vst [vmem:[#allocation33_spill] sm:$0xff] %v12169_v39  ;;  %18310 = vst [vmem:[#allocation34_spill] sm:$0xff] %v12173_v40  ;;  %v3646_v53 = vld [vmem:[%s14468_s23 + $0x28] sm:$0xff]  ;;  %10327 = vmatprep.subr.mxu0 %v3647_v56  ;;  %v3645_v6 = vld [vmem:[%s14468_s23 + $0x20] sm:$0xff]  ;;  %v11164_v44 = vpack.i.bf16 %v4032_v29, %v4353_v36  ;;  %11170 = vrot.lane.b32.xlu1 %v11169_v20, %s12201_s25  ;;  %v11174_v32 = vpack.i.bf16 %v14473_v18, %v14475_v24  ;;  %s6883_s1 = scalar_lea.vmem %s18075_s11, %s12193_s5  ;;  %s7116_s4 = scalar_lea.vmem %s18076_s12, %s12193_s5 }
 0x464   : > { %18311 = vst [vmem:[#allocation35_spill] sm:$0xff] %v12177_v61  ;;  %18312 = vst [vmem:[#allocation36_spill] sm:$0xff] %v12181_v26  ;;  %10328 = vmatpush3.msra.mxu0 %v3647_v56  ;;  %v4033_v23 = vld [vmem:[#allocation3 + $0x97] sm:$0xff]  ;;  %v4371_v27 = vld [vmem:[#allocation3 + $0xad] sm:$0xff]  ;;  %s7118_s0 = scalar_lea.vmem %s18077_s13, %s12193_s5 }
 0x465   : > { %18313 = vst [vmem:[#allocation37_spill] sm:$0xff] %v12185_v34  ;;  %18314 = vst [vmem:[#allocation38_spill] sm:$0xff] %v12189_v12  ;;  %10329 = vmatprep.subr.mxu0 %v3646_v53  ;;  %v4354_v57 = vld [vmem:[#allocation3 + $0x9b] sm:$0xff]  ;;  %v3643_v33 = vld [vmem:[%s14468_s23 + $0x10] sm:$0xff] }
 0x466   : > { %10330 = vmatpush3.msra.mxu0 %v3646_v53  ;;  %v3644_v8 = vld [vmem:[%s14468_s23 + $0x18] sm:$0xff]  ;;  %11165 = vrot.lane.b32.xlu0 %v11164_v44, %s12202_s3  ;;  %v11179_v13 = vpack.i.bf16 %v4033_v23, %v4354_v57  ;;  %v4018_v14 = vld [vmem:[#allocation3 + $0xae] sm:$0xff]  ;;  %v3641_v55 = vld [vmem:[%s14468_s23] sm:$0xff] }
 0x467   : > { %v14483_v31 = vld [vmem:[#allocation3 + $0x98] sm:$0xff]  ;;  %10331 = vmatprep.subr.mxu0 %v3645_v6  ;;  %11175 = vrot.lane.b32.xlu1 %v11174_v32, %s12200_s2  ;;  %v3642_v35 = vld [vmem:[%s14468_s23 + $0x8] sm:$0xff]  ;;  %v4056_v51 = vld [vmem:[#allocation3 + $0x200] sm:$0xff] }
 0x468   : > { %10332 = vmatpush3.msra.mxu0 %v3645_v6  ;;  %v11184_v45 = vpack.i.bf16 %v14483_v31, %v4371_v27  ;;  %v14489_v10 = vld [vmem:[#allocation3 + $0xb2] sm:$0xff]  ;;  %v4024_v46 = vld [vmem:[#allocation3 + $0x1fe] sm:$0xff] }
 0x469   : > { %10333 = vmatprep.subr.mxu0 %v3644_v8  ;;  %v4034_v0 = vld [vmem:[#allocation3 + $0xaf] sm:$0xff]  ;;  %v11189_v19 = vpack.i.bf16 %v4018_v14, %v14489_v10  ;;  %v4345_v1 = vld [vmem:[#allocation3 + $0x202] sm:$0xff]  ;;  %v4346_v48 = vld [vmem:[#allocation3 + $0x21a] sm:$0xff] }
 0x46a   : > { %10334 = vmatpush3.msra.mxu0 %v3644_v8  ;;  %v14492_v22 = vld [vmem:[#allocation3 + $0xb3] sm:$0xff]  ;;  %11180 = vrot.lane.b32.xlu0 %v11179_v13, %s12202_s3  ;;  %v4040_v30 = vld [vmem:[#allocation3 + $0x1ff] sm:$0xff]  ;;  %v11199_v47 = vpack.i.bf16 %v4024_v46, %v4345_v1  ;;  %v11214_v25 = vpack.i.bf16 %v4346_v48, %v4354_v57 }
 0x46b   : > { %10335 = vmatprep.subr.mxu0 %v3643_v33  ;;  %11185 = vrot.lane.b32.xlu1 %v11184_v45, %s12201_s25  ;;  %v11194_v21 = vpack.i.bf16 %v4034_v0, %v14492_v22  ;;  %v4361_v28 = vld [vmem:[#allocation3 + $0x203] sm:$0xff]  ;;  %v4378_v16 = vld [vmem:[#allocation3 + $0x215] sm:$0xff]  ;;  %v4379_v15 = vld [vmem:[#allocation3 + $0x22d] sm:$0xff] }
 0x46c   : > { %10336 = vmatpush3.msra.mxu0 %v3643_v33  ;;  %v11204_v38 = vpack.i.bf16 %v4040_v30, %v4361_v28  ;;  %v11209_v7 = vpack.i.bf16 %v4056_v51, %v4378_v16  ;;  %v4025_v41 = vld [vmem:[#allocation3 + $0x216] sm:$0xff]  ;;  %v11234_v11 = vpack.i.bf16 %v4379_v15, %v4018_v14  ;;  %v4026_v53 = vld [vmem:[#allocation3 + $0x22e] sm:$0xff] }
 0x46d   : > { %10337 = vmatprep.subr.mxu0 %v3642_v35  ;;  %v4362_v2 = vld [vmem:[#allocation3 + $0x21b] sm:$0xff]  ;;  %v11219_v63 = vpack.i.bf16 %v4025_v41, %v4033_v23  ;;  %v11249_v42 = vpack.i.bf16 %v4026_v53, %v4034_v0  ;;  %v4042_v20 = vld [vmem:[#allocation3 + $0x22f] sm:$0xff] }
 0x46e   : > { %10338 = vmatpush3.msra.mxu0 %v3642_v35  ;;  %11190 = vrot.lane.b32.xlu0 %v11189_v19, %s12200_s2  ;;  %v11224_v49 = vpack.i.bf16 %v4362_v2, %v4371_v27  ;;  %v4041_v17 = vld [vmem:[#allocation3 + $0x217] sm:$0xff]  ;;  %v3881_v16 = vld [vmem:[%s14569_s28 + $0x68] sm:$0xff] }
 0x46f   : > { %10339 = vmatprep.subr.mxu0 %v3641_v55  ;;  %11195 = vrot.lane.b32.xlu1 %v11194_v21, %s12202_s3  ;;  %v11229_v4 = vpack.i.bf16 %v4041_v17, %v14483_v31  ;;  %v4057_v56 = vld [vmem:[#allocation3 + $0x218] sm:$0xff]  ;;  %v14536_v6 = vld [vmem:[#allocation3 + $0xb0] sm:$0xff]  ;;  %v11264_v33 = vpack.i.bf16 %v4041_v17, %v4362_v2  ;;  %v3929_v41 = vld [vmem:[%s14569_s28 + $0x1e8] sm:$0xff] }
 0x470   : > { %10340 = vmatpush3.msra.mxu0 %v3641_v55  ;;  %v14522_v29 = vld [vmem:[#allocation3 + $0x99] sm:$0xff]  ;;  %v11254_v44 = vpack.i.bf16 %v4042_v20, %v14536_v6  ;;  %v14549_v32 = vld [vmem:[#allocation3 + $0x230] sm:$0xff]  ;;  %v11269_v27 = vpack.i.bf16 %v4057_v56, %v4379_v15 }
 0x471   : > { %10342 = vmatmul.mubr.msk.f32.vlgmr.msra.gmra.mxu0 %vm66_vm1, %v12185_v34  ;;  %v11239_v36 = vpack.i.bf16 %v4057_v56, %v14522_v29  ;;  %v14551_v23 = vld [vmem:[#allocation3 + $0xb1] sm:$0xff]  ;;  %v4698_v13 = vld [vmem:[#allocation3 + $0x219] sm:$0xff] }
 0x472   : > { %10344 = vmatprep.mubr.msk.f32.mxu0 %vm66_vm1, %v12181_v26  ;;  %11200 = vrot.lane.b32.xlu0 %v11199_v47, %s12200_s2  ;;  %v11259_v57 = vpack.i.bf16 %v14549_v32, %v14551_v23  ;;  %v4347_v8 = vld [vmem:[#allocation3 + $0x232] sm:$0xff]  ;;  %v11274_v45 = vpack.i.bf16 %v4698_v13, %v4026_v53  ;;  %v3897_v47 = vld [vmem:[%s14569_s28 + $0xe8] sm:$0xff]  ;;  %v3880_v2 = vld [vmem:[%s14569_s28 + $0x60] sm:$0xff] }
 0x473   : > { %11205 = vrot.lane.b32.xlu1 %v11204_v38, %s12202_s3  ;;  %v11244_v31 = vpack.i.bf16 %v4347_v8, %v14492_v22  ;;  %v14560_v14 = vld [vmem:[#allocation3 + $0x233] sm:$0xff]  ;;  %v3928_v17 = vld [vmem:[%s14569_s28 + $0x1e0] sm:$0xff] }
 0x474   : > { %v11279_v35 = vpack.i.bf16 %v4042_v20, %v14560_v14  ;;  %v3899_v22 = vld [vmem:[%s14569_s28 + $0xf8] sm:$0xff]  ;;  %v3898_v46 = vld [vmem:[%s14569_s28 + $0xf0] sm:$0xff]  ;;  %v3892_v13 = vld [vmem:[%s14569_s28 + $0xc0] sm:$0xff] }
 0x475   : > { %10345 = vmatmul.mubr.msk.f32.gmra.mxu0 %vm66_vm1, %v12177_v61  ;;  %9713 = vmatprep.subr.mxu1 %v3899_v22  ;;  %v3883_v19 = vld [vmem:[%s14569_s28 + $0x78] sm:$0xff]  ;;  %v3882_v30 = vld [vmem:[%s14569_s28 + $0x70] sm:$0xff]  ;;  %v3909_v22 = vld [vmem:[%s14569_s28 + $0x148] sm:$0xff] }
 0x476   : > { %10347 = vmatprep.mubr.msk.f32.mxu0 %vm66_vm1, %v12173_v40  ;;  %11210 = vrot.lane.b32.xlu0 %v11209_v7, %s12201_s25  ;;  %v3931_v1 = vld [vmem:[%s14569_s28 + $0x1f8] sm:$0xff]  ;;  %v3930_v38 = vld [vmem:[%s14569_s28 + $0x1f0] sm:$0xff] }
 0x477   : > { %11215 = vrot.lane.b32.xlu1 %v11214_v25, %s12200_s2  ;;  %9714 = vmatpush3.msra.mxu1 %v3883_v19  ;;  %v3915_v28 = vld [vmem:[%s14569_s28 + $0x178] sm:$0xff]  ;;  %v3914_v48 = vld [vmem:[%s14569_s28 + $0x170] sm:$0xff]  ;;  %v3896_v25 = vld [vmem:[%s14569_s28 + $0xe0] sm:$0xff] }
 0x478   : > { %9793 = vmatprep.subr.mxu0 %v3931_v1  ;;  %9715 = vmatprep.subr.mxu1 %v3898_v46  ;;  %v3927_v53 = vld [vmem:[%s14569_s28 + $0x1d8] sm:$0xff]  ;;  %v3924_v46 = vld [vmem:[%s14569_s28 + $0x1c0] sm:$0xff]  ;;  %v4002_v61 = vld [vmem:[#allocation3 + $0xad] sm:$0xff] }
 0x479   : > { %10348 = vmatmul.mubr.msk.f32.gmra.mxu0 %vm66_vm1, %v12169_v39  ;;  %9716 = vmatpush3.msra.mxu1 %v3882_v30  ;;  %v3911_v20 = vld [vmem:[%s14569_s28 + $0x158] sm:$0xff] }
 0x47a   : > { %10350 = vmatprep.mubr.msk.f32.mxu0 %vm66_vm1, %v12165_v43  ;;  %11220 = vrot.lane.b32.xlu0 %v11219_v63, %s12200_s2  ;;  %v3913_v63 = vld [vmem:[%s14569_s28 + $0x168] sm:$0xff]  ;;  %v3891_v19 = vld [vmem:[%s14569_s28 + $0xb8] sm:$0xff] }
 0x47b   : > { %11225 = vrot.lane.b32.xlu1 %v11224_v49, %s12202_s3  ;;  %9794 = vmatpush3.msra.mxu0 %v3915_v28  ;;  %v3895_v49 = vld [vmem:[%s14569_s28 + $0xd8] sm:$0xff]  ;;  %v3908_v28 = vld [vmem:[%s14569_s28 + $0x140] sm:$0xff] }
 0x47c   : > { %9795 = vmatprep.subr.mxu0 %v3930_v38  ;;  %9717 = vmatprep.subr.mxu1 %v3897_v47  ;;  %v3875_v30 = vld [vmem:[%s14569_s28 + $0x38] sm:$0xff]  ;;  %v3890_v38 = vld [vmem:[%s14569_s28 + $0xb0] sm:$0xff] }
 0x47d   : > { %10351 = vmatmul.mubr.msk.f32.gmra.mxu0 %vm66_vm1, %v12161_v9  ;;  %9718 = vmatpush3.msra.mxu1 %v3881_v16  ;;  %v3923_v16 = vld [vmem:[%s14569_s28 + $0x1b8] sm:$0xff] }
 0x47e   : > { %10353 = vmatprep.mubr.msk.f32.mxu0 %vm66_vm1, %v12157_v52  ;;  %11230 = vrot.lane.b32.xlu0 %v11229_v4, %s12202_s3  ;;  %v3879_v4 = vld [vmem:[%s14569_s28 + $0x58] sm:$0xff] }
 0x47f   : > { %11235 = vrot.lane.b32.xlu1 %v11234_v11, %s12201_s25  ;;  %9796 = vmatpush3.msra.mxu0 %v3914_v48  ;;  %v3912_v11 = vld [vmem:[%s14569_s28 + $0x160] sm:$0xff]  ;;  %v3874_v48 = vld [vmem:[%s14569_s28 + $0x30] sm:$0xff] }
 0x480   : > { %9719 = vmatprep.subr.mxu1 %v3896_v25  ;;  %9797 = vmatprep.subr.mxu0 %v3929_v41  ;;  %v3907_v25 = vld [vmem:[%s14569_s28 + $0x138] sm:$0xff]  ;;  %v3889_v41 = vld [vmem:[%s14569_s28 + $0xa8] sm:$0xff] }
 0x481   : > { %10354 = vmatmul.mubr.msk.f32.gmra.mxu0 %vm66_vm1, %v12153_v5  ;;  %9720 = vmatpush3.msra.mxu1 %v3880_v2  ;;  %v3922_v2 = vld [vmem:[%s14569_s28 + $0x1b0] sm:$0xff] }
 0x482   : > { %10356 = vmatprep.mubr.msk.f32.mxu0 %vm66_vm1, %v12149_v58  ;;  %11240 = vrot.lane.b32.xlu0 %v11239_v36, %s12201_s25  ;;  %v3894_v36 = vld [vmem:[%s14569_s28 + $0xd0] sm:$0xff] }
 0x483   : > { %11245 = vrot.lane.b32.xlu1 %v11244_v31, %s12200_s2  ;;  %9798 = vmatpush3.msra.mxu0 %v3913_v63  ;;  %v3877_v31 = vld [vmem:[%s14569_s28 + $0x48] sm:$0xff]  ;;  %v4323_v26 = vld [vmem:[#allocation3 + $0xb1] sm:$0xff] }
 0x484   : > { %9721 = vmatprep.subr.mxu1 %v3895_v49  ;;  %9799 = vmatprep.subr.mxu0 %v3928_v17  ;;  %v3873_v49 = vld [vmem:[%s14569_s28 + $0x28] sm:$0xff]  ;;  %v3906_v17 = vld [vmem:[%s14569_s28 + $0x130] sm:$0xff] }
 0x485   : > { %10357 = vmatmul.mubr.msk.f32.gmra.mxu0 %vm66_vm1, %v12145_v3  ;;  %9722 = vmatpush3.msra.mxu1 %v3879_v4 }
 0x486   : > { %10359 = vmatprep.mubr.msk.f32.mxu0 %vm66_vm1, %v12141_v54  ;;  %11250 = vrot.lane.b32.xlu0 %v11249_v42, %s12200_s2  ;;  %v3878_v42 = vld [vmem:[%s14569_s28 + $0x50] sm:$0xff] }
 0x487   : > { %11265 = vrot.lane.b32.xlu1 %v11264_v33, %s12200_s2  ;;  %9800 = vmatpush3.msra.mxu0 %v3912_v11  ;;  %v3888_v11 = vld [vmem:[%s14569_s28 + $0xa0] sm:$0xff] }
 0x488   : > { %9723 = vmatprep.subr.mxu1 %v3894_v36  ;;  %9801 = vmatprep.subr.mxu0 %v3927_v53  ;;  %v3921_v36 = vld [vmem:[%s14569_s28 + $0x1a8] sm:$0xff]  ;;  %v3872_v53 = vld [vmem:[%s14569_s28 + $0x20] sm:$0xff] }
 0x489   : > { %10360 = vmatmul.mubr.msk.f32.gmra.mxu0 %vm66_vm1, %v12137_v59  ;;  %9724 = vmatpush3.msra.mxu1 %v3878_v42  ;;  %v3905_v42 = vld [vmem:[%s14569_s28 + $0x128] sm:$0xff] }
 0x48a   : > { %10362 = vmatprep.mubr.msk.f32.mxu0 %vm66_vm1, %v12133_v60  ;;  %11255 = vrot.lane.b32.xlu0 %v11254_v44, %s12202_s3  ;;  %v3893_v44 = vld [vmem:[%s14569_s28 + $0xc8] sm:$0xff] }
 0x48b   : > { %11280 = vrot.lane.b32.xlu1 %v11279_v35, %s12200_s2  ;;  %9802 = vmatpush3.msra.mxu0 %v3911_v20  ;;  %v3876_v35 = vld [vmem:[%s14569_s28 + $0x40] sm:$0xff]  ;;  %v3887_v20 = vld [vmem:[%s14569_s28 + $0x98] sm:$0xff] }
 0x48c   : > { %9725 = vmatprep.subr.mxu1 %v3893_v44  ;;  %v3920_v44 = vld [vmem:[%s14569_s28 + $0x1a0] sm:$0xff] }
 0x48d   : > { %10363 = vmatmul.mubr.msk.f32.gmra.mxu0 %vm66_vm1, %v12129_v62  ;;  %9726 = vmatpush3.msra.mxu1 %v3877_v31 }
 0x48e   : > { %11260 = vrot.lane.b32.xlu0 %v11259_v57, %s12201_s25  ;;  %v3926_v57 = vld [vmem:[%s14569_s28 + $0x1d0] sm:$0xff]  ;;  %9727 = vmatprep.subr.mxu1 %v3892_v13  ;;  %v3904_v13 = vld [vmem:[%s14569_s28 + $0x120] sm:$0xff] }
 0x48f   : > { %9803 = vmatprep.subr.mxu0 %v3926_v57  ;;  %9728 = vmatpush3.msra.mxu1 %v3876_v35  ;;  %v3886_v35 = vld [vmem:[%s14569_s28 + $0x90] sm:$0xff] }
 0x490   : > { %9729 = vmatprep.subr.mxu1 %v3891_v19  ;;  %v3870_v19 = vld [vmem:[%s14569_s28 + $0x10] sm:$0xff] }
 0x491   : > { %9730 = vmatpush3.msra.mxu1 %v3875_v30 }
 0x492   : > { %11270 = vrot.lane.b32.xlu0 %v11269_v27, %s12202_s3  ;;  %v3910_v27 = vld [vmem:[%s14569_s28 + $0x150] sm:$0xff]  ;;  %9731 = vmatprep.subr.mxu1 %v3890_v38  ;;  %v3885_v38 = vld [vmem:[%s14569_s28 + $0x88] sm:$0xff] }
 0x493   : > { %9804 = vmatpush3.msra.mxu0 %v3910_v27  ;;  %9732 = vmatpush3.msra.mxu1 %v3874_v48  ;;  %v3871_v27 = vld [vmem:[%s14569_s28 + $0x18] sm:$0xff] }
 0x494   : > { %9733 = vmatprep.subr.mxu1 %v3889_v41 }
 0x495   : > { %9734 = vmatpush3.msra.mxu1 %v3873_v49 }
 0x496   : > { %11275 = vrot.lane.b32.xlu0 %v11274_v45, %s12201_s25  ;;  %v3925_v45 = vld [vmem:[%s14569_s28 + $0x1c8] sm:$0xff]  ;;  %9735 = vmatprep.subr.mxu1 %v3888_v11 }
 0x497   : > { %9805 = vmatprep.subr.mxu0 %v3925_v45  ;;  %9736 = vmatpush3.msra.mxu1 %v3872_v53 }
 0x498   : > { %9806 = vmatpush3.msra.mxu0 %v3909_v22  ;;  %9737 = vmatprep.subr.mxu1 %v3887_v20  ;;  %v3919_v22 = vld [vmem:[%s14569_s28 + $0x198] sm:$0xff] }
 0x499   : > { %9807 = vmatprep.subr.mxu0 %v3924_v46  ;;  %9738 = vmatpush3.msra.mxu1 %v3871_v27  ;;  %v3903_v46 = vld [vmem:[%s14569_s28 + $0x118] sm:$0xff]  ;;  %v4321_v27 = vld [vmem:[#allocation3 + $0x81] sm:$0xff] }
 0x49a   : > { %9808 = vmatpush3.msra.mxu0 %v3908_v28  ;;  %9739 = vmatprep.subr.mxu1 %v3886_v35 }
 0x49b   : > { %9809 = vmatprep.subr.mxu0 %v3923_v16  ;;  %v3918_v16 = vld [vmem:[%s14569_s28 + $0x190] sm:$0xff]  ;;  %9740 = vmatpush3.msra.mxu1 %v3870_v19  ;;  %v4000_v19 = vld [vmem:[#allocation3 + $0x7d] sm:$0xff] }
 0x49c   : > { %9810 = vmatpush3.msra.mxu0 %v3907_v25  ;;  %9741 = vmatprep.subr.mxu1 %v3885_v38 }
 0x49d   : > { %9811 = vmatprep.subr.mxu0 %v3922_v2 }
 0x49e   : > { %9812 = vmatpush3.msra.mxu0 %v3906_v17 }
 0x49f   : > { %9813 = vmatprep.subr.mxu0 %v3921_v36  ;;  %v3902_v36 = vld [vmem:[%s14569_s28 + $0x110] sm:$0xff] }
 0x4a0   : > { %9814 = vmatpush3.msra.mxu0 %v3905_v42 }
 0x4a1   : > { %9815 = vmatprep.subr.mxu0 %v3920_v44  ;;  %v3917_v44 = vld [vmem:[%s14569_s28 + $0x188] sm:$0xff] }
 0x4a2   : > { %9816 = vmatpush3.msra.mxu0 %v3904_v13 }
 0x4a3   : > { %9817 = vmatprep.subr.mxu0 %v3919_v22  ;;  %v3901_v22 = vld [vmem:[%s14569_s28 + $0x108] sm:$0xff] }
 0x4a4   : > { %9818 = vmatpush3.msra.mxu0 %v3903_v46  ;;  %v3916_v46 = vld [vmem:[%s14569_s28 + $0x180] sm:$0xff] }
 0x4a5   : > { %9819 = vmatprep.subr.mxu0 %v3918_v16 }
 0x4a6   : > { %9820 = vmatpush3.msra.mxu0 %v3902_v36 }
 0x4a7   : > { %9821 = vmatprep.subr.mxu0 %v3917_v44 }
 0x4a8   : > { %9822 = vmatpush3.msra.mxu0 %v3901_v22 }
 0x4a9   : > { %9823 = vmatprep.subr.mxu0 %v3916_v46 }
 0x4d4   : > { %v14571_v0 = vpop.permute.xlu0 %11160 }
 0x4d5   : > { %v14574_v55 = vpop.permute.xlu1 %11170  ;;  %v11162_v30 = vunpack.i.l.bf16 %v14571_v0  ;;  %v11163_v48 = vunpack.i.h.bf16 %v14571_v0  ;;  %v3869_v0 = vld [vmem:[%s14569_s28 + $0x8] sm:$0xff] }
 0x4d6   : > { %v11172_v2 = vunpack.i.l.bf16 %v14574_v55  ;;  %v11173_v42 = vunpack.i.h.bf16 %v14574_v55  ;;  %9742 = vmatpush3.msra.mxu1 %v3869_v0 }
 0x4d7   : > { %v4578_v55 = vsel %vm163_vm0, %v4321_v27, %v11162_v30  ;;  %v4256_v0 = vsel %vm163_vm0, %v4000_v19, %v11163_v48 }
 0x4d8   : > { %v14577_v21 = vpop.permute.xlu0 %11165 }
 0x4d9   : > { %v14585_v51 = vpop.permute.xlu1 %11175  ;;  %v11167_v25 = vunpack.i.l.bf16 %v14577_v21  ;;  %v11168_v49 = vunpack.i.h.bf16 %v14577_v21 }
 0x4da   : > { %v11178_v38 = vunpack.i.h.bf16 %v14585_v51 }
 0x4db   : > { %v4594_v16 = vsel %vm66_vm1, %v4578_v55, %v11167_v25  ;;  %v4272_v36 = vsel %vm66_vm1, %v4256_v0, %v11168_v49 }
 0x4dc   : > { %v14589_v7 = vpop.permute.xlu0 %11180 }
 0x4dd   : > { %v14597_v15 = vpop.permute.xlu1 %11185  ;;  %v11182_v44 = vunpack.i.l.bf16 %v14589_v7 }
 0x4e0   : > { %v14601_v56 = vpop.permute.xlu0 %11190 }
 0x4e1   : > { %v14609_v8 = vpop.permute.xlu1 %11195 }
 0x4e4   : > { %v14613_v33 = vpop.permute.xlu0 %11200 }
 0x4e5   : > { %v14621_v1 = vpop.permute.xlu1 %11205 }
 0x4e8   : > { %v14625_v47 = vpop.permute.xlu0 %11210 }
 0x4e9   : > { %v14633_v63 = vpop.permute.xlu1 %11215 }
 0x4ea   : > { %v11217_v17 = vunpack.i.l.bf16 %v14633_v63 }
 0x4ec   : > { %v14637_v4 = vpop.permute.xlu0 %11220  ;;  %v5219_v30 = vsel %vm163_vm0, %v14475_v24, %v11217_v17  ;;  %v11188_v24 = vunpack.i.h.bf16 %v14597_v15 }
 0x4ed   : > { %v11222_v57 = vunpack.i.l.bf16 %v14637_v4  ;;  %v14646_v31 = vpop.permute.xlu1 %11225 }
 0x4ee   : > { %v11227_v20 = vunpack.i.l.bf16 %v14646_v31 }
 0x4ef   : > { %v4898_v41 = vsel %vm163_vm0, %v14473_v18, %v11222_v57  ;;  %v3884_v18 = vld [vmem:[%s14569_s28 + $0x80] sm:$0xff] }
 0x4f0   : > { %v14650_v45 = vpop.permute.xlu0 %11230  ;;  %v3868_v57 = vld [vmem:[%s14569_s28] sm:$0xff]  ;;  %9743 = vmatprep.subr.mxu1 %v3884_v18  ;;  %v5235_v25 = vsel %vm66_vm1, %v5219_v30, %v11227_v20 }
 0x4f1   : > { %v11232_v28 = vunpack.i.l.bf16 %v14650_v45  ;;  %v14667_v11 = vpop.permute.xlu1 %11235  ;;  %9744 = vmatpush3.msra.mxu1 %v3868_v57  ;;  %v3900_v18 = vld [vmem:[%s14569_s28 + $0x100] sm:$0xff]  ;;  %v4289_v57 = vsel %vm4288_vm5, %v4272_v36, %v11173_v42  ;;  %v4001_v42 = vld [vmem:[#allocation3 + $0x95] sm:$0xff] }
 0x4f2   : > { %v11237_v35 = vunpack.i.l.bf16 %v14667_v11  ;;  %9824 = vmatpush3.msra.mxu0 %v3900_v18 }
 0x4f3   : > { %v4914_v13 = vsel %vm66_vm1, %v4898_v41, %v11232_v28  ;;  %v11177_v28 = vunpack.i.l.bf16 %v14585_v51  ;;  %v4610_v41 = vsel %vm4288_vm5, %v4594_v16, %v11172_v2  ;;  %v11183_v51 = vunpack.i.h.bf16 %v14589_v7 }
 0x4f4   : > { %v14671_v53 = vpop.permute.xlu0 %11240  ;;  %6345 = vmatprep.mubr.f32.mxu1 %v4610_v41  ;;  %v11187_v2 = vunpack.i.l.bf16 %v14597_v15  ;;  %v5251_v49 = vsel %vm4288_vm5, %v5235_v25, %v11237_v35  ;;  %v14712_v15 = vld [vmem:[%s3649_s29] ss:$0 sm:$0xff] }
 0x4f5   : > { %v11242_v21 = vunpack.i.l.bf16 %v14671_v53  ;;  %6346 = vmatmul.mubr.f32.vlgmr.msra.gmra.mxu1 %v4289_v57  ;;  %6490 = vmatprep.mubr.f32.mxu0 %v5251_v49  ;;  %v4579_v17 = vsel %vm163_vm0, %v14522_v29, %v11177_v28 }
 0x4f6   : > { %v4595_v20 = vsel %vm66_vm1, %v4579_v17, %v11182_v44 }
 0x4f7   : > { %v4930_v48 = vsel %vm4288_vm5, %v4914_v13, %v11242_v21  ;;  %v4257_v21 = vsel %vm163_vm0, %v4001_v42, %v11178_v38  ;;  %v4611_v7 = vsel %vm4288_vm5, %v4595_v20, %v11187_v2 }
 0x4f8   : > { %6491 = vmatmul.mubr.f32.vlgmr.msra.gmra.mxu0 %v4930_v48  ;;  %v4273_v27 = vsel %vm66_vm1, %v4257_v21, %v11183_v51  ;;  %6350 = vmatprep.mubr.f32.mxu1 %v4611_v7 }
 0x4f9   : > { %v4290_v13 = vsel %vm4288_vm5, %v4273_v27, %v11188_v24 }
 0x4fa   : > { %6351 = vmatmul.mubr.f32.gmra.mxu1 %v4290_v13 }
 0x531   : > { %v10343_v29 = vpop.f32.mrf.mxu0 }
 0x532   : > { %v3777_v35 = vadd.f32 %v10343_v29, %v14712_v15 }
 0x533   : > { %v3771_v55 = vpop.f32.mrf.mxu0 }
 0x534   : > { %v3851_v22 = vmax.f32 %v3777_v35, 0.0  ;;  %v3772_v19 = vadd.f32 %v14712_v15, %v3771_v55 }
 0x535   : > { %v10346_v46 = vpop.f32.mrf.mxu0 }
 0x536   : > { %3984 = vst.msk [vmem:[#allocation3 + $0xe0] sm:$0xff] %vm163_vm0, %v3851_v22  ;;  %v3850_v38 = vmax.f32 %v3772_v19, 0.0  ;;  %v3787_v16 = vadd.f32 %v10346_v46, %v14712_v15 }
 0x537   : > { %v3781_v0 = vpop.f32.mrf.mxu0 }
 0x538   : > { %3983 = vst.msk [vmem:[#allocation3 + $0xc8] sm:$0xff] %vm163_vm0, %v3850_v38  ;;  %v3853_v28 = vmax.f32 %v3787_v16, 0.0  ;;  %v3782_v41 = vadd.f32 %v14712_v15, %v3781_v0 }
 0x539   : > { %v10349_v36 = vpop.f32.mrf.mxu0 }
 0x53a   : > { %3986 = vst.msk [vmem:[#allocation3 + $0x110] sm:$0xff] %vm163_vm0, %v3853_v28  ;;  %v3852_v18 = vmax.f32 %v3782_v41, 0.0  ;;  %v3797_v30 = vadd.f32 %v10349_v36, %v14712_v15 }
 0x53b   : > { %v3791_v44 = vpop.f32.mrf.mxu0 }
 0x53c   : > { %3985 = vst.msk [vmem:[#allocation3 + $0xf8] sm:$0xff] %vm163_vm0, %v3852_v18  ;;  %v3855_v57 = vmax.f32 %v3797_v30, 0.0  ;;  %v3792_v25 = vadd.f32 %v14712_v15, %v3791_v44 }
 0x53d   : > { %v10352_v48 = vpop.f32.mrf.mxu0  ;;  %v14724_v51 = vld [vmem:[#allocation3 + $0xdf] sm:$0xff] }
 0x53e   : > { %v14726_v2 = vld [vmem:[#allocation3 + $0xe3] sm:$0xff]  ;;  %3988 = vst.msk [vmem:[#allocation3 + $0x140] sm:$0xff] %vm163_vm0, %v3855_v57  ;;  %v3854_v24 = vmax.f32 %v3792_v25, 0.0  ;;  %v3807_v17 = vadd.f32 %v10352_v48, %v14712_v15 }
 0x53f   : > { %v14728_v49 = vld [vmem:[#allocation3 + $0xde] sm:$0xff]  ;;  %v11289_v42 = vpack.i.bf16 %v14724_v51, %v14726_v2  ;;  %v3801_v21 = vpop.f32.mrf.mxu0  ;;  %v4019_v27 = vld [vmem:[#allocation3 + $0xc6] sm:$0xff] }
 0x540   : > { %v14734_v20 = vld [vmem:[#allocation3 + $0xe2] sm:$0xff]  ;;  %v4340_v13 = vld [vmem:[#allocation3 + $0xca] sm:$0xff]  ;;  %3987 = vst.msk [vmem:[#allocation3 + $0x128] sm:$0xff] %vm163_vm0, %v3854_v24  ;;  %v3857_v29 = vmax.f32 %v3807_v17, 0.0  ;;  %v3802_v35 = vadd.f32 %v14712_v15, %v3801_v21 }
 0x541   : > { %v11284_v7 = vpack.i.bf16 %v14728_v49, %v14734_v20  ;;  %11290 = vrot.lane.b32.xlu1 %v11289_v42, %s12202_s3  ;;  %v4372_v55 = vld [vmem:[#allocation3 + $0xc5] sm:$0xff]  ;;  %v10355_v22 = vpop.f32.mrf.mxu0  ;;  %v11299_v38 = vpack.i.bf16 %v4019_v27, %v4340_v13  ;;  %v4373_v44 = vld [vmem:[#allocation3 + $0xdd] sm:$0xff] }
 0x542   : > { %3990 = vst.msk [vmem:[#allocation3 + $0x170] sm:$0xff] %vm163_vm0, %v3857_v29  ;;  %v3856_v19 = vmax.f32 %v3802_v35, 0.0  ;;  %v3817_v46 = vadd.f32 %v10355_v22, %v14712_v15  ;;  %v11294_v0 = vpack.i.bf16 %v14536_v6, %v4372_v55  ;;  %v14745_v28 = vld [vmem:[#allocation3 + $0xc8] sm:$0xff]  ;;  %v11314_v29 = vpack.i.bf16 %v14560_v14, %v4372_v55  ;;  %v4343_v55 = vld [vmem:[#allocation3 + $0x112] sm:$0xff] }
 0x543   : > { %11285 = vrot.lane.b32.xlu0 %v11284_v7, %s12200_s2  ;;  %v3811_v16 = vpop.f32.mrf.mxu0  ;;  %v14750_v18 = vld [vmem:[#allocation3 + $0xc7] sm:$0xff]  ;;  %v11309_v6 = vpack.i.bf16 %v14745_v28, %v4373_v44 }
 0x544   : > { %3989 = vst.msk [vmem:[#allocation3 + $0x158] sm:$0xff] %vm163_vm0, %v3856_v19  ;;  %v3859_v41 = vmax.f32 %v3817_v46, 0.0  ;;  %v3812_v36 = vadd.f32 %v14712_v15, %v3811_v16  ;;  %v4356_v30 = vld [vmem:[#allocation3 + $0xcb] sm:$0xff]  ;;  %v11329_v19 = vpack.i.bf16 %v14489_v10, %v14750_v18 }
 0x545   : > { %11300 = vrot.lane.b32.xlu1 %v11299_v38, %s12200_s2  ;;  %v10358_v57 = vpop.f32.mrf.mxu0  ;;  %v11304_v24 = vpack.i.bf16 %v14750_v18, %v4356_v30  ;;  %v14770_v14 = vld [vmem:[#allocation3 + $0x10e] sm:$0xff]  ;;  %v11344_v30 = vpack.i.bf16 %v4340_v13, %v14724_v51 }
 0x546   : > { %3992 = vst.msk [vmem:[#allocation3 + $0x260] sm:$0xff] %vm163_vm0, %v3859_v41  ;;  %v3858_v25 = vmax.f32 %v3812_v36, 0.0  ;;  %v3827_v48 = vadd.f32 %v10358_v57, %v14712_v15  ;;  %v11349_v44 = vpack.i.bf16 %v14770_v14, %v4343_v55 }
 0x547   : > { %11295 = vrot.lane.b32.xlu0 %v11294_v0, %s12201_s25  ;;  %v3821_v17 = vpop.f32.mrf.mxu0 }
 0x548   : > { %3991 = vst.msk [vmem:[#allocation3 + $0x248] sm:$0xff] %vm163_vm0, %v3858_v25  ;;  %v3861_v42 = vmax.f32 %v3827_v48, 0.0  ;;  %v3822_v21 = vadd.f32 %v14712_v15, %v3821_v17  ;;  %v11324_v25 = vpack.i.bf16 %v14551_v23, %v4019_v27  ;;  %v4358_v17 = vld [vmem:[#allocation3 + $0xfb] sm:$0xff]  ;;  %v14795_v27 = vld [vmem:[#allocation3 + $0x10f] sm:$0xff] }
 0x549   : > { %11310 = vrot.lane.b32.xlu1 %v11309_v6, %s12201_s25  ;;  %v10361_v7 = vpop.f32.mrf.mxu0  ;;  %v4037_v23 = vld [vmem:[#allocation3 + $0xf7] sm:$0xff] }
 0x54a   : > { %3994 = vst.msk [vmem:[#allocation3 + $0x290] sm:$0xff] %vm163_vm0, %v3861_v42  ;;  %v3860_v35 = vmax.f32 %v3822_v21, 0.0  ;;  %v3837_v22 = vadd.f32 %v10361_v7, %v14712_v15  ;;  %v14790_v7 = vld [vmem:[#allocation3 + $0xc9] sm:$0xff] }
 0x54b   : > { %11305 = vrot.lane.b32.xlu0 %v11304_v24, %s12202_s3  ;;  %v3831_v46 = vpop.f32.mrf.mxu0  ;;  %v14781_v24 = vld [vmem:[#allocation3 + $0xf5] sm:$0xff] }
 0x54c   : > { %3993 = vst.msk [vmem:[#allocation3 + $0x278] sm:$0xff] %vm163_vm0, %v3860_v35  ;;  %v3863_v38 = vmax.f32 %v3837_v22, 0.0  ;;  %v3832_v16 = vadd.f32 %v14712_v15, %v3831_v46  ;;  %v11339_v35 = vpack.i.bf16 %v14790_v7, %v14728_v49  ;;  %v4021_v46 = vld [vmem:[#allocation3 + $0xf6] sm:$0xff] }
 0x54d   : > { %11315 = vrot.lane.b32.xlu1 %v11314_v29, %s12202_s3  ;;  %v10364_v41 = vpop.f32.mrf.mxu0  ;;  %v4359_v29 = vld [vmem:[#allocation3 + $0x113] sm:$0xff]  ;;  %v14898_v37 = vld [vmem:[#allocation3 + $0x262] sm:$0xff] }
 0x54e   : > { %3996 = vst.msk [vmem:[#allocation3 + $0x2c0] sm:$0xff] %vm163_vm0, %v3863_v38  ;;  %v3862_v36 = vmax.f32 %v3832_v16, 0.0  ;;  %v3847_v10 = vadd.f32 %v10364_v41, %v14712_v15  ;;  %v11354_v22 = vpack.i.bf16 %v14795_v27, %v4359_v29  ;;  %v4053_v41 = vld [vmem:[#allocation3 + $0xf8] sm:$0xff]  ;;  %v15050_v62 = vld [vmem:[#allocation3 + $0x261] sm:$0xff] }
 0x54f   : > { %11330 = vrot.lane.b32.xlu0 %v11329_v19, %s12201_s25  ;;  %v3841_v57 = vpop.f32.mrf.mxu0  ;;  %v5334_v19 = vld [vmem:[#allocation3 + $0xfa] sm:$0xff] }
 0x550   : > { %3995 = vst.msk [vmem:[#allocation3 + $0x2a8] sm:$0xff] %vm163_vm0, %v3862_v36  ;;  %v3865_v48 = vmax.f32 %v3847_v10, 0.0  ;;  %v3842_v13 = vadd.f32 %v14712_v15, %v3841_v57  ;;  %v11369_v15 = vpack.i.bf16 %v4037_v23, %v4358_v17  ;;  %v11364_v38 = vpack.i.bf16 %v4021_v46, %v5334_v19  ;;  %v4375_v36 = vld [vmem:[#allocation3 + $0x10d] sm:$0xff]  ;;  %v4376_v10 = vld [vmem:[#allocation3 + $0x125] sm:$0xff] }
 0x551   : > { %11320 = vrot.lane.b32.xlu1 %v11294_v0, %s12200_s2  ;;  %v14786_v0 = vld [vmem:[#allocation3 + $0xe0] sm:$0xff]  ;;  %v11404_v16 = vpack.i.bf16 %v5334_v19, %v14795_v27 }
 0x552   : > { %3998 = vst.msk [vmem:[#allocation3 + $0x2f0] sm:$0xff] %vm163_vm0, %v3865_v48  ;;  %v3864_v42 = vmax.f32 %v3842_v13, 0.0  ;;  %v11359_v21 = vpack.i.bf16 %v14786_v0, %v14781_v24  ;;  %v14815_v13 = vld [vmem:[#allocation3 + $0xe1] sm:$0xff] }
 0x553   : > { %11345 = vrot.lane.b32.xlu0 %v11344_v30, %s12201_s25  ;;  %v14807_v30 = vld [vmem:[#allocation3 + $0x110] sm:$0xff]  ;;  %v11384_v17 = vpack.i.bf16 %v14815_v13, %v4021_v46  ;;  %v4697_v46 = vld [vmem:[#allocation3 + $0x141] sm:$0xff] }
 0x554   : > { %3997 = vst.msk [vmem:[#allocation3 + $0x2d8] sm:$0xff] %vm163_vm0, %v3864_v42  ;;  %v11414_v57 = vpack.i.bf16 %v14807_v30, %v4376_v10  ;;  %v5657_v10 = vld [vmem:[#allocation3 + $0x157] sm:$0xff] }
 0x555   : > { %11325 = vrot.lane.b32.xlu1 %v11324_v25, %s12202_s3  ;;  %v4039_v25 = vld [vmem:[#allocation3 + $0x127] sm:$0xff] }
 0x556   : > { %v11444_v42 = vpack.i.bf16 %v4343_v55, %v4039_v25  ;;  %v4985_v55 = vld [vmem:[#allocation3 + $0x143] sm:$0xff] }
 0x557   : > { %11350 = vrot.lane.b32.xlu0 %v11349_v44, %s12200_s2  ;;  %v11374_v44 = vpack.i.bf16 %v4053_v41, %v4375_v36  ;;  %v5337_v36 = vld [vmem:[#allocation3 + $0x142] sm:$0xff] }
 0x559   : > { %11335 = vrot.lane.b32.xlu1 %v11309_v6, %s12200_s2  ;;  %v11389_v6 = vpack.i.bf16 %v14734_v20, %v4037_v23  ;;  %v4360_v20 = vld [vmem:[#allocation3 + $0x12b] sm:$0xff] }
 0x55a   : > { %v11424_v48 = vpack.i.bf16 %v4039_v25, %v4360_v20  ;;  %v5336_v23 = vld [vmem:[#allocation3 + $0x12a] sm:$0xff]  ;;  %v11484_v25 = vpack.i.bf16 %v5337_v36, %v5657_v10 }
 0x55b   : > { %11360 = vrot.lane.b32.xlu0 %v11359_v21, %s12201_s25  ;;  %v4027_v36 = vld [vmem:[#allocation3 + $0x246] sm:$0xff] }
 0x55d   : > { %11340 = vrot.lane.b32.xlu1 %v11339_v35, %s12202_s3  ;;  %v14820_v35 = vld [vmem:[#allocation3 + $0xf9] sm:$0xff] }
 0x55f   : > { %11370 = vrot.lane.b32.xlu0 %v11369_v15, %s12202_s3  ;;  %v5656_v15 = vld [vmem:[#allocation3 + $0x13f] sm:$0xff] }
 0x560   : > { %v11459_v29 = vpack.i.bf16 %v5336_v23, %v5656_v15 }
 0x561   : > { %11355 = vrot.lane.b32.xlu1 %v11354_v22, %s12202_s3  ;;  %v4681_v22 = vld [vmem:[#allocation3 + $0x140] sm:$0xff] }
 0x563   : > { %11390 = vrot.lane.b32.xlu0 %v11389_v6, %s12201_s25  ;;  %v11399_v6 = vpack.i.bf16 %v14820_v35, %v14770_v14  ;;  %v14830_v14 = vld [vmem:[#allocation3 + $0x128] sm:$0xff] }
 0x565   : > { %11365 = vrot.lane.b32.xlu1 %v11364_v38, %s12200_s2  ;;  %v5018_v38 = vld [vmem:[#allocation3 + $0x156] sm:$0xff] }
 0x566   : > { %v11469_v41 = vpack.i.bf16 %v4697_v46, %v5018_v38  ;;  %v14851_v38 = vld [vmem:[#allocation3 + $0x260] sm:$0xff] }
 0x567   : > { %11405 = vrot.lane.b32.xlu0 %v11404_v16, %s12201_s25  ;;  %v11409_v16 = vpack.i.bf16 %v5656_v15, %v4985_v55 }
 0x569   : > { %11375 = vrot.lane.b32.xlu1 %v11374_v44, %s12201_s25 }
 0x56b   : > { %11415 = vrot.lane.b32.xlu0 %v11414_v57, %s12201_s25 }
 0x56d   : > { %11380 = vrot.lane.b32.xlu1 %v11359_v21, %s12200_s2  ;;  %v5002_v21 = vld [vmem:[#allocation3 + $0x155] sm:$0xff] }
 0x56e   : > { %v11464_v19 = vpack.i.bf16 %v4681_v22, %v5002_v21  ;;  %v14836_v22 = vld [vmem:[#allocation3 + $0x25e] sm:$0xff]  ;;  %v14841_v21 = vld [vmem:[#allocation3 + $0x111] sm:$0xff] }
 0x56f   : > { %11425 = vrot.lane.b32.xlu0 %v11424_v48, %s12202_s3  ;;  %v4377_v48 = vld [vmem:[#allocation3 + $0x13d] sm:$0xff] }
 0x570   : > { %v11429_v15 = vpack.i.bf16 %v14830_v14, %v4377_v48  ;;  %v14871_v48 = vpop.permute.xlu0 %11250 }
 0x571   : > { %11385 = vrot.lane.b32.xlu1 %v11384_v17, %s12202_s3  ;;  %v5338_v17 = vld [vmem:[#allocation3 + $0x15a] sm:$0xff] }
 0x573   : > { %11445 = vrot.lane.b32.xlu0 %v11444_v42, %s12201_s25  ;;  %v5658_v42 = vld [vmem:[#allocation3 + $0x16f] sm:$0xff] }
 0x575   : > { %11395 = vrot.lane.b32.xlu1 %v11374_v44, %s12200_s2  ;;  %v4023_v44 = vld [vmem:[#allocation3 + $0x126] sm:$0xff] }
 0x576   : > { %v11419_v20 = vpack.i.bf16 %v4023_v44, %v5336_v23  ;;  %v11514_v23 = vpack.i.bf16 %v14836_v22, %v14724_v51  ;;  %v11439_v55 = vpack.i.bf16 %v14841_v21, %v4023_v44  ;;  %v11529_v51 = vpack.i.bf16 %v14851_v38, %v14815_v13 }
 0x577   : > { %11460 = vrot.lane.b32.xlu0 %v11459_v29, %s12201_s25  ;;  %v11499_v29 = vpack.i.bf16 %v5338_v17, %v5658_v42  ;;  %v11564_v44 = vpack.i.bf16 %v4027_v36, %v14750_v18  ;;  %v4059_v17 = vld [vmem:[#allocation3 + $0x248] sm:$0xff] }
 0x578   : > { %v11579_v42 = vpack.i.bf16 %v4059_v17, %v14790_v7  ;;  %v5626_v18 = vld [vmem:[#allocation3 + $0x16d] sm:$0xff] }
 0x579   : > { %11400 = vrot.lane.b32.xlu1 %v11399_v6, %s12202_s3  ;;  %v14844_v6 = vld [vmem:[#allocation3 + $0x25f] sm:$0xff] }
 0x57a   : > { %v11524_v46 = vpack.i.bf16 %v14844_v6, %v14786_v0 }
 0x57b   : > { %11465 = vrot.lane.b32.xlu0 %v11464_v19, %s12202_s3 }
 0x57d   : > { %11410 = vrot.lane.b32.xlu1 %v11409_v16, %s12200_s2  ;;  %v14856_v16 = vld [vmem:[#allocation3 + $0x129] sm:$0xff] }
 0x57f   : > { %11470 = vrot.lane.b32.xlu0 %v11469_v41, %s12201_s25 }
 0x581   : > { %11420 = vrot.lane.b32.xlu1 %v11419_v20, %s12200_s2  ;;  %v14866_v20 = vld [vmem:[#allocation3 + $0x247] sm:$0xff] }
 0x583   : > { %11485 = vrot.lane.b32.xlu0 %v11484_v25, %s12201_s25  ;;  %v11574_v25 = vpack.i.bf16 %v14866_v20, %v14745_v28 }
 0x585   : > { %11430 = vrot.lane.b32.xlu1 %v11429_v15, %s12201_s25 }
 0x587   : > { %11500 = vrot.lane.b32.xlu0 %v11499_v29, %s12201_s25  ;;  %v14878_v29 = vpop.permute.xlu0 %11255 }
 0x589   : > { %11435 = vrot.lane.b32.xlu1 %v11414_v57, %s12200_s2  ;;  %v14858_v57 = vld [vmem:[#allocation3 + $0x13e] sm:$0xff] }
 0x58a   : > { %v11454_v10 = vpack.i.bf16 %v14856_v16, %v14858_v57 }
 0x58b   : > { %11515 = vrot.lane.b32.xlu0 %v11514_v23, %s12200_s2 }
 0x58d   : > { %11440 = vrot.lane.b32.xlu1 %v11439_v55, %s12202_s3  ;;  %v14880_v55 = vld [vmem:[#allocation3 + $0x245] sm:$0xff] }
 0x58f   : > { %11525 = vrot.lane.b32.xlu0 %v11524_v46, %s12202_s3  ;;  %v11584_v46 = vpack.i.bf16 %v14549_v32, %v14880_v55 }
 0x591   : > { %11450 = vrot.lane.b32.xlu1 %v11429_v15, %s12200_s2  ;;  %v5306_v15 = vld [vmem:[#allocation3 + $0x158] sm:$0xff] }
 0x592   : > { %v11489_v23 = vpack.i.bf16 %v5306_v15, %v5626_v18  ;;  %v4381_v15 = vld [vmem:[#allocation3 + $0x25d] sm:$0xff] }
 0x593   : > { %11530 = vrot.lane.b32.xlu0 %v11529_v51, %s12201_s25  ;;  %v5642_v51 = vld [vmem:[#allocation3 + $0x16e] sm:$0xff]  ;;  %v11504_v32 = vpack.i.bf16 %v4381_v15, %v14728_v49 }
 0x595   : > { %11455 = vrot.lane.b32.xlu1 %v11454_v10, %s12202_s3  ;;  %v4699_v10 = vld [vmem:[#allocation3 + $0x231] sm:$0xff] }
 0x597   : > { %11565 = vrot.lane.b32.xlu0 %v11564_v44, %s12200_s2  ;;  %v14885_v44 = vpop.permute.xlu1 %11245 }
 0x599   : > { %11475 = vrot.lane.b32.xlu1 %v11464_v19, %s12200_s2  ;;  %v5322_v19 = vld [vmem:[#allocation3 + $0x159] sm:$0xff] }
 0x59b   : > { %11575 = vrot.lane.b32.xlu0 %v11574_v25, %s12202_s3  ;;  %v14888_v25 = vpop.permute.xlu0 %11260  ;;  %v14896_v18 = vpop.permute.xlu1 %11265 }
 0x59d   : > { %11480 = vrot.lane.b32.xlu1 %v11469_v41, %s12202_s3  ;;  %v11494_v41 = vpack.i.bf16 %v5322_v19, %v5642_v51  ;;  %v4700_v19 = vld [vmem:[#allocation3 + $0x249] sm:$0xff] }
 0x59e   : > { %v11604_v51 = vpack.i.bf16 %v4700_v19, %v14836_v22 }
 0x59f   : > { %11580 = vrot.lane.b32.xlu0 %v11579_v42, %s12201_s25  ;;  %v14890_v42 = vpack.i.bf16 %v4699_v10, %v4027_v36  ;;  %v11509_v36 = vpack.i.bf16 %v14898_v37, %v14726_v2  ;;  %v4365_v10 = vld [vmem:[#allocation3 + $0x263] sm:$0xff]  ;;  %v14908_v49 = vpop.permute.xlu1 %11280  ;;  %v11193_v2 = vunpack.i.h.bf16 %v14601_v56 }
 0x5a0   : > { %v11534_v34 = vpack.i.bf16 %v14844_v6, %v4365_v10 }
 0x5a1   : > { %11490 = vrot.lane.b32.xlu1 %v11489_v23, %s12200_s2  ;;  %v11599_v23 = vpack.i.bf16 %v4059_v17, %v4381_v15 }
 0x5a3   : > { %11585 = vrot.lane.b32.xlu0 %v11584_v46, %s12202_s3  ;;  %v14901_v46 = vpop.permute.xlu0 %11270 }
 0x5a5   : > { %11495 = vrot.lane.b32.xlu1 %v11494_v41, %s12202_s3  ;;  %v14910_v41 = vld [vmem:[#allocation3 + $0x232] sm:$0xff] }
 0x5a7   : > { %11590 = vrot.lane.b32.xlu0 %v14890_v42, %s12201_s25  ;;  %v14914_v50 = vpop.permute.xlu0 %11275 }
 0x5a8   : > { %18315 = vst [vmem:[#allocation39_spill] sm:$0xff] %v14914_v50 }
 0x5a9   : > { %11505 = vrot.lane.b32.xlu1 %v11504_v32, %s12201_s25  ;;  %v11519_v32 = vpack.i.bf16 %v4365_v10, %v14781_v24  ;;  %v11624_v24 = vpack.i.bf16 %v4059_v17, %v14786_v0  ;;  %v4258_v10 = vsel %vm163_vm0, %v4002_v61, %v11193_v2  ;;  %v11629_v17 = vpack.i.bf16 %v4700_v19, %v14786_v0 }
 0x5aa   : > { %v11544_v19 = vpack.i.bf16 %v14836_v22, %v14745_v28 }
 0x5ab   : > { %11600 = vrot.lane.b32.xlu0 %v11599_v23, %s12202_s3  ;;  %v11619_v23 = vpack.i.bf16 %v14910_v41, %v14866_v20 }
 0x5ad   : > { %11510 = vrot.lane.b32.xlu1 %v11509_v36, %s12200_s2  ;;  %v11192_v36 = vunpack.i.l.bf16 %v14601_v56  ;;  %v11539_v56 = vpack.i.bf16 %v4381_v15, %v14745_v28 }
 0x5af   : > { %11605 = vrot.lane.b32.xlu0 %v11604_v51, %s12201_s25  ;;  %v4580_v39 = vsel %vm163_vm0, %v4323_v26, %v11192_v36 }
 0x5b1   : > { %11520 = vrot.lane.b32.xlu1 %v11519_v32, %s12202_s3  ;;  %v11198_v32 = vunpack.i.h.bf16 %v14609_v8 }
 0x5b3   : > { %11620 = vrot.lane.b32.xlu0 %v11619_v23, %s12201_s25  ;;  %v14922_v12 = vpop.permute.xlu1 %11290  ;;  %v11197_v23 = vunpack.i.l.bf16 %v14609_v8  ;;  %v4274_v15 = vsel %vm66_vm1, %v4258_v10, %v11198_v32  ;;  %v14946_v32 = vld [vmem:[#allocation3 + $0x28e] sm:$0xff]  ;;  %v11549_v10 = vpack.i.bf16 %v14844_v6, %v14745_v28 }
 0x5b5   : > { %v14925_v51 = vpop.permute.xlu0 %11285  ;;  %11535 = vrot.lane.b32.xlu1 %v11534_v34, %s12200_s2  ;;  %v5340_v34 = vld [vmem:[#allocation3 + $0x24a] sm:$0xff]  ;;  %v4596_v8 = vsel %vm66_vm1, %v4580_v39, %v11197_v23 }
 0x5b6   : > { %v4003_v39 = vld [vmem:[#allocation3 + $0xc5] sm:$0xff] }
 0x5b7   : > { %11625 = vrot.lane.b32.xlu0 %v11624_v24, %s12200_s2  ;;  %v11301_v40 = vpop.permute.xlu1 %11300 }
 0x5b8   : > { %v11303_v5 = vunpack.i.h.bf16 %v11301_v40  ;;  %v11302_v58 = vunpack.i.l.bf16 %v11301_v40  ;;  %v11634_v40 = vpack.i.bf16 %v5340_v34, %v14786_v0 }
 0x5b9   : > { %v11296_v43 = vpop.permute.xlu0 %11295  ;;  %11540 = vrot.lane.b32.xlu1 %v11539_v56, %s12200_s2 }
 0x5ba   : > { %v11298_v9 = vunpack.i.h.bf16 %v11296_v43  ;;  %v11297_v52 = vunpack.i.l.bf16 %v11296_v43 }
 0x5bb   : > { %11630 = vrot.lane.b32.xlu0 %v11629_v17, %s12202_s3  ;;  %v11311_v36 = vpop.permute.xlu1 %11310 }
 0x5bc   : > { %v4612_v26 = vsel %vm4288_vm5, %v4596_v8, %v11297_v52  ;;  %v4291_v61 = vsel %vm4288_vm5, %v4274_v15, %v11298_v9  ;;  %v11313_v2 = vunpack.i.h.bf16 %v11311_v36  ;;  %v11312_v24 = vunpack.i.l.bf16 %v11311_v36 }
 0x5bd   : > { %6355 = vmatprep.mubr.f32.mxu1 %v4612_v26  ;;  %v11306_v43 = vpop.permute.xlu0 %11305  ;;  %11545 = vrot.lane.b32.xlu1 %v11544_v19, %s12202_s3  ;;  %v4581_v9 = vsel %vm163_vm0, %v14790_v7, %v11302_v58  ;;  %v4259_v52 = vsel %vm163_vm0, %v4003_v39, %v11303_v5  ;;  %v11649_v58 = vpack.i.bf16 %v14946_v32, %v14795_v27  ;;  %v14965_v5 = vld [vmem:[#allocation3 + $0x28f] sm:$0xff]  ;;  %v5012_v7 = vld [vmem:[#allocation3 + $0xc6] sm:$0xff] }
 0x5be   : > { %v11308_v56 = vunpack.i.h.bf16 %v11306_v43  ;;  %v11307_v17 = vunpack.i.l.bf16 %v11306_v43  ;;  %6356 = vmatmul.mubr.f32.gmra.mxu1 %v4291_v61  ;;  %v11554_v28 = vpack.i.bf16 %v14880_v55, %v5012_v7  ;;  %v11659_v61 = vpack.i.bf16 %v14965_v5, %v14807_v30  ;;  %v14976_v27 = vld [vmem:[#allocation3 + $0x290] sm:$0xff]  ;;  %v9745_v7 = vpop.f32.mrf.mxu1 }
 0x5bf   : > { %11635 = vrot.lane.b32.xlu0 %v11634_v40, %s12201_s25  ;;  %v14952_v22 = vpop.permute.xlu1 %11315  ;;  %v4980_v19 = vld [vmem:[#allocation3 + $0xcb] sm:$0xff]  ;;  %v11288_v43 = vunpack.i.h.bf16 %v14925_v51  ;;  %v14990_v39 = vld [vmem:[#allocation3 + $0x276] sm:$0xff] }
 0x5c0   : > { %v4597_v23 = vsel %vm66_vm1, %v4581_v9, %v11307_v17  ;;  %v4275_v0 = vsel %vm66_vm1, %v4259_v52, %v11308_v56  ;;  %v11559_v40 = vpack.i.bf16 %v5340_v34, %v4980_v19  ;;  %v11664_v17 = vpack.i.bf16 %v14976_v27, %v14841_v21  ;;  %v14987_v30 = vld [vmem:[#allocation3 + $0x24b] sm:$0xff]  ;;  %v4662_v9 = vld [vmem:[#allocation3 + $0xf7] sm:$0xff] }
 0x5c1   : > { %v14958_v8 = vpop.permute.xlu0 %11330  ;;  %v4613_v15 = vsel %vm4288_vm5, %v4597_v23, %v11312_v24  ;;  %v4292_v26 = vsel %vm4288_vm5, %v4275_v0, %v11313_v2  ;;  %11550 = vrot.lane.b32.xlu1 %v11549_v10, %s12201_s25  ;;  %v11287_v2 = vunpack.i.l.bf16 %v14925_v51  ;;  %v11293_v52 = vunpack.i.h.bf16 %v14922_v12  ;;  %v4997_v51 = vld [vmem:[#allocation3 + $0xdd] sm:$0xff] }
 0x5c2   : > { %18316 = vst [vmem:[#allocation40_spill] sm:$0xff] %v14958_v8  ;;  %6360 = vmatprep.mubr.f32.mxu1 %v4613_v15  ;;  %v11292_v23 = vunpack.i.l.bf16 %v14922_v12  ;;  %v11569_v0 = vpack.i.bf16 %v14987_v30, %v4997_v51  ;;  %v4260_v15 = vsel %vm163_vm0, %v4997_v51, %v11288_v43  ;;  %v15003_v12 = vld [vmem:[#allocation3 + $0x277] sm:$0xff]  ;;  %v11594_v51 = vpack.i.bf16 %v14866_v20, %v14987_v30 }
 0x5c3   : > { %6361 = vmatmul.mubr.f32.gmra.mxu1 %v4292_v26  ;;  %11650 = vrot.lane.b32.xlu0 %v11649_v58, %s12200_s2  ;;  %v14968_v36 = vpop.permute.xlu1 %11320  ;;  %v4582_v10 = vsel %vm163_vm0, %v14815_v13, %v11287_v2  ;;  %v11684_v58 = vpack.i.bf16 %v14990_v39, %v4662_v9  ;;  %v15005_v19 = vld [vmem:[#allocation3 + $0xf8] sm:$0xff]  ;;  %v4276_v13 = vsel %vm66_vm1, %v4260_v15, %v11293_v52  ;;  %v9746_v2 = vpop.f32.mrf.mxu1 }
 0x5c4   : > { %18317 = vst [vmem:[#allocation41_spill] sm:$0xff] %v14968_v36  ;;  %v15023_v52 = vld [vmem:[#allocation3 + $0x278] sm:$0xff] }
 0x5c5   : > { %v14971_v6 = vpop.permute.xlu0 %11345  ;;  %11555 = vrot.lane.b32.xlu1 %v11554_v28, %s12201_s25  ;;  %v15167_v36 = vld [vmem:[#allocation3 + $0x291] sm:$0xff] }
 0x5c6   : > { %18318 = vst [vmem:[#allocation42_spill] sm:$0xff] %v14971_v6  ;;  %v4983_v6 = vld [vmem:[#allocation3 + $0x113] sm:$0xff] }
 0x5c7   : > { %11660 = vrot.lane.b32.xlu0 %v11659_v61, %s12202_s3  ;;  %v14981_v24 = vpop.permute.xlu1 %11325 }
 0x5c8   : > { %18319 = vst [vmem:[#allocation43_spill] sm:$0xff] %v14981_v24 }
 0x5c9   : > { %v14983_v56 = vpop.permute.xlu0 %11350  ;;  %11560 = vrot.lane.b32.xlu1 %v11559_v40, %s12200_s2  ;;  %v4598_v40 = vsel %vm66_vm1, %v4582_v10, %v11292_v23  ;;  %v5307_v23 = vld [vmem:[#allocation3 + $0x230] sm:$0xff] }
 0x5ca   : > { %v11609_v20 = vpack.i.bf16 %v5307_v23, %v14880_v55  ;;  %v15040_v55 = vld [vmem:[#allocation3 + $0x28d] sm:$0xff]  ;;  %v11352_v23 = vunpack.i.l.bf16 %v14983_v56 }
 0x5cb   : > { %11665 = vrot.lane.b32.xlu0 %v11664_v17, %s12201_s25  ;;  %v14995_v34 = vpop.permute.xlu1 %11335 }
 0x5cc   : > { %18320 = vst [vmem:[#allocation44_spill] sm:$0xff] %v14995_v34  ;;  %v4584_v8 = vsel %vm163_vm0, %v14841_v21, %v11352_v23  ;;  %v15076_v21 = vld [vmem:[#allocation3 + $0x125] sm:$0xff] }
 0x5cd   : > { %v11361_v26 = vpop.permute.xlu0 %11360  ;;  %11570 = vrot.lane.b32.xlu1 %v11569_v0, %s12202_s3  ;;  %v15016_v0 = vadd.f32 %v9746_v2, %v9745_v7  ;;  %v11699_v7 = vpack.i.bf16 %v15023_v52, %v14820_v35  ;;  %v3941_v34 = vld [vmem:[%s14569_s28 + $0x248] sm:$0xff] }
 0x5ce   : > { %v11363_v28 = vunpack.i.h.bf16 %v11361_v26  ;;  %v11362_v61 = vunpack.i.l.bf16 %v11361_v26 }
 0x5cf   : > { %11685 = vrot.lane.b32.xlu0 %v11684_v58, %s12200_s2  ;;  %v15010_v43 = vpop.permute.xlu1 %11340  ;;  %18322 = vst [vmem:[#allocation46_spill] sm:$0xff] %v15016_v0  ;;  %v15020_v58 = vpack.i.bf16 %v15003_v12, %v15005_v19 }
 0x5d0   : > { %18321 = vst [vmem:[#allocation45_spill] sm:$0xff] %v15010_v43  ;;  %v4614_v17 = vsel %vm4288_vm5, %v4598_v40, %v11362_v61  ;;  %v4293_v9 = vsel %vm4288_vm5, %v4276_v13, %v11363_v28  ;;  %v15034_v61 = vld [vmem:[#allocation3 + $0x275] sm:$0xff] }
 0x5d1   : > { %6365 = vmatprep.mubr.f32.mxu1 %v4614_v17  ;;  %v11371_v26 = vpop.permute.xlu0 %11370  ;;  %11595 = vrot.lane.b32.xlu1 %v11594_v51, %s12200_s2  ;;  %v11704_v17 = vpack.i.bf16 %v14851_v38, %v15034_v61  ;;  %v4005_v51 = vld [vmem:[#allocation3 + $0xf5] sm:$0xff] }
 0x5d2   : > { %6366 = vmatmul.mubr.f32.gmra.mxu1 %v4293_v9  ;;  %v5015_v9 = vld [vmem:[#allocation3 + $0x10e] sm:$0xff]  ;;  %v11372_v3 = vunpack.i.l.bf16 %v11371_v26 }
 0x5d3   : > { %11695 = vrot.lane.b32.xlu0 %v15020_v58, %s12202_s3  ;;  %v11356_v10 = vpop.permute.xlu1 %11355  ;;  %v11639_v59 = vpack.i.bf16 %v15040_v55, %v5015_v9 }
 0x5d4   : > { %v11357_v54 = vunpack.i.l.bf16 %v11356_v10  ;;  %v11358_v9 = vunpack.i.h.bf16 %v11356_v10 }
 0x5d5   : > { %v15028_v15 = vpop.permute.xlu0 %11390  ;;  %11610 = vrot.lane.b32.xlu1 %v11609_v20, %s12200_s2 }
 0x5d6   : > { %18323 = vst [vmem:[#allocation47_spill] sm:$0xff] %v15028_v15  ;;  %v11709_v15 = vpack.i.bf16 %v15050_v62, %v14990_v39 }
 0x5d7   : > { %11700 = vrot.lane.b32.xlu0 %v11699_v7, %s12201_s25  ;;  %v11366_v28 = vpop.permute.xlu1 %11365 }
 0x5d8   : > { %v11368_v13 = vunpack.i.h.bf16 %v11366_v28  ;;  %v11367_v2 = vunpack.i.l.bf16 %v11366_v28  ;;  %v11373_v28 = vunpack.i.h.bf16 %v11371_v26 }
 0x5d9   : > { %v15036_v40 = vpop.permute.xlu0 %11405  ;;  %11615 = vrot.lane.b32.xlu1 %v14890_v42, %s12202_s3 }
 0x5da   : > { %18324 = vst [vmem:[#allocation48_spill] sm:$0xff] %v15036_v40  ;;  %v4583_v20 = vsel %vm163_vm0, %v14820_v35, %v11367_v2  ;;  %v4261_v7 = vsel %vm163_vm0, %v4005_v51, %v11368_v13  ;;  %v11353_v35 = vunpack.i.h.bf16 %v14983_v56 }
 0x5db   : > { %11705 = vrot.lane.b32.xlu0 %v11704_v17, %s12202_s3  ;;  %v11376_v60 = vpop.permute.xlu1 %11375  ;;  %v15054_v17 = vld [vmem:[#allocation3 + $0x292] sm:$0xff]  ;;  %v4599_v26 = vsel %vm66_vm1, %v4583_v20, %v11372_v3  ;;  %v4277_v2 = vsel %vm66_vm1, %v4261_v7, %v11373_v28 }
 0x5dc   : > { %v11378_v0 = vunpack.i.h.bf16 %v11376_v60  ;;  %v11377_v42 = vunpack.i.l.bf16 %v11376_v60  ;;  %v11644_v3 = vpack.i.bf16 %v15054_v17, %v4983_v6  ;;  %v4367_v20 = vld [vmem:[#allocation3 + $0x293] sm:$0xff] }
 0x5dd   : > { %v11416_v40 = vpop.permute.xlu0 %11415  ;;  %11640 = vrot.lane.b32.xlu1 %v11639_v59, %s12201_s25  ;;  %v4600_v59 = vsel %vm66_vm1, %v4584_v8, %v11357_v54  ;;  %v11654_v23 = vpack.i.bf16 %v4367_v20, %v15076_v21  ;;  %v15087_v7 = vld [vmem:[#allocation3 + $0x279] sm:$0xff] }
 0x5de   : > { %v11417_v13 = vunpack.i.l.bf16 %v11416_v40  ;;  %v4615_v60 = vsel %vm4288_vm5, %v4599_v26, %v11377_v42  ;;  %v4294_v51 = vsel %vm4288_vm5, %v4277_v2, %v11378_v0  ;;  %v11418_v50 = vunpack.i.h.bf16 %v11416_v40  ;;  %v15074_v0 = vld [vmem:[#allocation3 + $0x10d] sm:$0xff] }
 0x5df   : > { %11710 = vrot.lane.b32.xlu0 %v11709_v15, %s12201_s25  ;;  %v15065_v43 = vpop.permute.xlu1 %11380  ;;  %6370 = vmatprep.mubr.f32.mxu1 %v4615_v60  ;;  %v11719_v15 = vpack.i.bf16 %v15023_v52, %v15040_v55  ;;  %v4262_v54 = vsel %vm163_vm0, %v15074_v0, %v11353_v35  ;;  %v11724_v42 = vpack.i.bf16 %v15087_v7, %v14946_v32  ;;  %v15094_v35 = vld [vmem:[#allocation3 + $0x2a6] sm:$0xff]  ;;  %v5014_v60 = vld [vmem:[#allocation3 + $0xf6] sm:$0xff] }
 0x5e0   : > { %18325 = vst [vmem:[#allocation49_spill] sm:$0xff] %v15065_v43  ;;  %6371 = vmatmul.mubr.f32.gmra.mxu1 %v4294_v51  ;;  %v4616_v10 = vsel %vm4288_vm5, %v4600_v59, %v11417_v13  ;;  %v4278_v8 = vsel %vm66_vm1, %v4262_v54, %v11358_v9  ;;  %v4664_v13 = vld [vmem:[#allocation3 + $0x127] sm:$0xff]  ;;  %v11669_v26 = vpack.i.bf16 %v14965_v5, %v4367_v20  ;;  %v3962_v20 = vld [vmem:[%s14569_s28 + $0x2f0] sm:$0xff] }
 0x5e1   : > { %v15069_v56 = vpop.permute.xlu0 %11425  ;;  %6375 = vmatprep.mubr.f32.mxu1 %v4616_v10  ;;  %11645 = vrot.lane.b32.xlu1 %v11644_v3, %s12200_s2  ;;  %v4295_v40 = vsel %vm4288_vm5, %v4278_v8, %v11418_v50  ;;  %v11749_v9 = vpack.i.bf16 %v15094_v35, %v4664_v13  ;;  %v15104_v51 = vld [vmem:[#allocation3 + $0x2a7] sm:$0xff]  ;;  %v11674_v3 = vpack.i.bf16 %v15034_v61, %v5014_v60  ;;  %v3963_v10 = vld [vmem:[%s14569_s28 + $0x2f8] sm:$0xff]  ;;  %v3946_v13 = vld [vmem:[%s14569_s28 + $0x270] sm:$0xff] }
 0x5e2   : > { %v11759_v8 = vpack.i.bf16 %v15104_v51, %v14830_v14  ;;  %9873 = vmatprep.subr.mxu1 %v3963_v10  ;;  %v3960_v10 = vld [vmem:[%s14569_s28 + $0x2e0] sm:$0xff]  ;;  %v3957_v43 = vld [vmem:[%s14569_s28 + $0x2c8] sm:$0xff] }
 0x5e3   : > { %11720 = vrot.lane.b32.xlu0 %v11719_v15, %s12202_s3  ;;  %v15083_v6 = vpop.permute.xlu1 %11385  ;;  %v3947_v15 = vld [vmem:[%s14569_s28 + $0x278] sm:$0xff] }
 0x5e4   : > { %18326 = vst [vmem:[#allocation50_spill] sm:$0xff] %v15083_v6  ;;  %6376 = vmatmul.mubr.f32.gmra.mxu1 %v4295_v40  ;;  %v15117_v40 = vld [vmem:[#allocation3 + $0x27a] sm:$0xff] }
 0x5e5   : > { %v15089_v28 = vpop.permute.xlu0 %11445  ;;  %11655 = vrot.lane.b32.xlu1 %v11654_v23, %s12202_s3  ;;  %v4982_v23 = vld [vmem:[#allocation3 + $0xfb] sm:$0xff]  ;;  %9874 = vmatpush3.msra.mxu1 %v3947_v15 }
 0x5e6   : > { %18327 = vst [vmem:[#allocation51_spill] sm:$0xff] %v15089_v28  ;;  %9875 = vmatprep.subr.mxu1 %v3962_v20  ;;  %v11679_v14 = vpack.i.bf16 %v15117_v40, %v4982_v23  ;;  %v4366_v15 = vld [vmem:[#allocation3 + $0x27b] sm:$0xff]  ;;  %v11202_v28 = vunpack.i.l.bf16 %v14613_v33 }
 0x5e7   : > { %11725 = vrot.lane.b32.xlu0 %v11724_v42, %s12201_s25  ;;  %v15097_v50 = vpop.permute.xlu1 %11395  ;;  %v15120_v42 = vld [vmem:[#allocation3 + $0x2a8] sm:$0xff]  ;;  %9876 = vmatpush3.msra.mxu1 %v3946_v13  ;;  %v3944_v20 = vld [vmem:[%s14569_s28 + $0x260] sm:$0xff]  ;;  %v3943_v23 = vld [vmem:[%s14569_s28 + $0x258] sm:$0xff]  ;;  %v11714_v24 = vpack.i.bf16 %v15003_v12, %v4366_v15 }
 0x5e8   : > { %18328 = vst [vmem:[#allocation52_spill] sm:$0xff] %v15097_v50  ;;  %v3958_v50 = vld [vmem:[%s14569_s28 + $0x2d0] sm:$0xff] }
 0x5e9   : > { %v15100_v2 = vpop.permute.xlu0 %11460  ;;  %11670 = vrot.lane.b32.xlu1 %v11669_v26, %s12200_s2  ;;  %v3961_v26 = vld [vmem:[%s14569_s28 + $0x2e8] sm:$0xff] }
 0x5ea   : > { %18329 = vst [vmem:[#allocation53_spill] sm:$0xff] %v15100_v2  ;;  %9877 = vmatprep.subr.mxu1 %v3961_v26  ;;  %v11203_v26 = vunpack.i.h.bf16 %v14613_v33  ;;  %v4008_v33 = vld [vmem:[#allocation3 + $0x1fd] sm:$0xff] }
 0x5eb   : > { %11750 = vrot.lane.b32.xlu0 %v11749_v9, %s12200_s2  ;;  %v15107_v59 = vpop.permute.xlu1 %11400  ;;  %v3945_v9 = vld [vmem:[%s14569_s28 + $0x268] sm:$0xff] }
 0x5ec   : > { %18330 = vst [vmem:[#allocation54_spill] sm:$0xff] %v15107_v59  ;;  %9878 = vmatpush3.msra.mxu1 %v3945_v9  ;;  %v4329_v59 = vld [vmem:[#allocation3 + $0x201] sm:$0xff] }
 0x5ed   : > { %v15113_v54 = vpop.permute.xlu0 %11465  ;;  %11675 = vrot.lane.b32.xlu1 %v11674_v3, %s12201_s25  ;;  %v11764_v3 = vpack.i.bf16 %v15120_v42, %v14856_v16  ;;  %9879 = vmatprep.subr.mxu1 %v3960_v10 }
 0x5ee   : > { %18331 = vst [vmem:[#allocation55_spill] sm:$0xff] %v15113_v54  ;;  %v15141_v54 = vld [vmem:[#allocation3 + $0x2a5] sm:$0xff]  ;;  %9880 = vmatpush3.msra.mxu1 %v3944_v20  ;;  %v11212_v20 = vunpack.i.l.bf16 %v14625_v47 }
 0x5ef   : > { %11760 = vrot.lane.b32.xlu0 %v11759_v8, %s12202_s3  ;;  %v15126_v60 = vpop.permute.xlu1 %11410  ;;  %v3959_v8 = vld [vmem:[%s14569_s28 + $0x2d8] sm:$0xff]  ;;  %v11769_v10 = vpack.i.bf16 %v14976_v27, %v15141_v54 }
 0x5f0   : > { %18332 = vst [vmem:[#allocation56_spill] sm:$0xff] %v15126_v60  ;;  %9881 = vmatprep.subr.mxu1 %v3959_v8  ;;  %v4586_v60 = vsel %vm163_vm0, %v4329_v59, %v11202_v28  ;;  %v11774_v59 = vpack.i.bf16 %v15167_v36, %v15094_v35 }
 0x5f1   : > { %v15130_v2 = vpop.permute.xlu0 %11470  ;;  %11680 = vrot.lane.b32.xlu1 %v11679_v14, %s12200_s2  ;;  %9882 = vmatpush3.msra.mxu1 %v3943_v23  ;;  %v11428_v23 = vunpack.i.h.bf16 %v15069_v56 }
 0x5f2   : > { %18333 = vst [vmem:[#allocation57_spill] sm:$0xff] %v15130_v2  ;;  %v11689_v2 = vpack.i.bf16 %v4366_v15, %v15074_v0  ;;  %v11208_v0 = vunpack.i.h.bf16 %v14621_v1  ;;  %9883 = vmatprep.subr.mxu1 %v3958_v50 }
 0x5f3   : > { %11765 = vrot.lane.b32.xlu0 %v11764_v3, %s12201_s25  ;;  %v11421_v13 = vpop.permute.xlu1 %11420  ;;  %v11207_v3 = vunpack.i.l.bf16 %v14621_v1  ;;  %v3942_v1 = vld [vmem:[%s14569_s28 + $0x250] sm:$0xff] }
 0x5f4   : > { %v11423_v14 = vunpack.i.h.bf16 %v11421_v13  ;;  %v11422_v9 = vunpack.i.l.bf16 %v11421_v13  ;;  %v11218_v13 = vunpack.i.h.bf16 %v14633_v63  ;;  %v11427_v63 = vunpack.i.l.bf16 %v15069_v56  ;;  %9884 = vmatpush3.msra.mxu1 %v3942_v1 }
 0x5f5   : > { %v15145_v6 = vpop.permute.xlu0 %11485  ;;  %11690 = vrot.lane.b32.xlu1 %v11689_v2, %s12202_s3  ;;  %v11223_v2 = vunpack.i.h.bf16 %v14637_v4  ;;  %v15174_v4 = vld [vmem:[#allocation3 + $0x2bd] sm:$0xff]  ;;  %9885 = vmatprep.subr.mxu1 %v3957_v43  ;;  %v11228_v56 = vunpack.i.h.bf16 %v14646_v31  ;;  %v4602_v1 = vsel %vm66_vm1, %v4586_v60, %v11207_v3  ;;  %v4009_v31 = vld [vmem:[#allocation3 + $0x215] sm:$0xff]  ;;  %v11238_v3 = vunpack.i.h.bf16 %v14667_v11 }
 0x5f6   : > { %18334 = vst [vmem:[#allocation58_spill] sm:$0xff] %v15145_v6  ;;  %v4585_v6 = vsel %vm163_vm0, %v14856_v16, %v11422_v9  ;;  %v4263_v8 = vsel %vm163_vm0, %v15076_v21, %v11423_v14  ;;  %v4330_v16 = vld [vmem:[#allocation3 + $0x219] sm:$0xff]  ;;  %v4264_v9 = vsel %vm163_vm0, %v4008_v33, %v11203_v26  ;;  %9886 = vmatpush3.msra.mxu1 %v3941_v34 }
 0x5f7   : > { %11770 = vrot.lane.b32.xlu0 %v11769_v10, %s12202_s3  ;;  %v11431_v10 = vpop.permute.xlu1 %11430  ;;  %v3956_v21 = vld [vmem:[%s14569_s28 + $0x2c0] sm:$0xff]  ;;  %v4601_v12 = vsel %vm66_vm1, %v4585_v6, %v11427_v63  ;;  %v4279_v15 = vsel %vm66_vm1, %v4263_v8, %v11428_v23  ;;  %v4587_v43 = vsel %vm163_vm0, %v4330_v16, %v11218_v13  ;;  %v11233_v6 = vunpack.i.h.bf16 %v14650_v45  ;;  %v3955_v23 = vld [vmem:[%s14569_s28 + $0x2b8] sm:$0xff] }
 0x5f8   : > { %v11433_v14 = vunpack.i.h.bf16 %v11431_v10  ;;  %v11432_v28 = vunpack.i.l.bf16 %v11431_v10  ;;  %9887 = vmatprep.subr.mxu1 %v3956_v21  ;;  %v11729_v34 = vpack.i.bf16 %v15174_v4, %v14858_v57  ;;  %v3940_v60 = vld [vmem:[%s14569_s28 + $0x240] sm:$0xff]  ;;  %v4618_v13 = vsel %vm4288_vm5, %v4602_v1, %v11212_v20 }
 0x5f9   : > { %v15170_v50 = vpop.permute.xlu0 %11500  ;;  %11715 = vrot.lane.b32.xlu1 %v11714_v24, %s12200_s2  ;;  %v11213_v24 = vunpack.i.h.bf16 %v14625_v47  ;;  %v11789_v8 = vpack.i.bf16 %v15120_v42, %v15174_v4  ;;  %v4280_v47 = vsel %vm66_vm1, %v4264_v9, %v11208_v0  ;;  %v4993_v45 = vld [vmem:[#allocation3 + $0x2c3] sm:$0xff]  ;;  %v4603_v57 = vsel %vm66_vm1, %v4587_v43, %v11228_v56  ;;  %9888 = vmatpush3.msra.mxu1 %v3940_v60 }
 0x5fa   : > { %18335 = vst [vmem:[#allocation59_spill] sm:$0xff] %v15170_v50  ;;  %v4617_v10 = vsel %vm4288_vm5, %v4601_v12, %v11432_v28  ;;  %v4296_v50 = vsel %vm4288_vm5, %v4279_v15, %v11433_v14  ;;  %v4265_v11 = vsel %vm163_vm0, %v4009_v31, %v11223_v2  ;;  %v15205_v63 = vld [vmem:[#allocation3 + $0x2bf] sm:$0xff]  ;;  %v11243_v20 = vunpack.i.h.bf16 %v14671_v53  ;;  %v15212_v14 = vld [vmem:[#allocation3 + $0x2a9] sm:$0xff]  ;;  %9889 = vmatprep.subr.mxu1 %v3955_v23 }
 0x5fb   : > { %11775 = vrot.lane.b32.xlu0 %v11774_v59, %s12201_s25  ;;  %v15188_v26 = vpop.permute.xlu1 %11435  ;;  %6380 = vmatprep.mubr.f32.mxu1 %v4617_v10  ;;  %v4297_v0 = vsel %vm4288_vm5, %v4280_v47, %v11213_v24  ;;  %v11734_v21 = vpack.i.bf16 %v15205_v63, %v4993_v45  ;;  %v15214_v28 = vld [vmem:[#allocation3 + $0x2be] sm:$0xff]  ;;  %v4619_v59 = vsel %vm4288_vm5, %v4603_v57, %v11238_v3  ;;  %v5016_v56 = vld [vmem:[#allocation3 + $0x126] sm:$0xff]  ;;  %v3954_v12 = vld [vmem:[%s14569_s28 + $0x2b0] sm:$0xff] }
 0x5fc   : > { %6381 = vmatmul.mubr.f32.gmra.mxu1 %v4296_v50  ;;  %v3939_v2 = vld [vmem:[%s14569_s28 + $0x238] sm:$0xff]  ;;  %v11794_v53 = vpack.i.bf16 %v15212_v14, %v15214_v28  ;;  %v4281_v9 = vsel %vm66_vm1, %v4265_v11, %v11233_v6  ;;  %v3938_v15 = vld [vmem:[%s14569_s28 + $0x230] sm:$0xff]  ;;  %v11739_v43 = vpack.i.bf16 %v15141_v54, %v5016_v56  ;;  %v15231_v31 = vld [vmem:[#allocation3 + $0x2c0] sm:$0xff] }
 0x5fd   : > { %v15194_v33 = vpop.permute.xlu0 %11515  ;;  %6385 = vmatprep.mubr.f32.mxu1 %v4618_v13  ;;  %11730 = vrot.lane.b32.xlu1 %v11729_v34, %s12201_s25  ;;  %v4298_v10 = vsel %vm4288_vm5, %v4281_v9, %v11243_v20  ;;  %v15233_v24 = vld [vmem:[#allocation3 + $0x2d5] sm:$0xff]  ;;  %v3953_v6 = vld [vmem:[%s14569_s28 + $0x2a8] sm:$0xff]  ;;  %v3952_v47 = vld [vmem:[%s14569_s28 + $0x2a0] sm:$0xff] }
 0x5fe   : > { %9890 = vmatpush3.msra.mxu1 %v3939_v2  ;;  %v11799_v60 = vpack.i.bf16 %v15231_v31, %v15233_v24  ;;  %v15240_v3 = vld [vmem:[#allocation3 + $0x2aa] sm:$0xff]  ;;  %v3936_v45 = vld [vmem:[%s14569_s28 + $0x220] sm:$0xff]  ;;  %v15252_v20 = vld [vmem:[#allocation3 + $0x2d6] sm:$0xff] }
 0x5ff   : > { %11790 = vrot.lane.b32.xlu0 %v11789_v8, %s12202_s3  ;;  %v15208_v16 = vpop.permute.xlu1 %11440  ;;  %9891 = vmatprep.subr.mxu1 %v3954_v12  ;;  %v4984_v13 = vld [vmem:[#allocation3 + $0x12b] sm:$0xff]  ;;  %v15250_v11 = vld [vmem:[#allocation3 + $0x2c1] sm:$0xff]  ;;  %v3935_v9 = vld [vmem:[%s14569_s28 + $0x218] sm:$0xff] }
 0x600   : > { %6386 = vmatmul.mubr.f32.gmra.mxu1 %v4297_v0  ;;  %v3937_v8 = vld [vmem:[%s14569_s28 + $0x228] sm:$0xff]  ;;  %v11744_v57 = vpack.i.bf16 %v15240_v3, %v4984_v13  ;;  %v3951_v0 = vld [vmem:[%s14569_s28 + $0x298] sm:$0xff]  ;;  %v11804_v2 = vpack.i.bf16 %v15250_v11, %v15252_v20  ;;  %v5926_v56 = vld [vmem:[#allocation3 + $0x110] sm:$0xff] }
 0x601   : > { %v15217_v50 = vpop.permute.xlu0 %11525  ;;  %6390 = vmatprep.mubr.f32.mxu1 %v4619_v59  ;;  %11735 = vrot.lane.b32.xlu1 %v11734_v21, %s12200_s2  ;;  %v4368_v59 = vld [vmem:[#allocation3 + $0x2ab] sm:$0xff]  ;;  %v11809_v13 = vpack.i.bf16 %v14851_v38, %v5926_v56  ;;  %v11819_v38 = vpack.i.bf16 %v15050_v62, %v5926_v56  ;;  %v11283_v62 = vunpack.i.h.bf16 %v14908_v49 }
 0x602   : > { %9892 = vmatpush3.msra.mxu1 %v3938_v15  ;;  %v3950_v12 = vld [vmem:[%s14569_s28 + $0x290] sm:$0xff] }
 0x603   : > { %11795 = vrot.lane.b32.xlu0 %v11794_v53, %s12201_s25  ;;  %v15227_v1 = vpop.permute.xlu1 %11450  ;;  %9893 = vmatprep.subr.mxu1 %v3953_v6  ;;  %v5001_v53 = vld [vmem:[#allocation3 + $0x13d] sm:$0xff]  ;;  %v3934_v15 = vld [vmem:[%s14569_s28 + $0x210] sm:$0xff]  ;;  %v3949_v6 = vld [vmem:[%s14569_s28 + $0x288] sm:$0xff] }
 0x604   : > { %6391 = vmatmul.mubr.f32.gmra.mxu1 %v4298_v10 }
 0x605   : > { %v15236_v34 = vpop.permute.xlu0 %11530  ;;  %11740 = vrot.lane.b32.xlu1 %v11739_v43, %s12201_s25  ;;  %9894 = vmatpush3.msra.mxu1 %v3937_v8  ;;  %v11754_v43 = vpack.i.bf16 %v4368_v59, %v5001_v53  ;;  %v3933_v8 = vld [vmem:[%s14569_s28 + $0x208] sm:$0xff] }
 0x606   : > { %9895 = vmatprep.subr.mxu1 %v3952_v47  ;;  %v3948_v47 = vld [vmem:[%s14569_s28 + $0x280] sm:$0xff] }
 0x607   : > { %11800 = vrot.lane.b32.xlu0 %v11799_v60, %s12202_s3  ;;  %v15247_v23 = vpop.permute.xlu1 %11455  ;;  %9896 = vmatpush3.msra.mxu1 %v3936_v45  ;;  %v3932_v45 = vld [vmem:[%s14569_s28 + $0x200] sm:$0xff] }
 0x608   : > { %18336 = vst [vmem:[#allocation60_spill] sm:$0xff] %v15247_v23  ;;  %9897 = vmatprep.subr.mxu1 %v3951_v0  ;;  %v11779_v0 = vpack.i.bf16 %v15104_v51, %v4368_v59  ;;  %v11784_v59 = vpack.i.bf16 %v15034_v61, %v15005_v19 }
 0x609   : > { %v15255_v21 = vpop.permute.xlu0 %11565  ;;  %11745 = vrot.lane.b32.xlu1 %v11744_v57, %s12200_s2  ;;  %9898 = vmatpush3.msra.mxu1 %v3935_v9  ;;  %v3978_v9 = vld [vmem:[%s14569_s28 + $0x370] sm:$0xff] }
 0x60a   : > { %9899 = vmatprep.subr.mxu1 %v3950_v12  ;;  %v11282_v12 = vunpack.i.l.bf16 %v14908_v49  ;;  %v3976_v49 = vld [vmem:[%s14569_s28 + $0x360] sm:$0xff] }
 0x60b   : > { %11805 = vrot.lane.b32.xlu0 %v11804_v2, %s12201_s25  ;;  %v15264_v10 = vpop.permute.xlu1 %11475  ;;  %9900 = vmatpush3.msra.mxu1 %v3934_v15  ;;  %v3979_v2 = vld [vmem:[%s14569_s28 + $0x378] sm:$0xff] }
 0x60c   : > { %18337 = vst [vmem:[#allocation61_spill] sm:$0xff] %v15264_v10  ;;  %9901 = vmatprep.subr.mxu1 %v3949_v6  ;;  %10365 = vmatprep.subr.mxu0 %v3979_v2  ;;  %v5228_v61 = vsel %vm163_vm0, %v14910_v41, %v11282_v12 }
 0x60d   : > { %v15267_v60 = vpop.permute.xlu0 %11575  ;;  %11755 = vrot.lane.b32.xlu1 %v11754_v43, %s12202_s3  ;;  %9902 = vmatpush3.msra.mxu1 %v3933_v8  ;;  %v3977_v43 = vld [vmem:[%s14569_s28 + $0x368] sm:$0xff] }
 0x60e   : > { %9903 = vmatprep.subr.mxu1 %v3948_v47  ;;  %10366 = vmatpush3.msra.mxu0 %v3979_v2  ;;  %v5928_v2 = vld [vmem:[#allocation3 + $0x140] sm:$0xff] }
 0x60f   : > { %11810 = vrot.lane.b32.xlu0 %v11809_v13, %s12200_s2  ;;  %v15275_v57 = vpop.permute.xlu1 %11480  ;;  %9904 = vmatpush3.msra.mxu1 %v3932_v45  ;;  %v11829_v13 = vpack.i.bf16 %v14898_v37, %v5926_v56  ;;  %v4651_v45 = vld [vmem:[#allocation3 + $0x22e] sm:$0xff] }
 0x610   : > { %18338 = vst [vmem:[#allocation62_spill] sm:$0xff] %v15275_v57  ;;  %10367 = vmatprep.subr.mxu0 %v3978_v9  ;;  %v3975_v57 = vld [vmem:[%s14569_s28 + $0x358] sm:$0xff]  ;;  %v4907_v10 = vsel %vm163_vm0, %v4651_v45, %v11283_v62 }
 0x611   : > { %v15279_v53 = vpop.permute.xlu0 %11580  ;;  %11780 = vrot.lane.b32.xlu1 %v11779_v0, %s12200_s2  ;;  %10368 = vmatpush3.msra.mxu0 %v3978_v9  ;;  %v11814_v9 = vpack.i.bf16 %v14990_v39, %v15005_v19 }
 0x612   : > { %10369 = vmatprep.subr.mxu0 %v3977_v43 }
 0x613   : > { %11820 = vrot.lane.b32.xlu0 %v11819_v38, %s12202_s3  ;;  %v11491_v15 = vpop.permute.xlu1 %11490  ;;  %10370 = vmatpush3.msra.mxu0 %v3977_v43 }
 0x614   : > { %v11493_v8 = vunpack.i.h.bf16 %v11491_v15  ;;  %v11492_v47 = vunpack.i.l.bf16 %v11491_v15  ;;  %10371 = vmatprep.subr.mxu0 %v3976_v49  ;;  %v5610_v15 = vld [vmem:[#allocation3 + $0x15b] sm:$0xff] }
 0x615   : > { %v11586_v6 = vpop.permute.xlu0 %11585  ;;  %11785 = vrot.lane.b32.xlu1 %v11784_v59, %s12200_s2  ;;  %v5290_v59 = vld [vmem:[#allocation3 + $0x157] sm:$0xff]  ;;  %10372 = vmatpush3.msra.mxu0 %v3976_v49 }
 0x616   : > { %v11587_v0 = vunpack.i.l.bf16 %v11586_v6  ;;  %v11588_v38 = vunpack.i.h.bf16 %v11586_v6  ;;  %v11839_v6 = vpack.i.bf16 %v15023_v52, %v5928_v2  ;;  %v5546_v43 = vsel %vm163_vm0, %v5290_v59, %v11493_v8  ;;  %10373 = vmatprep.subr.mxu0 %v3975_v57  ;;  %v3974_v8 = vld [vmem:[%s14569_s28 + $0x350] sm:$0xff] }
 0x617   : > { %11830 = vrot.lane.b32.xlu0 %v11829_v13, %s12201_s25  ;;  %v11496_v56 = vpop.permute.xlu1 %11495  ;;  %v5866_v13 = vsel %vm163_vm0, %v5610_v15, %v11492_v47  ;;  %10374 = vmatpush3.msra.mxu0 %v3975_v57  ;;  %v3971_v15 = vld [vmem:[%s14569_s28 + $0x338] sm:$0xff] }
 0x618   : > { %v5244_v37 = vsel %vm66_vm1, %v5228_v61, %v11587_v0  ;;  %v11498_v23 = vunpack.i.h.bf16 %v11496_v56  ;;  %v11497_v41 = vunpack.i.l.bf16 %v11496_v56  ;;  %v4923_v39 = vsel %vm66_vm1, %v4907_v10, %v11588_v38  ;;  %10375 = vmatprep.subr.mxu0 %v3974_v8  ;;  %v3973_v10 = vld [vmem:[%s14569_s28 + $0x348] sm:$0xff] }
 0x619   : > { %v11591_v12 = vpop.permute.xlu0 %11590  ;;  %11815 = vrot.lane.b32.xlu1 %v11814_v9, %s12202_s3  ;;  %v11849_v38 = vpack.i.bf16 %v15087_v7, %v5928_v2  ;;  %v5927_v56 = vld [vmem:[#allocation3 + $0x128] sm:$0xff]  ;;  %10376 = vmatpush3.msra.mxu0 %v3974_v8  ;;  %v3972_v9 = vld [vmem:[%s14569_s28 + $0x340] sm:$0xff]  ;;  %v11859_v7 = vpack.i.bf16 %v15117_v40, %v5928_v2  ;;  %v3966_v8 = vld [vmem:[%s14569_s28 + $0x310] sm:$0xff] }
 0x61a   : > { %v11593_v0 = vunpack.i.h.bf16 %v11591_v12  ;;  %v11592_v61 = vunpack.i.l.bf16 %v11591_v12  ;;  %v15307_v19 = vsel %vm66_vm1, %v5546_v43, %v11498_v23  ;;  %v15310_v62 = vsel %vm66_vm1, %v5866_v13, %v11497_v41  ;;  %10377 = vmatprep.subr.mxu0 %v3973_v10  ;;  %v3970_v41 = vld [vmem:[%s14569_s28 + $0x330] sm:$0xff]  ;;  %v3969_v12 = vld [vmem:[%s14569_s28 + $0x328] sm:$0xff]  ;;  %v3968_v2 = vld [vmem:[%s14569_s28 + $0x320] sm:$0xff] }
 0x61b   : > { %11840 = vrot.lane.b32.xlu0 %v11839_v6, %s12200_s2  ;;  %v15314_v45 = vpop.permute.xlu1 %11505  ;;  %10378 = vmatpush3.msra.mxu0 %v3973_v10 }
 0x61c   : > { %v15317_v47 = vsel %vm4288_vm5, %v5244_v37, %v11592_v61  ;;  %v15320_v49 = vsel %vm4288_vm5, %v4923_v39, %v11593_v0  ;;  %v11834_v37 = vpack.i.bf16 %v15040_v55, %v5927_v56  ;;  %10379 = vmatprep.subr.mxu0 %v3972_v9  ;;  %v11844_v55 = vpack.i.bf16 %v14946_v32, %v5927_v56  ;;  %v3967_v32 = vld [vmem:[%s14569_s28 + $0x318] sm:$0xff] }
 0x61d   : > { %v15323_v23 = vpop.permute.xlu0 %11600  ;;  %11825 = vrot.lane.b32.xlu1 %v15020_v58, %s12201_s25  ;;  %10380 = vmatpush3.msra.mxu0 %v3972_v9  ;;  %v5930_v58 = vld [vmem:[#allocation3 + $0x170] sm:$0xff]  ;;  %v11854_v0 = vpack.i.bf16 %v14965_v5, %v5927_v56  ;;  %v3965_v56 = vld [vmem:[%s14569_s28 + $0x308] sm:$0xff] }
 0x61e   : > { %10381 = vmatprep.subr.mxu0 %v3971_v15  ;;  %v11869_v40 = vpack.i.bf16 %v14976_v27, %v5930_v58  ;;  %v11879_v39 = vpack.i.bf16 %v15167_v36, %v5930_v58  ;;  %v15355_v27 = vld [vmem:[#allocation3 + $0x158] sm:$0xff]  ;;  %v11889_v36 = vpack.i.bf16 %v15054_v17, %v5930_v58  ;;  %v3964_v17 = vld [vmem:[%s14569_s28 + $0x300] sm:$0xff]  ;;  %v11253_v58 = vunpack.i.h.bf16 %v14871_v48 }
 0x61f   : > { %11850 = vrot.lane.b32.xlu0 %v11849_v38, %s12202_s3  ;;  %v15330_v57 = vpop.permute.xlu1 %11510  ;;  %10382 = vmatpush3.msra.mxu0 %v3971_v15  ;;  %v11864_v5 = vpack.i.bf16 %v15141_v54, %v15355_v27  ;;  %v5292_v15 = vld [vmem:[#allocation3 + $0x247] sm:$0xff] }
 0x620   : > { %10383 = vmatprep.subr.mxu0 %v3970_v41  ;;  %v12001_v54 = vld [vmem:[#allocation3 + $0xe0] sm:$0xff] }
 0x621   : > { %v15334_v59 = vpop.permute.xlu0 %11605  ;;  %11835 = vrot.lane.b32.xlu1 %v11834_v37, %s12200_s2  ;;  %10384 = vmatpush3.msra.mxu0 %v3970_v41 }
 0x622   : > { %10385 = vmatprep.subr.mxu0 %v3969_v12 }
 0x623   : > { %11860 = vrot.lane.b32.xlu0 %v11859_v7, %s12201_s25  ;;  %v15341_v6 = vpop.permute.xlu1 %11520  ;;  %10386 = vmatpush3.msra.mxu0 %v3969_v12 }
 0x624   : > { %10387 = vmatprep.subr.mxu0 %v3968_v2 }
 0x625   : > { %v15344_v43 = vpop.permute.xlu0 %11620  ;;  %11845 = vrot.lane.b32.xlu1 %v11844_v55, %s12202_s3  ;;  %10388 = vmatpush3.msra.mxu0 %v3968_v2 }
 0x626   : > { %10389 = vmatprep.subr.mxu0 %v3967_v32 }
 0x627   : > { %11870 = vrot.lane.b32.xlu0 %v11869_v40, %s12200_s2  ;;  %v15350_v13 = vpop.permute.xlu1 %11535  ;;  %10390 = vmatpush3.msra.mxu0 %v3967_v32  ;;  %v15365_v40 = vld [vmem:[#allocation3 + $0x260] sm:$0xff] }
 0x628   : > { %10391 = vmatprep.subr.mxu0 %v3966_v8 }
 0x629   : > { %v11626_v61 = vpop.permute.xlu0 %11625  ;;  %11855 = vrot.lane.b32.xlu1 %v11854_v0, %s12201_s25  ;;  %10392 = vmatpush3.msra.mxu0 %v3966_v8  ;;  %v11874_v8 = vpack.i.bf16 %v15094_v35, %v15355_v27  ;;  %v11258_v35 = vunpack.i.h.bf16 %v14878_v29 }
 0x62a   : > { %v11628_v10 = vunpack.i.h.bf16 %v11626_v61  ;;  %v11627_v38 = vunpack.i.l.bf16 %v11626_v61  ;;  %10393 = vmatprep.subr.mxu0 %v3965_v56 }
 0x62b   : > { %11880 = vrot.lane.b32.xlu0 %v11879_v39, %s12202_s3  ;;  %v11541_v9 = vpop.permute.xlu1 %11540  ;;  %10394 = vmatpush3.msra.mxu0 %v3965_v56  ;;  %v11899_v56 = vpack.i.bf16 %v15120_v42, %v15365_v40 }
 0x62c   : > { %v11543_v7 = vunpack.i.h.bf16 %v11541_v9  ;;  %v11542_v41 = vunpack.i.l.bf16 %v11541_v9  ;;  %v5548_v2 = vsel %vm163_vm0, %v5292_v15, %v11628_v10  ;;  %v6100_v0 = vsel %vm163_vm0, %v12001_v54, %v11627_v38  ;;  %10395 = vmatprep.subr.mxu0 %v3964_v17 }
 0x62d   : > { %v11631_v37 = vpop.permute.xlu0 %11630  ;;  %11865 = vrot.lane.b32.xlu1 %v11864_v5, %s12200_s2  ;;  %v11252_v10 = vunpack.i.l.bf16 %v14871_v48  ;;  %10396 = vmatpush3.msra.mxu0 %v3964_v17  ;;  %v11248_v48 = vunpack.i.h.bf16 %v14885_v44  ;;  %v4643_v17 = vld [vmem:[#allocation3 + $0xae] sm:$0xff] }
 0x62e   : > { %v11633_v12 = vunpack.i.h.bf16 %v11631_v37  ;;  %v11632_v55 = vunpack.i.l.bf16 %v11631_v37  ;;  %v5868_v37 = vsel %vm163_vm0, %v14987_v30, %v11543_v7  ;;  %v11247_v30 = vunpack.i.l.bf16 %v14885_v44  ;;  %v15402_v44 = vld [vmem:[#allocation3 + $0x248] sm:$0xff] }
 0x62f   : > { %11890 = vrot.lane.b32.xlu0 %v11889_v36, %s12201_s25  ;;  %v11546_v39 = vpop.permute.xlu1 %11545  ;;  %v12002_v36 = vld [vmem:[#allocation3 + $0xc8] sm:$0xff] }
 0x630   : > { %v5564_v32 = vsel %vm66_vm1, %v5548_v2, %v11633_v12  ;;  %v6116_v61 = vsel %vm66_vm1, %v6100_v0, %v11632_v55  ;;  %v11548_v9 = vunpack.i.h.bf16 %v11546_v39  ;;  %v11547_v5 = vunpack.i.l.bf16 %v11546_v39  ;;  %v4010_v0 = vld [vmem:[#allocation3 + $0x22d] sm:$0xff] }
 0x631   : > { %v11636_v38 = vpop.permute.xlu0 %11635  ;;  %v6099_v15 = vsel %vm163_vm0, %v12002_v36, %v11542_v41  ;;  %11875 = vrot.lane.b32.xlu1 %v11874_v8, %s12202_s3  ;;  %v11884_v41 = vpack.i.bf16 %v15104_v51, %v15355_v27  ;;  %v4331_v36 = vld [vmem:[#allocation3 + $0x231] sm:$0xff]  ;;  %v11318_v51 = vunpack.i.h.bf16 %v14952_v22  ;;  %v11317_v27 = vunpack.i.l.bf16 %v14952_v22 }
 0x632   : > { %v11638_v12 = vunpack.i.h.bf16 %v11636_v38  ;;  %v11637_v55 = vunpack.i.l.bf16 %v11636_v38  ;;  %v5884_v2 = vsel %vm66_vm1, %v5868_v37, %v11548_v9  ;;  %v6115_v54 = vsel %vm66_vm1, %v6099_v15, %v11547_v5  ;;  %v4963_v15 = vld [vmem:[#allocation3 + $0xb2] sm:$0xff] }
 0x633   : > { %11900 = vrot.lane.b32.xlu0 %v11899_v56, %s12200_s2  ;;  %v11551_v7 = vpop.permute.xlu1 %11550  ;;  %v11257_v9 = vunpack.i.l.bf16 %v14878_v29  ;;  %v11909_v56 = vpack.i.bf16 %v15212_v14, %v15365_v40  ;;  %v4899_v29 = vsel %vm163_vm0, %v4643_v17, %v11252_v10  ;;  %v11894_v22 = vpack.i.bf16 %v15174_v4, %v15402_v44 }
 0x634   : > { %v15392_v39 = vsel %vm4288_vm5, %v5564_v32, %v11638_v12  ;;  %v15395_v8 = vsel %vm4288_vm5, %v6116_v61, %v11637_v55  ;;  %v11553_v38 = vunpack.i.h.bf16 %v11551_v7  ;;  %v11552_v5 = vunpack.i.l.bf16 %v11551_v7 }
 0x635   : > { %18339 = vst [vmem:[#allocation63_spill] sm:$0xff] %v15392_v39  ;;  %18340 = vst [vmem:[#allocation64_spill] sm:$0xff] %v15395_v8  ;;  %v15398_v37 = vpop.permute.xlu0 %11650  ;;  %11885 = vrot.lane.b32.xlu1 %v11884_v41, %s12201_s25  ;;  %v4266_v32 = vsel %vm163_vm0, %v4010_v0, %v11253_v58  ;;  %v11263_v61 = vunpack.i.h.bf16 %v14888_v25  ;;  %v11262_v12 = vunpack.i.l.bf16 %v14888_v25  ;;  %v11919_v58 = vpack.i.bf16 %v15240_v3, %v15365_v40 }
 0x636   : > { %v15413_v14 = vsel %vm4288_vm5, %v5884_v2, %v11553_v38  ;;  %v15416_v55 = vsel %vm4288_vm5, %v6115_v54, %v11552_v5  ;;  %v4588_v10 = vsel %vm163_vm0, %v4331_v36, %v11248_v48  ;;  %v5220_v0 = vsel %vm163_vm0, %v4963_v15, %v11247_v30  ;;  %v15431_v5 = vld [vmem:[#allocation3 + $0x290] sm:$0xff]  ;;  %v15444_v15 = vld [vmem:[#allocation3 + $0x2c2] sm:$0xff] }
 0x637   : > { %11910 = vrot.lane.b32.xlu0 %v11909_v56, %s12202_s3  ;;  %18341 = vst [vmem:[#allocation65_spill] sm:$0xff] %v15413_v14  ;;  %18342 = vst [vmem:[#allocation66_spill] sm:$0xff] %v15416_v55  ;;  %v11556_v7 = vpop.permute.xlu1 %11555  ;;  %v4282_v2 = vsel %vm66_vm1, %v4266_v32, %v11258_v35  ;;  %v4915_v54 = vsel %vm66_vm1, %v4899_v29, %v11257_v9  ;;  %v4604_v38 = vsel %vm66_vm1, %v4588_v10, %v11318_v51 }
 0x638   : > { %v11558_v25 = vunpack.i.h.bf16 %v11556_v7  ;;  %v11557_v17 = vunpack.i.l.bf16 %v11556_v7  ;;  %v5236_v4 = vsel %vm66_vm1, %v5220_v0, %v11317_v27  ;;  %v4299_v35 = vsel %vm4288_vm5, %v4282_v2, %v11263_v61  ;;  %18343 = vst [vmem:[#allocation67_spill] sm:$0xff] %v15444_v15 }
 0x639   : > { %v15424_v41 = vpop.permute.xlu0 %11660  ;;  %11895 = vrot.lane.b32.xlu1 %v11894_v22, %s12200_s2  ;;  %v4931_v30 = vsel %vm4288_vm5, %v4915_v54, %v11262_v12  ;;  %v11904_v9 = vpack.i.bf16 %v15214_v28, %v15402_v44  ;;  %v11929_v36 = vpack.i.bf16 %v15231_v31, %v15431_v5  ;;  %v11568_v32 = vunpack.i.h.bf16 %v15255_v21 }
 0x63a   : > { %v4620_v3 = vsel %vm4288_vm5, %v4604_v38, %v11558_v25  ;;  %v5252_v40 = vsel %vm4288_vm5, %v5236_v4, %v11557_v17  ;;  %v11567_v29 = vunpack.i.l.bf16 %v15255_v21  ;;  %v11914_v28 = vpack.i.bf16 %v15205_v63, %v15402_v44  ;;  %v4964_v25 = vld [vmem:[#allocation3 + $0xca] sm:$0xff] }
 0x63b   : > { %11920 = vrot.lane.b32.xlu0 %v11919_v58, %s12201_s25  ;;  %6395 = vmatprep.mubr.f32.mxu1 %v4620_v3  ;;  %v11561_v48 = vpop.permute.xlu1 %11560  ;;  %v11939_v61 = vpack.i.bf16 %v15250_v11, %v15431_v5  ;;  %v11578_v12 = vunpack.i.h.bf16 %v15267_v60  ;;  %v11577_v7 = vunpack.i.l.bf16 %v15267_v60  ;;  %v11924_v58 = vpack.i.bf16 %v15233_v24, %v15023_v52  ;;  %v4332_v63 = vld [vmem:[#allocation3 + $0x249] sm:$0xff] }
 0x63c   : > { %6495 = vmatprep.mubr.f32.mxu0 %v5252_v40  ;;  %6396 = vmatmul.mubr.f32.gmra.mxu1 %v4299_v35  ;;  %v11563_v51 = vunpack.i.h.bf16 %v11561_v48  ;;  %v11562_v27 = vunpack.i.l.bf16 %v11561_v48  ;;  %v11949_v10 = vpack.i.bf16 %v15444_v15, %v15431_v5  ;;  %v11583_v21 = vunpack.i.h.bf16 %v15279_v53  ;;  %v12003_v24 = vld [vmem:[#allocation3 + $0x245] sm:$0xff] }
 0x63d   : > { %v15440_v56 = vpop.permute.xlu0 %11665  ;;  %6496 = vmatmul.mubr.f32.gmra.mxu0 %v4931_v30  ;;  %11905 = vrot.lane.b32.xlu1 %v11904_v9, %s12202_s3  ;;  %v11582_v0 = vunpack.i.l.bf16 %v15279_v53  ;;  %v11508_v2 = vunpack.i.h.bf16 %v15314_v45  ;;  %v11507_v60 = vunpack.i.l.bf16 %v15314_v45  ;;  %v4267_v38 = vsel %vm163_vm0, %v12003_v24, %v11568_v32  ;;  %v12004_v53 = vld [vmem:[#allocation3 + $0xc6] sm:$0xff]  ;;  %v5665_v24 = vld [vmem:[#allocation3 + $0x2d7] sm:$0xff] }
 0x63e   : > { %v4589_v54 = vsel %vm163_vm0, %v4332_v63, %v11563_v51  ;;  %v5221_v52 = vsel %vm163_vm0, %v4964_v25, %v11562_v27  ;;  %v4900_v4 = vsel %vm163_vm0, %v12004_v53, %v11567_v29  ;;  %v4283_v45 = vsel %vm66_vm1, %v4267_v38, %v11578_v12  ;;  %v4972_v12 = vld [vmem:[#allocation3 + $0x24a] sm:$0xff]  ;;  %v5330_v38 = vld [vmem:[#allocation3 + $0x2d9] sm:$0xff] }
 0x63f   : > { %11930 = vrot.lane.b32.xlu0 %v11929_v36, %s12200_s2  ;;  %v11571_v22 = vpop.permute.xlu1 %11570  ;;  %v4916_v40 = vsel %vm66_vm1, %v4900_v4, %v11577_v7  ;;  %v4300_v27 = vsel %vm4288_vm5, %v4283_v45, %v11583_v21  ;;  %v11603_v29 = vunpack.i.h.bf16 %v15323_v23  ;;  %v5314_v7 = vld [vmem:[#allocation3 + $0x2d8] sm:$0xff]  ;;  %v11607_v25 = vunpack.i.l.bf16 %v15334_v59  ;;  %v5291_v53 = vld [vmem:[#allocation3 + $0x22f] sm:$0xff] }
 0x640   : > { %v11573_v44 = vunpack.i.h.bf16 %v11571_v22  ;;  %v11572_v17 = vunpack.i.l.bf16 %v11571_v22  ;;  %v4932_v32 = vsel %vm4288_vm5, %v4916_v40, %v11582_v0  ;;  %v11608_v22 = vunpack.i.h.bf16 %v15334_v59  ;;  %v5611_v4 = vld [vmem:[#allocation3 + $0x233] sm:$0xff] }
 0x641   : > { %v15462_v11 = vpop.permute.xlu0 %11685  ;;  %11915 = vrot.lane.b32.xlu1 %v11914_v28, %s12201_s25  ;;  %v11602_v28 = vunpack.i.l.bf16 %v15323_v23  ;;  %v11959_v59 = vpack.i.bf16 %v5314_v7, %v15231_v31 }
 0x642   : > { %v4605_v5 = vsel %vm66_vm1, %v4589_v54, %v11573_v44  ;;  %v5237_v3 = vsel %vm66_vm1, %v5221_v52, %v11572_v17 }
 0x643   : > { %11940 = vrot.lane.b32.xlu0 %v11939_v61, %s12202_s3  ;;  %v11596_v48 = vpop.permute.xlu1 %11595  ;;  %v4621_v35 = vsel %vm4288_vm5, %v4605_v5, %v11508_v2  ;;  %v5253_v30 = vsel %vm4288_vm5, %v5237_v3, %v11507_v60  ;;  %v4652_v61 = vld [vmem:[#allocation3 + $0x246] sm:$0xff]  ;;  %v12005_v2 = vld [vmem:[#allocation3 + $0x278] sm:$0xff] }
 0x644   : > { %v11598_v9 = vunpack.i.h.bf16 %v11596_v48  ;;  %v11597_v36 = vunpack.i.l.bf16 %v11596_v48  ;;  %6400 = vmatprep.mubr.f32.mxu1 %v4621_v35  ;;  %6500 = vmatprep.mubr.f32.mxu0 %v5253_v30  ;;  %v11934_v60 = vpack.i.bf16 %v15252_v20, %v12005_v2  ;;  %v11944_v40 = vpack.i.bf16 %v5665_v24, %v12005_v2 }
 0x645   : > { %v15478_v51 = vpop.permute.xlu0 %11695  ;;  %6401 = vmatmul.mubr.f32.gmra.mxu1 %v4300_v27  ;;  %6501 = vmatmul.mubr.f32.gmra.mxu0 %v4932_v32  ;;  %v11969_v48 = vpack.i.bf16 %v5330_v38, %v15231_v31  ;;  %v11623_v35 = vunpack.i.h.bf16 %v15344_v43  ;;  %v11622_v30 = vunpack.i.l.bf16 %v15344_v43  ;;  %v5634_v27 = vld [vmem:[#allocation3 + $0x2ed] sm:$0xff]  ;;  %v5346_v32 = vld [vmem:[#allocation3 + $0x2da] sm:$0xff]  ;;  %v11513_v38 = vunpack.i.h.bf16 %v15330_v57 }
 0x646   : > { %v4908_v63 = vsel %vm163_vm0, %v4652_v61, %v11598_v9  ;;  %v5229_v44 = vsel %vm163_vm0, %v4972_v12, %v11597_v36  ;;  %11925 = vrot.lane.b32.xlu1 %v11924_v58, %s12200_s2 }
 0x647   : > { %11950 = vrot.lane.b32.xlu0 %v11949_v10, %s12201_s25  ;;  %v11611_v21 = vpop.permute.xlu1 %11610  ;;  %v5245_v23 = vsel %vm66_vm1, %v5229_v44, %v11602_v28  ;;  %v4924_v0 = vsel %vm66_vm1, %v4908_v63, %v11603_v29  ;;  %v11979_v63 = vpack.i.bf16 %v5346_v32, %v15231_v31  ;;  %v5650_v44 = vld [vmem:[#allocation3 + $0x2ee] sm:$0xff] }
 0x648   : > { %v15497_v54 = vsel %vm4288_vm5, %v5245_v23, %v11607_v25  ;;  %v15500_v52 = vsel %vm4288_vm5, %v4924_v0, %v11608_v22  ;;  %v11613_v58 = vunpack.i.h.bf16 %v11611_v21  ;;  %v11612_v10 = vunpack.i.l.bf16 %v11611_v21  ;;  %v5938_v21 = vld [vmem:[#allocation3 + $0x2f0] sm:$0xff] }
 0x649   : > { %v15492_v17 = vpop.permute.xlu0 %11700  ;;  %v11954_v25 = vpack.i.bf16 %v5634_v27, %v15120_v42  ;;  %v11964_v2 = vpack.i.bf16 %v5650_v44, %v15120_v42 }
 0x64a   : > { %11935 = vrot.lane.b32.xlu1 %v11934_v60, %s12202_s3  ;;  %v5547_v9 = vsel %vm163_vm0, %v5291_v53, %v11613_v58  ;;  %v5867_v36 = vsel %vm163_vm0, %v5611_v4, %v11612_v10  ;;  %v11989_v60 = vpack.i.bf16 %v5938_v21, %v5314_v7  ;;  %v11512_v53 = vunpack.i.l.bf16 %v15330_v57  ;;  %v4970_v21 = vld [vmem:[#allocation3 + $0x21a] sm:$0xff] }
 0x64b   : > { %11960 = vrot.lane.b32.xlu0 %v11959_v59, %s12200_s2  ;;  %v11616_v5 = vpop.permute.xlu1 %11615  ;;  %v5666_v59 = vld [vmem:[#allocation3 + $0x2ef] sm:$0xff]  ;;  %v11518_v4 = vunpack.i.h.bf16 %v15194_v33  ;;  %v11267_v57 = vunpack.i.l.bf16 %v14896_v18 }
 0x64c   : > { %v11618_v20 = vunpack.i.h.bf16 %v11616_v5  ;;  %v11617_v3 = vunpack.i.l.bf16 %v11616_v5  ;;  %v11974_v10 = vpack.i.bf16 %v5666_v59, %v15120_v42  ;;  %v11517_v5 = vunpack.i.l.bf16 %v15194_v33 }
 0x64d   : > { %v15504_v45 = vpop.permute.xlu0 %11705  ;;  %v11528_v42 = vunpack.i.h.bf16 %v15217_v50 }
 0x64e   : > { %v5563_v29 = vsel %vm66_vm1, %v5547_v9, %v11618_v20  ;;  %v5883_v28 = vsel %vm66_vm1, %v5867_v36, %v11617_v3  ;;  %11945 = vrot.lane.b32.xlu1 %v11944_v40, %s12201_s25  ;;  %v11523_v20 = vunpack.i.h.bf16 %v15341_v6  ;;  %v11522_v3 = vunpack.i.l.bf16 %v15341_v6  ;;  %v4965_v9 = vld [vmem:[#allocation3 + $0xe2] sm:$0xff] }
 0x64f   : > { %11970 = vrot.lane.b32.xlu0 %v11969_v48, %s12202_s3  ;;  %v15515_v61 = vpop.permute.xlu1 %11640  ;;  %v15518_v12 = vsel %vm4288_vm5, %v5883_v28, %v11622_v30  ;;  %v15521_v43 = vsel %vm4288_vm5, %v5563_v29, %v11623_v35  ;;  %v11527_v40 = vunpack.i.l.bf16 %v15217_v50  ;;  %v11268_v48 = vunpack.i.h.bf16 %v14896_v18  ;;  %v12006_v36 = vld [vmem:[#allocation3 + $0x261] sm:$0xff] }
 0x650   : > { %18344 = vst [vmem:[#allocation68_spill] sm:$0xff] %v15518_v12  ;;  %18345 = vst [vmem:[#allocation69_spill] sm:$0xff] %v15521_v43  ;;  %v11533_v35 = vunpack.i.h.bf16 %v15236_v34  ;;  %v11532_v30 = vunpack.i.l.bf16 %v15236_v34  ;;  %v4590_v27 = vsel %vm163_vm0, %v12006_v36, %v11513_v38  ;;  %v5222_v6 = vsel %vm163_vm0, %v4965_v9, %v11512_v53  ;;  %v4012_v28 = vld [vmem:[#allocation3 + $0x25d] sm:$0xff]  ;;  %v4336_v12 = vld [vmem:[#allocation3 + $0x2a9] sm:$0xff] }
 0x651   : > { %v15523_v22 = vpop.permute.xlu0 %11710  ;;  %v5238_v18 = vsel %vm66_vm1, %v5222_v6, %v11522_v3  ;;  %v4268_v44 = vsel %vm163_vm0, %v4012_v28, %v11518_v4  ;;  %v11272_v9 = vunpack.i.l.bf16 %v14901_v46  ;;  %v11687_v28 = vunpack.i.l.bf16 %v15462_v11 }
 0x652   : > { %11955 = vrot.lane.b32.xlu1 %v11954_v25, %s12200_s2  ;;  %v4645_v25 = vld [vmem:[#allocation3 + $0xde] sm:$0xff]  ;;  %v4284_v38 = vsel %vm66_vm1, %v4268_v44, %v11528_v42 }
 0x653   : > { %11980 = vrot.lane.b32.xlu0 %v11979_v63, %s12201_s25  ;;  %v15529_v23 = vpop.permute.xlu1 %11645  ;;  %v4606_v63 = vsel %vm66_vm1, %v4590_v27, %v11523_v20  ;;  %v4901_v34 = vsel %vm163_vm0, %v4645_v25, %v11517_v5  ;;  %v4301_v3 = vsel %vm4288_vm5, %v4284_v38, %v11533_v35  ;;  %v11273_v5 = vunpack.i.h.bf16 %v14901_v46  ;;  %v18348_v25 = vld [vmem:[#allocation44_spill] sm:$0xff] }
 0x654   : > { %v4917_v53 = vsel %vm66_vm1, %v4901_v34, %v11527_v40  ;;  %v18346_v40 = vld [vmem:[#allocation41_spill] sm:$0xff]  ;;  %v11688_v46 = vunpack.i.h.bf16 %v15462_v11  ;;  %v11703_v34 = vunpack.i.h.bf16 %v15492_v17  ;;  %v11643_v11 = vunpack.i.h.bf16 %v15515_v61 }
 0x655   : > { %v15531_v0 = vpop.permute.xlu0 %11720  ;;  %v4933_v4 = vsel %vm4288_vm5, %v4917_v53, %v11532_v30  ;;  %v11323_v36 = vunpack.i.h.bf16 %v18346_v40  ;;  %v11322_v27 = vunpack.i.l.bf16 %v18346_v40 }
 0x656   : > { %11965 = vrot.lane.b32.xlu1 %v11964_v2, %s12202_s3  ;;  %v4650_v2 = vld [vmem:[#allocation3 + $0x216] sm:$0xff] }
 0x657   : > { %11990 = vrot.lane.b32.xlu0 %v11989_v60, %s12202_s3  ;;  %v15536_v58 = vpop.permute.xlu1 %11655  ;;  %v4906_v42 = vsel %vm163_vm0, %v4650_v2, %v11268_v48  ;;  %v11698_v48 = vunpack.i.h.bf16 %v15478_v51  ;;  %v4966_v2 = vld [vmem:[#allocation3 + $0xfa] sm:$0xff] }
 0x659   : > { %v15538_v31 = vpop.permute.xlu0 %11725 }
 0x65a   : > { %11975 = vrot.lane.b32.xlu1 %v11974_v10, %s12201_s25 }
 0x65b   : > { %v15542_v24 = vpop.permute.xlu1 %11670 }
 0x65d   : > { %v15546_v7 = vpop.permute.xlu0 %11750 }
 0x65e   : > { %11985 = vrot.lane.b32.xlu1 %v11989_v60, %s12200_s2 }
 0x65f   : > { %v11676_v33 = vpop.permute.xlu1 %11675 }
 0x660   : > { %v11678_v32 = vunpack.i.h.bf16 %v11676_v33  ;;  %v11677_v29 = vunpack.i.l.bf16 %v11676_v33  ;;  %v5227_v33 = vsel %vm163_vm0, %v4970_v21, %v11267_v57  ;;  %v11337_v57 = vunpack.i.l.bf16 %v18348_v25 }
 0x661   : > { %v15561_v50 = vpop.permute.xlu0 %11760  ;;  %v11702_v21 = vunpack.i.l.bf16 %v15492_v17 }
 0x662   : > { %11995 = vrot.lane.b32.xlu1 %v11989_v60, %s12201_s25  ;;  %v4622_v59 = vsel %vm4288_vm5, %v4606_v63, %v11678_v32  ;;  %v5254_v10 = vsel %vm4288_vm5, %v5238_v18, %v11677_v29  ;;  %v18347_v32 = vld [vmem:[#allocation43_spill] sm:$0xff]  ;;  %v11338_v63 = vunpack.i.h.bf16 %v18348_v25  ;;  %v11697_v18 = vunpack.i.l.bf16 %v15478_v51  ;;  %v12007_v51 = vld [vmem:[#allocation3 + $0x275] sm:$0xff]  ;;  %s3980_s25 = scalar_lea.vmem %s18073_s9, %s12193_s5  ;;  %s3622_s5 = sadd.s32 1, %s12193_s5  }
 0x663   : > { %6405 = vmatprep.mubr.f32.mxu1 %v4622_v59  ;;  %v11681_v20 = vpop.permute.xlu1 %11680  ;;  %6505 = vmatprep.mubr.f32.mxu0 %v5254_v10  ;;  %v11328_v30 = vunpack.i.h.bf16 %v18347_v32  ;;  %v11327_v29 = vunpack.i.l.bf16 %v18347_v32  ;;  %v4334_v59 = vld [vmem:[#allocation3 + $0x279] sm:$0xff]  ;;  %v4269_v40 = vsel %vm163_vm0, %v12007_v51, %v11688_v46  ;;  %p16489_p0 = scmp.ge.s32.totalorder %s3622_s5, 10  }
 0x664   : > { %6406 = vmatmul.mubr.f32.gmra.mxu1 %v4301_v3  ;;  %6506 = vmatmul.mubr.f32.gmra.mxu0 %v4933_v4  ;;  %v11683_v6 = vunpack.i.h.bf16 %v11681_v20  ;;  %v11682_v35 = vunpack.i.l.bf16 %v11681_v20  ;;  %v11642_v20 = vunpack.i.l.bf16 %v15515_v61  ;;  %v12008_v32 = vld [vmem:[#allocation3 + $0xf6] sm:$0xff]  ;;  %v4285_v8 = vsel %vm66_vm1, %v4269_v40, %v11698_v48 }
 0x665   : > { %v15576_v60 = vpop.permute.xlu0 %11765  ;;  %v4902_v17 = vsel %vm163_vm0, %v12008_v32, %v11687_v28  ;;  %v18349_v46 = vld [vmem:[#allocation45_spill] sm:$0xff]  ;;  %v4302_v48 = vsel %vm4288_vm5, %v4285_v8, %v11703_v34  ;;  %v4922_v40 = vsel %vm66_vm1, %v4906_v42, %v11273_v5  ;;  %v5284_v32 = vld [vmem:[#allocation3 + $0xc7] sm:$0xff] }
 0x666   : > { %v4591_v3 = vsel %vm163_vm0, %v4334_v59, %v11683_v6  ;;  %v5223_v4 = vsel %vm163_vm0, %v4966_v2, %v11682_v35  ;;  %v4918_v39 = vsel %vm66_vm1, %v4902_v17, %v11697_v18  ;;  %v5603_v35 = vld [vmem:[#allocation3 + $0xb3] sm:$0xff]  ;;  %v11343_v59 = vunpack.i.h.bf16 %v18349_v46  ;;  %v18352_v42 = vld [vmem:[#allocation42_spill] sm:$0xff] }
 0x667   : > { %v11691_v44 = vpop.permute.xlu1 %11690  ;;  %v5283_v2 = vld [vmem:[#allocation3 + $0xaf] sm:$0xff]  ;;  %v11342_v28 = vunpack.i.l.bf16 %v18349_v46  ;;  %v4934_v18 = vsel %vm4288_vm5, %v4918_v39, %v11702_v21  ;;  %v5540_v34 = vsel %vm163_vm0, %v5284_v32, %v11338_v63  ;;  %v11652_v32 = vunpack.i.l.bf16 %v15398_v37 }
 0x668   : > { %v11693_v10 = vunpack.i.h.bf16 %v11691_v44  ;;  %v11692_v38 = vunpack.i.l.bf16 %v11691_v44  ;;  %v5539_v17 = vsel %vm163_vm0, %v5283_v2, %v11323_v36  ;;  %v18351_v21 = vld [vmem:[#allocation40_spill] sm:$0xff]  ;;  %v5556_v5 = vsel %vm66_vm1, %v5540_v34, %v11343_v59  ;;  %v18354_v2 = vld [vmem:[#allocation47_spill] sm:$0xff] }
 0x669   : > { %v15592_v53 = vpop.permute.xlu0 %11770  ;;  %v11348_v36 = vunpack.i.h.bf16 %v18352_v42  ;;  %v12011_v34 = vld [vmem:[#allocation3 + $0x10e] sm:$0xff] }
 0x66a   : > { %v4607_v25 = vsel %vm66_vm1, %v4591_v3, %v11693_v10  ;;  %v5239_v44 = vsel %vm66_vm1, %v5223_v4, %v11692_v38  ;;  %v18350_v10 = vld [vmem:[#allocation39_spill] sm:$0xff]  ;;  %v5243_v3 = vsel %vm66_vm1, %v5227_v33, %v11272_v9  ;;  %v11333_v33 = vunpack.i.h.bf16 %v18351_v21 }
 0x66b   : > { %v15604_v55 = vpop.permute.xlu1 %11715  ;;  %v4623_v61 = vsel %vm4288_vm5, %v4607_v25, %v11643_v11  ;;  %v5255_v6 = vsel %vm4288_vm5, %v5239_v44, %v11642_v20  ;;  %v11278_v38 = vunpack.i.h.bf16 %v18350_v10  ;;  %v11277_v11 = vunpack.i.l.bf16 %v18350_v10  ;;  %v5604_v4 = vld [vmem:[#allocation3 + $0xcb] sm:$0xff] }
 0x66c   : > { %6410 = vmatprep.mubr.f32.mxu1 %v4623_v61  ;;  %6510 = vmatprep.mubr.f32.mxu0 %v5255_v6  ;;  %v5859_v20 = vsel %vm163_vm0, %v5603_v35, %v11322_v27  ;;  %v5860_v8 = vsel %vm163_vm0, %v5604_v4, %v11337_v57  ;;  %v11332_v44 = vunpack.i.l.bf16 %v18351_v21  ;;  %v5555_v27 = vsel %vm66_vm1, %v5539_v17, %v11328_v30  ;;  %v18353_v6 = vld [vmem:[#allocation49_spill] sm:$0xff]  ;;  %v12010_v10 = vld [vmem:[#allocation3 + $0x28d] sm:$0xff] }
 0x66d   : > { %v15610_v51 = vpop.permute.xlu0 %11775  ;;  %6411 = vmatmul.mubr.f32.gmra.mxu1 %v4302_v48  ;;  %6511 = vmatmul.mubr.f32.gmra.mxu0 %v4934_v18  ;;  %v5875_v39 = vsel %vm66_vm1, %v5859_v20, %v11327_v29  ;;  %v5876_v9 = vsel %vm66_vm1, %v5860_v8, %v11342_v28  ;;  %v11347_v29 = vunpack.i.l.bf16 %v18352_v42  ;;  %v11382_v57 = vunpack.i.l.bf16 %v18353_v6  ;;  %v5605_v8 = vld [vmem:[#allocation3 + $0xe3] sm:$0xff]  ;;  %v15676_v42 = vpop.f32.mrf.mxu1 }
 0x66e   : > { %v15636_v63 = vsel %vm4288_vm5, %v5875_v39, %v11332_v44  ;;  %v15639_v35 = vsel %vm4288_vm5, %v5243_v3, %v11277_v11  ;;  %v15642_v30 = vsel %vm4288_vm5, %v4922_v40, %v11278_v38  ;;  %v15648_v28 = vsel %vm4288_vm5, %v5555_v27, %v11333_v33  ;;  %v18355_v11 = vld [vmem:[#allocation48_spill] sm:$0xff]  ;;  %18358 = vst [vmem:[#allocation43_spill] sm:$0xff] %v15676_v42 }
 0x66f   : > { %v15620_v25 = vpop.permute.xlu1 %11730  ;;  %v15651_v48 = vsel %vm4288_vm5, %v5876_v9, %v11347_v29  ;;  %v15654_v18 = vsel %vm4288_vm5, %v5556_v5, %v11348_v36  ;;  %v11648_v38 = vunpack.i.h.bf16 %v15529_v23  ;;  %v11647_v3 = vunpack.i.l.bf16 %v15529_v23  ;;  %v18357_v23 = vld [vmem:[#allocation56_spill] sm:$0xff] }
 0x670   : > { %v11653_v40 = vunpack.i.h.bf16 %v15398_v37  ;;  %v11658_v17 = vunpack.i.h.bf16 %v15536_v58  ;;  %v11657_v39 = vunpack.i.l.bf16 %v15536_v58  ;;  %v11663_v21 = vunpack.i.h.bf16 %v15424_v41  ;;  %v4967_v58 = vld [vmem:[#allocation3 + $0x112] sm:$0xff] }
 0x671   : > { %v15627_v61 = vpop.permute.xlu0 %11790  ;;  %v11662_v44 = vunpack.i.l.bf16 %v15424_v41  ;;  %v15670_v27 = vsel %vm163_vm0, %v5605_v8, %v11382_v57  ;;  %v11413_v9 = vunpack.i.h.bf16 %v18357_v23  ;;  %v11412_v5 = vunpack.i.l.bf16 %v18357_v23  ;;  %v12009_v29 = vld [vmem:[#allocation3 + $0x291] sm:$0xff] }
 0x672   : > { %v11668_v37 = vunpack.i.h.bf16 %v15440_v56  ;;  %v11667_v33 = vunpack.i.l.bf16 %v15440_v56  ;;  %v4592_v20 = vsel %vm163_vm0, %v12009_v29, %v11648_v38  ;;  %v5224_v41 = vsel %vm163_vm0, %v4967_v58, %v11647_v3 }
 0x673   : > { %v15645_v59 = vpop.permute.xlu1 %11735  ;;  %v4270_v23 = vsel %vm163_vm0, %v12010_v10, %v11653_v40  ;;  %v4903_v14 = vsel %vm163_vm0, %v12011_v34, %v11652_v32  ;;  %v4608_v56 = vsel %vm66_vm1, %v4592_v20, %v11658_v17  ;;  %v5240_v42 = vsel %vm66_vm1, %v5224_v41, %v11657_v39  ;;  %v15692_v10 = vpop.f32.mrf.mxu1  ;;  %v4969_v17 = vld [vmem:[#allocation3 + $0x142] sm:$0xff]  ;;  %v18362_v39 = vld [vmem:[#allocation52_spill] sm:$0xff] }
 0x674   : > { %v4286_v43 = vsel %vm66_vm1, %v4270_v23, %v11663_v21  ;;  %v4919_v38 = vsel %vm66_vm1, %v4903_v14, %v11662_v44  ;;  %18361 = vst [vmem:[#allocation45_spill] sm:$0xff] %v15692_v10  ;;  %v18363_v34 = vld [vmem:[#allocation54_spill] sm:$0xff]  ;;  %v18365_v41 = vld [vmem:[#allocation55_spill] sm:$0xff]  ;;  %v11752_v14 = vunpack.i.l.bf16 %v15546_v7  ;;  %v11767_v29 = vunpack.i.l.bf16 %v15576_v60 }
 0x675   : > { %v15660_v4 = vpop.permute.xlu0 %11795  ;;  %v4303_v20 = vsel %vm4288_vm5, %v4286_v43, %v11668_v37  ;;  %v4935_v32 = vsel %vm4288_vm5, %v4919_v38, %v11667_v33  ;;  %v11467_v23 = vunpack.i.l.bf16 %v18365_v41  ;;  %v18366_v38 = vld [vmem:[#allocation57_spill] sm:$0xff] }
 0x676   : > { %18356 = vst [vmem:[#allocation41_spill] sm:$0xff] %v15660_v4 }
 0x677   : > { %v11741_v36 = vpop.permute.xlu1 %11740 }
 0x678   : > { %v11743_v46 = vunpack.i.h.bf16 %v11741_v36  ;;  %v11742_v57 = vunpack.i.l.bf16 %v11741_v36  ;;  %v18360_v36 = vld [vmem:[#allocation50_spill] sm:$0xff] }
 0x679   : > { %v15680_v8 = vpop.permute.xlu0 %11800 }
 0x67a   : > { %18359 = vst [vmem:[#allocation44_spill] sm:$0xff] %v15680_v8  ;;  %v4624_v3 = vsel %vm4288_vm5, %v4608_v56, %v11743_v46  ;;  %v5256_v58 = vsel %vm4288_vm5, %v5240_v42, %v11742_v57  ;;  %v5226_v42 = vsel %vm163_vm0, %v4969_v17, %v11412_v5  ;;  %v11468_v57 = vunpack.i.h.bf16 %v18365_v41  ;;  %v4649_v56 = vld [vmem:[#allocation3 + $0x13e] sm:$0xff]  ;;  %v4968_v46 = vld [vmem:[#allocation3 + $0x12a] sm:$0xff] }
 0x67b   : > { %6415 = vmatprep.mubr.f32.mxu1 %v4624_v3  ;;  %v11746_v40 = vpop.permute.xlu1 %11745  ;;  %6515 = vmatprep.mubr.f32.mxu0 %v5256_v58  ;;  %v11472_v3 = vunpack.i.l.bf16 %v18366_v38  ;;  %v11753_v58 = vunpack.i.h.bf16 %v15546_v7  ;;  %v4905_v21 = vsel %vm163_vm0, %v4649_v56, %v11413_v9  ;;  %v11762_v5 = vunpack.i.l.bf16 %v15561_v50  ;;  %v12012_v8 = vld [vmem:[#allocation3 + $0x2a5] sm:$0xff] }
 0x67c   : > { %6416 = vmatmul.mubr.f32.gmra.mxu1 %v4303_v20  ;;  %6516 = vmatmul.mubr.f32.gmra.mxu0 %v4935_v32  ;;  %v11748_v43 = vunpack.i.h.bf16 %v11746_v40  ;;  %v11747_v37 = vunpack.i.l.bf16 %v11746_v40  ;;  %v11763_v20 = vunpack.i.h.bf16 %v15561_v50  ;;  %v11768_v32 = vunpack.i.h.bf16 %v15576_v60  ;;  %v12013_v60 = vld [vmem:[#allocation3 + $0x126] sm:$0xff] }
 0x67d   : > { %v15699_v44 = vpop.permute.xlu0 %11805  ;;  %v5242_v40 = vsel %vm66_vm1, %v5226_v42, %v11467_v23  ;;  %v11733_v9 = vunpack.i.h.bf16 %v15620_v25  ;;  %v11732_v50 = vunpack.i.l.bf16 %v15620_v25  ;;  %v4271_v42 = vsel %vm163_vm0, %v12012_v8, %v11753_v58 }
 0x67e   : > { %18364 = vst [vmem:[#allocation39_spill] sm:$0xff] %v15699_v44  ;;  %v9751_v33 = vpop.f32.mrf.mxu1  ;;  %v4593_v56 = vsel %vm163_vm0, %v4336_v12, %v11748_v43  ;;  %v5225_v4 = vsel %vm163_vm0, %v4968_v46, %v11747_v37  ;;  %v4904_v23 = vsel %vm163_vm0, %v12013_v60, %v11752_v14  ;;  %v5285_v43 = vld [vmem:[#allocation3 + $0xdf] sm:$0xff]  ;;  %v11403_v8 = vunpack.i.h.bf16 %v18363_v34 }
 0x67f   : > { %v11756_v41 = vpop.permute.xlu1 %11755  ;;  %v18369_v58 = vunpack.i.h.bf16 %v18353_v6  ;;  %v18371_v6 = vunpack.i.l.bf16 %v18360_v36 }
 0x680   : > { %v9752_v17 = vpop.f32.mrf.mxu1  ;;  %v11758_v15 = vunpack.i.h.bf16 %v11756_v41  ;;  %v11757_v7 = vunpack.i.l.bf16 %v11756_v41 }
 0x681   : > { %v15713_v10 = vadd.f32 %v9752_v17, %v9751_v33  ;;  %v15715_v44 = vpop.permute.xlu0 %11810 }
 0x682   : > { %18368 = vst [vmem:[#allocation42_spill] sm:$0xff] %v15715_v44  ;;  %v4609_v33 = vsel %vm66_vm1, %v4593_v56, %v11758_v15  ;;  %v5241_v17 = vsel %vm66_vm1, %v5225_v4, %v11757_v7  ;;  %v4920_v44 = vsel %vm66_vm1, %v4904_v23, %v11762_v5  ;;  %v11407_v5 = vunpack.i.l.bf16 %v18355_v11  ;;  %v5606_v56 = vld [vmem:[#allocation3 + $0xfb] sm:$0xff] }
 0x683   : > { %18367 = vst [vmem:[#allocation40_spill] sm:$0xff] %v15713_v10  ;;  %v9754_v41 = vpop.f32.mrf.mxu1  ;;  %v4287_v10 = vsel %vm66_vm1, %v4271_v42, %v11763_v20  ;;  %v15727_v25 = vpop.permute.xlu1 %11780  ;;  %v4625_v12 = vsel %vm4288_vm5, %v4609_v33, %v11733_v9  ;;  %v5257_v46 = vsel %vm4288_vm5, %v5241_v17, %v11732_v50  ;;  %v4936_v4 = vsel %vm4288_vm5, %v4920_v44, %v11767_v29  ;;  %v18370_v42 = vld [vmem:[#allocation51_spill] sm:$0xff] }
 0x684   : > { %6420 = vmatprep.mubr.f32.mxu1 %v4625_v12  ;;  %6520 = vmatprep.mubr.f32.mxu0 %v5257_v46  ;;  %v4304_v15 = vsel %vm4288_vm5, %v4287_v10, %v11768_v32  ;;  %v5541_v20 = vsel %vm163_vm0, %v5285_v43, %v18369_v58  ;;  %v5258_v9 = vsel %vm4288_vm5, %v5242_v40, %v11472_v3  ;;  %v11448_v60 = vunpack.i.h.bf16 %v18370_v42  ;;  %v5286_v3 = vld [vmem:[#allocation3 + $0xf7] sm:$0xff] }
 0x685   : > { %v9755_v37 = vpop.f32.mrf.mxu1  ;;  %v15732_v14 = vpop.permute.xlu0 %11820  ;;  %6421 = vmatmul.mubr.f32.gmra.mxu1 %v4304_v15  ;;  %6521 = vmatmul.mubr.f32.gmra.mxu0 %v4936_v4  ;;  %v4921_v50 = vsel %vm66_vm1, %v4905_v21, %v11468_v57  ;;  %v11473_v10 = vunpack.i.h.bf16 %v18366_v38  ;;  %v5877_v29 = vsel %vm66_vm1, %v15670_v27, %v18371_v6  ;;  %v18372_v44 = vunpack.i.l.bf16 %v18362_v39 }
 0x686   : > { %v15740_v7 = vadd.f32 %v9755_v37, %v9754_v41  ;;  %6525 = vmatprep.mubr.f32.mxu0 %v5258_v9  ;;  %6635 = vmatprep.mubr.f32.mxu1 %v15636_v63  ;;  %v11447_v21 = vunpack.i.l.bf16 %v18370_v42  ;;  %v18373_v40 = vunpack.i.h.bf16 %v18360_v36  ;;  %v18374_v63 = vunpack.i.l.bf16 %v18363_v34  ;;  %v4973_v42 = vld [vmem:[#allocation3 + $0x262] sm:$0xff] }
 0x687   : > { %v5862_v32 = vsel %vm163_vm0, %v5606_v56, %v18372_v44  ;;  %v15755_v57 = vpop.permute.xlu1 %11785  ;;  %v18375_v33 = vunpack.i.h.bf16 %v18362_v39  ;;  %v11438_v17 = vunpack.i.h.bf16 %v15188_v26  ;;  %v11437_v41 = vunpack.i.l.bf16 %v15188_v26  ;;  %v18377_v26 = vld [vmem:[#allocation53_spill] sm:$0xff] }
 0x688   : > { %v5557_v38 = vsel %vm66_vm1, %v5541_v20, %v18373_v40  ;;  %v5878_v23 = vsel %vm66_vm1, %v5862_v32, %v18374_v63  ;;  %v4937_v46 = vsel %vm4288_vm5, %v4921_v50, %v11473_v10  ;;  %v11443_v43 = vunpack.i.h.bf16 %v15208_v16  ;;  %v18378_v20 = vld [vmem:[#allocation60_spill] sm:$0xff]  ;;  %v18380_v50 = vld [vmem:[#allocation58_spill] sm:$0xff] }
 0x689   : > { %v5542_v27 = vsel %vm163_vm0, %v5286_v3, %v18375_v33  ;;  %v15768_v12 = vpop.permute.xlu0 %11830  ;;  %v11442_v34 = vunpack.i.l.bf16 %v15208_v16  ;;  %v11452_v37 = vunpack.i.l.bf16 %v15227_v1  ;;  %6526 = vmatmul.mubr.f32.gmra.mxu0 %v4937_v46  ;;  %6636 = vmatmul.mubr.f32.vlgmr.msra.gmra.mxu1 %v15648_v28  ;;  %v18376_v39 = vunpack.i.l.bf16 %v18354_v2  ;;  %v5287_v32 = vld [vmem:[#allocation3 + $0x10f] sm:$0xff]  ;;  %v18383_v46 = vld [vmem:[#allocation61_spill] sm:$0xff] }
 0x68a   : > { %v5558_v36 = vsel %vm66_vm1, %v5542_v27, %v11403_v8  ;;  %v11463_v4 = vunpack.i.h.bf16 %v18377_v26  ;;  %v11462_v58 = vunpack.i.l.bf16 %v18377_v26  ;;  %v11457_v9 = vunpack.i.l.bf16 %v18378_v20  ;;  %6530 = vmatprep.mubr.f32.mxu0 %v15639_v35  ;;  %6640 = vmatprep.mubr.f32.mxu1 %v15651_v48  ;;  %v5607_v35 = vld [vmem:[#allocation3 + $0x113] sm:$0xff]  ;;  %v18382_v48 = vld [vmem:[#allocation59_spill] sm:$0xff] }
 0x68b   : > { %v5893_v15 = vsel %vm4288_vm5, %v5877_v29, %v18376_v39  ;;  %v18379_v16 = vunpack.i.h.bf16 %v18354_v2  ;;  %v11488_v28 = vunpack.i.h.bf16 %v18380_v50  ;;  %v11487_v56 = vunpack.i.l.bf16 %v18380_v50  ;;  %v15789_v10 = vpop.permute.xlu1 %11815  ;;  %v5608_v33 = vld [vmem:[#allocation3 + $0x12b] sm:$0xff] }
 0x68c   : > { %v5894_v6 = vsel %vm4288_vm5, %v5878_v23, %v11407_v5  ;;  %v18381_v29 = vunpack.i.h.bf16 %v18355_v11  ;;  %v11503_v3 = vunpack.i.h.bf16 %v18382_v48  ;;  %v11453_v2 = vunpack.i.h.bf16 %v15227_v1 }
 0x68d   : > { %v5573_v8 = vsel %vm4288_vm5, %v5557_v38, %v18379_v16  ;;  %v15799_v40 = vpop.permute.xlu0 %11840  ;;  %v5863_v38 = vsel %vm163_vm0, %v5607_v35, %v11437_v41  ;;  %v5543_v63 = vsel %vm163_vm0, %v5287_v32, %v11438_v17  ;;  %v11458_v5 = vunpack.i.h.bf16 %v18378_v20  ;;  %6531 = vmatmul.mubr.f32.gmra.mxu0 %v15642_v30  ;;  %6641 = vmatmul.mubr.f32.gmra.mxu1 %v15654_v18  ;;  %v18384_v30 = vld [vmem:[#allocation62_spill] sm:$0xff] }
 0x68e   : > { %v15795_v44 = vsel %vm4288_vm5, %v5558_v36, %v18381_v29  ;;  %v5879_v11 = vsel %vm66_vm1, %v5863_v38, %v11442_v34  ;;  %v5559_v23 = vsel %vm66_vm1, %v5543_v63, %v11443_v43  ;;  %v5864_v27 = vsel %vm163_vm0, %v5608_v33, %v11452_v37  ;;  %6535 = vmatprep.mubr.f32.mxu0 %v15317_v47  ;;  %v5288_v20 = vld [vmem:[#allocation3 + $0x127] sm:$0xff] }
 0x68f   : > { %v11502_v1 = vunpack.i.l.bf16 %v18382_v48  ;;  %v11478_v36 = vunpack.i.h.bf16 %v18383_v46  ;;  %v11477_v41 = vunpack.i.l.bf16 %v18383_v46  ;;  %6645 = vmatprep.mubr.f32.mxu1 %v5893_v15  ;;  %v5880_v17 = vsel %vm66_vm1, %v5864_v27, %v11457_v9  ;;  %v15818_v37 = vpop.permute.xlu1 %11825  ;;  %v5609_v33 = vld [vmem:[#allocation3 + $0x143] sm:$0xff]  ;;  %v4974_v27 = vld [vmem:[#allocation3 + $0x27a] sm:$0xff] }
 0x690   : > { %v11482_v39 = vunpack.i.l.bf16 %v18384_v30  ;;  %v11538_v18 = vunpack.i.h.bf16 %v15350_v13  ;;  %v11537_v34 = vunpack.i.l.bf16 %v15350_v13  ;;  %v11717_v43 = vunpack.i.l.bf16 %v15604_v55 }
 0x691   : > { %v11707_v16 = vunpack.i.l.bf16 %v15504_v45  ;;  %v15821_v29 = vpop.permute.xlu0 %11850  ;;  %v5895_v47 = vsel %vm4288_vm5, %v5879_v11, %v11447_v21  ;;  %v5575_v15 = vsel %vm4288_vm5, %v5559_v23, %v11448_v60  ;;  %v5544_v9 = vsel %vm163_vm0, %v5288_v20, %v11453_v2  ;;  %6536 = vmatmul.mubr.f32.gmra.mxu0 %v15320_v49  ;;  %6646 = vmatmul.mubr.f32.gmra.mxu1 %v5573_v8  ;;  %v5289_v21 = vld [vmem:[#allocation3 + $0x13f] sm:$0xff] }
 0x692   : > { %v11483_v35 = vunpack.i.h.bf16 %v18384_v30  ;;  %v11708_v13 = vunpack.i.h.bf16 %v15504_v45  ;;  %v11712_v32 = vunpack.i.l.bf16 %v15523_v22  ;;  %v9757_v38 = vpop.f32.mrf.mxu1  ;;  %v5560_v63 = vsel %vm66_vm1, %v5544_v9, %v11458_v5  ;;  %v4653_v11 = vld [vmem:[#allocation3 + $0x25e] sm:$0xff]  ;;  %6540 = vmatprep.mubr.f32.mxu0 %v15497_v54  ;;  %6650 = vmatprep.mubr.f32.mxu1 %v5894_v6 }
 0x693   : > { %v11718_v60 = vunpack.i.h.bf16 %v15604_v55  ;;  %v5896_v45 = vsel %vm4288_vm5, %v5880_v17, %v11462_v58  ;;  %v5865_v2 = vsel %vm163_vm0, %v5609_v33, %v11477_v41  ;;  %v5545_v23 = vsel %vm163_vm0, %v5289_v21, %v11478_v36  ;;  %v15841_v30 = vpop.permute.xlu1 %11835  ;;  %v4655_v33 = vld [vmem:[#allocation3 + $0x28e] sm:$0xff] }
 0x694   : > { %v4909_v49 = vsel %vm163_vm0, %v4653_v11, %v11538_v18  ;;  %v5230_v8 = vsel %vm163_vm0, %v4973_v42, %v11537_v34  ;;  %v5231_v5 = vsel %vm163_vm0, %v4974_v27, %v11717_v43  ;;  %v9758_v46 = vpop.f32.mrf.mxu1  ;;  %v5881_v55 = vsel %vm66_vm1, %v5865_v2, %v11482_v39  ;;  %v4654_v34 = vld [vmem:[#allocation3 + $0x276] sm:$0xff]  ;;  %v4976_v27 = vld [vmem:[#allocation3 + $0x2aa] sm:$0xff] }
 0x695   : > { %v5246_v54 = vsel %vm66_vm1, %v5230_v8, %v11707_v16  ;;  %v11713_v6 = vunpack.i.h.bf16 %v15523_v22  ;;  %v11722_v58 = vunpack.i.l.bf16 %v15531_v0  ;;  %v15847_v41 = vadd.f32 %v9758_v46, %v9757_v38  ;;  %v15849_v36 = vpop.permute.xlu0 %11860  ;;  %6541 = vmatmul.mubr.f32.gmra.mxu0 %v15500_v52  ;;  %6651 = vmatmul.mubr.f32.gmra.mxu1 %v15795_v44  ;;  %v4975_v21 = vld [vmem:[#allocation3 + $0x292] sm:$0xff] }
 0x696   : > { %v4925_v17 = vsel %vm66_vm1, %v4909_v49, %v11708_v13  ;;  %v11723_v18 = vunpack.i.h.bf16 %v15531_v0  ;;  %v5262_v39 = vsel %vm4288_vm5, %v5246_v54, %v11712_v32  ;;  %v5561_v43 = vsel %vm66_vm1, %v5545_v23, %v11483_v35  ;;  %6655 = vmatprep.mubr.f32.mxu1 %v5895_v47 }
 0x697   : > { %v11673_v22 = vunpack.i.h.bf16 %v15542_v24  ;;  %v11672_v20 = vunpack.i.l.bf16 %v15542_v24  ;;  %v4910_v16 = vsel %vm163_vm0, %v4654_v34, %v11718_v60  ;;  %6545 = vmatprep.mubr.f32.mxu0 %v5262_v39  ;;  %v5247_v9 = vsel %vm66_vm1, %v5231_v5, %v11722_v58  ;;  %v15865_v32 = vpop.permute.xlu1 %11845  ;;  %v4656_v5 = vld [vmem:[#allocation3 + $0x2a6] sm:$0xff] }
 0x698   : > { %v11727_v0 = vunpack.i.l.bf16 %v15538_v31  ;;  %v11773_v52 = vunpack.i.h.bf16 %v15592_v53  ;;  %v11772_v44 = vunpack.i.l.bf16 %v15592_v53  ;;  %v11782_v13 = vunpack.i.l.bf16 %v15727_v25  ;;  %v18387_v39 = vld [vmem:[#allocation39_spill] sm:$0xff] }
 0x699   : > { %v15867_v35 = vpop.permute.xlu0 %11870  ;;  %v4941_v24 = vsel %vm4288_vm5, %v4925_v17, %v11713_v6  ;;  %v5576_v47 = vsel %vm4288_vm5, %v5560_v63, %v11463_v4  ;;  %v5897_v38 = vsel %vm4288_vm5, %v5881_v55, %v11487_v56  ;;  %v5577_v53 = vsel %vm4288_vm5, %v5561_v43, %v11488_v28  ;;  %6656 = vmatmul.mubr.f32.gmra.mxu1 %v5575_v15 }
 0x69a   : > { %v11778_v11 = vunpack.i.h.bf16 %v15610_v51  ;;  %v11777_v42 = vunpack.i.l.bf16 %v15610_v51  ;;  %6546 = vmatmul.mubr.f32.gmra.mxu0 %v4941_v24  ;;  %v5263_v26 = vsel %vm4288_vm5, %v5247_v9, %v11727_v0  ;;  %v4926_v4 = vsel %vm66_vm1, %v4910_v16, %v11723_v18  ;;  %6660 = vmatprep.mubr.f32.mxu1 %v5896_v45  ;;  %v18386_v18 = vld [vmem:[#allocation41_spill] sm:$0xff]  ;;  %v18389_v0 = vld [vmem:[#allocation42_spill] sm:$0xff] }
 0x69b   : > { %v11728_v63 = vunpack.i.h.bf16 %v15538_v31  ;;  %v4911_v56 = vsel %vm163_vm0, %v4655_v33, %v11673_v22  ;;  %v5232_v50 = vsel %vm163_vm0, %v4975_v21, %v11672_v20  ;;  %v11783_v28 = vunpack.i.h.bf16 %v15727_v25  ;;  %6550 = vmatprep.mubr.f32.mxu0 %v5263_v26  ;;  %v15890_v2 = vpop.permute.xlu1 %11855  ;;  %v18388_v20 = vld [vmem:[#allocation67_spill] sm:$0xff] }
 0x69c   : > { %v4927_v60 = vsel %vm66_vm1, %v4911_v56, %v11773_v52  ;;  %v5248_v51 = vsel %vm66_vm1, %v5232_v50, %v11772_v44  ;;  %v5233_v15 = vsel %vm163_vm0, %v4976_v27, %v11782_v13  ;;  %v5898_v31 = vsel %vm4288_vm5, %v15310_v62, %v11502_v1  ;;  %v18385_v1 = vld [vmem:[#allocation44_spill] sm:$0xff] }
 0x69d   : > { %v11792_v23 = vunpack.i.l.bf16 %v15627_v61  ;;  %v11738_v49 = vunpack.i.h.bf16 %v15645_v59  ;;  %v11737_v25 = vunpack.i.l.bf16 %v15645_v59  ;;  %v15899_v45 = vpop.permute.xlu0 %11880  ;;  %v4942_v8 = vsel %vm4288_vm5, %v4926_v4, %v11728_v63  ;;  %6661 = vmatmul.mubr.f32.gmra.mxu1 %v5576_v47  ;;  %v5293_v4 = vld [vmem:[#allocation3 + $0x25f] sm:$0xff] }
 0x69e   : > { %6551 = vmatmul.mubr.f32.gmra.mxu0 %v4942_v8  ;;  %v5264_v46 = vsel %vm4288_vm5, %v5248_v51, %v11777_v42  ;;  %v4943_v55 = vsel %vm4288_vm5, %v4927_v60, %v11778_v11  ;;  %v5578_v62 = vsel %vm4288_vm5, %v15307_v19, %v11503_v3  ;;  %v11803_v54 = vunpack.i.h.bf16 %v18385_v1  ;;  %6665 = vmatprep.mubr.f32.mxu1 %v5897_v38  ;;  %v12014_v19 = vld [vmem:[#allocation3 + $0x2be] sm:$0xff] }
 0x69f   : > { %v11802_v59 = vunpack.i.l.bf16 %v18385_v1  ;;  %v4912_v6 = vsel %vm163_vm0, %v4656_v5, %v11783_v28  ;;  %6555 = vmatprep.mubr.f32.mxu0 %v5264_v46  ;;  %v5249_v58 = vsel %vm66_vm1, %v5233_v15, %v11792_v23  ;;  %v11793_v17 = vunpack.i.h.bf16 %v15627_v61  ;;  %v15916_v22 = vpop.permute.xlu1 %11865 }
 0x6a0   : > { %v11797_v34 = vunpack.i.l.bf16 %v18386_v18  ;;  %v11808_v43 = vunpack.i.h.bf16 %v18387_v39  ;;  %v11807_v48 = vunpack.i.l.bf16 %v18387_v39  ;;  %v4913_v3 = vsel %vm163_vm0, %v12014_v19, %v11738_v49  ;;  %v9760_v61 = vpop.f32.mrf.mxu1 }
 0x6a1   : > { %v5234_v16 = vsel %vm163_vm0, %v18388_v20, %v11737_v25  ;;  %v11798_v9 = vunpack.i.h.bf16 %v18386_v18  ;;  %v11813_v52 = vunpack.i.h.bf16 %v18389_v0  ;;  %v15923_v44 = vpop.permute.xlu0 %11890  ;;  %v11812_v13 = vunpack.i.l.bf16 %v18389_v0  ;;  %6666 = vmatmul.mubr.f32.gmra.mxu1 %v5577_v53  ;;  %v5613_v25 = vld [vmem:[#allocation3 + $0x263] sm:$0xff]  ;;  %v5294_v20 = vld [vmem:[#allocation3 + $0x277] sm:$0xff] }
 0x6a2   : > { %v11823_v24 = vunpack.i.h.bf16 %v15732_v14  ;;  %6556 = vmatmul.mubr.f32.gmra.mxu0 %v4943_v55  ;;  %v5265_v47 = vsel %vm4288_vm5, %v5249_v58, %v11797_v34  ;;  %v4928_v38 = vsel %vm66_vm1, %v4912_v6, %v11793_v17  ;;  %v4929_v33 = vsel %vm66_vm1, %v4913_v3, %v11803_v54  ;;  %v9761_v26 = vpop.f32.mrf.mxu1  ;;  %6670 = vmatprep.mubr.f32.mxu1 %v5898_v31  ;;  %v12016_v6 = vld [vmem:[#allocation3 + $0xf8] sm:$0xff]  ;;  %v12017_v0 = vld [vmem:[#allocation3 + $0x140] sm:$0xff] }
 0x6a3   : > { %v5250_v21 = vsel %vm66_vm1, %v5234_v16, %v11802_v59  ;;  %v11822_v11 = vunpack.i.l.bf16 %v15732_v14  ;;  %v11788_v42 = vunpack.i.h.bf16 %v15755_v57  ;;  %6560 = vmatprep.mubr.f32.mxu0 %v5265_v47  ;;  %v11787_v63 = vunpack.i.l.bf16 %v15755_v57  ;;  %v15936_v53 = vpop.permute.xlu1 %11875  ;;  %v12015_v57 = vld [vmem:[#allocation3 + $0x110] sm:$0xff]  ;;  %v18393_v47 = vld [vmem:[#allocation66_spill] sm:$0xff] }
 0x6a4   : > { %v15934_v56 = vadd.f32 %v9761_v26, %v9760_v61  ;;  %v5266_v50 = vsel %vm4288_vm5, %v5250_v21, %v11807_v48  ;;  %v4945_v27 = vsel %vm4288_vm5, %v4929_v33, %v11808_v43  ;;  %v5549_v28 = vsel %vm163_vm0, %v5293_v4, %v11813_v52  ;;  %v9763_v15 = vpop.f32.mrf.mxu1  ;;  %v18390_v59 = vld [vmem:[#allocation68_spill] sm:$0xff]  ;;  %v5614_v4 = vld [vmem:[#allocation3 + $0x27b] sm:$0xff] }
 0x6a5   : > { %v11833_v14 = vunpack.i.h.bf16 %v15768_v12  ;;  %v11832_v60 = vunpack.i.l.bf16 %v15768_v12  ;;  %v15943_v51 = vpop.permute.xlu0 %11900  ;;  %v4944_v31 = vsel %vm4288_vm5, %v4928_v38, %v11798_v9  ;;  %v6102_v23 = vsel %vm163_vm0, %v12015_v57, %v11812_v13  ;;  %6671 = vmatmul.mubr.f32.gmra.mxu1 %v5578_v62  ;;  %v18391_v9 = vld [vmem:[#allocation69_spill] sm:$0xff] }
 0x6a6   : > { %v5565_v49 = vsel %vm66_vm1, %v5549_v28, %v11823_v24  ;;  %v11818_v8 = vunpack.i.h.bf16 %v15789_v10  ;;  %v11817_v5 = vunpack.i.l.bf16 %v15789_v10  ;;  %6561 = vmatmul.mubr.f32.gmra.mxu0 %v4944_v31  ;;  %v6118_v46 = vsel %vm66_vm1, %v6102_v23, %v11822_v11  ;;  %v9764_v54 = vpop.f32.mrf.mxu1  ;;  %6675 = vmatprep.mubr.f32.mxu1 %v18390_v59  ;;  %v18392_v24 = vld [vmem:[#allocation65_spill] sm:$0xff]  ;;  %v18395_v31 = vld [vmem:[#allocation64_spill] sm:$0xff] }
 0x6a7   : > { %v5869_v12 = vsel %vm163_vm0, %v5613_v25, %v11788_v42  ;;  %v11843_v55 = vunpack.i.h.bf16 %v15799_v40  ;;  %v11842_v1 = vunpack.i.l.bf16 %v15799_v40  ;;  %6565 = vmatprep.mubr.f32.mxu0 %v5266_v50  ;;  %v6101_v58 = vsel %vm163_vm0, %v12016_v6, %v11787_v63  ;;  %v15960_v18 = vpop.permute.xlu1 %11885 }
 0x6a8   : > { %v11828_v17 = vunpack.i.h.bf16 %v15818_v37  ;;  %v11827_v10 = vunpack.i.l.bf16 %v15818_v37  ;;  %v15958_v62 = vadd.f32 %v9764_v54, %v9763_v15  ;;  %v11853_v34 = vunpack.i.h.bf16 %v15821_v29  ;;  %v18394_v15 = vld [vmem:[#allocation63_spill] sm:$0xff] }
 0x6a9   : > { %v11852_v39 = vunpack.i.l.bf16 %v15821_v29  ;;  %v15964_v40 = vpop.permute.xlu0 %11910  ;;  %v5581_v43 = vsel %vm4288_vm5, %v5565_v49, %v11833_v14  ;;  %v6134_v48 = vsel %vm4288_vm5, %v6118_v46, %v11832_v60  ;;  %v5885_v19 = vsel %vm66_vm1, %v5869_v12, %v11818_v8  ;;  %6676 = vmatmul.mubr.f32.gmra.mxu1 %v18391_v9 }
 0x6aa   : > { %v6117_v3 = vsel %vm66_vm1, %v6101_v58, %v11817_v5  ;;  %v11838_v37 = vunpack.i.h.bf16 %v15841_v30  ;;  %v11837_v16 = vunpack.i.l.bf16 %v15841_v30  ;;  %6566 = vmatmul.mubr.f32.gmra.mxu0 %v4945_v27  ;;  %v5550_v29 = vsel %vm163_vm0, %v5294_v20, %v11843_v55  ;;  %6680 = vmatprep.mubr.f32.mxu1 %v18392_v24  ;;  %v5295_v5 = vld [vmem:[#allocation3 + $0x28f] sm:$0xff] }
 0x6ab   : > { %v6104_v52 = vsel %vm163_vm0, %v12017_v0, %v11842_v1  ;;  %v11863_v61 = vunpack.i.h.bf16 %v15849_v36  ;;  %v11862_v13 = vunpack.i.l.bf16 %v15849_v36  ;;  %10397 = vmatprep.mubr.f32.mxu0 %v18393_v47  ;;  %v11848_v38 = vunpack.i.h.bf16 %v15865_v32  ;;  %v15981_v33 = vpop.permute.xlu1 %11895  ;;  %v12019_v1 = vld [vmem:[#allocation3 + $0x170] sm:$0xff] }
 0x6ac   : > { %v11847_v30 = vunpack.i.l.bf16 %v15865_v32  ;;  %v5901_v21 = vsel %vm4288_vm5, %v5885_v19, %v11828_v17  ;;  %v6133_v11 = vsel %vm4288_vm5, %v6117_v3, %v11827_v10  ;;  %v5566_v42 = vsel %vm66_vm1, %v5550_v29, %v11853_v34  ;;  %v12018_v32 = vld [vmem:[#allocation3 + $0x128] sm:$0xff]  ;;  %v5615_v19 = vld [vmem:[#allocation3 + $0x293] sm:$0xff] }
 0x6ad   : > { %v6120_v26 = vsel %vm66_vm1, %v6104_v52, %v11852_v39  ;;  %v11873_v36 = vunpack.i.h.bf16 %v15867_v35  ;;  %v11872_v63 = vunpack.i.l.bf16 %v15867_v35  ;;  %v15989_v50 = vpop.permute.xlu0 %11920  ;;  %v5870_v27 = vsel %vm163_vm0, %v5614_v4, %v11838_v37  ;;  %6681 = vmatmul.mubr.f32.gmra.mxu1 %v18394_v15  ;;  %v5296_v15 = vld [vmem:[#allocation3 + $0x2a7] sm:$0xff] }
 0x6ae   : > { %v6103_v28 = vsel %vm163_vm0, %v12018_v32, %v11837_v16  ;;  %v11858_v14 = vunpack.i.h.bf16 %v15890_v2  ;;  %v11857_v60 = vunpack.i.l.bf16 %v15890_v2  ;;  %10398 = vmatmul.mubr.f32.vlgmr.msra.gmra.mxu0 %v18395_v31  ;;  %v11883_v57 = vunpack.i.h.bf16 %v15899_v45  ;;  %6685 = vmatprep.mubr.f32.mxu1 %v5901_v21 }
 0x6af   : > { %v11882_v23 = vunpack.i.l.bf16 %v15899_v45  ;;  %10400 = vmatprep.mubr.f32.mxu0 %v6133_v11  ;;  %v5582_v35 = vsel %vm4288_vm5, %v5566_v42, %v11863_v61  ;;  %v6136_v49 = vsel %vm4288_vm5, %v6120_v26, %v11862_v13  ;;  %v5886_v25 = vsel %vm66_vm1, %v5870_v27, %v11848_v38  ;;  %v11906_v12 = vpop.permute.xlu1 %11905 }
 0x6b0   : > { %v6119_v8 = vsel %vm66_vm1, %v6103_v28, %v11847_v30  ;;  %v11868_v2 = vunpack.i.h.bf16 %v15916_v22  ;;  %v11867_v46 = vunpack.i.l.bf16 %v15916_v22  ;;  %v5551_v55 = vsel %vm163_vm0, %v5295_v5, %v11873_v36  ;;  %v12021_v36 = vld [vmem:[#allocation3 + $0x248] sm:$0xff] }
 0x6b1   : > { %v6106_v45 = vsel %vm163_vm0, %v12019_v1, %v11872_v63  ;;  %v11878_v54 = vunpack.i.h.bf16 %v15936_v53  ;;  %v11877_v59 = vunpack.i.l.bf16 %v15936_v53  ;;  %v16009_v6 = vpop.permute.xlu0 %11930  ;;  %v11888_v58 = vunpack.i.h.bf16 %v15960_v18  ;;  %6686 = vmatmul.mubr.f32.gmra.mxu1 %v5581_v43 }
 0x6b2   : > { %v11887_v17 = vunpack.i.l.bf16 %v15960_v18  ;;  %10401 = vmatmul.mubr.f32.gmra.mxu0 %v6134_v48  ;;  %v5902_v22 = vsel %vm4288_vm5, %v5886_v25, %v11858_v14  ;;  %v6135_v10 = vsel %vm4288_vm5, %v6119_v8, %v11857_v60  ;;  %v5567_v34 = vsel %vm66_vm1, %v5551_v55, %v11883_v57  ;;  %v12020_v18 = vld [vmem:[#allocation3 + $0x158] sm:$0xff] }
 0x6b3   : > { %v6122_v39 = vsel %vm66_vm1, %v6106_v45, %v11882_v23  ;;  %v11893_v3 = vunpack.i.h.bf16 %v15923_v44  ;;  %v11892_v53 = vunpack.i.l.bf16 %v15923_v44  ;;  %6690 = vmatprep.mubr.f32.mxu1 %v5902_v22  ;;  %10403 = vmatprep.mubr.f32.mxu0 %v6135_v10  ;;  %v5871_v20 = vsel %vm163_vm0, %v5615_v19, %v11868_v2  ;;  %v11916_v16 = vpop.permute.xlu1 %11915  ;;  %v12022_v23 = vld [vmem:[#allocation3 + $0x260] sm:$0xff] }
 0x6b4   : > { %v6105_v43 = vsel %vm163_vm0, %v12020_v18, %v11867_v46  ;;  %v11898_v48 = vunpack.i.h.bf16 %v15981_v33  ;;  %v11897_v37 = vunpack.i.l.bf16 %v15981_v33  ;;  %v5887_v9 = vsel %vm66_vm1, %v5871_v20, %v11878_v54  ;;  %v5616_v33 = vld [vmem:[#allocation3 + $0x2ab] sm:$0xff]  ;;  %v5617_v10 = vld [vmem:[#allocation3 + $0x2c3] sm:$0xff]  ;;  %v12023_v18 = vld [vmem:[#allocation3 + $0x278] sm:$0xff] }
 0x6b5   : > { %v6121_v29 = vsel %vm66_vm1, %v6105_v43, %v11877_v59  ;;  %v11908_v0 = vunpack.i.h.bf16 %v11906_v12  ;;  %v11907_v52 = vunpack.i.l.bf16 %v11906_v12  ;;  %v16025_v61 = vpop.permute.xlu0 %11940  ;;  %v11918_v44 = vunpack.i.h.bf16 %v11916_v16  ;;  %6691 = vmatmul.mubr.f32.gmra.mxu1 %v5582_v35 }
 0x6b6   : > { %v11917_v13 = vunpack.i.l.bf16 %v11916_v16  ;;  %10404 = vmatmul.mubr.f32.gmra.mxu0 %v6136_v49  ;;  %v5903_v24 = vsel %vm4288_vm5, %v5887_v9, %v11888_v58  ;;  %v6137_v47 = vsel %vm4288_vm5, %v6121_v29, %v11887_v17  ;;  %v11903_v38 = vunpack.i.h.bf16 %v15943_v51  ;;  %v12024_v16 = vld [vmem:[#allocation3 + $0x290] sm:$0xff] }
 0x6b7   : > { %v11902_v30 = vunpack.i.l.bf16 %v15943_v51  ;;  %6695 = vmatprep.mubr.f32.mxu1 %v5903_v24  ;;  %10406 = vmatprep.mubr.f32.mxu0 %v6137_v47  ;;  %v5583_v21 = vsel %vm4288_vm5, %v5567_v34, %v11893_v3  ;;  %v6138_v11 = vsel %vm4288_vm5, %v6122_v39, %v11892_v53  ;;  %v11913_v42 = vunpack.i.h.bf16 %v15964_v40  ;;  %v5297_v53 = vld [vmem:[#allocation3 + $0x2bf] sm:$0xff] }
 0x6b8   : > { %v11912_v26 = vunpack.i.l.bf16 %v15964_v40  ;;  %v5872_v4 = vsel %vm163_vm0, %v5616_v33, %v11898_v48  ;;  %v6107_v63 = vsel %vm163_vm0, %v12021_v36, %v11897_v37  ;;  %v11923_v27 = vunpack.i.h.bf16 %v15989_v50  ;;  %v11926_v14 = vpop.permute.xlu1 %11925 }
 0x6b9   : > { %v11922_v51 = vunpack.i.l.bf16 %v15989_v50  ;;  %v5888_v32 = vsel %vm66_vm1, %v5872_v4, %v11908_v0  ;;  %v6123_v28 = vsel %vm66_vm1, %v6107_v63, %v11907_v52  ;;  %v11951_v60 = vpop.permute.xlu0 %11950  ;;  %6696 = vmatmul.mubr.f32.gmra.mxu1 %v5583_v21  ;;  %v5552_v57 = vsel %vm163_vm0, %v5296_v15, %v11903_v38  ;;  %v5298_v15 = vld [vmem:[#allocation3 + $0x2d7] sm:$0xff] }
 0x6ba   : > { %10407 = vmatmul.mubr.f32.gmra.mxu0 %v6138_v11  ;;  %v5904_v40 = vsel %vm4288_vm5, %v5888_v32, %v11918_v44  ;;  %v6139_v31 = vsel %vm4288_vm5, %v6123_v28, %v11917_v13  ;;  %v6108_v35 = vsel %vm163_vm0, %v12022_v23, %v11902_v30  ;;  %v5568_v50 = vsel %vm66_vm1, %v5552_v57, %v11913_v42  ;;  %v5618_v32 = vld [vmem:[#allocation3 + $0x2db] sm:$0xff] }
 0x6bb   : > { %6700 = vmatprep.mubr.f32.mxu1 %v5904_v40  ;;  %10409 = vmatprep.mubr.f32.mxu0 %v6139_v31  ;;  %v6124_v49 = vsel %vm66_vm1, %v6108_v35, %v11912_v26  ;;  %v5584_v8 = vsel %vm4288_vm5, %v5568_v50, %v11923_v27  ;;  %v11928_v2 = vunpack.i.h.bf16 %v11926_v14  ;;  %v11927_v46 = vunpack.i.l.bf16 %v11926_v14  ;;  %v12025_v31 = vld [vmem:[#allocation3 + $0x2a8] sm:$0xff] }
 0x6bc   : > { %v11936_v25 = vpop.permute.xlu1 %11935  ;;  %v6140_v5 = vsel %vm4288_vm5, %v6124_v49, %v11922_v51  ;;  %v9766_v55 = vpop.f32.mrf.mxu1  ;;  %v11933_v1 = vunpack.i.h.bf16 %v16009_v6  ;;  %v11932_v45 = vunpack.i.l.bf16 %v16009_v6  ;;  %v11943_v58 = vunpack.i.h.bf16 %v16025_v61  ;;  %v12026_v49 = vld [vmem:[#allocation3 + $0x2c0] sm:$0xff] }
 0x6bd   : > { %v16049_v12 = vpop.permute.xlu0 %11960  ;;  %6701 = vmatmul.mubr.f32.gmra.mxu1 %v5584_v8  ;;  %v11938_v54 = vunpack.i.h.bf16 %v11936_v25  ;;  %v11937_v59 = vunpack.i.l.bf16 %v11936_v25  ;;  %v11942_v17 = vunpack.i.l.bf16 %v16025_v61  ;;  %v11953_v34 = vunpack.i.h.bf16 %v11951_v60 }
 0x6be   : > { %10410 = vmatmul.mubr.f32.gmra.mxu0 %v6140_v5  ;;  %v9767_v22 = vpop.f32.mrf.mxu1  ;;  %v11952_v39 = vunpack.i.l.bf16 %v11951_v60  ;;  %v5873_v20 = vsel %vm163_vm0, %v5617_v10, %v11928_v2  ;;  %v6109_v43 = vsel %vm163_vm0, %v12023_v18, %v11927_v46  ;;  %v5553_v37 = vsel %vm163_vm0, %v5297_v53, %v11933_v1 }
 0x6bf   : > { %v16055_v19 = vadd.f32 %v9767_v22, %v9766_v55  ;;  %v6110_v9 = vsel %vm163_vm0, %v12024_v16, %v11932_v45  ;;  %v5889_v29 = vsel %vm66_vm1, %v5873_v20, %v11938_v54  ;;  %v6125_v0 = vsel %vm66_vm1, %v6109_v43, %v11937_v59  ;;  %v12027_v22 = vld [vmem:[#allocation3 + $0x2f0] sm:$0xff] }
 0x6c0   : > { %v11946_v3 = vpop.permute.xlu1 %11945  ;;  %v5569_v52 = vsel %vm66_vm1, %v5553_v37, %v11943_v58  ;;  %v6126_v61 = vsel %vm66_vm1, %v6110_v9, %v11942_v17  ;;  %v11963_v26 = vunpack.i.h.bf16 %v16049_v12  ;;  %v11962_v4 = vunpack.i.l.bf16 %v16049_v12  ;;  %v6882_v9 = vld [vmem:[%s6878_s24 + $0x18] sm:$0xff] }
 0x6c1   : > { %v11948_v6 = vunpack.i.h.bf16 %v11946_v3  ;;  %v11947_v48 = vunpack.i.l.bf16 %v11946_v3  ;;  %v11971_v44 = vpop.permute.xlu0 %11970  ;;  %v5585_v38 = vsel %vm4288_vm5, %v5569_v52, %v11953_v34  ;;  %v6142_v30 = vsel %vm4288_vm5, %v6126_v61, %v11952_v39  ;;  %v12028_v34 = vld [vmem:[#allocation3 + $0x2d8] sm:$0xff]  ;;  %10421 = vmatprep.subr.mxu0 %v6882_v9  ;;  %v6879_v52 = vld [vmem:[%s6878_s24] sm:$0xff]  ;;  %v16093_v61 = vpop.f32.mrf.mxu1 }
 0x6c2   : > { %v11973_v27 = vunpack.i.h.bf16 %v11971_v44  ;;  %v11972_v51 = vunpack.i.l.bf16 %v11971_v44  ;;  %v5554_v50 = vsel %vm163_vm0, %v5298_v15, %v11963_v26  ;;  %v6112_v25 = vsel %vm163_vm0, %v12026_v49, %v11962_v4  ;;  %10422 = vmatpush3.msra.mxu0 %v6882_v9 }
 0x6c3   : > { %v5905_v13 = vsel %vm4288_vm5, %v5889_v29, %v11948_v6  ;;  %v6141_v24 = vsel %vm4288_vm5, %v6125_v0, %v11947_v48  ;;  %v6881_v29 = vld [vmem:[%s6878_s24 + $0x10] sm:$0xff]  ;;  %v6880_v0 = vld [vmem:[%s6878_s24 + $0x8] sm:$0xff]  ;;  %v16095_v44 = vpop.f32.mrf.mxu1 }
 0x6c4   : > { %v11956_v47 = vpop.permute.xlu1 %11955  ;;  %6705 = vmatprep.mubr.f32.mxu1 %v5905_v13  ;;  %10412 = vmatprep.mubr.f32.mxu0 %v6141_v24  ;;  %v5570_v2 = vsel %vm66_vm1, %v5554_v50, %v11973_v27  ;;  %v6128_v46 = vsel %vm66_vm1, %v6112_v25, %v11972_v51 }
 0x6c5   : > { %6706 = vmatmul.mubr.f32.gmra.mxu1 %v5585_v38  ;;  %10413 = vmatmul.mubr.f32.gmra.mxu0 %v6142_v30  ;;  %v11958_v21 = vunpack.i.h.bf16 %v11956_v47  ;;  %v11957_v11 = vunpack.i.l.bf16 %v11956_v47  ;;  %v11981_v42 = vpop.permute.xlu0 %11980  ;;  %v16097_v13 = vpop.f32.mrf.mxu1 }
 0x6c6   : > { %v11983_v28 = vunpack.i.h.bf16 %v11981_v42  ;;  %v11982_v14 = vunpack.i.l.bf16 %v11981_v42  ;;  %10423 = vmatprep.subr.mxu0 %v6881_v29 }
 0x6c7   : > { %v5874_v40 = vsel %vm163_vm0, %v5618_v32, %v11958_v21  ;;  %v6111_v57 = vsel %vm163_vm0, %v12025_v31, %v11957_v11  ;;  %10424 = vmatpush3.msra.mxu0 %v6881_v29  ;;  %v16099_v24 = vpop.f32.mrf.mxu1 }
 0x6c8   : > { %v11966_v33 = vpop.permute.xlu1 %11965  ;;  %v5586_v45 = vsel %vm4288_vm5, %v5570_v2, %v11983_v28  ;;  %v6144_v54 = vsel %vm4288_vm5, %v6128_v46, %v11982_v14  ;;  %10425 = vmatprep.subr.mxu0 %v6880_v0 }
 0x6c9   : > { %v11968_v36 = vunpack.i.h.bf16 %v11966_v33  ;;  %v11967_v63 = vunpack.i.l.bf16 %v11966_v33  ;;  %v11991_v59 = vpop.permute.xlu0 %11990  ;;  %10426 = vmatpush3.msra.mxu0 %v6880_v0  ;;  %v16107_v33 = vpop.f32.mrf.mxu0 }
 0x6ca   : > { %v11993_v3 = vunpack.i.h.bf16 %v11991_v59  ;;  %v11992_v53 = vunpack.i.l.bf16 %v11991_v59  ;;  %10427 = vmatprep.subr.mxu0 %v6879_v52 }
 0x6cb   : > { %v5890_v8 = vsel %vm66_vm1, %v5874_v40, %v11968_v36  ;;  %v6127_v5 = vsel %vm66_vm1, %v6111_v57, %v11967_v63  ;;  %10428 = vmatpush3.msra.mxu0 %v6879_v52  ;;  %v9826_v42 = vpop.f32.mrf.mxu0 }
 0x6cc   : > { %v11976_v60 = vpop.permute.xlu1 %11975 }
 0x6cd   : > { %v11978_v23 = vunpack.i.h.bf16 %v11976_v60  ;;  %v11977_v35 = vunpack.i.l.bf16 %v11976_v60 }
 0x6cf   : > { %v5906_v12 = vsel %vm4288_vm5, %v5890_v8, %v11978_v23  ;;  %v6143_v55 = vsel %vm4288_vm5, %v6127_v5, %v11977_v35 }
 0x6d0   : > { %v11986_v1 = vpop.permute.xlu1 %11985  ;;  %6710 = vmatprep.mubr.f32.mxu1 %v5906_v12  ;;  %10415 = vmatprep.mubr.f32.mxu0 %v6143_v55 }
 0x6d1   : > { %v11988_v58 = vunpack.i.h.bf16 %v11986_v1  ;;  %v11987_v17 = vunpack.i.l.bf16 %v11986_v1  ;;  %6711 = vmatmul.mubr.f32.gmra.mxu1 %v5586_v45  ;;  %10416 = vmatmul.mubr.f32.gmra.mxu0 %v6144_v54 }
 0x6d3   : > { %v6114_v10 = vsel %vm163_vm0, %v12027_v22, %v11988_v58  ;;  %v6113_v39 = vsel %vm163_vm0, %v12028_v34, %v11987_v17 }
 0x6d4   : > { %v11996_v20 = vpop.permute.xlu1 %11995  ;;  %v6129_v6 = vsel %vm66_vm1, %v6113_v39, %v11992_v53  ;;  %v6130_v48 = vsel %vm66_vm1, %v6114_v10, %v11993_v3 }
 0x6d5   : > { %v11998_v18 = vunpack.i.h.bf16 %v11996_v20  ;;  %v11997_v43 = vunpack.i.l.bf16 %v11996_v20 }
 0x6d7   : > { %v6145_v37 = vsel %vm4288_vm5, %v6129_v6, %v11997_v43  ;;  %v6146_v16 = vsel %vm4288_vm5, %v6130_v48, %v11998_v18 }
 0x6d8   : > { %10418 = vmatprep.mubr.f32.mxu0 %v6145_v37 }
 0x6d9   : > { %10419 = vmatmul.mubr.f32.gmra.mxu0 %v6146_v16 }
 0x6fc   : > { %v16101_v47 = vpop.f32.mrf.mxu1 }
 0x6fd   : > { %v9828_v4 = vpop.f32.mrf.mxu0 }
 0x6fe   : > { %v16103_v38 = vpop.f32.mrf.mxu1 }
 0x6ff   : > { %v9829_v63 = vpop.f32.mrf.mxu0 }
 0x705   : > { %v16105_v30 = vpop.f32.mrf.mxu1  ;;  %v16113_v27 = vpop.f32.mrf.mxu0 }
 0x707   : > { %v16109_v21 = vpop.f32.mrf.mxu1  ;;  %v16117_v14 = vpop.f32.mrf.mxu0 }
 0x724   : > { %v9781_v11 = vpop.f32.mrf.mxu1  ;;  %v9834_v60 = vpop.f32.mrf.mxu0 }
 0x726   : > { %v9782_v26 = vpop.f32.mrf.mxu1  ;;  %v9835_v15 = vpop.f32.mrf.mxu0 }
 0x727   : > { %v16111_v36 = vadd.f32 %v9782_v26, %v9781_v11 }
 0x729   : > { %18396 = vst [vmem:[#allocation49_spill] sm:$0xff] %v16111_v36 }
 0x72d   : > { %v9784_v51 = vpop.f32.mrf.mxu1  ;;  %v16119_v40 = vpop.f32.mrf.mxu0 }
 0x72f   : > { %v9785_v32 = vpop.f32.mrf.mxu1  ;;  %v16121_v57 = vpop.f32.mrf.mxu0 }
 0x730   : > { %v16115_v28 = vadd.f32 %v9785_v32, %v9784_v51  ;;  %v16171_v32 = vld [vmem:[%s3980_s25] ss:$0 sm:$0xff] }
 0x732   : > { %18397 = vst [vmem:[#allocation47_spill] sm:$0xff] %v16115_v28 }
 0x73c   : > { %v9787_v31 = vpop.f32.mrf.mxu1  ;;  %v16123_v35 = vpop.f32.mrf.mxu0 }
 0x73e   : > { %v9788_v23 = vpop.f32.mrf.mxu1  ;;  %v16127_v49 = vpop.f32.mrf.mxu0 }
 0x73f   : > { %v16125_v50 = vadd.f32 %v9788_v23, %v9787_v31  ;;  %v18408_v31 = vld [vmem:[#allocation43_spill] sm:$0xff]  ;;  %v18409_v23 = vld [vmem:[#allocation45_spill] sm:$0xff] }
 0x741   : > { %18398 = vst [vmem:[#allocation48_spill] sm:$0xff] %v16125_v50 }
 0x745   : > { %v9790_v25 = vpop.f32.mrf.mxu1  ;;  %v16129_v8 = vpop.f32.mrf.mxu0 }
 0x747   : > { %v9791_v5 = vpop.f32.mrf.mxu1  ;;  %v16131_v2 = vpop.f32.mrf.mxu0 }
 0x748   : > { %v16133_v46 = vadd.f32 %v9791_v5, %v9790_v25  ;;  %v9750_v25 = vadd.f32 %v18409_v23, %v18408_v31 }
 0x749   : > { %v16135_v12 = vpop.f32.mrf.mxu0  ;;  %v9905_v55 = vpop.f32.mrf.mxu1 }
 0x74a   : > { %18399 = vst [vmem:[#allocation56_spill] sm:$0xff] %v16133_v46  ;;  %v9830_v46 = vadd.f32 %v9829_v63, %v9828_v4 }
 0x74b   : > { %v16137_v1 = vpop.f32.mrf.mxu0  ;;  %v9906_v45 = vpop.f32.mrf.mxu1 }
 0x74c   : > { %v9907_v31 = vadd.f32 %v9906_v45, %v9905_v55  ;;  %v9842_v45 = vadd.f32 %v16127_v49, %v16123_v35 }
 0x74d   : > { %v16139_v54 = vpop.f32.mrf.mxu0  ;;  %v9908_v59 = vpop.f32.mrf.mxu1 }
 0x74f   : > { %v16141_v58 = vpop.f32.mrf.mxu0  ;;  %v9909_v17 = vpop.f32.mrf.mxu1 }
 0x751   : > { %v16143_v22 = vpop.f32.mrf.mxu0  ;;  %v9911_v10 = vpop.f32.mrf.mxu1 }
 0x753   : > { %v16145_v34 = vpop.f32.mrf.mxu0  ;;  %v9912_v39 = vpop.f32.mrf.mxu1 }
 0x755   : > { %v16147_v3 = vpop.f32.mrf.mxu0  ;;  %v9914_v53 = vpop.f32.mrf.mxu1 }
 0x756   : > { %18400 = vst [vmem:[#allocation50_spill] sm:$0xff] %v16147_v3 }
 0x757   : > { %v16149_v20 = vpop.f32.mrf.mxu0  ;;  %v9915_v18 = vpop.f32.mrf.mxu1 }
 0x758   : > { %18401 = vst [vmem:[#allocation52_spill] sm:$0xff] %v16149_v20  ;;  %v9910_v20 = vadd.f32 %v9909_v17, %v9908_v59 }
 0x759   : > { %v9917_v6 = vpop.f32.mrf.mxu1 }
 0x75a   : > { %v16151_v43 = vpop.f32.mrf.mxu0 }
 0x75b   : > { %18402 = vst [vmem:[#allocation54_spill] sm:$0xff] %v16151_v43  ;;  %v9918_v37 = vpop.f32.mrf.mxu1 }
 0x75c   : > { %v16153_v48 = vpop.f32.mrf.mxu0  ;;  %v9919_v35 = vadd.f32 %v9918_v37, %v9917_v6  ;;  %v6383_v6 = vadd.f32 %v16055_v19, %v16171_v32  ;;  %v9854_v19 = vadd.f32 %v16145_v34, %v16143_v22 }
 0x75d   : > { %18403 = vst [vmem:[#allocation55_spill] sm:$0xff] %v16153_v48  ;;  %v9920_v9 = vpop.f32.mrf.mxu1 }
 0x75e   : > { %v16155_v16 = vpop.f32.mrf.mxu0 }
 0x75f   : > { %18404 = vst [vmem:[#allocation57_spill] sm:$0xff] %v16155_v16  ;;  %v9921_v0 = vpop.f32.mrf.mxu1 }
 0x760   : > { %v16157_v29 = vpop.f32.mrf.mxu0 }
 0x761   : > { %18405 = vst [vmem:[#allocation51_spill] sm:$0xff] %v16157_v29  ;;  %v16161_v11 = vpop.f32.mrf.mxu1  ;;  %v18412_v29 = vld [vmem:[#allocation46_spill] sm:$0xff] }
 0x762   : > { %v16159_v52 = vpop.f32.mrf.mxu0  ;;  %v6348_v16 = vadd.f32 %v18412_v29, %v16171_v32  ;;  %v9833_v29 = vadd.f32 %v16117_v14, %v16113_v27 }
 0x763   : > { %18406 = vst [vmem:[#allocation53_spill] sm:$0xff] %v16159_v52  ;;  %v16169_v51 = vpop.f32.mrf.mxu1  ;;  %v9827_v52 = vadd.f32 %v9826_v42, %v16107_v33  ;;  %v6363_v33 = vadd.f32 %v15740_v7, %v16171_v32  ;;  %v9916_v42 = vadd.f32 %v9915_v18, %v9914_v53  ;;  %v9839_v7 = vadd.f32 %v16121_v57, %v16119_v40 }
 0x764   : > { %v16167_v26 = vpop.f32.mrf.mxu0  ;;  %v6373_v53 = vadd.f32 %v15934_v56, %v16171_v32 }
 0x765   : > { %18407 = vst [vmem:[#allocation60_spill] sm:$0xff] %v16167_v26  ;;  %v9926_v50 = vpop.f32.mrf.mxu1  ;;  %v6353_v26 = vadd.f32 %v9750_v25, %v16171_v32  ;;  %v6493_v63 = vadd.f32 %v9827_v52, %v6348_v16 }
 0x766   : > { %v16175_v5 = vpop.f32.mrf.mxu0 }
 0x767   : > { %18410 = vst [vmem:[#allocation58_spill] sm:$0xff] %v16175_v5  ;;  %v9927_v28 = vpop.f32.mrf.mxu1  ;;  %v6498_v23 = vadd.f32 %v9830_v46, %v6353_v26  ;;  %v9836_v5 = vadd.f32 %v9835_v15, %v9834_v60  ;;  %v9913_v46 = vadd.f32 %v9912_v39, %v9911_v10  ;;  %v6638_v60 = vadd.f32 %v9907_v31, %v6493_v63 }
 0x768   : > { %v16177_v36 = vpop.f32.mrf.mxu0  ;;  %v6368_v39 = vadd.f32 %v15847_v41, %v16171_v32  ;;  %v6518_v31 = vadd.f32 %v9842_v45, %v6373_v53 }
 0x769   : > { %18411 = vst [vmem:[#allocation59_spill] sm:$0xff] %v16177_v36  ;;  %v16185_v48 = vpop.f32.mrf.mxu1  ;;  %v6643_v17 = vadd.f32 %v9910_v20, %v6498_v23  ;;  %v18413_v36 = vld [vmem:[#allocation40_spill] sm:$0xff]  ;;  %v6508_v15 = vadd.f32 %v9836_v5, %v6363_v33  ;;  %v9922_v20 = vadd.f32 %v9921_v0, %v9920_v9  ;;  %v9848_v23 = vadd.f32 %v16137_v1, %v16135_v12 }
 0x76a   : > { %v16183_v3 = vpop.f32.mrf.mxu0  ;;  %v6358_v55 = vadd.f32 %v18413_v36, %v16171_v32  ;;  %v6378_v9 = vadd.f32 %v15958_v62, %v16171_v32  ;;  %v6513_v0 = vadd.f32 %v9839_v7, %v6368_v39  ;;  %v9774_v12 = vadd.f32 %v16099_v24, %v16097_v13 }
 0x76b   : > { %v16189_v4 = vpop.f32.mrf.mxu1  ;;  %v6653_v36 = vadd.f32 %v9916_v42, %v6508_v15  ;;  %v9928_v1 = vadd.f32 %v9927_v28, %v9926_v50  ;;  %v6663_v33 = vadd.f32 %v9922_v20, %v6518_v31  ;;  %v9771_v62 = vadd.f32 %v16095_v44, %v16093_v61  ;;  %v18416_v31 = vld [vmem:[#allocation50_spill] sm:$0xff] }
 0x76c   : > { %v16187_v43 = vpop.f32.mrf.mxu0  ;;  %v6503_v27 = vadd.f32 %v9833_v29, %v6358_v55  ;;  %v9845_v29 = vadd.f32 %v16131_v2, %v16129_v8  ;;  %v9925_v8 = vadd.f32 %v16169_v51, %v16161_v11  ;;  %v9851_v50 = vadd.f32 %v16141_v58, %v16139_v54 }
 0x76d   : > { %v9932_v59 = vpop.f32.mrf.mxu1  ;;  %v6393_v61 = vadd.f32 %v9774_v12, %v16171_v32  ;;  %v6388_v22 = vadd.f32 %v9771_v62, %v16171_v32  ;;  %v9931_v34 = vadd.f32 %v16189_v4, %v16185_v48  ;;  %v9777_v48 = vadd.f32 %v16103_v38, %v16101_v47 }
 0x76e   : > { %v10399_v25 = vpop.f32.mrf.mxu0  ;;  %v6648_v5 = vadd.f32 %v9913_v46, %v6503_v27  ;;  %v6523_v28 = vadd.f32 %v9845_v29, %v6378_v9 }
 0x76f   : > { %v6788_v16 = vadd.f32 %v10399_v25, %v6643_v17  ;;  %v9933_v52 = vpop.f32.mrf.mxu1  ;;  %v6658_v17 = vadd.f32 %v9919_v35, %v6513_v0  ;;  %v6528_v25 = vadd.f32 %v9848_v23, %v6383_v6  ;;  %v6533_v27 = vadd.f32 %v9851_v50, %v6388_v22  ;;  %v18417_v23 = vld [vmem:[#allocation52_spill] sm:$0xff] }
 0x770   : > { %v6782_v26 = vpop.f32.mrf.mxu0  ;;  %v9934_v44 = vadd.f32 %v9933_v52, %v9932_v59  ;;  %v6668_v45 = vadd.f32 %v9925_v8, %v6523_v28  ;;  %v9780_v59 = vadd.f32 %v16109_v21, %v16105_v30  ;;  %v6398_v47 = vadd.f32 %v9777_v48, %v16171_v32  ;;  %v18422_v28 = vld [vmem:[#allocation47_spill] sm:$0xff]  ;;  %v18426_v48 = vld [vmem:[#allocation56_spill] sm:$0xff] }
 0x771   : > { %v6783_v14 = vadd.f32 %v6782_v26, %v6638_v60  ;;  %v16203_v18 = vpop.f32.mrf.mxu1  ;;  %v6862_v40 = vmax.f32 %v6788_v16, 0.0  ;;  %v6673_v51 = vadd.f32 %v9928_v1, %v6528_v25  ;;  %v6538_v16 = vadd.f32 %v9854_v19, %v6393_v61  ;;  %v18419_v25 = vld [vmem:[#allocation60_spill] sm:$0xff]  ;;  %v18423_v61 = vld [vmem:[#allocation49_spill] sm:$0xff] }
 0x772   : > { %v10402_v10 = vpop.f32.mrf.mxu0  ;;  %v6678_v20 = vadd.f32 %v9931_v34, %v6533_v27  ;;  %v6403_v21 = vadd.f32 %v9780_v59, %v16171_v32  ;;  %v6413_v50 = vadd.f32 %v18422_v28, %v16171_v32  ;;  %v18425_v59 = vld [vmem:[#allocation59_spill] sm:$0xff] }
 0x773   : > { %v6861_v49 = vmax.f32 %v6783_v14, 0.0  ;;  %v6798_v57 = vadd.f32 %v10402_v10, %v6653_v36  ;;  %v16209_v63 = vpop.f32.mrf.mxu1  ;;  %v6683_v14 = vadd.f32 %v9934_v44, %v6538_v16  ;;  %v18414_v36 = vld [vmem:[#allocation54_spill] sm:$0xff]  ;;  %v18415_v10 = vld [vmem:[#allocation55_spill] sm:$0xff]  ;;  %v6408_v44 = vadd.f32 %v18423_v61, %v16171_v32 }
 0x774   : > { %v6792_v56 = vpop.f32.mrf.mxu0  ;;  %v9860_v39 = vadd.f32 %v18415_v10, %v18414_v36  ;;  %v9937_v38 = vadd.f32 %v16209_v63, %v16203_v18 }
 0x775   : > { %v6793_v41 = vadd.f32 %v6792_v56, %v6648_v5  ;;  %10429 = vmatprep.mubr.msk.f32.mxu0 %vm163_vm0, %v6861_v49  ;;  %v9938_v37 = vpop.f32.mrf.mxu1  ;;  %v6864_v55 = vmax.f32 %v6798_v57, 0.0 }
 0x776   : > { %v10405_v42 = vpop.f32.mrf.mxu0  ;;  %10430 = vmatmul.mubr.msk.f32.vlgmr.msra.gmra.mxu0 %vm163_vm0, %v6862_v40  ;;  %v9857_v40 = vadd.f32 %v18417_v23, %v18416_v31  ;;  %v6548_v0 = vadd.f32 %v9860_v39, %v6403_v21 }
 0x777   : > { %v6863_v2 = vmax.f32 %v6793_v41, 0.0  ;;  %v6808_v13 = vadd.f32 %v10405_v42, %v6663_v33  ;;  %v9939_v11 = vpop.f32.mrf.mxu1 }
 0x778   : > { %v6802_v24 = vpop.f32.mrf.mxu0  ;;  %v9940_v57 = vadd.f32 %v9939_v11, %v9938_v37  ;;  %v6543_v41 = vadd.f32 %v9857_v40, %v6398_v47 }
 0x779   : > { %v6803_v46 = vadd.f32 %v6802_v24, %v6658_v17  ;;  %10432 = vmatprep.mubr.msk.f32.mxu0 %vm163_vm0, %v6863_v2  ;;  %v6866_v54 = vmax.f32 %v6808_v13, 0.0  ;;  %v9941_v52 = vpop.f32.mrf.mxu1  ;;  %v18418_v17 = vld [vmem:[#allocation53_spill] sm:$0xff]  ;;  %v18421_v13 = vld [vmem:[#allocation51_spill] sm:$0xff] }
 0x77a   : > { %v10408_v60 = vpop.f32.mrf.mxu0  ;;  %10433 = vmatmul.mubr.msk.f32.gmra.mxu0 %vm163_vm0, %v6864_v55  ;;  %v6693_v12 = vadd.f32 %v9940_v57, %v6548_v0  ;;  %v6688_v37 = vadd.f32 %v9937_v38, %v6543_v41  ;;  %v9866_v18 = vadd.f32 %v18419_v25, %v18418_v17  ;;  %v18420_v55 = vld [vmem:[#allocation57_spill] sm:$0xff] }
 0x77b   : > { %v6865_v15 = vmax.f32 %v6803_v46, 0.0  ;;  %v6818_v58 = vadd.f32 %v10408_v60, %v6673_v51  ;;  %v9942_v56 = vpop.f32.mrf.mxu1  ;;  %v9863_v24 = vadd.f32 %v18421_v13, %v18420_v55 }
 0x77c   : > { %v6812_v26 = vpop.f32.mrf.mxu0  ;;  %v9943_v11 = vadd.f32 %v9942_v56, %v9941_v52  ;;  %v6558_v51 = vadd.f32 %v9866_v18, %v6413_v50  ;;  %v6423_v52 = vadd.f32 %v18426_v48, %v16171_v32 }
 0x77d   : > { %v6813_v7 = vadd.f32 %v6812_v26, %v6668_v45  ;;  %10435 = vmatprep.mubr.msk.f32.mxu0 %vm163_vm0, %v6865_v15  ;;  %v6868_v35 = vmax.f32 %v6818_v58, 0.0  ;;  %v9944_v6 = vpop.f32.mrf.mxu1  ;;  %v6553_v22 = vadd.f32 %v9863_v24, %v6408_v44 }
 0x77e   : > { %v10411_v53 = vpop.f32.mrf.mxu0  ;;  %10436 = vmatmul.mubr.msk.f32.gmra.mxu0 %vm163_vm0, %v6866_v54  ;;  %v9872_v54 = vadd.f32 %v16187_v43, %v16183_v3 }
 0x77f   : > { %v6867_v4 = vmax.f32 %v6813_v7, 0.0  ;;  %v6828_v49 = vadd.f32 %v10411_v53, %v6683_v14  ;;  %v9945_v8 = vpop.f32.mrf.mxu1  ;;  %v6698_v16 = vadd.f32 %v9943_v11, %v6553_v22  ;;  %v18424_v7 = vld [vmem:[#allocation58_spill] sm:$0xff] }
 0x780   : > { %v6822_v5 = vpop.f32.mrf.mxu0  ;;  %v9946_v46 = vadd.f32 %v9945_v8, %v9944_v6  ;;  %v9869_v14 = vadd.f32 %v18425_v59, %v18424_v7 }
 0x781   : > { %v6823_v30 = vadd.f32 %v6822_v5, %v6678_v20  ;;  %10438 = vmatprep.mubr.msk.f32.mxu0 %vm163_vm0, %v6867_v4  ;;  %v6870_v29 = vmax.f32 %v6828_v49, 0.0  ;;  %v18427_v20 = vld [vmem:[#allocation48_spill] sm:$0xff] }
 0x782   : > { %10439 = vmatmul.mubr.msk.f32.gmra.mxu0 %vm163_vm0, %v6868_v35  ;;  %v6703_v15 = vadd.f32 %v9946_v46, %v6558_v51  ;;  %v6418_v36 = vadd.f32 %v18427_v20, %v16171_v32  ;;  %v6568_v35 = vadd.f32 %v9872_v54, %v6423_v52  ;;  %v12203_v32 = vmov 0.0   ;;  %v18428_v46 = vld [vmem:[#allocation23_spill] sm:$0xff]  ;;  %v18433_v20 = vld [vmem:[#allocation28_spill] sm:$0xff] }
 0x783   : > { %v6869_v9 = vmax.f32 %v6823_v30, 0.0  ;;  %10453 = vmatprep.subr.mxu1 %v12203_v32  ;;  %10488 = vmatprep.subr.mxu0 %v12203_v32 }
 0x784   : > { %v6563_v5 = vadd.f32 %v9869_v14, %v6418_v36  ;;  %10485 = vmatprep.mubr.msk.f32.mxu1 %vm12204_vm6, %v12203_v32  ;;  %v18432_v14 = vld [vmem:[#allocation27_spill] sm:$0xff] }
 0x785   : > { %10441 = vmatprep.mubr.msk.f32.mxu0 %vm163_vm0, %v6869_v9  ;;  %v10414_v1 = vpop.f32.mrf.mxu0  ;;  %v9947_v63 = vpop.f32.mrf.mxu1 }
 0x786   : > { %10442 = vmatmul.mubr.msk.f32.gmra.mxu0 %vm163_vm0, %v6870_v29  ;;  %v6838_v33 = vadd.f32 %v10414_v1, %v6693_v12 }
 0x787   : > { %v6832_v42 = vpop.f32.mrf.mxu0  ;;  %v9948_v60 = vpop.f32.mrf.mxu1 }
 0x788   : > { %v6833_v62 = vadd.f32 %v6832_v42, %v6688_v37  ;;  %v6872_v19 = vmax.f32 %v6838_v33, 0.0  ;;  %v9949_v10 = vadd.f32 %v9948_v60, %v9947_v63  ;;  %v18429_v60 = vld [vmem:[#allocation25_spill] sm:$0xff] }
 0x78a   : > { %v6871_v2 = vmax.f32 %v6833_v62, 0.0  ;;  %v6708_v31 = vadd.f32 %v9949_v10, %v6563_v5  ;;  %v16293_v62 = vld [vmem:[%s6883_s1] ss:$0 sm:$0xff] }
 0x78c   : > { %10444 = vmatprep.mubr.msk.f32.mxu0 %vm163_vm0, %v6871_v2 }
 0x78d   : > { %10445 = vmatmul.mubr.msk.f32.gmra.mxu0 %vm163_vm0, %v6872_v19 }
 0x791   : > { %v9950_v34 = vpop.f32.mrf.mxu1  ;;  %v10417_v45 = vpop.f32.mrf.mxu0 }
 0x792   : > { %v6848_v58 = vadd.f32 %v10417_v45, %v6703_v15 }
 0x793   : > { %v9951_v26 = vpop.f32.mrf.mxu1  ;;  %v6842_v27 = vpop.f32.mrf.mxu0 }
 0x794   : > { %v6843_v53 = vadd.f32 %v6842_v27, %v6698_v16  ;;  %v9952_v4 = vadd.f32 %v9951_v26, %v9950_v34  ;;  %v6874_v49 = vmax.f32 %v6848_v58, 0.0  ;;  %v18430_v34 = vld [vmem:[#allocation24_spill] sm:$0xff]  ;;  %v18431_v58 = vld [vmem:[#allocation26_spill] sm:$0xff] }
 0x796   : > { %v6873_v39 = vmax.f32 %v6843_v53, 0.0  ;;  %v6713_v3 = vadd.f32 %v9952_v4, %v6568_v35 }
 0x798   : > { %10447 = vmatprep.mubr.msk.f32.mxu0 %vm163_vm0, %v6873_v39 }
 0x799   : > { %v10420_v43 = vpop.f32.mrf.mxu0  ;;  %10448 = vmatmul.mubr.msk.f32.gmra.mxu0 %vm163_vm0, %v6874_v49  ;;  %v18434_v49 = vld [vmem:[#allocation29_spill] sm:$0xff] }
 0x79a   : > { %v6858_v23 = vadd.f32 %v10420_v43, %v6713_v3 }
 0x79b   : > { %v6852_v40 = vpop.f32.mrf.mxu0 }
 0x79c   : > { %v6853_v30 = vadd.f32 %v6852_v40, %v6708_v31  ;;  %v6876_v57 = vmax.f32 %v6858_v23, 0.0  ;;  %v18435_v23 = vld [vmem:[#allocation30_spill] sm:$0xff] }
 0x79e   : > { %v6875_v21 = vmax.f32 %v6853_v30, 0.0 }
 0x7a0   : > { %10450 = vmatprep.mubr.msk.f32.mxu0 %vm163_vm0, %v6875_v21 }
 0x7a1   : > { %10451 = vmatmul.mubr.msk.f32.gmra.mxu0 %vm163_vm0, %v6876_v57 }
 0x7a2   : > { %10520 = vmatprep.mubr.msk.f32.mxu0 %vm12204_vm6, %v12203_v32 }
 0x836   : > { %v16279_v56 = vpop.f32.mrf.mxu0 }
 0x838   : > { %v16281_v47 = vpop.f32.mrf.mxu0 }
 0x83a   : > { %v16283_v38 = vpop.f32.mrf.mxu0 }
 0x83b   : > { %v7021_v21 = vadd.f32 %v16283_v38, %v16293_v62 }
 0x83c   : > { %v16285_v9 = vpop.f32.mrf.mxu0 }
 0x83e   : > { %v10437_v0 = vpop.f32.mrf.mxu0 }
 0x83f   : > { %v7031_v39 = vadd.f32 %v10437_v0, %v16293_v62  ;;  %v18436_v0 = vld [vmem:[#allocation31_spill] sm:$0xff] }
 0x840   : > { %v16287_v29 = vpop.f32.mrf.mxu0 }
 0x841   : > { %v7026_v43 = vadd.f32 %v16293_v62, %v16287_v29  ;;  %v7089_v57 = vmax.f32 %v7031_v39, 0.0  ;;  %v18444_v39 = vld [vmem:[#allocation17_spill] sm:$0xff] }
 0x842   : > { %v10440_v41 = vpop.f32.mrf.mxu0 }
 0x843   : > { %v7041_v7 = vadd.f32 %v10440_v41, %v16293_v62 }
 0x844   : > { %v7035_v6 = vpop.f32.mrf.mxu0 }
 0x845   : > { %v7036_v52 = vadd.f32 %v16293_v62, %v7035_v6  ;;  %v7091_v35 = vmax.f32 %v7041_v7, 0.0  ;;  %v7016_v6 = vadd.f32 %v16293_v62, %v16285_v9 }
 0x846   : > { %v10443_v12 = vpop.f32.mrf.mxu0 }
 0x847   : > { %v7051_v11 = vadd.f32 %v10443_v12, %v16293_v62  ;;  %v7090_v31 = vmax.f32 %v7036_v52, 0.0  ;;  %v16364_v29 = vadd.f32 %v18436_v0, %v7091_v35  ;;  %v7088_v12 = vmax.f32 %v7026_v43, 0.0 }
 0x848   : > { %v7045_v1 = vpop.f32.mrf.mxu0 }
 0x849   : > { %v7046_v16 = vadd.f32 %v16293_v62, %v7045_v1  ;;  %v7093_v59 = vmax.f32 %v7051_v11, 0.0  ;;  %v18437_v1 = vld [vmem:[#allocation32_spill] sm:$0xff] }
 0x84a   : > { %v16374_v38 = vadd.f32 %v18437_v1, %v7090_v31 }
 0x84b   : > { %v7092_v4 = vmax.f32 %v7046_v16, 0.0  ;;  %v16344_v5 = vadd.f32 %v18434_v49, %v7093_v59 }
 0x84d   : > { %v10446_v37 = vpop.f32.mrf.mxu0  ;;  %v16354_v40 = vadd.f32 %v18435_v23, %v7092_v4  ;;  %v7199_v41 = vmul.f32 %v16344_v5, %v16344_v5 }
 0x84e   : > { %v7061_v19 = vadd.f32 %v10446_v37, %v16293_v62 }
 0x84f   : > { %v7055_v33 = vpop.f32.mrf.mxu0  ;;  %v7198_v37 = vmul.f32 %v16354_v40, %v16354_v40 }
 0x850   : > { %v7056_v28 = vadd.f32 %v16293_v62, %v7055_v33  ;;  %v7095_v51 = vmax.f32 %v7061_v19, 0.0  ;;  %v7011_v33 = vadd.f32 %v16279_v56, %v16293_v62 }
 0x852   : > { %v7094_v54 = vmax.f32 %v7056_v28, 0.0  ;;  %v16326_v53 = vadd.f32 %v18432_v14, %v7095_v51  ;;  %v7085_v19 = vmax.f32 %v7011_v33, 0.0  ;;  %v18443_v51 = vld [vmem:[#allocation38_spill] sm:$0xff] }
 0x854   : > { %v16335_v36 = vadd.f32 %v18433_v20, %v7094_v54  ;;  %v7201_v3 = vmul.f32 %v16326_v53, %v16326_v53  ;;  %v12205_v54 = vmov 1.0  }
 0x856   : > { %v7200_v30 = vmul.f32 %v16335_v36, %v16335_v36 }
 0x859   : > { %v10449_v42 = vpop.f32.mrf.mxu0 }
 0x85a   : > { %v7071_v2 = vadd.f32 %v10449_v42, %v16293_v62  ;;  %v7087_v42 = vmax.f32 %v7021_v21, 0.0 }
 0x85b   : > { %v7065_v8 = vpop.f32.mrf.mxu0 }
 0x85c   : > { %v7066_v25 = vadd.f32 %v16293_v62, %v7065_v8  ;;  %v7097_v55 = vmax.f32 %v7071_v2, 0.0  ;;  %v18438_v8 = vld [vmem:[#allocation33_spill] sm:$0xff]  ;;  %v7197_v2 = vmul.f32 %v16364_v29, %v16364_v29 }
 0x85d   : > { %v16384_v9 = vadd.f32 %v18438_v8, %v7089_v57 }
 0x85e   : > { %v7096_v50 = vmax.f32 %v7066_v25, 0.0  ;;  %v16306_v22 = vadd.f32 %v18429_v60, %v7097_v55  ;;  %v7086_v25 = vmax.f32 %v7016_v6, 0.0  ;;  %v18440_v55 = vld [vmem:[#allocation35_spill] sm:$0xff] }
 0x860   : > { %v16317_v26 = vadd.f32 %v18431_v58, %v7096_v50  ;;  %v7203_v48 = vmul.f32 %v16306_v22, %v16306_v22 }
 0x861   : > { %v10452_v17 = vpop.f32.mrf.mxu0 }
 0x862   : > { %v7081_v18 = vadd.f32 %v10452_v17, %v16293_v62  ;;  %v7202_v10 = vmul.f32 %v16317_v26, %v16317_v26  ;;  %v7006_v17 = vadd.f32 %v16293_v62, %v16281_v47  ;;  %v7195_v47 = vmul.f32 %v16384_v9, %v16384_v9 }
 0x863   : > { %v7075_v63 = vpop.f32.mrf.mxu0 }
 0x864   : > { %v7099_v13 = vmax.f32 %v7081_v18, 0.0  ;;  %v7076_v24 = vadd.f32 %v16293_v62, %v7075_v63  ;;  %v18439_v18 = vld [vmem:[#allocation34_spill] sm:$0xff]  ;;  %v7196_v63 = vmul.f32 %v16374_v38, %v16374_v38  ;;  %v7084_v62 = vmax.f32 %v7006_v17, 0.0 }
 0x865   : > { %v16394_v56 = vadd.f32 %v18439_v18, %v7088_v12 }
 0x866   : > { %v16302_v61 = vadd.f32 %v18428_v46, %v7099_v13  ;;  %v7098_v44 = vmax.f32 %v7076_v24, 0.0  ;;  %v16402_v13 = vadd.f32 %v18440_v55, %v7087_v42  ;;  %v18441_v24 = vld [vmem:[#allocation36_spill] sm:$0xff]  ;;  %v18442_v46 = vld [vmem:[#allocation37_spill] sm:$0xff]  ;;  %v7100_v60 = vadd.f32 %v18443_v51, %v7084_v62  ;;  %v9109_v62 = vld [vmem:[%s7118_s0] ss:$0 sm:$0xff] }
 0x867   : > { %v16410_v28 = vadd.f32 %v18441_v24, %v7086_v25  ;;  %v7194_v50 = vmul.f32 %v16394_v56, %v16394_v56 }
 0x868   : > { %v16309_v15 = vadd.f32 %v18430_v34, %v7098_v44  ;;  %10454 = vmatpush3.msra.mxu1 %v16302_v61  ;;  %v7205_v45 = vmul.f32 %v16302_v61, %v16302_v61  ;;  %v7101_v44 = vadd.f32 %v18442_v46, %v7085_v19  ;;  %v7193_v11 = vmul.f32 %v16402_v13, %v16402_v13 }
 0x869   : > { %10455 = vmatprep.subr.mxu1 %v12203_v32  ;;  %v7192_v34 = vmul.f32 %v16410_v28, %v16410_v28  ;;  %v7190_v16 = vmul.f32 %v7100_v60, %v7100_v60 }
 0x86a   : > { %10456 = vmatpush3.msra.mxu1 %v16309_v15  ;;  %10489 = vmatpush3.msra.mxu0 %v7205_v45  ;;  %v7204_v27 = vmul.f32 %v16309_v15, %v16309_v15  ;;  %v7191_v45 = vmul.f32 %v7101_v44, %v7101_v44 }
 0x86b   : > { %10457 = vmatprep.subr.mxu1 %v12203_v32  ;;  %10490 = vmatprep.subr.mxu0 %v12203_v32 }
 0x86c   : > { %10458 = vmatpush3.msra.mxu1 %v16306_v22  ;;  %10491 = vmatpush3.msra.mxu0 %v7204_v27 }
 0x86d   : > { %10459 = vmatprep.subr.mxu1 %v12203_v32  ;;  %10492 = vmatprep.subr.mxu0 %v12203_v32 }
 0x86e   : > { %10460 = vmatpush3.msra.mxu1 %v16317_v26  ;;  %10493 = vmatpush3.msra.mxu0 %v7203_v48 }
 0x86f   : > { %10461 = vmatprep.subr.mxu1 %v12203_v32  ;;  %10494 = vmatprep.subr.mxu0 %v12203_v32 }
 0x870   : > { %10462 = vmatpush3.msra.mxu1 %v16326_v53  ;;  %10495 = vmatpush3.msra.mxu0 %v7202_v10 }
 0x871   : > { %10463 = vmatprep.subr.mxu1 %v12203_v32  ;;  %10496 = vmatprep.subr.mxu0 %v12203_v32 }
 0x872   : > { %10464 = vmatpush3.msra.mxu1 %v16335_v36  ;;  %10497 = vmatpush3.msra.mxu0 %v7201_v3 }
 0x873   : > { %10465 = vmatprep.subr.mxu1 %v12203_v32  ;;  %10498 = vmatprep.subr.mxu0 %v12203_v32 }
 0x874   : > { %10466 = vmatpush3.msra.mxu1 %v16344_v5  ;;  %10499 = vmatpush3.msra.mxu0 %v7200_v30 }
 0x875   : > { %10467 = vmatprep.subr.mxu1 %v12203_v32  ;;  %10500 = vmatprep.subr.mxu0 %v12203_v32 }
 0x876   : > { %10468 = vmatpush3.msra.mxu1 %v16354_v40  ;;  %10501 = vmatpush3.msra.mxu0 %v7199_v41 }
 0x877   : > { %10469 = vmatprep.subr.mxu1 %v12203_v32  ;;  %10502 = vmatprep.subr.mxu0 %v12203_v32 }
 0x878   : > { %10470 = vmatpush3.msra.mxu1 %v16364_v29  ;;  %10503 = vmatpush3.msra.mxu0 %v7198_v37 }
 0x879   : > { %10471 = vmatprep.subr.mxu1 %v12203_v32  ;;  %10504 = vmatprep.subr.mxu0 %v12203_v32 }
 0x87a   : > { %10472 = vmatpush3.msra.mxu1 %v16374_v38  ;;  %10505 = vmatpush3.msra.mxu0 %v7197_v2 }
 0x87b   : > { %10473 = vmatprep.subr.mxu1 %v12203_v32  ;;  %10506 = vmatprep.subr.mxu0 %v12203_v32 }
 0x87c   : > { %10474 = vmatpush3.msra.mxu1 %v16384_v9  ;;  %10507 = vmatpush3.msra.mxu0 %v7196_v63 }
 0x87d   : > { %10475 = vmatprep.subr.mxu1 %v12203_v32  ;;  %10508 = vmatprep.subr.mxu0 %v12203_v32 }
 0x87e   : > { %10476 = vmatpush3.msra.mxu1 %v16394_v56  ;;  %10509 = vmatpush3.msra.mxu0 %v7195_v47 }
 0x87f   : > { %10477 = vmatprep.subr.mxu1 %v12203_v32  ;;  %10510 = vmatprep.subr.mxu0 %v12203_v32 }
 0x880   : > { %10478 = vmatpush3.msra.mxu1 %v16402_v13  ;;  %10511 = vmatpush3.msra.mxu0 %v7194_v50 }
 0x881   : > { %10479 = vmatprep.subr.mxu1 %v12203_v32  ;;  %10512 = vmatprep.subr.mxu0 %v12203_v32 }
 0x882   : > { %10480 = vmatpush3.msra.mxu1 %v16410_v28  ;;  %10513 = vmatpush3.msra.mxu0 %v7193_v11 }
 0x883   : > { %10481 = vmatprep.subr.mxu1 %v12203_v32  ;;  %10514 = vmatprep.subr.mxu0 %v12203_v32 }
 0x884   : > { %10482 = vmatpush3.msra.mxu1 %v7101_v44  ;;  %10515 = vmatpush3.msra.mxu0 %v7192_v34 }
 0x885   : > { %10483 = vmatprep.subr.mxu1 %v12203_v32  ;;  %10516 = vmatprep.subr.mxu0 %v12203_v32 }
 0x886   : > { %10484 = vmatpush3.msra.mxu1 %v7100_v60  ;;  %10517 = vmatpush3.msra.mxu0 %v7191_v45 }
 0x887   : > { %10486 = vmatmul.mubr.f32.vlgmr.msra.gmra.mxu1 %v12205_v54  ;;  %10518 = vmatprep.subr.mxu0 %v12203_v32 }
 0x888   : > { %10519 = vmatpush3.msra.mxu0 %v7190_v16 }
 0x889   : > { %10521 = vmatmul.mubr.f32.vlgmr.msra.gmra.mxu0 %v12205_v54 }
 0x947   : > { %v7186_v58 = vpop.f32.mrf.mxu1 }
 0x948   : > { %v7276_v27 = vmul.f32 0.0078125, %v7186_v58 }
 0x949   : > { %v7272_v7 = vpop.f32.mrf.mxu0  ;;  %v10487_v59 = vpop.f32.mrf.mxu1 }
 0x94a   : > { %v7278_v48 = vmul.f32 %v7276_v27, %v7276_v27  ;;  %v7277_v52 = vmul.f32 0.0078125, %v7272_v7  ;;  %v7284_v35 = vrot.slane %v7276_v27, %v18444_v39 }
 0x94b   : > { %v10522_v14 = vpop.f32.mrf.mxu0 }
 0x94c   : > { %v7279_v4 = vsub.f32 %v7277_v52, %v7278_v48  ;;  %v7285_v49 = vsub.f32 %v7100_v60, %v7284_v35  ;;  %v7286_v3 = vsub.f32 %v7101_v44, %v7284_v35  ;;  %v7287_v32 = vsub.f32 %v16410_v28, %v7284_v35 }
 0x94d   : > { %v7288_v43 = vsub.f32 %v16402_v13, %v7284_v35  ;;  %v7289_v31 = vsub.f32 %v16394_v56, %v7284_v35  ;;  %v7290_v30 = vsub.f32 %v16384_v9, %v7284_v35  ;;  %v7291_v21 = vsub.f32 %v16374_v38, %v7284_v35 }
 0x94e   : > { %v7280_v20 = vmax.f32 %v7279_v4, 0.0  ;;  %v7292_v57 = vsub.f32 %v16364_v29, %v7284_v35  ;;  %v7293_v0 = vsub.f32 %v16354_v40, %v7284_v35  ;;  %v7294_v41 = vsub.f32 %v16344_v5, %v7284_v35  ;;  %v9108_v5 = vld [vmem:[%s7116_s4] ss:$0 sm:$0xff] }
 0x94f   : > { %v7295_v6 = vsub.f32 %v16335_v36, %v7284_v35  ;;  %v7296_v12 = vsub.f32 %v16326_v53, %v7284_v35  ;;  %v7297_v37 = vsub.f32 %v16317_v26, %v7284_v35  ;;  %v7298_v38 = vsub.f32 %v16306_v22, %v7284_v35 }
 0x950   : > { %v7301_v10 = vadd.f32 1e-05, %v7280_v20  ;;  %v7299_v29 = vsub.f32 %v16309_v15, %v7284_v35  ;;  %v7300_v40 = vsub.f32 %v16302_v61, %v7284_v35 }
 0x952   : > { %11999 = vrsqrt.f32 %v7301_v10 }
 0x95f   : > { %v12000_v23 = vpop.eup %11999 }
 0x960   : > { %v7306_v1 = vrot.slane %v12000_v23, %v18444_v39 }
 0x962   : > { %v7307_v33 = vmul.f32 %v7306_v1, %v7285_v49  ;;  %v7308_v42 = vmul.f32 %v7306_v1, %v7286_v3  ;;  %v7309_v8 = vmul.f32 %v7306_v1, %v7287_v32  ;;  %v7310_v9 = vmul.f32 %v7306_v1, %v7288_v43 }
 0x963   : > { %v7311_v2 = vmul.f32 %v7306_v1, %v7289_v31  ;;  %v7312_v36 = vmul.f32 %v7306_v1, %v7290_v30  ;;  %v7313_v17 = vmul.f32 %v7306_v1, %v7291_v21  ;;  %v7314_v25 = vmul.f32 %v7306_v1, %v7292_v57 }
 0x964   : > { %v7315_v26 = vmul.f32 %v7306_v1, %v7293_v0  ;;  %v7316_v53 = vmul.f32 %v7306_v1, %v7294_v41  ;;  %v7317_v22 = vmul.f32 %v7306_v1, %v7295_v6  ;;  %v7318_v18 = vmul.f32 %v7306_v1, %v7296_v12 }
 0x965   : > { %v7319_v15 = vmul.f32 %v7306_v1, %v7297_v37  ;;  %v7320_v56 = vmul.f32 %v7306_v1, %v7298_v38  ;;  %v7321_v61 = vmul.f32 %v7306_v1, %v7299_v29  ;;  %v7322_v63 = vmul.f32 %v7306_v1, %v7300_v40 }
 0x966   : > { %v7329_v19 = vmul.f32 %v9108_v5, %v7307_v33  ;;  %v7330_v55 = vmul.f32 %v9108_v5, %v7308_v42  ;;  %v7331_v13 = vmul.f32 %v9108_v5, %v7309_v8  ;;  %v7332_v47 = vmul.f32 %v9108_v5, %v7310_v9 }
 0x967   : > { %v7333_v24 = vmul.f32 %v9108_v5, %v7311_v2  ;;  %v7334_v28 = vmul.f32 %v9108_v5, %v7312_v36  ;;  %v7335_v50 = vmul.f32 %v9108_v5, %v7313_v17  ;;  %v7336_v46 = vmul.f32 %v9108_v5, %v7314_v25  ;;  %v7412_v36 = vld [vmem:[%s18078_s14 + $0xe8] sm:$0xff] (%p16489_p0)  ;;  %v7414_v17 = vld [vmem:[%s18078_s14 + $0xf8] sm:$0xff] (%p16489_p0)  ;;  %v7411_v25 = vld [vmem:[%s18078_s14 + $0xe0] sm:$0xff] (%p16489_p0) }
 0x968   : > { %v7337_v44 = vmul.f32 %v9108_v5, %v7315_v26  ;;  %v7338_v11 = vmul.f32 %v9108_v5, %v7316_v53  ;;  %v7339_v51 = vmul.f32 %v9108_v5, %v7317_v22  ;;  %v7340_v60 = vmul.f32 %v9108_v5, %v7318_v18  ;;  %7501 = vmatprep.subr.mxu0 (%p16489_p0), %v7412_v36  ;;  %v7409_v22 = vld [vmem:[%s18078_s14 + $0xd0] sm:$0xff] (%p16489_p0)  ;;  %v7404_v18 = vld [vmem:[%s18078_s14 + $0xa8] sm:$0xff] (%p16489_p0) }
 0x969   : > { %v7341_v34 = vmul.f32 %v9108_v5, %v7319_v15  ;;  %v7342_v45 = vmul.f32 %v9108_v5, %v7320_v56  ;;  %v7343_v16 = vmul.f32 %v9108_v5, %v7321_v61  ;;  %v7344_v54 = vmul.f32 %v9108_v5, %v7322_v63  ;;  %7662 = vmatprep.subr.mxu1 (%p16489_p0), %v7414_v17  ;;  %v7406_v15 = vld [vmem:[%s18078_s14 + $0xb8] sm:$0xff] (%p16489_p0)  ;;  %v7403_v56 = vld [vmem:[%s18078_s14 + $0xa0] sm:$0xff] (%p16489_p0)  ;;  %v7400_v63 = vld [vmem:[%s18078_s14 + $0x88] sm:$0xff] (%p16489_p0) }
 0x96a   : > { %v7351_v58 = vadd.f32 %v9109_v62, %v7329_v19  ;;  %v7352_v27 = vadd.f32 %v9109_v62, %v7330_v55  ;;  %v7353_v7 = vadd.f32 %v9109_v62, %v7331_v13  ;;  %v7354_v59 = vadd.f32 %v9109_v62, %v7332_v47  ;;  %7502 = vmatpush1.msra.mxu0 (%p16489_p0), %v7411_v25  ;;  %v7402_v19 = vld [vmem:[%s18078_s14 + $0x98] sm:$0xff] (%p16489_p0)  ;;  %v7399_v55 = vld [vmem:[%s18078_s14 + $0x80] sm:$0xff] (%p16489_p0)  ;;  %v7401_v13 = vld [vmem:[%s18078_s14 + $0x90] sm:$0xff] (%p16489_p0) }
 0x96b   : > { %v7355_v14 = vadd.f32 %v9109_v62, %v7333_v24  ;;  %v7356_v48 = vadd.f32 %v9109_v62, %v7334_v28  ;;  %v7357_v52 = vadd.f32 %v9109_v62, %v7335_v50  ;;  %v7358_v4 = vadd.f32 %v9109_v62, %v7336_v46  ;;  %v7396_v47 = vld [vmem:[%s18078_s14 + $0x68] sm:$0xff] (%p16489_p0)  ;;  %v7395_v24 = vld [vmem:[%s18078_s14 + $0x60] sm:$0xff] (%p16489_p0)  ;;  %v7397_v28 = vld [vmem:[%s18078_s14 + $0x70] sm:$0xff] (%p16489_p0) }
 0x96c   : > { %v7359_v20 = vadd.f32 %v9109_v62, %v7337_v44  ;;  %v7360_v10 = vadd.f32 %v9109_v62, %v7338_v11  ;;  %v7361_v39 = vadd.f32 %v9109_v62, %v7339_v51  ;;  %v7362_v35 = vadd.f32 %v9109_v62, %v7340_v60  ;;  %v7392_v50 = vld [vmem:[%s18078_s14 + $0x48] sm:$0xff] (%p16489_p0)  ;;  %v7394_v46 = vld [vmem:[%s18078_s14 + $0x58] sm:$0xff] (%p16489_p0)  ;;  %v7391_v44 = vld [vmem:[%s18078_s14 + $0x40] sm:$0xff] (%p16489_p0) }
 0x96d   : > { %v7363_v49 = vadd.f32 %v9109_v62, %v7341_v34  ;;  %v7364_v3 = vadd.f32 %v9109_v62, %v7342_v45  ;;  %v7365_v32 = vadd.f32 %v9109_v62, %v7343_v16  ;;  %v7366_v43 = vadd.f32 %v9109_v62, %v7344_v54  ;;  %v7393_v11 = vld [vmem:[%s18078_s14 + $0x50] sm:$0xff] (%p16489_p0)  ;;  %v7388_v51 = vld [vmem:[%s18078_s14 + $0x28] sm:$0xff] (%p16489_p0) }
 0x96e   : > { %v16456_v12 = vmax.f32 %v7351_v58, 0.0   ;;  %v16458_v34 = vmax.f32 %v7352_v27, 0.0   ;;  %v16460_v26 = vmax.f32 %v7353_v7, 0.0   ;;  %v16462_v61 = vmax.f32 %v7354_v59, 0.0   ;;  %v7389_v45 = vld [vmem:[%s18078_s14 + $0x30] sm:$0xff] (%p16489_p0)  ;;  %v7384_v16 = vld [vmem:[%s18078_s14 + $0x8] sm:$0xff] (%p16489_p0) }
 0x96f   : > { %v16464_v40 = vmax.f32 %v7355_v14, 0.0   ;;  %v16466_v0 = vmax.f32 %v7356_v48, 0.0   ;;  %v16468_v41 = vmax.f32 %v7357_v52, 0.0   ;;  %v16470_v9 = vmax.f32 %v7358_v4, 0.0   ;;  %v7385_v27 = vld [vmem:[%s18078_s14 + $0x10] sm:$0xff] (%p16489_p0) }
 0x970   : > { %v18445_v31 = vmov %v16456_v12  ;;  %v18446_v23 = vmov %v16458_v34  ;;  %v18447_v30 = vmov %v16460_v26  ;;  %v18448_v21 = vmov %v16462_v61 }
 0x971   : > { %v18449_v57 = vmov %v16464_v40  ;;  %v18450_v6 = vmov %v16470_v9  ;;  %v16472_v52 = vmax.f32 %v7359_v20, 0.0   ;;  %v16474_v5 = vmax.f32 %v7360_v10, 0.0  }
 0x972   : > { %v16476_v58 = vmax.f32 %v7361_v39, 0.0   ;;  %v16478_v12 = vmax.f32 %v7362_v35, 0.0   ;;  %v16480_v54 = vmax.f32 %v7363_v49, 0.0   ;;  %v16482_v59 = vmax.f32 %v7364_v3, 0.0  }
 0x973   : > { %v18451_v1 = vmov %v16472_v52  ;;  %v18452_v37 = vmov %v16474_v5  ;;  %v16484_v60 = vmax.f32 %v7365_v32, 0.0   ;;  %v16486_v62 = vmax.f32 %v7366_v43, 0.0  }
 0x974   : > { %v18453_v38 = vmov %v16476_v58  ;;  %v18454_v29 = vmov %v16478_v12  ;;  %v18455_v33 = vmov %v16480_v54  ;;  %v18456_v42 = vmov %v16482_v59 }
 0x975   : > { %v18457_v8 = vmov %v16484_v60  ;;  %v18458_v2 = vmov %v16486_v62  ;;  %v18462_v59 = vmov %v18456_v42  ;;  %v18463_v54 = vmov %v18455_v33  ;;  %3621 = sbr.rel (!%p16489_p0) target bundleno = 1118 (0x45e), region = 123 }
 0x976   : > { %v18460_v62 = vmov %v18458_v2  ;;  %v18461_v60 = vmov %v18457_v8  ;;  %v18464_v3 = vmov %v18454_v29  ;;  %v18465_v58 = vmov %v18453_v38  ;;  %v7386_v54 = vld [vmem:[%s18078_s14 + $0x18] sm:$0xff] (%p16489_p0) }
 0x977   : > { %v18466_v5 = vmov %v18452_v37  ;;  %v18467_v52 = vmov %v18451_v1  ;;  %v18468_v9 = vmov %v18450_v6  ;;  %v18469_v43 = vmov %v16468_v41  ;;  %v7398_v62 = vld [vmem:[%s18078_s14 + $0x78] sm:$0xff] (%p16489_p0)  ;;  %v7383_v58 = vld [vmem:[%s18078_s14] sm:$0xff] (%p16489_p0) }
 0x978   : > { %v18470_v39 = vmov %v16466_v0  ;;  %v18471_v40 = vmov %v18449_v57  ;;  %v18472_v61 = vmov %v18448_v21  ;;  %v18473_v26 = vmov %v18447_v30  ;;  %v7408_v9 = vld [vmem:[%s18078_s14 + $0xc8] sm:$0xff] (%p16489_p0)  ;;  %v7410_v5 = vld [vmem:[%s18078_s14 + $0xd8] sm:$0xff] (%p16489_p0) }
 0x979   : > { %v18474_v34 = vmov %v18446_v23  ;;  %v18475_v12 = vmov %v18445_v31  ;;  %v18476_v53 = vmov (%p16489_p0), 0.0   ;;  %v7413_v40 = vld [vmem:[%s18078_s14 + $0xf0] sm:$0xff] (%p16489_p0)  ;;  %v7407_v26 = vld [vmem:[%s18078_s14 + $0xc0] sm:$0xff] (%p16489_p0)  ;;  %7503 = vmatprep.subr.mxu0 (%p16489_p0), %v7408_v9  ;;  %v7390_v60 = vld [vmem:[%s18078_s14 + $0x38] sm:$0xff] (%p16489_p0) }
 0x97a   :  { %7549 = vmatprep.mubr.f32.mxu0 %v18476_v53  ;;  %7710 = vmatprep.mubr.f32.mxu1 %v18476_v53  ;;  %v7405_v61 = vld [vmem:[%s18078_s14 + $0xb0] sm:$0xff]  ;;  %v7387_v34 = vld [vmem:[%s18078_s14 + $0x20] sm:$0xff] }
 0x97b   :  { %7663 = vmatpush1.msra.mxu1 %v7413_v40  ;;  %7504 = vmatpush1.msra.mxu0 %v7407_v26 }
 0x97c   :  { %7664 = vmatprep.subr.mxu1 %v7410_v5  ;;  %7505 = vmatprep.subr.mxu0 %v7404_v18 }
 0x97d   :  { %7665 = vmatpush1.msra.mxu1 %v7409_v22  ;;  %7506 = vmatpush1.msra.mxu0 %v7403_v56 }
 0x97e   :  { %7666 = vmatprep.subr.mxu1 %v7406_v15  ;;  %7507 = vmatprep.subr.mxu0 %v7400_v63 }
 0x97f   :  { %7667 = vmatpush1.msra.mxu1 %v7405_v61  ;;  %7508 = vmatpush1.msra.mxu0 %v7399_v55 }
 0x980   :  { %7668 = vmatprep.subr.mxu1 %v7402_v19  ;;  %7509 = vmatprep.subr.mxu0 %v7396_v47 }
 0x981   :  { %7669 = vmatpush1.msra.mxu1 %v7401_v13  ;;  %7510 = vmatpush1.msra.mxu0 %v7395_v24 }
 0x982   :  { %7670 = vmatprep.subr.mxu1 %v7398_v62  ;;  %7511 = vmatprep.subr.mxu0 %v7392_v50 }
 0x983   :  { %7671 = vmatpush1.msra.mxu1 %v7397_v28  ;;  %7512 = vmatpush1.msra.mxu0 %v7391_v44 }
 0x984   :  { %7672 = vmatprep.subr.mxu1 %v7394_v46  ;;  %7513 = vmatprep.subr.mxu0 %v7388_v51 }
 0x985   :  { %7673 = vmatpush1.msra.mxu1 %v7393_v11  ;;  %7514 = vmatpush1.msra.mxu0 %v7387_v34 }
 0x986   :  { %7674 = vmatprep.subr.mxu1 %v7390_v60  ;;  %7515 = vmatprep.subr.mxu0 %v7384_v16  ;;  %v18488_v60 = vld [vmem:[#allocation15_spill] sm:$0xff] }
 0x987   :  { %7675 = vmatpush1.msra.mxu1 %v7389_v45  ;;  %7516 = vmatpush1.msra.mxu0 %v7383_v58  ;;  %v16828_v34 = vsub.s32 2, %v18488_v60  ;;  %v16834_v58 = vsub.s32 3, %v18488_v60 }
 0x988   :  { %7676 = vmatprep.subr.mxu1 %v7386_v54  ;;  %9110 = vmatmul.mubr.msk.f32.vlgmr.msra.gmra.mxu0 %vm66_vm1, %v18445_v31  ;;  %v16831_v54 = vsub.s32 1, %v18488_v60 }
 0x989   :  { %7677 = vmatpush1.msra.mxu1 %v7385_v27  ;;  %7555 = vmatprep.mubr.f32.mxu0 %v18476_v53  ;;  %18489 = vst [vmem:[#allocation14_spill] sm:$0xff] %v16828_v34  ;;  %18491 = vst [vmem:[#allocation70_spill] sm:$0xff] %v16834_v58 }
 0x98a   :  { %9126 = vmatmul.mubr.msk.f32.vlgmr.msra.gmra.mxu1 %vm66_vm1, %v18445_v31  ;;  %18490 = vst [vmem:[#allocation15_spill] sm:$0xff] %v16831_v54 }
 0x98b   :  { %7716 = vmatprep.mubr.f32.mxu1 %v18476_v53 }
 0x98c   :  { %9111 = vmatmul.mubr.msk.f32.gmra.mxu0 %vm66_vm1, %v18446_v23 }
 0x98d   :  { %7561 = vmatprep.mubr.f32.mxu0 %v18476_v53 }
 0x98e   :  { %9127 = vmatmul.mubr.msk.f32.gmra.mxu1 %vm66_vm1, %v18446_v23 }
 0x98f   :  { %7722 = vmatprep.mubr.f32.mxu1 %v18476_v53 }
 0x990   :  { %9112 = vmatmul.mubr.msk.f32.gmra.mxu0 %vm66_vm1, %v18447_v30 }
 0x991   :  { %7567 = vmatprep.mubr.f32.mxu0 %v18476_v53 }
 0x992   :  { %9128 = vmatmul.mubr.msk.f32.gmra.mxu1 %vm66_vm1, %v18447_v30 }
 0x993   :  { %7728 = vmatprep.mubr.f32.mxu1 %v18476_v53 }
 0x994   :  { %9113 = vmatmul.mubr.msk.f32.gmra.mxu0 %vm66_vm1, %v18448_v21 }
 0x995   :  { %7573 = vmatprep.mubr.f32.mxu0 %v18476_v53 }
 0x996   :  { %9129 = vmatmul.mubr.msk.f32.gmra.mxu1 %vm66_vm1, %v18448_v21 }
 0x997   :  { %7734 = vmatprep.mubr.f32.mxu1 %v18476_v53 }
 0x998   :  { %9114 = vmatmul.mubr.msk.f32.gmra.mxu0 %vm66_vm1, %v18449_v57 }
 0x999   :  { %7579 = vmatprep.mubr.f32.mxu0 %v18476_v53 }
 0x99a   :  { %9130 = vmatmul.mubr.msk.f32.gmra.mxu1 %vm66_vm1, %v18449_v57 }
 0x99b   :  { %7740 = vmatprep.mubr.f32.mxu1 %v18476_v53 }
 0x99c   :  { %9115 = vmatmul.mubr.msk.f32.gmra.mxu0 %vm66_vm1, %v16466_v0 }
 0x99d   :  { %7585 = vmatprep.mubr.f32.mxu0 %v18476_v53 }
 0x99e   :  { %9131 = vmatmul.mubr.msk.f32.gmra.mxu1 %vm66_vm1, %v16466_v0 }
 0x99f   :  { %7746 = vmatprep.mubr.f32.mxu1 %v18476_v53 }
 0x9a0   :  { %9116 = vmatmul.mubr.msk.f32.gmra.mxu0 %vm66_vm1, %v16468_v41 }
 0x9a1   :  { %7591 = vmatprep.mubr.f32.mxu0 %v18476_v53 }
 0x9a2   :  { %9132 = vmatmul.mubr.msk.f32.gmra.mxu1 %vm66_vm1, %v16468_v41 }
 0x9a3   :  { %7752 = vmatprep.mubr.f32.mxu1 %v18476_v53 }
 0x9a4   :  { %9117 = vmatmul.mubr.msk.f32.gmra.mxu0 %vm66_vm1, %v18450_v6 }
 0x9a5   :  { %7597 = vmatprep.mubr.f32.mxu0 %v18476_v53 }
 0x9a6   :  { %9133 = vmatmul.mubr.msk.f32.gmra.mxu1 %vm66_vm1, %v18450_v6 }
 0x9a7   :  { %7758 = vmatprep.mubr.f32.mxu1 %v18476_v53 }
 0x9a8   :  { %9118 = vmatmul.mubr.msk.f32.gmra.mxu0 %vm66_vm1, %v18451_v1 }
 0x9a9   :  { %7603 = vmatprep.mubr.f32.mxu0 %v18476_v53 }
 0x9aa   :  { %9134 = vmatmul.mubr.msk.f32.gmra.mxu1 %vm66_vm1, %v18451_v1 }
 0x9ab   :  { %7764 = vmatprep.mubr.f32.mxu1 %v18476_v53 }
 0x9ac   :  { %9119 = vmatmul.mubr.msk.f32.gmra.mxu0 %vm66_vm1, %v18452_v37 }
 0x9ad   :  { %7609 = vmatprep.mubr.f32.mxu0 %v18476_v53 }
 0x9ae   :  { %9135 = vmatmul.mubr.msk.f32.gmra.mxu1 %vm66_vm1, %v18452_v37 }
 0x9af   :  { %7770 = vmatprep.mubr.f32.mxu1 %v18476_v53 }
 0x9b0   :  { %9120 = vmatmul.mubr.msk.f32.gmra.mxu0 %vm66_vm1, %v18453_v38 }
 0x9b1   :  { %7615 = vmatprep.mubr.f32.mxu0 %v18476_v53 }
 0x9b2   :  { %9136 = vmatmul.mubr.msk.f32.gmra.mxu1 %vm66_vm1, %v18453_v38 }
 0x9b3   :  { %7776 = vmatprep.mubr.f32.mxu1 %v18476_v53 }
 0x9b4   :  { %9121 = vmatmul.mubr.msk.f32.gmra.mxu0 %vm66_vm1, %v18454_v29 }
 0x9b5   :  { %7621 = vmatprep.mubr.f32.mxu0 %v18476_v53 }
 0x9b6   :  { %9137 = vmatmul.mubr.msk.f32.gmra.mxu1 %vm66_vm1, %v18454_v29 }
 0x9b7   :  { %7782 = vmatprep.mubr.f32.mxu1 %v18476_v53 }
 0x9b8   :  { %9122 = vmatmul.mubr.msk.f32.gmra.mxu0 %vm66_vm1, %v18455_v33 }
 0x9b9   :  { %7627 = vmatprep.mubr.f32.mxu0 %v18476_v53 }
 0x9ba   :  { %9138 = vmatmul.mubr.msk.f32.gmra.mxu1 %vm66_vm1, %v18455_v33 }
 0x9bb   :  { %7788 = vmatprep.mubr.f32.mxu1 %v18476_v53 }
 0x9bc   :  { %9123 = vmatmul.mubr.msk.f32.gmra.mxu0 %vm66_vm1, %v18456_v42 }
 0x9bd   :  { %7633 = vmatprep.mubr.f32.mxu0 %v18476_v53 }
 0x9be   :  { %9139 = vmatmul.mubr.msk.f32.gmra.mxu1 %vm66_vm1, %v18456_v42 }
 0x9bf   :  { %7794 = vmatprep.mubr.f32.mxu1 %v18476_v53 }
 0x9c0   :  { %9124 = vmatmul.mubr.msk.f32.gmra.mxu0 %vm66_vm1, %v18457_v8 }
 0x9c1   :  { %7639 = vmatprep.mubr.f32.mxu0 %v18476_v53 }
 0x9c2   :  { %9140 = vmatmul.mubr.msk.f32.gmra.mxu1 %vm66_vm1, %v18457_v8 }
 0x9c3   :  { %7800 = vmatprep.mubr.f32.mxu1 %v18476_v53 }
 0x9c4   :  { %9125 = vmatmul.mubr.msk.f32.gmra.mxu0 %vm66_vm1, %v18458_v2 }
 0x9c5   :  { %7873 = vmatprep.mubr.f32.mxu0 %v18476_v53 }
 0x9c6   :  { %9141 = vmatmul.mubr.msk.f32.gmra.mxu1 %vm66_vm1, %v18458_v2 }
 0x9c7   :  { %7944 = vmatprep.mubr.f32.mxu1 %v18476_v53 }
 0xa48   :  { %v16739_v7 = vpop.f32.mrf.mxu0 }
 0xa49   :  { %18477 = vst [vmem:[#allocation21_spill] sm:$0xff] %v16739_v7 }
 0xa4a   :  { %v16741_v59 = vpop.f32.mrf.mxu1  ;;  %v16743_v14 = vpop.f32.mrf.mxu0 }
 0xa4b   :  { %18478 = vst [vmem:[#allocation22_spill] sm:$0xff] %v16741_v59  ;;  %18479 = vst [vmem:[#allocation9_spill] sm:$0xff] %v16743_v14  ;;  %v7415_v59 = vld [vmem:[%s18079_s15] sm:$0xf] }
 0xa4c   :  { %v16745_v48 = vpop.f32.mrf.mxu1  ;;  %v16747_v52 = vpop.f32.mrf.mxu0  ;;  %v16840_v7 = vrot.slane %v7415_v59, %v16828_v34 }
 0xa4d   :  { %18480 = vst [vmem:[#allocation18_spill] sm:$0xff] %v16745_v48  ;;  %18481 = vst [vmem:[#allocation20_spill] sm:$0xff] %v16747_v52  ;;  %v16846_v52 = vrot.slane %v7415_v59, %v16834_v58 }
 0xa4e   :  { %v16749_v4 = vpop.f32.mrf.mxu1  ;;  %v16751_v20 = vpop.f32.mrf.mxu0 }
 0xa4f   :  { %18482 = vst [vmem:[#allocation11_spill] sm:$0xff] %v16749_v4  ;;  %18483 = vst [vmem:[#allocation10_spill] sm:$0xff] %v16751_v20  ;;  %v16843_v4 = vrot.slane %v7415_v59, %v16831_v54 }
 0xa50   :  { %v16753_v10 = vpop.f32.mrf.mxu1  ;;  %v16755_v39 = vpop.f32.mrf.mxu0 }
 0xa51   :  { %18484 = vst [vmem:[#allocation19_spill] sm:$0xff] %v16753_v10  ;;  %18485 = vst [vmem:[#allocation16_spill] sm:$0xff] %v16755_v39  ;;  %v18492_v10 = vld [vmem:[#allocation17_spill] sm:$0xff] }
 0xa52   :  { %v16757_v35 = vpop.f32.mrf.mxu1  ;;  %v16759_v49 = vpop.f32.mrf.mxu0  ;;  %v16849_v60 = vrot.slane %v7415_v59, %v18492_v10 }
 0xa53   :  { %18486 = vst [vmem:[#allocation12_spill] sm:$0xff] %v16757_v35 }
 0xa54   :  { %v16761_v3 = vpop.f32.mrf.mxu1  ;;  %v16763_v32 = vpop.f32.mrf.mxu0 }
 0xa55   :  { %18487 = vst [vmem:[#allocation13_spill] sm:$0xff] %v16761_v3 }
 0xa56   :  { %v16765_v43 = vpop.f32.mrf.mxu1  ;;  %v16767_v31 = vpop.f32.mrf.mxu0 }
 0xa58   :  { %v16769_v23 = vpop.f32.mrf.mxu1  ;;  %v16771_v30 = vpop.f32.mrf.mxu0 }
 0xa5a   :  { %v16773_v21 = vpop.f32.mrf.mxu1  ;;  %v16775_v57 = vpop.f32.mrf.mxu0 }
 0xa5c   :  { %v16777_v0 = vpop.f32.mrf.mxu1  ;;  %v16779_v41 = vpop.f32.mrf.mxu0 }
 0xa5e   :  { %v16781_v6 = vpop.f32.mrf.mxu1  ;;  %v16783_v1 = vpop.f32.mrf.mxu0 }
 0xa60   :  { %v16785_v37 = vpop.f32.mrf.mxu1  ;;  %v16787_v38 = vpop.f32.mrf.mxu0 }
 0xa62   :  { %v16789_v12 = vpop.f32.mrf.mxu1  ;;  %v16791_v29 = vpop.f32.mrf.mxu0 }
 0xa64   :  { %v16793_v33 = vpop.f32.mrf.mxu1  ;;  %v16795_v42 = vpop.f32.mrf.mxu0 }
 0xa66   :  { %v16797_v8 = vpop.f32.mrf.mxu1  ;;  %v16799_v2 = vpop.f32.mrf.mxu0 }
 0xa68   :  { %v16801_v36 = vpop.f32.mrf.mxu1  ;;  %v16803_v17 = vpop.f32.mrf.mxu0 }
 0xa6a   :  { %v16805_v25 = vpop.f32.mrf.mxu1  ;;  %v16807_v40 = vpop.f32.mrf.mxu0 }
 0xa6c   :  { %v16809_v9 = vpop.f32.mrf.mxu1  ;;  %v16811_v5 = vpop.f32.mrf.mxu0 }
 0xa6e   :  { %v16813_v26 = vpop.f32.mrf.mxu1  ;;  %v16815_v22 = vpop.f32.mrf.mxu0 }
 0xa70   :  { %v16817_v18 = vpop.f32.mrf.mxu1  ;;  %v16819_v15 = vpop.f32.mrf.mxu0 }
 0xa72   :  { %v16821_v56 = vpop.f32.mrf.mxu1  ;;  %v16823_v61 = vpop.f32.mrf.mxu0 }
 0xa74   :  { %v16825_v63 = vpop.f32.mrf.mxu1  ;;  %v7617_v19 = vpop.f32.mrf.mxu0 }
 0xa76   :  { %v7778_v55 = vpop.f32.mrf.mxu1  ;;  %v7619_v13 = vpop.f32.mrf.mxu0 }
 0xa78   :  { %v7780_v47 = vpop.f32.mrf.mxu1  ;;  %v7623_v62 = vpop.f32.mrf.mxu0 }
 0xa7a   :  { %v7784_v24 = vpop.f32.mrf.mxu1  ;;  %v7625_v28 = vpop.f32.mrf.mxu0 }
 0xa7c   :  { %v7786_v50 = vpop.f32.mrf.mxu1  ;;  %v7629_v46 = vpop.f32.mrf.mxu0 }
 0xa7e   :  { %v7790_v44 = vpop.f32.mrf.mxu1  ;;  %v7631_v11 = vpop.f32.mrf.mxu0 }
 0xa80   :  { %v7792_v51 = vpop.f32.mrf.mxu1  ;;  %v7635_v45 = vpop.f32.mrf.mxu0 }
 0xa82   :  { %v7796_v16 = vpop.f32.mrf.mxu1  ;;  %v7637_v27 = vpop.f32.mrf.mxu0 }
 0xa83   :  { %v16864_v58 = vadd.f32 %v7637_v27, %v16843_v4  ;;  %v18531_v27 = vld [vmem:[#allocation12_spill] sm:$0xff] }
 0xa84   :  { %v7798_v53 = vpop.f32.mrf.mxu1  ;;  %v7641_v48 = vpop.f32.mrf.mxu0  ;;  %v17103_v10 = vadd.f32 %v18531_v27, %v16840_v7 }
 0xa85   :  { %v16861_v54 = vadd.f32 %v7641_v48, %v16849_v60  ;;  %18497 = vst [vmem:[#allocation75_spill] sm:$0xff] %v16864_v58  ;;  %v16867_v59 = vadd.f32 %v7798_v53, %v16846_v52  ;;  %v16880_v48 = vadd.f32 %v7631_v11, %v16843_v4  ;;  %v16883_v53 = vadd.f32 %v7792_v51, %v16846_v52 }
 0xa86   :  { %v7802_v14 = vpop.f32.mrf.mxu1  ;;  %v7643_v35 = vpop.f32.mrf.mxu0  ;;  %v16896_v11 = vadd.f32 %v7625_v28, %v16843_v4  ;;  %v16899_v51 = vadd.f32 %v7786_v50, %v16846_v52  ;;  %v16912_v28 = vadd.f32 %v7619_v13, %v16843_v4  ;;  %v16915_v50 = vadd.f32 %v7780_v47, %v16846_v52 }
 0xa87   :  { %v16852_v20 = vadd.f32 %v7802_v14, %v16840_v7  ;;  %v16855_v3 = vadd.f32 %v7643_v35, %v16843_v4  ;;  %18496 = vst [vmem:[#allocation74_spill] sm:$0xff] %v16861_v54  ;;  %18498 = vst [vmem:[#allocation76_spill] sm:$0xff] %v16867_v59  ;;  %v16872_v14 = vadd.f32 %v7635_v45, %v16849_v60 }
 0xa88   :  { %v7804_v39 = vpop.f32.mrf.mxu1  ;;  %v16875_v35 = vadd.f32 %v7796_v16, %v16840_v7  ;;  %18501 = vst [vmem:[#allocation79_spill] sm:$0xff] %v16880_v48  ;;  %18502 = vst [vmem:[#allocation80_spill] sm:$0xff] %v16883_v53  ;;  %v16891_v45 = vadd.f32 %v7790_v44, %v16840_v7  ;;  %v16907_v44 = vadd.f32 %v7784_v24, %v16840_v7 }
 0xa89   :  { %18493 = vst [vmem:[#allocation71_spill] sm:$0xff] %v16852_v20  ;;  %18494 = vst [vmem:[#allocation72_spill] sm:$0xff] %v16855_v3  ;;  %v16858_v34 = vadd.f32 %v7804_v39, %v16846_v52  ;;  %7809 = vmatprep.subr.mxu0 %v16855_v3  ;;  %v16888_v39 = vadd.f32 %v7629_v46, %v16849_v60  ;;  %v16904_v46 = vadd.f32 %v7623_v62, %v16849_v60 }
 0xa8a   :  { %18499 = vst [vmem:[#allocation77_spill] sm:$0xff] %v16872_v14  ;;  %18500 = vst [vmem:[#allocation78_spill] sm:$0xff] %v16875_v35  ;;  %7810 = vmatpush1.msra.mxu0 %v16861_v54  ;;  %v16920_v62 = vadd.f32 %v7617_v19, %v16849_v60  ;;  %v16923_v24 = vadd.f32 %v7778_v55, %v16840_v7  ;;  %v16929_v13 = vadd.f32 %v16823_v61, %v16843_v4 }
 0xa8b   :  { %18495 = vst [vmem:[#allocation73_spill] sm:$0xff] %v16858_v34  ;;  %7880 = vmatprep.subr.mxu1 %v16858_v34  ;;  %7811 = vmatprep.subr.mxu0 %v16864_v58  ;;  %18503 = vst [vmem:[#allocation81_spill] sm:$0xff] %v16888_v39  ;;  %v16933_v47 = vadd.f32 %v16825_v63, %v16846_v52  ;;  %v16939_v19 = vadd.f32 %v16819_v15, %v16849_v60 }
 0xa8c   :  { %7881 = vmatpush1.msra.mxu1 %v16852_v20  ;;  %18504 = vst [vmem:[#allocation82_spill] sm:$0xff] %v16891_v45  ;;  %7812 = vmatpush1.msra.mxu0 %v16872_v14  ;;  %18505 = vst [vmem:[#allocation83_spill] sm:$0xff] %v16896_v11  ;;  %v16943_v55 = vadd.f32 %v16821_v56, %v16840_v7  ;;  %v16949_v61 = vadd.f32 %v16815_v22, %v16843_v4 }
 0xa8d   :  { %7882 = vmatprep.subr.mxu1 %v16867_v59  ;;  %18506 = vst [vmem:[#allocation84_spill] sm:$0xff] %v16899_v51  ;;  %7813 = vmatprep.subr.mxu0 %v16880_v48  ;;  %18507 = vst [vmem:[#allocation85_spill] sm:$0xff] %v16904_v46  ;;  %v16953_v63 = vadd.f32 %v16817_v18, %v16846_v52  ;;  %v16959_v15 = vadd.f32 %v16811_v5, %v16849_v60 }
 0xa8e   :  { %7883 = vmatpush1.msra.mxu1 %v16875_v35  ;;  %18508 = vst [vmem:[#allocation86_spill] sm:$0xff] %v16907_v44  ;;  %7814 = vmatpush1.msra.mxu0 %v16888_v39  ;;  %18509 = vst [vmem:[#allocation87_spill] sm:$0xff] %v16912_v28  ;;  %v16963_v56 = vadd.f32 %v16813_v26, %v16840_v7  ;;  %v16969_v22 = vadd.f32 %v16807_v40, %v16843_v4 }
 0xa8f   :  { %7884 = vmatprep.subr.mxu1 %v16883_v53  ;;  %18510 = vst [vmem:[#allocation88_spill] sm:$0xff] %v16915_v50  ;;  %7815 = vmatprep.subr.mxu0 %v16896_v11  ;;  %18511 = vst [vmem:[#allocation89_spill] sm:$0xff] %v16920_v62  ;;  %v16973_v18 = vadd.f32 %v16809_v9, %v16846_v52  ;;  %v16979_v5 = vadd.f32 %v16803_v17, %v16849_v60 }
 0xa90   :  { %7885 = vmatpush1.msra.mxu1 %v16891_v45  ;;  %18512 = vst [vmem:[#allocation90_spill] sm:$0xff] %v16923_v24  ;;  %7816 = vmatpush1.msra.mxu0 %v16904_v46  ;;  %18513 = vst [vmem:[#allocation91_spill] sm:$0xff] %v16929_v13  ;;  %v16983_v26 = vadd.f32 %v16805_v25, %v16840_v7  ;;  %v16989_v40 = vadd.f32 %v16799_v2, %v16843_v4 }
 0xa91   :  { %7886 = vmatprep.subr.mxu1 %v16899_v51  ;;  %18514 = vst [vmem:[#allocation92_spill] sm:$0xff] %v16933_v47  ;;  %7817 = vmatprep.subr.mxu0 %v16912_v28  ;;  %18515 = vst [vmem:[#allocation93_spill] sm:$0xff] %v16939_v19  ;;  %v16993_v9 = vadd.f32 %v16801_v36, %v16846_v52  ;;  %v16999_v17 = vadd.f32 %v16795_v42, %v16849_v60 }
 0xa92   :  { %7887 = vmatpush1.msra.mxu1 %v16907_v44  ;;  %18516 = vst [vmem:[#allocation94_spill] sm:$0xff] %v16943_v55  ;;  %7818 = vmatpush1.msra.mxu0 %v16920_v62  ;;  %18517 = vst [vmem:[#allocation95_spill] sm:$0xff] %v16949_v61  ;;  %v17003_v25 = vadd.f32 %v16797_v8, %v16840_v7  ;;  %v17009_v2 = vadd.f32 %v16791_v29, %v16843_v4 }
 0xa93   :  { %7888 = vmatprep.subr.mxu1 %v16915_v50  ;;  %18518 = vst [vmem:[#allocation96_spill] sm:$0xff] %v16953_v63  ;;  %7819 = vmatprep.subr.mxu0 %v16929_v13  ;;  %18519 = vst [vmem:[#allocation97_spill] sm:$0xff] %v16959_v15  ;;  %v17013_v36 = vadd.f32 %v16793_v33, %v16846_v52  ;;  %v17019_v42 = vadd.f32 %v16787_v38, %v16849_v60 }
 0xa94   :  { %7889 = vmatpush1.msra.mxu1 %v16923_v24  ;;  %18520 = vst [vmem:[#allocation98_spill] sm:$0xff] %v16963_v56  ;;  %7820 = vmatpush1.msra.mxu0 %v16939_v19  ;;  %v17023_v8 = vadd.f32 %v16789_v12, %v16840_v7  ;;  %v17029_v29 = vadd.f32 %v16783_v1, %v16843_v4 }
 0xa95   :  { %7890 = vmatprep.subr.mxu1 %v16933_v47  ;;  %7821 = vmatprep.subr.mxu0 %v16949_v61  ;;  %v17033_v33 = vadd.f32 %v16785_v37, %v16846_v52  ;;  %v17039_v38 = vadd.f32 %v16779_v41, %v16849_v60  ;;  %v17043_v12 = vadd.f32 %v16781_v6, %v16840_v7 }
 0xa96   :  { %7891 = vmatpush1.msra.mxu1 %v16943_v55  ;;  %7822 = vmatpush1.msra.mxu0 %v16959_v15  ;;  %v17049_v1 = vadd.f32 %v16775_v57, %v16843_v4  ;;  %v17053_v37 = vadd.f32 %v16777_v0, %v16846_v52  ;;  %v17059_v41 = vadd.f32 %v16771_v30, %v16849_v60 }
 0xa97   :  { %7892 = vmatprep.subr.mxu1 %v16953_v63  ;;  %7823 = vmatprep.subr.mxu0 %v16969_v22  ;;  %v17063_v6 = vadd.f32 %v16773_v21, %v16840_v7  ;;  %v17069_v57 = vadd.f32 %v16767_v31, %v16843_v4  ;;  %v17073_v0 = vadd.f32 %v16769_v23, %v16846_v52  ;;  %v18527_v23 = vld [vmem:[#allocation13_spill] sm:$0xff] }
 0xa98   :  { %7893 = vmatpush1.msra.mxu1 %v16963_v56  ;;  %7824 = vmatpush1.msra.mxu0 %v16979_v5  ;;  %v17079_v30 = vadd.f32 %v16763_v32, %v16849_v60  ;;  %v17083_v21 = vadd.f32 %v16765_v43, %v16840_v7  ;;  %v17089_v31 = vadd.f32 %v16759_v49, %v16843_v4  ;;  %v18529_v32 = vld [vmem:[#allocation16_spill] sm:$0xff]  ;;  %v18532_v49 = vld [vmem:[#allocation10_spill] sm:$0xff] }
 0xa99   :  { %7894 = vmatprep.subr.mxu1 %v16973_v18  ;;  %7825 = vmatprep.subr.mxu0 %v16989_v40  ;;  %18521 = vst [vmem:[#allocation99_spill] sm:$0xff] %v17063_v6  ;;  %18522 = vst [vmem:[#allocation100_spill] sm:$0xff] %v17069_v57  ;;  %v17093_v16 = vadd.f32 %v18527_v23, %v16846_v52  ;;  %v17099_v43 = vadd.f32 %v18529_v32, %v16849_v60  ;;  %v18534_v32 = vld [vmem:[#allocation20_spill] sm:$0xff] }
 0xa9a   :  { %7895 = vmatpush1.msra.mxu1 %v16983_v26  ;;  %7826 = vmatpush1.msra.mxu0 %v16999_v17  ;;  %18523 = vst [vmem:[#allocation101_spill] sm:$0xff] %v17073_v0  ;;  %18524 = vst [vmem:[#allocation102_spill] sm:$0xff] %v17079_v30  ;;  %v17109_v23 = vadd.f32 %v18532_v49, %v16843_v4  ;;  %v17119_v27 = vadd.f32 %v18534_v32, %v16849_v60  ;;  %v18536_v49 = vld [vmem:[#allocation9_spill] sm:$0xff] }
 0xa9b   :  { %7896 = vmatprep.subr.mxu1 %v16993_v9  ;;  %7827 = vmatprep.subr.mxu0 %v17009_v2  ;;  %18525 = vst [vmem:[#allocation103_spill] sm:$0xff] %v17083_v21  ;;  %18526 = vst [vmem:[#allocation104_spill] sm:$0xff] %v17089_v31  ;;  %v18538_v32 = vld [vmem:[#allocation21_spill] sm:$0xff] }
 0xa9c   :  { %7897 = vmatpush1.msra.mxu1 %v17003_v25  ;;  %7828 = vmatpush1.msra.mxu0 %v17019_v42  ;;  %18528 = vst [vmem:[#allocation13_spill] sm:$0xff] %v17093_v16  ;;  %18530 = vst [vmem:[#allocation16_spill] sm:$0xff] %v17099_v43 }
 0xa9d   :  { %7898 = vmatprep.subr.mxu1 %v17013_v36  ;;  %7829 = vmatprep.subr.mxu0 %v17029_v29 }
 0xa9e   :  { %7899 = vmatpush1.msra.mxu1 %v17023_v8  ;;  %7830 = vmatpush1.msra.mxu0 %v17039_v38 }
 0xa9f   :  { %7900 = vmatprep.subr.mxu1 %v17033_v33  ;;  %7831 = vmatprep.subr.mxu0 %v17049_v1 }
 0xaa0   :  { %7901 = vmatpush1.msra.mxu1 %v17043_v12  ;;  %7832 = vmatpush1.msra.mxu0 %v17059_v41 }
 0xaa1   :  { %7902 = vmatprep.subr.mxu1 %v17053_v37  ;;  %7833 = vmatprep.subr.mxu0 %v17069_v57  ;;  %v18533_v57 = vld [vmem:[#allocation19_spill] sm:$0xff] }
 0xaa2   :  { %7903 = vmatpush1.msra.mxu1 %v17063_v6  ;;  %7834 = vmatpush1.msra.mxu0 %v17079_v30  ;;  %v17113_v6 = vadd.f32 %v18533_v57, %v16846_v52  ;;  %v18535_v30 = vld [vmem:[#allocation11_spill] sm:$0xff]  ;;  %v17129_v57 = vadd.f32 %v18536_v49, %v16843_v4  ;;  %v8014_v4 = vmul.f32 %v16858_v34, %v16858_v34 }
 0xaa3   :  { %7904 = vmatprep.subr.mxu1 %v17073_v0  ;;  %7835 = vmatprep.subr.mxu0 %v17089_v31  ;;  %v17123_v0 = vadd.f32 %v18535_v30, %v16840_v7  ;;  %v18537_v31 = vld [vmem:[#allocation18_spill] sm:$0xff]  ;;  %v17139_v30 = vadd.f32 %v18538_v32, %v16849_v60  ;;  %v8013_v60 = vmul.f32 %v16852_v20, %v16852_v20 }
 0xaa4   :  { %7905 = vmatpush1.msra.mxu1 %v17083_v21  ;;  %7836 = vmatpush1.msra.mxu0 %v17099_v43  ;;  %v17133_v21 = vadd.f32 %v18537_v31, %v16846_v52  ;;  %v18539_v43 = vld [vmem:[#allocation22_spill] sm:$0xff]  ;;  %v8012_v52 = vmul.f32 %v16855_v3, %v16855_v3  ;;  %v18540_v31 = vmov 1.0   ;;  %v8010_v49 = vmul.f32 %v16867_v59, %v16867_v59  ;;  %v18545_v59 = vld [vmem:[#allocation103_spill] sm:$0xff] }
 0xaa5   :  { %7906 = vmatprep.subr.mxu1 %v17093_v16  ;;  %7837 = vmatprep.subr.mxu0 %v17109_v23  ;;  %v17143_v16 = vadd.f32 %v18539_v43, %v16840_v7  ;;  %v8011_v7 = vmul.f32 %v16861_v54, %v16861_v54  ;;  %v8008_v43 = vmul.f32 %v16864_v58, %v16864_v58 }
 0xaa6   :  { %7907 = vmatpush1.msra.mxu1 %v17103_v10  ;;  %7838 = vmatpush1.msra.mxu0 %v17119_v27  ;;  %v8007_v32 = vmul.f32 %v16872_v14, %v16872_v14  ;;  %v8009_v54 = vmul.f32 %v16875_v35, %v16875_v35  ;;  %v8003_v20 = vmul.f32 %v16888_v39, %v16888_v39  ;;  %v18544_v35 = vld [vmem:[#allocation102_spill] sm:$0xff] }
 0xaa7   :  { %7908 = vmatprep.subr.mxu1 %v17113_v6  ;;  %7839 = vmatprep.subr.mxu0 %v17129_v57  ;;  %v8005_v34 = vmul.f32 %v16891_v45, %v16891_v45  ;;  %v7963_v14 = vmul.f32 %v18544_v35, %v18544_v35  ;;  %v7965_v58 = vmul.f32 %v18545_v59, %v18545_v59  ;;  %v18548_v45 = vld [vmem:[#allocation16_spill] sm:$0xff] }
 0xaa8   :  { %7909 = vmatpush1.msra.mxu1 %v17123_v0  ;;  %7840 = vmatpush1.msra.mxu0 %v17139_v30  ;;  %v7959_v39 = vmul.f32 %v18548_v45, %v18548_v45 }
 0xaa9   :  { %7910 = vmatprep.subr.mxu1 %v17133_v21  ;;  %7874 = vmatmul.mubr.f32.vlgmr.msra.gmra.mxu0 %v18540_v31 }
 0xaaa   :  { %7911 = vmatpush1.msra.mxu1 %v17143_v16  ;;  %8015 = vmatprep.subr.mxu0 %v8012_v52  ;;  %v8004_v52 = vmul.f32 %v16880_v48, %v16880_v48 }
 0xaab   :  { %7945 = vmatmul.mubr.f32.vlgmr.msra.gmra.mxu1 %v18540_v31  ;;  %8086 = vmatprep.subr.mxu1 %v8014_v4  ;;  %v8006_v4 = vmul.f32 %v16883_v53, %v16883_v53  ;;  %v7961_v53 = vmul.f32 %v17103_v10, %v17103_v10 }
 0xaac   :  { %8016 = vmatpush1.msra.mxu0 %v8011_v7  ;;  %8087 = vmatpush1.msra.mxu1 %v8013_v60  ;;  %v8000_v7 = vmul.f32 %v16896_v11, %v16896_v11  ;;  %v8002_v60 = vmul.f32 %v16899_v51, %v16899_v51  ;;  %v18552_v11 = vld [vmem:[#allocation17_spill] sm:$0xff] }
 0xaad   :  { %8017 = vmatprep.subr.mxu0 %v8008_v43  ;;  %8088 = vmatprep.subr.mxu1 %v8010_v49  ;;  %v7999_v43 = vmul.f32 %v16904_v46, %v16904_v46  ;;  %v8001_v49 = vmul.f32 %v16907_v44, %v16907_v44 }
 0xaae   :  { %8018 = vmatpush1.msra.mxu0 %v8007_v32  ;;  %8089 = vmatpush1.msra.mxu1 %v8009_v54  ;;  %v7996_v54 = vmul.f32 %v16912_v28, %v16912_v28  ;;  %v7998_v32 = vmul.f32 %v16915_v50, %v16915_v50 }
 0xaaf   :  { %8019 = vmatprep.subr.mxu0 %v8004_v52  ;;  %8090 = vmatprep.subr.mxu1 %v8006_v4  ;;  %v7995_v52 = vmul.f32 %v16920_v62, %v16920_v62  ;;  %v7997_v4 = vmul.f32 %v16923_v24, %v16923_v24 }
 0xab0   :  { %8020 = vmatpush1.msra.mxu0 %v8003_v20  ;;  %8091 = vmatpush1.msra.mxu1 %v8005_v34  ;;  %v7992_v20 = vmul.f32 %v16929_v13, %v16929_v13  ;;  %v7994_v34 = vmul.f32 %v16933_v47, %v16933_v47 }
 0xab1   :  { %8021 = vmatprep.subr.mxu0 %v8000_v7  ;;  %8092 = vmatprep.subr.mxu1 %v8002_v60  ;;  %v7991_v7 = vmul.f32 %v16939_v19, %v16939_v19  ;;  %v7993_v60 = vmul.f32 %v16943_v55, %v16943_v55 }
 0xab2   :  { %8022 = vmatpush1.msra.mxu0 %v7999_v43  ;;  %8093 = vmatpush1.msra.mxu1 %v8001_v49  ;;  %v7988_v43 = vmul.f32 %v16949_v61, %v16949_v61  ;;  %v7990_v49 = vmul.f32 %v16953_v63, %v16953_v63 }
 0xab3   :  { %8023 = vmatprep.subr.mxu0 %v7996_v54  ;;  %8094 = vmatprep.subr.mxu1 %v7998_v32  ;;  %v7987_v54 = vmul.f32 %v16959_v15, %v16959_v15  ;;  %v7989_v32 = vmul.f32 %v16963_v56, %v16963_v56 }
 0xab4   :  { %8024 = vmatpush1.msra.mxu0 %v7995_v52  ;;  %8095 = vmatpush1.msra.mxu1 %v7997_v4  ;;  %v7984_v52 = vmul.f32 %v16969_v22, %v16969_v22  ;;  %v7986_v4 = vmul.f32 %v16973_v18, %v16973_v18 }
 0xab5   :  { %8025 = vmatprep.subr.mxu0 %v7992_v20  ;;  %8096 = vmatprep.subr.mxu1 %v7994_v34  ;;  %v7983_v20 = vmul.f32 %v16979_v5, %v16979_v5  ;;  %v7985_v34 = vmul.f32 %v16983_v26, %v16983_v26 }
 0xab6   :  { %8026 = vmatpush1.msra.mxu0 %v7991_v7  ;;  %8097 = vmatpush1.msra.mxu1 %v7993_v60  ;;  %v7980_v7 = vmul.f32 %v16989_v40, %v16989_v40  ;;  %v7982_v60 = vmul.f32 %v16993_v9, %v16993_v9 }
 0xab7   :  { %8027 = vmatprep.subr.mxu0 %v7988_v43  ;;  %8098 = vmatprep.subr.mxu1 %v7990_v49  ;;  %v7979_v43 = vmul.f32 %v16999_v17, %v16999_v17  ;;  %v7981_v49 = vmul.f32 %v17003_v25, %v17003_v25 }
 0xab8   :  { %8028 = vmatpush1.msra.mxu0 %v7987_v54  ;;  %8099 = vmatpush1.msra.mxu1 %v7989_v32  ;;  %v7976_v54 = vmul.f32 %v17009_v2, %v17009_v2  ;;  %v7978_v32 = vmul.f32 %v17013_v36, %v17013_v36 }
 0xab9   :  { %8029 = vmatprep.subr.mxu0 %v7984_v52  ;;  %8100 = vmatprep.subr.mxu1 %v7986_v4  ;;  %v7975_v52 = vmul.f32 %v17019_v42, %v17019_v42  ;;  %v7977_v4 = vmul.f32 %v17023_v8, %v17023_v8 }
 0xaba   :  { %8030 = vmatpush1.msra.mxu0 %v7983_v20  ;;  %8101 = vmatpush1.msra.mxu1 %v7985_v34  ;;  %v7972_v20 = vmul.f32 %v17029_v29, %v17029_v29  ;;  %v7974_v34 = vmul.f32 %v17033_v33, %v17033_v33 }
 0xabb   :  { %8031 = vmatprep.subr.mxu0 %v7980_v7  ;;  %8102 = vmatprep.subr.mxu1 %v7982_v60  ;;  %v7971_v7 = vmul.f32 %v17039_v38, %v17039_v38  ;;  %v7973_v60 = vmul.f32 %v17043_v12, %v17043_v12 }
 0xabc   :  { %8032 = vmatpush1.msra.mxu0 %v7979_v43  ;;  %8103 = vmatpush1.msra.mxu1 %v7981_v49  ;;  %v7968_v43 = vmul.f32 %v17049_v1, %v17049_v1  ;;  %v7970_v49 = vmul.f32 %v17053_v37, %v17053_v37 }
 0xabd   :  { %8033 = vmatprep.subr.mxu0 %v7976_v54  ;;  %8104 = vmatprep.subr.mxu1 %v7978_v32  ;;  %v7967_v54 = vmul.f32 %v17059_v41, %v17059_v41  ;;  %v18541_v32 = vld [vmem:[#allocation99_spill] sm:$0xff] }
 0xabe   :  { %8034 = vmatpush1.msra.mxu0 %v7975_v52  ;;  %8105 = vmatpush1.msra.mxu1 %v7977_v4  ;;  %v7969_v3 = vmul.f32 %v18541_v32, %v18541_v32  ;;  %v18542_v52 = vld [vmem:[#allocation100_spill] sm:$0xff] }
 0xabf   :  { %8035 = vmatprep.subr.mxu0 %v7972_v20  ;;  %8106 = vmatprep.subr.mxu1 %v7974_v34  ;;  %v7964_v4 = vmul.f32 %v18542_v52, %v18542_v52  ;;  %v18543_v20 = vld [vmem:[#allocation101_spill] sm:$0xff] }
 0xac0   :  { %8036 = vmatpush1.msra.mxu0 %v7971_v7  ;;  %8107 = vmatpush1.msra.mxu1 %v7973_v60  ;;  %v7966_v34 = vmul.f32 %v18543_v20, %v18543_v20  ;;  %v18546_v7 = vld [vmem:[#allocation104_spill] sm:$0xff] }
 0xac1   :  { %8037 = vmatprep.subr.mxu0 %v7968_v43  ;;  %8108 = vmatprep.subr.mxu1 %v7970_v49  ;;  %v7960_v60 = vmul.f32 %v18546_v7, %v18546_v7  ;;  %v18547_v43 = vld [vmem:[#allocation13_spill] sm:$0xff] }
 0xac2   :  { %8038 = vmatpush1.msra.mxu0 %v7967_v54  ;;  %8109 = vmatpush1.msra.mxu1 %v7969_v3  ;;  %v7962_v49 = vmul.f32 %v18547_v43, %v18547_v43  ;;  %v7956_v3 = vmul.f32 %v17109_v23, %v17109_v23  ;;  %v7958_v54 = vmul.f32 %v17113_v6, %v17113_v6 }
 0xac3   :  { %8039 = vmatprep.subr.mxu0 %v7964_v4  ;;  %8110 = vmatprep.subr.mxu1 %v7966_v34  ;;  %v7955_v4 = vmul.f32 %v17119_v27, %v17119_v27  ;;  %v7957_v34 = vmul.f32 %v17123_v0, %v17123_v0 }
 0xac4   :  { %8040 = vmatpush1.msra.mxu0 %v7963_v14  ;;  %8111 = vmatpush1.msra.mxu1 %v7965_v58  ;;  %v7952_v58 = vmul.f32 %v17129_v57, %v17129_v57  ;;  %v7954_v14 = vmul.f32 %v17133_v21, %v17133_v21 }
 0xac5   :  { %8041 = vmatprep.subr.mxu0 %v7960_v60  ;;  %8112 = vmatprep.subr.mxu1 %v7962_v49  ;;  %v7951_v60 = vmul.f32 %v17139_v30, %v17139_v30  ;;  %v7953_v49 = vmul.f32 %v17143_v16, %v17143_v16 }
 0xac6   :  { %8042 = vmatpush1.msra.mxu0 %v7959_v39  ;;  %8113 = vmatpush1.msra.mxu1 %v7961_v53  ;;  %v18549_v53 = vmov 0.0   ;;  %v8610_v39 = vld [vmem:[%s18082_s18 + $0xf8] sm:$0xff] }
 0xac7   :  { %8043 = vmatprep.subr.mxu0 %v7956_v3  ;;  %8114 = vmatprep.subr.mxu1 %v7958_v54  ;;  %v8642_v3 = vld [vmem:[%s18082_s18 + $0x1f8] sm:$0xff] }
 0xac8   :  { %8044 = vmatpush1.msra.mxu0 %v7955_v4  ;;  %8115 = vmatpush1.msra.mxu1 %v7957_v34  ;;  %v8594_v54 = vld [vmem:[%s18082_s18 + $0x78] sm:$0xff]  ;;  %v8641_v34 = vld [vmem:[%s18082_s18 + $0x1f0] sm:$0xff] }
 0xac9   :  { %8045 = vmatprep.subr.mxu0 %v7952_v58  ;;  %8116 = vmatprep.subr.mxu1 %v7954_v14  ;;  %v8626_v4 = vld [vmem:[%s18082_s18 + $0x178] sm:$0xff]  ;;  %v8593_v58 = vld [vmem:[%s18082_s18 + $0x70] sm:$0xff] }
 0xaca   :  { %8046 = vmatpush1.msra.mxu0 %v7951_v60  ;;  %8079 = vmatprep.mubr.f32.mxu0 %v18549_v53  ;;  %v8625_v14 = vld [vmem:[%s18082_s18 + $0x170] sm:$0xff]  ;;  %v8608_v60 = vld [vmem:[%s18082_s18 + $0xe8] sm:$0xff] }
 0xacb   :  { %8117 = vmatpush1.msra.mxu1 %v7953_v49  ;;  %8150 = vmatprep.mubr.f32.mxu1 %v18549_v53  ;;  %v8640_v49 = vld [vmem:[%s18082_s18 + $0x1e8] sm:$0xff] }
 0xacc   :  { %8080 = vmatmul.mubr.f32.vlgmr.msra.gmra.mxu0 %v18540_v31  ;;  %8151 = vmatmul.mubr.f32.vlgmr.msra.gmra.mxu1 %v18540_v31  ;;  %v8609_v31 = vld [vmem:[%s18082_s18 + $0xf0] sm:$0xff]  ;;  %v8592_v53 = vld [vmem:[%s18082_s18 + $0x68] sm:$0xff] }
 0xacd   :  { %10039 = vmatprep.subr.mxu0 %v8610_v39  ;;  %10119 = vmatprep.subr.mxu1 %v8642_v3  ;;  %v8624_v39 = vld [vmem:[%s18082_s18 + $0x168] sm:$0xff]  ;;  %v8607_v3 = vld [vmem:[%s18082_s18 + $0xe0] sm:$0xff] }
 0xace   :  { %10040 = vmatpush3.msra.mxu0 %v8594_v54  ;;  %10120 = vmatpush3.msra.mxu1 %v8626_v4  ;;  %v8639_v54 = vld [vmem:[%s18082_s18 + $0x1e0] sm:$0xff] }
 0xacf   :  { %10041 = vmatprep.subr.mxu0 %v8609_v31  ;;  %10121 = vmatprep.subr.mxu1 %v8641_v34  ;;  %v8591_v4 = vld [vmem:[%s18082_s18 + $0x60] sm:$0xff]  ;;  %v8606_v34 = vld [vmem:[%s18082_s18 + $0xd8] sm:$0xff] }
 0xad0   :  { %10042 = vmatpush3.msra.mxu0 %v8593_v58  ;;  %10122 = vmatpush3.msra.mxu1 %v8625_v14  ;;  %v8623_v31 = vld [vmem:[%s18082_s18 + $0x160] sm:$0xff]  ;;  %v8638_v58 = vld [vmem:[%s18082_s18 + $0x1d8] sm:$0xff] }
 0xad1   :  { %10043 = vmatprep.subr.mxu0 %v8608_v60  ;;  %10123 = vmatprep.subr.mxu1 %v8640_v49  ;;  %v8590_v14 = vld [vmem:[%s18082_s18 + $0x58] sm:$0xff]  ;;  %v8605_v49 = vld [vmem:[%s18082_s18 + $0xd0] sm:$0xff] }
 0xad2   :  { %10044 = vmatpush3.msra.mxu0 %v8592_v53  ;;  %10124 = vmatpush3.msra.mxu1 %v8624_v39  ;;  %v8622_v60 = vld [vmem:[%s18082_s18 + $0x158] sm:$0xff]  ;;  %v8637_v53 = vld [vmem:[%s18082_s18 + $0x1d0] sm:$0xff] }
 0xad3   :  { %10045 = vmatprep.subr.mxu0 %v8607_v3  ;;  %10125 = vmatprep.subr.mxu1 %v8639_v54  ;;  %v8589_v39 = vld [vmem:[%s18082_s18 + $0x50] sm:$0xff]  ;;  %v8604_v54 = vld [vmem:[%s18082_s18 + $0xc8] sm:$0xff] }
 0xad4   :  { %10046 = vmatpush3.msra.mxu0 %v8591_v4  ;;  %10126 = vmatpush3.msra.mxu1 %v8623_v31  ;;  %v8621_v3 = vld [vmem:[%s18082_s18 + $0x150] sm:$0xff]  ;;  %v8636_v4 = vld [vmem:[%s18082_s18 + $0x1c8] sm:$0xff] }
 0xad5   :  { %10047 = vmatprep.subr.mxu0 %v8606_v34  ;;  %10127 = vmatprep.subr.mxu1 %v8638_v58  ;;  %v8588_v31 = vld [vmem:[%s18082_s18 + $0x48] sm:$0xff]  ;;  %v8603_v58 = vld [vmem:[%s18082_s18 + $0xc0] sm:$0xff] }
 0xad6   :  { %10048 = vmatpush3.msra.mxu0 %v8590_v14  ;;  %10128 = vmatpush3.msra.mxu1 %v8622_v60  ;;  %v8620_v34 = vld [vmem:[%s18082_s18 + $0x148] sm:$0xff]  ;;  %v8635_v14 = vld [vmem:[%s18082_s18 + $0x1c0] sm:$0xff] }
 0xad7   :  { %10049 = vmatprep.subr.mxu0 %v8605_v49  ;;  %10129 = vmatprep.subr.mxu1 %v8637_v53  ;;  %v8587_v60 = vld [vmem:[%s18082_s18 + $0x40] sm:$0xff]  ;;  %v8602_v53 = vld [vmem:[%s18082_s18 + $0xb8] sm:$0xff] }
 0xad8   :  { %10050 = vmatpush3.msra.mxu0 %v8589_v39  ;;  %10130 = vmatpush3.msra.mxu1 %v8621_v3  ;;  %v8619_v49 = vld [vmem:[%s18082_s18 + $0x140] sm:$0xff]  ;;  %v8634_v39 = vld [vmem:[%s18082_s18 + $0x1b8] sm:$0xff] }
 0xad9   :  { %10051 = vmatprep.subr.mxu0 %v8604_v54  ;;  %10131 = vmatprep.subr.mxu1 %v8636_v4  ;;  %v8586_v3 = vld [vmem:[%s18082_s18 + $0x38] sm:$0xff]  ;;  %v8601_v4 = vld [vmem:[%s18082_s18 + $0xb0] sm:$0xff] }
 0xada   :  { %10052 = vmatpush3.msra.mxu0 %v8588_v31  ;;  %10132 = vmatpush3.msra.mxu1 %v8620_v34  ;;  %v8618_v54 = vld [vmem:[%s18082_s18 + $0x138] sm:$0xff]  ;;  %v8633_v31 = vld [vmem:[%s18082_s18 + $0x1b0] sm:$0xff] }
 0xadb   :  { %10053 = vmatprep.subr.mxu0 %v8603_v58  ;;  %10133 = vmatprep.subr.mxu1 %v8635_v14  ;;  %v8585_v34 = vld [vmem:[%s18082_s18 + $0x30] sm:$0xff]  ;;  %v8600_v14 = vld [vmem:[%s18082_s18 + $0xa8] sm:$0xff] }
 0xadc   :  { %10054 = vmatpush3.msra.mxu0 %v8587_v60  ;;  %10134 = vmatpush3.msra.mxu1 %v8619_v49  ;;  %v8617_v58 = vld [vmem:[%s18082_s18 + $0x130] sm:$0xff]  ;;  %v8632_v60 = vld [vmem:[%s18082_s18 + $0x1a8] sm:$0xff] }
 0xadd   :  { %10055 = vmatprep.subr.mxu0 %v8602_v53  ;;  %10135 = vmatprep.subr.mxu1 %v8634_v39  ;;  %v8584_v49 = vld [vmem:[%s18082_s18 + $0x28] sm:$0xff]  ;;  %v8599_v39 = vld [vmem:[%s18082_s18 + $0xa0] sm:$0xff] }
 0xade   :  { %10056 = vmatpush3.msra.mxu0 %v8586_v3  ;;  %10136 = vmatpush3.msra.mxu1 %v8618_v54  ;;  %v8616_v53 = vld [vmem:[%s18082_s18 + $0x128] sm:$0xff]  ;;  %v8631_v3 = vld [vmem:[%s18082_s18 + $0x1a0] sm:$0xff] }
 0xadf   :  { %10057 = vmatprep.subr.mxu0 %v8601_v4  ;;  %10137 = vmatprep.subr.mxu1 %v8633_v31  ;;  %v8583_v54 = vld [vmem:[%s18082_s18 + $0x20] sm:$0xff]  ;;  %v8598_v31 = vld [vmem:[%s18082_s18 + $0x98] sm:$0xff] }
 0xae0   :  { %10058 = vmatpush3.msra.mxu0 %v8585_v34  ;;  %10138 = vmatpush3.msra.mxu1 %v8617_v58  ;;  %v8615_v4 = vld [vmem:[%s18082_s18 + $0x120] sm:$0xff]  ;;  %v8630_v34 = vld [vmem:[%s18082_s18 + $0x198] sm:$0xff] }
 0xae1   :  { %10059 = vmatprep.subr.mxu0 %v8600_v14  ;;  %10139 = vmatprep.subr.mxu1 %v8632_v60  ;;  %v8582_v58 = vld [vmem:[%s18082_s18 + $0x18] sm:$0xff]  ;;  %v8597_v60 = vld [vmem:[%s18082_s18 + $0x90] sm:$0xff] }
 0xae2   :  { %10060 = vmatpush3.msra.mxu0 %v8584_v49  ;;  %10140 = vmatpush3.msra.mxu1 %v8616_v53  ;;  %v8614_v14 = vld [vmem:[%s18082_s18 + $0x118] sm:$0xff]  ;;  %v8629_v49 = vld [vmem:[%s18082_s18 + $0x190] sm:$0xff] }
 0xae3   :  { %10061 = vmatprep.subr.mxu0 %v8599_v39  ;;  %10141 = vmatprep.subr.mxu1 %v8631_v3  ;;  %v8581_v53 = vld [vmem:[%s18082_s18 + $0x10] sm:$0xff]  ;;  %v8596_v3 = vld [vmem:[%s18082_s18 + $0x88] sm:$0xff] }
 0xae4   :  { %10062 = vmatpush3.msra.mxu0 %v8583_v54  ;;  %10142 = vmatpush3.msra.mxu1 %v8615_v4  ;;  %v8613_v39 = vld [vmem:[%s18082_s18 + $0x110] sm:$0xff]  ;;  %v8628_v54 = vld [vmem:[%s18082_s18 + $0x188] sm:$0xff] }
 0xae5   :  { %10063 = vmatprep.subr.mxu0 %v8598_v31  ;;  %10143 = vmatprep.subr.mxu1 %v8630_v34  ;;  %v8580_v4 = vld [vmem:[%s18082_s18 + $0x8] sm:$0xff]  ;;  %v8595_v34 = vld [vmem:[%s18082_s18 + $0x80] sm:$0xff] }
 0xae6   :  { %10064 = vmatpush3.msra.mxu0 %v8582_v58  ;;  %10144 = vmatpush3.msra.mxu1 %v8614_v14  ;;  %v8612_v31 = vld [vmem:[%s18082_s18 + $0x108] sm:$0xff]  ;;  %v8627_v58 = vld [vmem:[%s18082_s18 + $0x180] sm:$0xff] }
 0xae7   :  { %10065 = vmatprep.subr.mxu0 %v8597_v60  ;;  %10145 = vmatprep.subr.mxu1 %v8629_v49  ;;  %v8579_v14 = vld [vmem:[%s18082_s18] sm:$0xff] }
 0xae8   :  { %10066 = vmatpush3.msra.mxu0 %v8581_v53  ;;  %10146 = vmatpush3.msra.mxu1 %v8613_v39  ;;  %v8611_v60 = vld [vmem:[%s18082_s18 + $0x100] sm:$0xff] }
 0xae9   :  { %10067 = vmatprep.subr.mxu0 %v8596_v3  ;;  %10147 = vmatprep.subr.mxu1 %v8628_v54  ;;  %v7807_v3 = vld [vmem:[%s18080_s16] sm:$0xf] }
 0xaea   :  { %10068 = vmatpush3.msra.mxu0 %v8580_v4  ;;  %10148 = vmatpush3.msra.mxu1 %v8612_v31 }
 0xaeb   :  { %10069 = vmatprep.subr.mxu0 %v8595_v34  ;;  %10149 = vmatprep.subr.mxu1 %v8627_v58  ;;  %v18550_v34 = vld [vmem:[#allocation14_spill] sm:$0xff] }
 0xaec   :  { %10070 = vmatpush3.msra.mxu0 %v8579_v14  ;;  %10150 = vmatpush3.msra.mxu1 %v8611_v60  ;;  %v17481_v58 = vrot.slane %v7807_v3, %v18550_v34  ;;  %v17484_v14 = vrot.slane %v7807_v3, %v18552_v11 }
 0xaee   :  { %18551 = vst [vmem:[#allocation12_spill] sm:$0xff] %v17481_v58  ;;  %18553 = vst [vmem:[#allocation10_spill] sm:$0xff] %v17484_v14  ;;  %v7808_v14 = vld [vmem:[%s18081_s17] sm:$0xf] }
 0xb69   :  { %v7875_v49 = vpop.f32.mrf.mxu0 }
 0xb6a   :  { %v8157_v54 = vmul.f32 0.0078125, %v7875_v49  ;;  %v18554_v49 = vld [vmem:[#allocation15_spill] sm:$0xff] }
 0xb6b   :  { %v7946_v53 = vpop.f32.mrf.mxu1  ;;  %v7877_v39 = vpop.f32.mrf.mxu0  ;;  %v17502_v63 = vrot.slane %v7808_v14, %v18554_v49 }
 0xb6c   :  { %v8158_v44 = vmul.f32 0.0078125, %v7877_v39  ;;  %v8159_v31 = vmul.f32 0.0078125, %v7946_v53  ;;  %v8165_v60 = vmul.f32 %v8157_v54, %v8157_v54  ;;  %v17487_v39 = vrot.slane %v7807_v3, %v18554_v49 }
 0xb6d   :  { %v7948_v48 = vpop.f32.mrf.mxu1  ;;  %18556 = vst [vmem:[#allocation19_spill] sm:$0xff] %v17502_v63 }
 0xb6e   :  { %v8160_v4 = vmul.f32 0.0078125, %v7948_v48  ;;  %v8167_v24 = vmul.f32 %v8159_v31, %v8159_v31  ;;  %v8166_v28 = vmul.f32 %v8158_v44, %v8158_v44  ;;  %v18555_v48 = vld [vmem:[#allocation70_spill] sm:$0xff] }
 0xb6f   :  { %v17490_v53 = vrot.slane %v7807_v3, %v18555_v48  ;;  %v17505_v3 = vrot.slane %v7808_v14, %v18555_v48 }
 0xb70   :  { %v8168_v55 = vmul.f32 %v8160_v4, %v8160_v4 }
 0xb71   :  { %18557 = vst [vmem:[#allocation20_spill] sm:$0xff] %v17505_v3 }
 0xb8c   :  { %v8081_v46 = vpop.f32.mrf.mxu0  ;;  %v8152_v51 = vpop.f32.mrf.mxu1 }
 0xb8d   :  { %v8161_v62 = vmul.f32 0.0078125, %v8081_v46  ;;  %v8163_v50 = vmul.f32 0.0078125, %v8152_v51  ;;  %v17496_v51 = vrot.slane %v8157_v54, %v18552_v11  ;;  %v17499_v46 = vrot.slane %v8159_v31, %v18552_v11 }
 0xb8e   :  { %v8083_v19 = vpop.f32.mrf.mxu0  ;;  %v8154_v47 = vpop.f32.mrf.mxu1  ;;  %v17514_v54 = vrot.slane %v7808_v14, %v18552_v11  ;;  %v17517_v31 = vrot.slane %v7808_v14, %v18550_v34 }
 0xb8f   :  { %v8169_v58 = vsub.f32 %v8161_v62, %v8165_v60  ;;  %v8171_v13 = vsub.f32 %v8163_v50, %v8167_v24  ;;  %v8162_v56 = vmul.f32 0.0078125, %v8083_v19  ;;  %v8164_v15 = vmul.f32 0.0078125, %v8154_v47 }
 0xb90   :  { %v17508_v19 = vrot.slane %v8158_v44, %v18552_v11  ;;  %v17511_v60 = vrot.slane %v8160_v4, %v18552_v11  ;;  %v18591_v44 = vld [vmem:[#allocation12_spill] sm:$0xff] }
 0xb91   :  { %v8173_v62 = vmax.f32 %v8169_v58, 0.0  ;;  %v8175_v50 = vmax.f32 %v8171_v13, 0.0  ;;  %v8170_v24 = vsub.f32 %v8162_v56, %v8166_v28  ;;  %v8172_v47 = vsub.f32 %v8164_v15, %v8168_v55 }
 0xb93   :  { %v8257_v49 = vadd.f32 1e-05, %v8173_v62  ;;  %v8259_v63 = vadd.f32 1e-05, %v8175_v50  ;;  %v8174_v48 = vmax.f32 %v8170_v24, 0.0  ;;  %v8176_v3 = vmax.f32 %v8172_v47, 0.0 }
 0xb94   :  { %v18581_v62 = vsub.f32 %v17139_v30, %v17496_v51  ;;  %v18585_v30 = vsub.f32 %v17123_v0, %v17499_v46  ;;  %v18590_v0 = vsub.f32 %v17133_v21, %v17511_v60  ;;  %v18593_v21 = vsub.f32 %v18548_v45, %v17496_v51 }
 0xb95   :  { %12029 = vrsqrt.f32 %v8257_v49  ;;  %v8258_v15 = vadd.f32 1e-05, %v8174_v48  ;;  %v8260_v56 = vadd.f32 1e-05, %v8176_v3 }
 0xb96   :  { %12031 = vrsqrt.f32 %v8259_v63 }
 0xb97   :  { %12033 = vrsqrt.f32 %v8258_v15 }
 0xb98   :  { %12035 = vrsqrt.f32 %v8260_v56  ;;  %v18597_v56 = vld [vmem:[#allocation20_spill] sm:$0xff] }
 0xba2   :  { %v12030_v58 = vpop.eup %12029 }
 0xba3   :  { %v12032_v28 = vpop.eup %12031  ;;  %v17628_v63 = vrot.slane %v12030_v58, %v18552_v11 }
 0xba4   :  { %v12034_v24 = vpop.eup %12033  ;;  %v17637_v55 = vrot.slane %v12032_v28, %v18552_v11  ;;  %v18582_v28 = vsub.f32 %v17119_v27, %v17496_v51 }
 0xba5   :  { %v12036_v49 = vpop.eup %12035  ;;  %v17646_v47 = vrot.slane %v12034_v24, %v18552_v11  ;;  %v8281_v3 = vmul.f32 %v17628_v63, %v18581_v62  ;;  %v18584_v24 = vsub.f32 %v17143_v16, %v17499_v46  ;;  %v18589_v16 = vsub.f32 %v17109_v23, %v17508_v19 }
 0xba6   :  { %v8285_v4 = vmul.f32 %v17628_v63, %v18582_v28  ;;  %v17659_v13 = vrot.slane %v12036_v49, %v18552_v11  ;;  %v8287_v62 = vmul.f32 %v17637_v55, %v18585_v30  ;;  %v18587_v28 = vsub.f32 %v17129_v57, %v17508_v19  ;;  %v18588_v11 = vld [vmem:[#allocation10_spill] sm:$0xff] }
 0xba7   :  { %v8283_v14 = vmul.f32 %v17637_v55, %v18584_v24  ;;  %v8366_v49 = vmul.f32 %v18588_v11, %v8281_v3  ;;  %v8286_v24 = vmul.f32 %v17646_v47, %v18589_v16  ;;  %v18592_v57 = vsub.f32 %v17113_v6, %v17511_v60 }
 0xba8   :  { %v8282_v58 = vmul.f32 %v17646_v47, %v18587_v28  ;;  %v8370_v34 = vmul.f32 %v18588_v11, %v8285_v4  ;;  %v8284_v30 = vmul.f32 %v17659_v13, %v18590_v0  ;;  %v8372_v3 = vmul.f32 %v18591_v44, %v8287_v62 }
 0xba9   :  { %v8368_v27 = vmul.f32 %v18591_v44, %v8283_v14  ;;  %v8288_v28 = vmul.f32 %v17659_v13, %v18592_v57  ;;  %v8451_v16 = vadd.f32 %v17514_v54, %v8366_v49  ;;  %v8371_v4 = vmul.f32 %v17487_v39, %v8286_v24  ;;  %v18595_v57 = vld [vmem:[#allocation19_spill] sm:$0xff] }
 0xbaa   :  { %v8367_v23 = vmul.f32 %v17487_v39, %v8282_v58  ;;  %v8289_v0 = vmul.f32 %v17628_v63, %v18593_v21  ;;  %v8369_v14 = vmul.f32 %v17490_v53, %v8284_v30  ;;  %v18594_v62 = vsub.f32 %v17103_v10, %v17499_v46 }
 0xbab   :  { %v8453_v48 = vadd.f32 %v17517_v31, %v8368_v27  ;;  %v8373_v6 = vmul.f32 %v17490_v53, %v8288_v28  ;;  %v8456_v24 = vadd.f32 %v18595_v57, %v8371_v4  ;;  %v8455_v50 = vadd.f32 %v17514_v54, %v8370_v34 }
 0xbac   :  { %v8291_v58 = vmul.f32 %v17637_v55, %v18594_v62  ;;  %v8452_v49 = vadd.f32 %v18595_v57, %v8367_v23  ;;  %v8454_v30 = vadd.f32 %v18597_v56, %v8369_v14  ;;  %v8515_v15 = vmax.f32 %v8451_v16, 0.0 }
 0xbad   :  { %v8458_v27 = vadd.f32 %v18597_v56, %v8373_v6  ;;  %v8457_v28 = vadd.f32 %v17517_v31, %v8372_v3  ;;  %v8517_v10 = vmax.f32 %v8453_v48, 0.0  ;;  %v18598_v62 = vsub.f32 %v18546_v7, %v17508_v19 }
 0xbae   :  { %v8516_v61 = vmax.f32 %v8452_v49, 0.0  ;;  %v18599_v34 = vsub.f32 %v18547_v43, %v17511_v60  ;;  %v8518_v21 = vmax.f32 %v8454_v30, 0.0  ;;  %v8520_v45 = vmax.f32 %v8456_v24, 0.0 }
 0xbaf   :  { %v8290_v23 = vmul.f32 %v17646_v47, %v18598_v62  ;;  %v8374_v16 = vmul.f32 %v18588_v11, %v8289_v0  ;;  %v8376_v14 = vmul.f32 %v18591_v44, %v8291_v58  ;;  %v18600_v7 = vsub.f32 %v18542_v52, %v17508_v19 }
 0xbb0   :  { %v8292_v4 = vmul.f32 %v17659_v13, %v18599_v34  ;;  %8714 = vmatprep.mubr.f32.mxu0 %v8516_v61  ;;  %v18601_v43 = vsub.f32 %v18543_v20, %v17511_v60  ;;  %8859 = vmatprep.mubr.f32.mxu1 %v8518_v21  ;;  %v8522_v0 = vmax.f32 %v8458_v27, 0.0  ;;  %v18602_v24 = vsub.f32 %v18544_v35, %v17496_v51 }
 0xbb1   :  { %v8375_v3 = vmul.f32 %v17487_v39, %v8290_v23  ;;  %v8294_v6 = vmul.f32 %v17646_v47, %v18600_v7  ;;  %8715 = vmatmul.mubr.f32.vlgmr.msra.gmra.mxu0 %v8515_v15  ;;  %v8459_v58 = vadd.f32 %v17514_v54, %v8374_v16  ;;  %v8461_v61 = vadd.f32 %v17517_v31, %v8376_v14 }
 0xbb2   :  { %v8377_v48 = vmul.f32 %v17490_v53, %v8292_v4  ;;  %v8296_v49 = vmul.f32 %v17659_v13, %v18601_v43  ;;  %v8293_v30 = vmul.f32 %v17628_v63, %v18602_v24  ;;  %8860 = vmatmul.mubr.f32.vlgmr.msra.gmra.mxu1 %v8517_v10  ;;  %8719 = vmatprep.mubr.f32.mxu0 %v8520_v45  ;;  %v8519_v52 = vmax.f32 %v8455_v50, 0.0 }
 0xbb3   :  { %v8460_v62 = vadd.f32 %v18595_v57, %v8375_v3  ;;  %v8379_v21 = vmul.f32 %v17487_v39, %v8294_v6  ;;  %8864 = vmatprep.mubr.f32.mxu1 %v8522_v0  ;;  %v8521_v15 = vmax.f32 %v8457_v28, 0.0  ;;  %v8523_v27 = vmax.f32 %v8459_v58, 0.0 }
 0xbb4   :  { %v8462_v20 = vadd.f32 %v18597_v56, %v8377_v48  ;;  %v8381_v23 = vmul.f32 %v17490_v53, %v8296_v49  ;;  %v8378_v34 = vmul.f32 %v18588_v11, %v8293_v30  ;;  %v18603_v50 = vsub.f32 %v18545_v59, %v17499_v46 }
 0xbb5   :  { %v8524_v4 = vmax.f32 %v8460_v62, 0.0  ;;  %v8464_v16 = vadd.f32 %v18595_v57, %v8379_v21  ;;  %8720 = vmatmul.mubr.f32.gmra.mxu0 %v8519_v52  ;;  %v18604_v28 = vsub.f32 %v17049_v1, %v17508_v19  ;;  %v18605_v48 = vsub.f32 %v17053_v37, %v17511_v60 }
 0xbb6   :  { %v8526_v35 = vmax.f32 %v8462_v20, 0.0  ;;  %v8295_v45 = vmul.f32 %v17637_v55, %v18603_v50  ;;  %v8466_v10 = vadd.f32 %v18597_v56, %v8381_v23  ;;  %v8463_v14 = vadd.f32 %v17514_v54, %v8378_v34  ;;  %8865 = vmatmul.mubr.f32.gmra.mxu1 %v8521_v15 }
 0xbb7   :  { %v8298_v3 = vmul.f32 %v17646_v47, %v18604_v28  ;;  %v8300_v7 = vmul.f32 %v17659_v13, %v18605_v48  ;;  %8724 = vmatprep.mubr.f32.mxu0 %v8524_v4  ;;  %v8525_v59 = vmax.f32 %v8461_v61, 0.0  ;;  %v18606_v43 = vsub.f32 %v17059_v41, %v17496_v51 }
 0xbb8   :  { %v8380_v6 = vmul.f32 %v18591_v44, %v8295_v45  ;;  %v18607_v1 = vsub.f32 %v18541_v32, %v17499_v46  ;;  %8869 = vmatprep.mubr.f32.mxu1 %v8526_v35  ;;  %v8528_v58 = vmax.f32 %v8464_v16, 0.0  ;;  %v8530_v37 = vmax.f32 %v8466_v10, 0.0 }
 0xbb9   :  { %v8297_v49 = vmul.f32 %v17628_v63, %v18606_v43  ;;  %v8383_v24 = vmul.f32 %v17487_v39, %v8298_v3  ;;  %v8385_v30 = vmul.f32 %v17490_v53, %v8300_v7  ;;  %v18608_v62 = vsub.f32 %v17029_v29, %v17508_v19  ;;  %8725 = vmatmul.mubr.f32.gmra.mxu0 %v8523_v27 }
 0xbba   :  { %v8299_v0 = vmul.f32 %v17637_v55, %v18607_v1  ;;  %v8465_v61 = vadd.f32 %v17517_v31, %v8380_v6  ;;  %v18609_v15 = vsub.f32 %v17033_v33, %v17511_v60  ;;  %v18610_v34 = vsub.f32 %v17039_v38, %v17496_v51  ;;  %8870 = vmatmul.mubr.f32.gmra.mxu1 %v8525_v59 }
 0xbbb   :  { %v8382_v52 = vmul.f32 %v18588_v11, %v8297_v49  ;;  %v8302_v32 = vmul.f32 %v17646_v47, %v18608_v62  ;;  %v8468_v20 = vadd.f32 %v18595_v57, %v8383_v24  ;;  %v8470_v21 = vadd.f32 %v18597_v56, %v8385_v30  ;;  %8729 = vmatprep.mubr.f32.mxu0 %v8528_v58 }
 0xbbc   :  { %v8384_v41 = vmul.f32 %v18591_v44, %v8299_v0  ;;  %v8304_v23 = vmul.f32 %v17659_v13, %v18609_v15  ;;  %v8301_v4 = vmul.f32 %v17628_v63, %v18610_v34  ;;  %v8527_v29 = vmax.f32 %v8463_v14, 0.0  ;;  %8874 = vmatprep.mubr.f32.mxu1 %v8530_v37 }
 0xbbd   :  { %v8467_v35 = vadd.f32 %v17514_v54, %v8382_v52  ;;  %v8387_v16 = vmul.f32 %v17487_v39, %v8302_v32  ;;  %v8529_v50 = vmax.f32 %v8465_v61, 0.0  ;;  %v8532_v45 = vmax.f32 %v8468_v20, 0.0 }
 0xbbe   :  { %v8469_v27 = vadd.f32 %v17517_v31, %v8384_v41  ;;  %v8389_v33 = vmul.f32 %v17490_v53, %v8304_v23  ;;  %v8386_v10 = vmul.f32 %v18588_v11, %v8301_v4  ;;  %v8534_v28 = vmax.f32 %v8470_v21, 0.0  ;;  %8730 = vmatmul.mubr.f32.gmra.mxu0 %v8527_v29 }
 0xbbf   :  { %v8531_v38 = vmax.f32 %v8467_v35, 0.0  ;;  %v8472_v3 = vadd.f32 %v18595_v57, %v8387_v16  ;;  %v18611_v14 = vsub.f32 %v17043_v12, %v17499_v46  ;;  %v18612_v6 = vsub.f32 %v17009_v2, %v17508_v19  ;;  %8875 = vmatmul.mubr.f32.gmra.mxu1 %v8529_v50  ;;  %8734 = vmatprep.mubr.f32.mxu0 %v8532_v45 }
 0xbc0   :  { %v8474_v7 = vadd.f32 %v18597_v56, %v8389_v33  ;;  %v8471_v59 = vadd.f32 %v17514_v54, %v8386_v10  ;;  %v18613_v49 = vsub.f32 %v17013_v36, %v17511_v60  ;;  %v8533_v12 = vmax.f32 %v8469_v27, 0.0  ;;  %8879 = vmatprep.mubr.f32.mxu1 %v8534_v28 }
 0xbc1   :  { %v8303_v48 = vmul.f32 %v17637_v55, %v18611_v14  ;;  %v8306_v43 = vmul.f32 %v17646_v47, %v18612_v6  ;;  %v18614_v58 = vsub.f32 %v17019_v42, %v17496_v51  ;;  %v18615_v2 = vsub.f32 %v17023_v8, %v17499_v46 }
 0xbc2   :  { %v8308_v1 = vmul.f32 %v17659_v13, %v18613_v49  ;;  %v8536_v30 = vmax.f32 %v8472_v3, 0.0  ;;  %v8538_v36 = vmax.f32 %v8474_v7, 0.0  ;;  %v18616_v32 = vsub.f32 %v16989_v40, %v17508_v19  ;;  %8735 = vmatmul.mubr.f32.gmra.mxu0 %v8531_v38 }
 0xbc3   :  { %v8388_v0 = vmul.f32 %v18591_v44, %v8303_v48  ;;  %v8305_v37 = vmul.f32 %v17628_v63, %v18614_v58  ;;  %v8307_v24 = vmul.f32 %v17637_v55, %v18615_v2  ;;  %v8391_v61 = vmul.f32 %v17487_v39, %v8306_v43  ;;  %8880 = vmatmul.mubr.f32.gmra.mxu1 %v8533_v12 }
 0xbc4   :  { %v8393_v52 = vmul.f32 %v17490_v53, %v8308_v1  ;;  %v8310_v8 = vmul.f32 %v17646_v47, %v18616_v32  ;;  %v18617_v15 = vsub.f32 %v16993_v9, %v17511_v60  ;;  %v18618_v34 = vsub.f32 %v16999_v17, %v17496_v51  ;;  %8739 = vmatprep.mubr.f32.mxu0 %v8536_v30  ;;  %v18624_v30 = vld [vmem:[#allocation95_spill] sm:$0xff]  ;;  %v18628_v32 = vld [vmem:[#allocation97_spill] sm:$0xff] }
 0xbc5   :  { %v8473_v41 = vadd.f32 %v17517_v31, %v8388_v0  ;;  %v8390_v62 = vmul.f32 %v18588_v11, %v8305_v37  ;;  %v8392_v42 = vmul.f32 %v18591_v44, %v8307_v24  ;;  %v8476_v20 = vadd.f32 %v18595_v57, %v8391_v61  ;;  %8884 = vmatprep.mubr.f32.mxu1 %v8538_v36 }
 0xbc6   :  { %v8478_v21 = vadd.f32 %v18597_v56, %v8393_v52  ;;  %v8312_v23 = vmul.f32 %v17659_v13, %v18617_v15  ;;  %v8309_v4 = vmul.f32 %v17628_v63, %v18618_v34  ;;  %v8535_v40 = vmax.f32 %v8471_v59, 0.0 }
 0xbc7   :  { %v8475_v29 = vadd.f32 %v17514_v54, %v8390_v62  ;;  %v8477_v35 = vadd.f32 %v17517_v31, %v8392_v42  ;;  %v8395_v27 = vmul.f32 %v17487_v39, %v8310_v8  ;;  %v8537_v16 = vmax.f32 %v8473_v41, 0.0  ;;  %v18626_v41 = vld [vmem:[#allocation96_spill] sm:$0xff] }
 0xbc8   :  { %v8540_v50 = vmax.f32 %v8476_v20, 0.0  ;;  %v8397_v9 = vmul.f32 %v17490_v53, %v8312_v23  ;;  %v8394_v45 = vmul.f32 %v18588_v11, %v8309_v4  ;;  %v8542_v33 = vmax.f32 %v8478_v21, 0.0  ;;  %8740 = vmatmul.mubr.f32.gmra.mxu0 %v8535_v40 }
 0xbc9   :  { %v8539_v17 = vmax.f32 %v8475_v29, 0.0  ;;  %v8480_v10 = vadd.f32 %v18595_v57, %v8395_v27  ;;  %v18619_v28 = vsub.f32 %v17003_v25, %v17499_v46  ;;  %v18620_v48 = vsub.f32 %v16969_v22, %v17508_v19  ;;  %8885 = vmatmul.mubr.f32.gmra.mxu1 %v8537_v16 }
 0xbca   :  { %v8482_v3 = vadd.f32 %v18597_v56, %v8397_v9  ;;  %v8479_v14 = vadd.f32 %v17514_v54, %v8394_v45  ;;  %v18621_v59 = vsub.f32 %v16973_v18, %v17511_v60  ;;  %8744 = vmatprep.mubr.f32.mxu0 %v8540_v50  ;;  %v8541_v25 = vmax.f32 %v8477_v35, 0.0  ;;  %8889 = vmatprep.mubr.f32.mxu1 %v8542_v33  ;;  %v18630_v9 = vld [vmem:[#allocation98_spill] sm:$0xff] }
 0xbcb   :  { %v8311_v38 = vmul.f32 %v17637_v55, %v18619_v28  ;;  %v8314_v7 = vmul.f32 %v17646_v47, %v18620_v48  ;;  %v18622_v49 = vsub.f32 %v16979_v5, %v17496_v51  ;;  %v18623_v22 = vsub.f32 %v16983_v26, %v17499_v46  ;;  %v18632_v28 = vld [vmem:[#allocation91_spill] sm:$0xff] }
 0xbcc   :  { %v8316_v6 = vmul.f32 %v17659_v13, %v18621_v59  ;;  %v8544_v0 = vmax.f32 %v8480_v10, 0.0  ;;  %v8546_v18 = vmax.f32 %v8482_v3, 0.0  ;;  %v18625_v36 = vsub.f32 %v18624_v30, %v17508_v19  ;;  %8745 = vmatmul.mubr.f32.gmra.mxu0 %v8539_v17  ;;  %v18640_v30 = vld [vmem:[#allocation87_spill] sm:$0xff] }
 0xbcd   :  { %v8396_v43 = vmul.f32 %v18591_v44, %v8311_v38  ;;  %v8313_v1 = vmul.f32 %v17628_v63, %v18622_v49  ;;  %v8315_v12 = vmul.f32 %v17637_v55, %v18623_v22  ;;  %v8399_v58 = vmul.f32 %v17487_v39, %v8314_v7  ;;  %8890 = vmatmul.mubr.f32.gmra.mxu1 %v8541_v25  ;;  %v18636_v25 = vld [vmem:[#allocation93_spill] sm:$0xff] }
 0xbce   :  { %v8401_v37 = vmul.f32 %v17490_v53, %v8316_v6  ;;  %v8318_v26 = vmul.f32 %v17646_v47, %v18625_v36  ;;  %v18627_v62 = vsub.f32 %v18626_v41, %v17511_v60  ;;  %v18629_v8 = vsub.f32 %v18628_v32, %v17496_v51  ;;  %8749 = vmatprep.mubr.f32.mxu0 %v8544_v0  ;;  %v18642_v41 = vld [vmem:[#allocation88_spill] sm:$0xff]  ;;  %v18644_v32 = vld [vmem:[#allocation89_spill] sm:$0xff] }
 0xbcf   :  { %v8481_v2 = vadd.f32 %v17517_v31, %v8396_v43  ;;  %v8398_v24 = vmul.f32 %v18588_v11, %v8313_v1  ;;  %v8400_v5 = vmul.f32 %v18591_v44, %v8315_v12  ;;  %v8484_v61 = vadd.f32 %v18595_v57, %v8399_v58  ;;  %8894 = vmatprep.mubr.f32.mxu1 %v8546_v18  ;;  %v18638_v1 = vld [vmem:[#allocation94_spill] sm:$0xff] }
 0xbd0   :  { %v8486_v52 = vadd.f32 %v18597_v56, %v8401_v37  ;;  %v8320_v42 = vmul.f32 %v17659_v13, %v18627_v62  ;;  %v8317_v20 = vmul.f32 %v17628_v63, %v18629_v8  ;;  %v8543_v21 = vmax.f32 %v8479_v14, 0.0  ;;  %v18634_v14 = vld [vmem:[#allocation92_spill] sm:$0xff] }
 0xbd1   :  { %v8483_v15 = vadd.f32 %v17514_v54, %v8398_v24  ;;  %v8485_v23 = vadd.f32 %v17517_v31, %v8400_v5  ;;  %v8403_v34 = vmul.f32 %v17487_v39, %v8318_v26  ;;  %v8545_v4 = vmax.f32 %v8481_v2, 0.0 }
 0xbd2   :  { %v8548_v40 = vmax.f32 %v8484_v61, 0.0  ;;  %v8405_v29 = vmul.f32 %v17490_v53, %v8320_v42  ;;  %v8402_v35 = vmul.f32 %v18588_v11, %v8317_v20  ;;  %v8550_v27 = vmax.f32 %v8486_v52, 0.0  ;;  %8750 = vmatmul.mubr.f32.gmra.mxu0 %v8543_v21 }
 0xbd3   :  { %v8547_v16 = vmax.f32 %v8483_v15, 0.0  ;;  %v8488_v50 = vadd.f32 %v18595_v57, %v8403_v34  ;;  %v18631_v45 = vsub.f32 %v18630_v9, %v17499_v46  ;;  %v18633_v38 = vsub.f32 %v18632_v28, %v17508_v19  ;;  %8895 = vmatmul.mubr.f32.gmra.mxu1 %v8545_v4  ;;  %v18646_v9 = vld [vmem:[#allocation90_spill] sm:$0xff]  ;;  %v18648_v28 = vld [vmem:[#allocation83_spill] sm:$0xff] }
 0xbd4   :  { %v8490_v17 = vadd.f32 %v18597_v56, %v8405_v29  ;;  %v8487_v10 = vadd.f32 %v17514_v54, %v8402_v35  ;;  %v18635_v48 = vsub.f32 %v18634_v14, %v17511_v60  ;;  %8754 = vmatprep.mubr.f32.mxu0 %v8548_v40  ;;  %v8549_v59 = vmax.f32 %v8485_v23, 0.0  ;;  %8899 = vmatprep.mubr.f32.mxu1 %v8550_v27  ;;  %v18650_v14 = vld [vmem:[#allocation84_spill] sm:$0xff] }
 0xbd5   :  { %v8319_v33 = vmul.f32 %v17637_v55, %v18631_v45  ;;  %v8322_v3 = vmul.f32 %v17646_v47, %v18633_v38  ;;  %v18637_v43 = vsub.f32 %v18636_v25, %v17496_v51  ;;  %v18639_v22 = vsub.f32 %v18638_v1, %v17499_v46  ;;  %v18652_v25 = vld [vmem:[#allocation85_spill] sm:$0xff]  ;;  %v18654_v1 = vld [vmem:[#allocation86_spill] sm:$0xff] }
 0xbd6   :  { %v8324_v7 = vmul.f32 %v17659_v13, %v18635_v48  ;;  %v8552_v0 = vmax.f32 %v8488_v50, 0.0  ;;  %v8554_v18 = vmax.f32 %v8490_v17, 0.0  ;;  %v18641_v36 = vsub.f32 %v18640_v30, %v17508_v19  ;;  %8755 = vmatmul.mubr.f32.gmra.mxu0 %v8547_v16  ;;  %v18656_v30 = vld [vmem:[#allocation79_spill] sm:$0xff] }
 0xbd7   :  { %v8404_v6 = vmul.f32 %v18591_v44, %v8319_v33  ;;  %v8321_v49 = vmul.f32 %v17628_v63, %v18637_v43  ;;  %v8323_v12 = vmul.f32 %v17637_v55, %v18639_v22  ;;  %v8407_v58 = vmul.f32 %v17487_v39, %v8322_v3  ;;  %8900 = vmatmul.mubr.f32.gmra.mxu1 %v8549_v59 }
 0xbd8   :  { %v8409_v37 = vmul.f32 %v17490_v53, %v8324_v7  ;;  %v8326_v26 = vmul.f32 %v17646_v47, %v18641_v36  ;;  %v18643_v62 = vsub.f32 %v18642_v41, %v17511_v60  ;;  %v18645_v8 = vsub.f32 %v18644_v32, %v17496_v51  ;;  %8759 = vmatprep.mubr.f32.mxu0 %v8552_v0  ;;  %v18658_v41 = vld [vmem:[#allocation80_spill] sm:$0xff]  ;;  %v18660_v32 = vld [vmem:[#allocation81_spill] sm:$0xff] }
 0xbd9   :  { %v8489_v2 = vadd.f32 %v17517_v31, %v8404_v6  ;;  %v8406_v24 = vmul.f32 %v18588_v11, %v8321_v49  ;;  %v8408_v5 = vmul.f32 %v18591_v44, %v8323_v12  ;;  %v8492_v61 = vadd.f32 %v18595_v57, %v8407_v58  ;;  %8904 = vmatprep.mubr.f32.mxu1 %v8554_v18 }
 0xbda   :  { %v8494_v52 = vadd.f32 %v18597_v56, %v8409_v37  ;;  %v8328_v42 = vmul.f32 %v17659_v13, %v18643_v62  ;;  %v8325_v20 = vmul.f32 %v17628_v63, %v18645_v8  ;;  %v8551_v21 = vmax.f32 %v8487_v10, 0.0 }
 0xbdb   :  { %v8491_v15 = vadd.f32 %v17514_v54, %v8406_v24  ;;  %v8493_v23 = vadd.f32 %v17517_v31, %v8408_v5  ;;  %v8411_v34 = vmul.f32 %v17487_v39, %v8326_v26  ;;  %v8553_v4 = vmax.f32 %v8489_v2, 0.0 }
 0xbdc   :  { %v8556_v40 = vmax.f32 %v8492_v61, 0.0  ;;  %v8413_v29 = vmul.f32 %v17490_v53, %v8328_v42  ;;  %v8410_v35 = vmul.f32 %v18588_v11, %v8325_v20  ;;  %v8558_v27 = vmax.f32 %v8494_v52, 0.0  ;;  %8760 = vmatmul.mubr.f32.gmra.mxu0 %v8551_v21 }
 0xbdd   :  { %v8555_v16 = vmax.f32 %v8491_v15, 0.0  ;;  %v8496_v50 = vadd.f32 %v18595_v57, %v8411_v34  ;;  %v18647_v45 = vsub.f32 %v18646_v9, %v17499_v46  ;;  %v18649_v38 = vsub.f32 %v18648_v28, %v17508_v19  ;;  %8905 = vmatmul.mubr.f32.gmra.mxu1 %v8553_v4  ;;  %v18662_v9 = vld [vmem:[#allocation82_spill] sm:$0xff]  ;;  %v18664_v28 = vld [vmem:[#allocation75_spill] sm:$0xff] }
 0xbde   :  { %v8498_v17 = vadd.f32 %v18597_v56, %v8413_v29  ;;  %v8495_v10 = vadd.f32 %v17514_v54, %v8410_v35  ;;  %v18651_v48 = vsub.f32 %v18650_v14, %v17511_v60  ;;  %8764 = vmatprep.mubr.f32.mxu0 %v8556_v40  ;;  %v8557_v59 = vmax.f32 %v8493_v23, 0.0  ;;  %8909 = vmatprep.mubr.f32.mxu1 %v8558_v27  ;;  %v18666_v14 = vld [vmem:[#allocation76_spill] sm:$0xff] }
 0xbdf   :  { %v8327_v33 = vmul.f32 %v17637_v55, %v18647_v45  ;;  %v8330_v3 = vmul.f32 %v17646_v47, %v18649_v38  ;;  %v18653_v43 = vsub.f32 %v18652_v25, %v17496_v51  ;;  %v18655_v22 = vsub.f32 %v18654_v1, %v17499_v46  ;;  %v18668_v25 = vld [vmem:[#allocation77_spill] sm:$0xff]  ;;  %v18670_v1 = vld [vmem:[#allocation78_spill] sm:$0xff] }
 0xbe0   :  { %v8332_v7 = vmul.f32 %v17659_v13, %v18651_v48  ;;  %v8560_v0 = vmax.f32 %v8496_v50, 0.0  ;;  %v8562_v18 = vmax.f32 %v8498_v17, 0.0  ;;  %v18657_v36 = vsub.f32 %v18656_v30, %v17508_v19  ;;  %8765 = vmatmul.mubr.f32.gmra.mxu0 %v8555_v16  ;;  %v18672_v30 = vld [vmem:[#allocation72_spill] sm:$0xff] }
 0xbe1   :  { %v8412_v6 = vmul.f32 %v18591_v44, %v8327_v33  ;;  %v8329_v49 = vmul.f32 %v17628_v63, %v18653_v43  ;;  %v8331_v12 = vmul.f32 %v17637_v55, %v18655_v22  ;;  %v8415_v58 = vmul.f32 %v17487_v39, %v8330_v3  ;;  %8910 = vmatmul.mubr.f32.gmra.mxu1 %v8557_v59 }
 0xbe2   :  { %v8417_v37 = vmul.f32 %v17490_v53, %v8332_v7  ;;  %v8334_v26 = vmul.f32 %v17646_v47, %v18657_v36  ;;  %v18659_v62 = vsub.f32 %v18658_v41, %v17511_v60  ;;  %v18661_v8 = vsub.f32 %v18660_v32, %v17496_v51  ;;  %8769 = vmatprep.mubr.f32.mxu0 %v8560_v0  ;;  %v18674_v41 = vld [vmem:[#allocation73_spill] sm:$0xff]  ;;  %v18676_v32 = vld [vmem:[#allocation74_spill] sm:$0xff] }
 0xbe3   :  { %v8497_v2 = vadd.f32 %v17517_v31, %v8412_v6  ;;  %v8414_v24 = vmul.f32 %v18588_v11, %v8329_v49  ;;  %v8416_v5 = vmul.f32 %v18591_v44, %v8331_v12  ;;  %v8500_v61 = vadd.f32 %v18595_v57, %v8415_v58  ;;  %8914 = vmatprep.mubr.f32.mxu1 %v8562_v18 }
 0xbe4   :  { %v8502_v52 = vadd.f32 %v18597_v56, %v8417_v37  ;;  %v8336_v42 = vmul.f32 %v17659_v13, %v18659_v62  ;;  %v8333_v20 = vmul.f32 %v17628_v63, %v18661_v8  ;;  %v8559_v21 = vmax.f32 %v8495_v10, 0.0 }
 0xbe5   :  { %v8499_v15 = vadd.f32 %v17514_v54, %v8414_v24  ;;  %v8501_v23 = vadd.f32 %v17517_v31, %v8416_v5  ;;  %v8419_v34 = vmul.f32 %v17487_v39, %v8334_v26  ;;  %v8561_v4 = vmax.f32 %v8497_v2, 0.0 }
 0xbe6   :  { %v8564_v40 = vmax.f32 %v8500_v61, 0.0  ;;  %v8421_v29 = vmul.f32 %v17490_v53, %v8336_v42  ;;  %v8418_v35 = vmul.f32 %v18588_v11, %v8333_v20  ;;  %v8566_v27 = vmax.f32 %v8502_v52, 0.0  ;;  %8770 = vmatmul.mubr.f32.gmra.mxu0 %v8559_v21  ;;  %v18678_v21 = vld [vmem:[#allocation71_spill] sm:$0xff] }
 0xbe7   :  { %v8563_v16 = vmax.f32 %v8499_v15, 0.0  ;;  %v8504_v50 = vadd.f32 %v18595_v57, %v8419_v34  ;;  %v18663_v45 = vsub.f32 %v18662_v9, %v17499_v46  ;;  %v18665_v38 = vsub.f32 %v18664_v28, %v17508_v19  ;;  %8915 = vmatmul.mubr.f32.gmra.mxu1 %v8561_v4 }
 0xbe8   :  { %v8506_v17 = vadd.f32 %v18597_v56, %v8421_v29  ;;  %v8503_v10 = vadd.f32 %v17514_v54, %v8418_v35  ;;  %v18667_v48 = vsub.f32 %v18666_v14, %v17511_v60  ;;  %8774 = vmatprep.mubr.f32.mxu0 %v8564_v40  ;;  %v8565_v59 = vmax.f32 %v8501_v23, 0.0  ;;  %8919 = vmatprep.mubr.f32.mxu1 %v8566_v27 }
 0xbe9   :  { %v8335_v33 = vmul.f32 %v17637_v55, %v18663_v45  ;;  %v8338_v3 = vmul.f32 %v17646_v47, %v18665_v38  ;;  %v18669_v43 = vsub.f32 %v18668_v25, %v17496_v51  ;;  %v18671_v22 = vsub.f32 %v18670_v1, %v17499_v46 }
 0xbea   :  { %v8340_v7 = vmul.f32 %v17659_v13, %v18667_v48  ;;  %v8568_v0 = vmax.f32 %v8504_v50, 0.0  ;;  %v8570_v18 = vmax.f32 %v8506_v17, 0.0  ;;  %v18673_v36 = vsub.f32 %v18672_v30, %v17508_v19  ;;  %8775 = vmatmul.mubr.f32.gmra.mxu0 %v8563_v16 }
 0xbeb   :  { %v8420_v6 = vmul.f32 %v18591_v44, %v8335_v33  ;;  %v8337_v49 = vmul.f32 %v17628_v63, %v18669_v43  ;;  %v8339_v12 = vmul.f32 %v17637_v55, %v18671_v22  ;;  %v8423_v58 = vmul.f32 %v17487_v39, %v8338_v3  ;;  %8920 = vmatmul.mubr.f32.gmra.mxu1 %v8565_v59 }
 0xbec   :  { %v8425_v37 = vmul.f32 %v17490_v53, %v8340_v7  ;;  %v8342_v26 = vmul.f32 %v17646_v47, %v18673_v36  ;;  %v18675_v62 = vsub.f32 %v18674_v41, %v17511_v60  ;;  %v18677_v8 = vsub.f32 %v18676_v32, %v17496_v51  ;;  %8779 = vmatprep.mubr.f32.mxu0 %v8568_v0 }
 0xbed   :  { %v8505_v2 = vadd.f32 %v17517_v31, %v8420_v6  ;;  %v8422_v24 = vmul.f32 %v18588_v11, %v8337_v49  ;;  %v8424_v5 = vmul.f32 %v18591_v44, %v8339_v12  ;;  %v8508_v61 = vadd.f32 %v18595_v57, %v8423_v58  ;;  %8924 = vmatprep.mubr.f32.mxu1 %v8570_v18 }
 0xbee   :  { %v8510_v52 = vadd.f32 %v18597_v56, %v8425_v37  ;;  %v8344_v42 = vmul.f32 %v17659_v13, %v18675_v62  ;;  %v8341_v20 = vmul.f32 %v17628_v63, %v18677_v8  ;;  %v8567_v19 = vmax.f32 %v8503_v10, 0.0 }
 0xbef   :  { %v8427_v47 = vmul.f32 %v17487_v39, %v8342_v26  ;;  %v8255_v15 = vsub.f32 %v18678_v21, %v17499_v46  ;;  %v8569_v23 = vmax.f32 %v8505_v2, 0.0  ;;  %v8507_v34 = vadd.f32 %v17514_v54, %v8422_v24 }
 0xbf0   :  { %v8429_v60 = vmul.f32 %v17490_v53, %v8344_v42  ;;  %v8426_v13 = vmul.f32 %v18588_v11, %v8341_v20  ;;  %v8572_v4 = vmax.f32 %v8508_v61, 0.0  ;;  %v8509_v51 = vadd.f32 %v17517_v31, %v8424_v5  ;;  %8780 = vmatmul.mubr.f32.gmra.mxu0 %v8567_v19 }
 0xbf1   :  { %v8512_v63 = vadd.f32 %v18595_v57, %v8427_v47  ;;  %v8343_v40 = vmul.f32 %v17637_v55, %v8255_v15  ;;  %v8574_v39 = vmax.f32 %v8510_v52, 0.0  ;;  %8925 = vmatmul.mubr.f32.gmra.mxu1 %v8569_v23  ;;  %v8571_v35 = vmax.f32 %v8507_v34, 0.0 }
 0xbf2   :  { %v8514_v29 = vadd.f32 %v18597_v56, %v8429_v60  ;;  %8784 = vmatprep.mubr.f32.mxu0 %v8572_v4  ;;  %v8511_v53 = vadd.f32 %v17514_v54, %v8426_v13  ;;  %v8573_v11 = vmax.f32 %v8509_v51, 0.0 }
 0xbf3   :  { %v8428_v46 = vmul.f32 %v18591_v44, %v8343_v40  ;;  %8929 = vmatprep.mubr.f32.mxu1 %v8574_v39  ;;  %v8576_v27 = vmax.f32 %v8512_v63, 0.0  ;;  %v18043_v44 = vld [vmem:[%s18083_s19] ss:$0 sm:$0xff]  ;;  %s12206_s19 = smov [#allocation6]  }
 0xbf4   :  { %8785 = vmatmul.mubr.f32.gmra.mxu0 %v8571_v35  ;;  %v8578_v57 = vmax.f32 %v8514_v29, 0.0  ;;  %v8575_v55 = vmax.f32 %v8511_v53, 0.0  ;;  %s8961_s27 = sshll.u32 %s12206_s19, 4  ;;  %s8962_s27 = int_to_ptr.vmem [resolvable:$true] %s8961_s27 }
 0xbf5   :  { %v8513_v16 = vadd.f32 %v17517_v31, %v8428_v46  ;;  %8930 = vmatmul.mubr.f32.gmra.mxu1 %v8573_v11  ;;  %8789 = vmatprep.mubr.f32.mxu0 %v8576_v27  ;;  %s12037_s28 = scalar_lea.vmem %s8962_s27, 2048  ;;  %p12042_p2 = scmp.lt.s32.totalorder %s8962_s27, %s8962_s27 }
 0xbf6   :  { %8934 = vmatprep.mubr.f32.mxu1 %v8578_v57  ;;  %p12038_p1 = scmp.ne.s32.totalorder %s8962_s27, %s12037_s28  ;;  %p12043_p3 = scmp.lt.s32.totalorder %s12037_s28, %s12037_s28 }
 0xbf7   :  { %v8577_v50 = vmax.f32 %v8513_v16, 0.0 }
 0xbf8   :  { %8790 = vmatmul.mubr.f32.gmra.mxu0 %v8575_v55  ;;  %p12044_p4 = por %p12043_p3, %p12042_p2 }
 0xbf9   :  { %8935 = vmatmul.mubr.f32.gmra.mxu1 %v8577_v50 }
 0xbfa   :  { %p12045_p5 = pnand %p12044_p4, %p12038_p1 }
 0xc71   :  { %v10071_v56 = vpop.f32.mrf.mxu0 }
 0xc72   :  { %v10151_v9 = vpop.f32.mrf.mxu1 }
 0xc73   :  { %v10072_v54 = vpop.f32.mrf.mxu0 }
 0xc74   :  { %v10073_v45 = vadd.f32 %v10072_v54, %v10071_v56  ;;  %v10152_v33 = vpop.f32.mrf.mxu1 }
 0xc75   :  { %v10074_v31 = vpop.f32.mrf.mxu0  ;;  %v10153_v10 = vadd.f32 %v10152_v33, %v10151_v9 }
 0xc76   :  { %v8717_v17 = vadd.f32 %v10073_v45, %v18043_v44  ;;  %v10154_v28 = vpop.f32.mrf.mxu1 }
 0xc77   :  { %v10075_v38 = vpop.f32.mrf.mxu0 }
 0xc78   :  { %v8862_v3 = vadd.f32 %v10153_v10, %v8717_v17  ;;  %v10076_v14 = vadd.f32 %v10075_v38, %v10074_v31  ;;  %v10155_v48 = vpop.f32.mrf.mxu1 }
 0xc79   :  { %v10077_v7 = vpop.f32.mrf.mxu0  ;;  %v10156_v6 = vadd.f32 %v10155_v48, %v10154_v28 }
 0xc7a   :  { %8940 = vst [vmem:[#allocation6] sm:$0xff] %v8862_v3  ;;  %v8722_v59 = vadd.f32 %v10076_v14, %v18043_v44  ;;  %v10157_v25 = vpop.f32.mrf.mxu1 }
 0xc7b   :  { %v10078_v43 = vpop.f32.mrf.mxu0 }
 0xc7c   :  { %v8867_v49 = vadd.f32 %v10156_v6, %v8722_v59  ;;  %v10079_v1 = vadd.f32 %v10078_v43, %v10077_v7  ;;  %v10158_v22 = vpop.f32.mrf.mxu1 }
 0xc7d   :  { %v10159_v18 = vadd.f32 %v10158_v22, %v10157_v25 }
 0xc7e   :  { %v10080_v12 = vpop.f32.mrf.mxu0  ;;  %8941 = vst [vmem:[#allocation6 + $0x8] sm:$0xff] %v8867_v49  ;;  %v8727_v0 = vadd.f32 %v10079_v1, %v18043_v44 }
 0xc7f   :  { %v10160_v58 = vpop.f32.mrf.mxu1 }
 0xc80   :  { %v10081_v37 = vpop.f32.mrf.mxu0  ;;  %v8872_v2 = vadd.f32 %v10159_v18, %v8727_v0 }
 0xc81   :  { %v10082_v24 = vadd.f32 %v10081_v37, %v10080_v12  ;;  %v10161_v5 = vpop.f32.mrf.mxu1 }
 0xc82   :  { %v10083_v30 = vpop.f32.mrf.mxu0  ;;  %8942 = vst [vmem:[#allocation6 + $0x10] sm:$0xff] %v8872_v2  ;;  %v10162_v26 = vadd.f32 %v10161_v5, %v10160_v58 }
 0xc83   :  { %v8732_v36 = vadd.f32 %v10082_v24, %v18043_v44  ;;  %v10163_v61 = vpop.f32.mrf.mxu1 }
 0xc84   :  { %v10084_v52 = vpop.f32.mrf.mxu0 }
 0xc85   :  { %v8877_v41 = vadd.f32 %v10162_v26, %v8732_v36  ;;  %v10085_v62 = vadd.f32 %v10084_v52, %v10083_v30  ;;  %v10164_v42 = vpop.f32.mrf.mxu1 }
 0xc86   :  { %v10165_v20 = vadd.f32 %v10164_v42, %v10163_v61 }
 0xc87   :  { %8943 = vst [vmem:[#allocation6 + $0x18] sm:$0xff] %v8877_v41  ;;  %v8737_v8 = vadd.f32 %v10085_v62, %v18043_v44 }
 0xc88   :  { %v10086_v32 = vpop.f32.mrf.mxu0 }
 0xc89   :  { %v10166_v19 = vpop.f32.mrf.mxu1  ;;  %v8882_v21 = vadd.f32 %v10165_v20, %v8737_v8 }
 0xc8a   :  { %v10087_v47 = vpop.f32.mrf.mxu0 }
 0xc8b   :  { %v10088_v15 = vadd.f32 %v10087_v47, %v10086_v32  ;;  %v10167_v23 = vpop.f32.mrf.mxu1  ;;  %8944 = vst [vmem:[#allocation6 + $0x20] sm:$0xff] %v8882_v21 }
 0xc8c   :  { %v10089_v34 = vpop.f32.mrf.mxu0  ;;  %v10168_v13 = vadd.f32 %v10167_v23, %v10166_v19 }
 0xc8d   :  { %v8742_v60 = vadd.f32 %v10088_v15, %v18043_v44  ;;  %v10169_v4 = vpop.f32.mrf.mxu1 }
 0xc8e   :  { %v10090_v51 = vpop.f32.mrf.mxu0 }
 0xc8f   :  { %v8887_v63 = vadd.f32 %v10168_v13, %v8742_v60  ;;  %v10091_v40 = vadd.f32 %v10090_v51, %v10089_v34  ;;  %v10170_v39 = vpop.f32.mrf.mxu1 }
 0xc90   :  { %v10171_v35 = vadd.f32 %v10170_v39, %v10169_v4 }
 0xc91   :  { %8945 = vst [vmem:[#allocation6 + $0x28] sm:$0xff] %v8887_v63  ;;  %v8747_v46 = vadd.f32 %v10091_v40, %v18043_v44 }
 0xc92   :  { %v10092_v29 = vpop.f32.mrf.mxu0 }
 0xc93   :  { %v10172_v53 = vpop.f32.mrf.mxu1  ;;  %v8892_v27 = vadd.f32 %v10171_v35, %v8747_v46 }
 0xc94   :  { %v10093_v11 = vpop.f32.mrf.mxu0 }
 0xc95   :  { %v10094_v16 = vadd.f32 %v10093_v11, %v10092_v29  ;;  %v10173_v57 = vpop.f32.mrf.mxu1  ;;  %8946 = vst [vmem:[#allocation6 + $0x30] sm:$0xff] %v8892_v27 }
 0xc96   :  { %v10095_v55 = vpop.f32.mrf.mxu0  ;;  %v10174_v56 = vadd.f32 %v10173_v57, %v10172_v53 }
 0xc97   :  { %v8752_v50 = vadd.f32 %v10094_v16, %v18043_v44  ;;  %v10175_v9 = vpop.f32.mrf.mxu1 }
 0xc98   :  { %v10096_v54 = vpop.f32.mrf.mxu0 }
 0xc99   :  { %v8897_v45 = vadd.f32 %v10174_v56, %v8752_v50  ;;  %v10097_v33 = vadd.f32 %v10096_v54, %v10095_v55  ;;  %v10176_v31 = vpop.f32.mrf.mxu1 }
 0xc9a   :  { %v10177_v28 = vadd.f32 %v10176_v31, %v10175_v9 }
 0xc9b   :  { %8947 = vst [vmem:[#allocation6 + $0x38] sm:$0xff] %v8897_v45  ;;  %v8757_v10 = vadd.f32 %v10097_v33, %v18043_v44 }
 0xc9c   :  { %v10098_v17 = vpop.f32.mrf.mxu0 }
 0xc9d   :  { %v10178_v38 = vpop.f32.mrf.mxu1  ;;  %v8902_v14 = vadd.f32 %v10177_v28, %v8757_v10 }
 0xc9e   :  { %v10099_v3 = vpop.f32.mrf.mxu0 }
 0xc9f   :  { %v10100_v48 = vadd.f32 %v10099_v3, %v10098_v17  ;;  %v10179_v7 = vpop.f32.mrf.mxu1  ;;  %8948 = vst [vmem:[#allocation6 + $0x40] sm:$0xff] %v8902_v14 }
 0xca0   :  { %v10101_v59 = vpop.f32.mrf.mxu0  ;;  %v10180_v25 = vadd.f32 %v10179_v7, %v10178_v38 }
 0xca1   :  { %v8762_v6 = vadd.f32 %v10100_v48, %v18043_v44  ;;  %v10181_v43 = vpop.f32.mrf.mxu1 }
 0xca2   :  { %v10102_v49 = vpop.f32.mrf.mxu0 }
 0xca3   :  { %v8907_v1 = vadd.f32 %v10180_v25, %v8762_v6  ;;  %v10103_v22 = vadd.f32 %v10102_v49, %v10101_v59  ;;  %v10182_v12 = vpop.f32.mrf.mxu1 }
 0xca4   :  { %v10183_v58 = vadd.f32 %v10182_v12, %v10181_v43 }
 0xca5   :  { %8949 = vst [vmem:[#allocation6 + $0x48] sm:$0xff] %v8907_v1  ;;  %v8767_v18 = vadd.f32 %v10103_v22, %v18043_v44 }
 0xca6   :  { %v10104_v0 = vpop.f32.mrf.mxu0 }
 0xca7   :  { %v10184_v37 = vpop.f32.mrf.mxu1  ;;  %v8912_v24 = vadd.f32 %v10183_v58, %v8767_v18 }
 0xca8   :  { %v10105_v2 = vpop.f32.mrf.mxu0 }
 0xca9   :  { %v10106_v5 = vadd.f32 %v10105_v2, %v10104_v0  ;;  %v10185_v30 = vpop.f32.mrf.mxu1  ;;  %8950 = vst [vmem:[#allocation6 + $0x50] sm:$0xff] %v8912_v24 }
 0xcaa   :  { %v10107_v36 = vpop.f32.mrf.mxu0  ;;  %v10186_v61 = vadd.f32 %v10185_v30, %v10184_v37 }
 0xcab   :  { %v8772_v26 = vadd.f32 %v10106_v5, %v18043_v44  ;;  %v10187_v52 = vpop.f32.mrf.mxu1 }
 0xcac   :  { %v10108_v41 = vpop.f32.mrf.mxu0 }
 0xcad   :  { %v8917_v62 = vadd.f32 %v10186_v61, %v8772_v26  ;;  %v10109_v42 = vadd.f32 %v10108_v41, %v10107_v36  ;;  %v10188_v32 = vpop.f32.mrf.mxu1 }
 0xcae   :  { %v10189_v19 = vadd.f32 %v10188_v32, %v10187_v52 }
 0xcaf   :  { %8951 = vst [vmem:[#allocation6 + $0x58] sm:$0xff] %v8917_v62  ;;  %v8777_v20 = vadd.f32 %v10109_v42, %v18043_v44 }
 0xcb0   :  { %v10110_v8 = vpop.f32.mrf.mxu0 }
 0xcb1   :  { %v10190_v47 = vpop.f32.mrf.mxu1  ;;  %v8922_v15 = vadd.f32 %v10189_v19, %v8777_v20 }
 0xcb2   :  { %v10111_v21 = vpop.f32.mrf.mxu0 }
 0xcb3   :  { %v10112_v23 = vadd.f32 %v10111_v21, %v10110_v8  ;;  %v10191_v34 = vpop.f32.mrf.mxu1  ;;  %8952 = vst [vmem:[#allocation6 + $0x60] sm:$0xff] %v8922_v15 }
 0xcb4   :  { %v10113_v60 = vpop.f32.mrf.mxu0  ;;  %v10192_v4 = vadd.f32 %v10191_v34, %v10190_v47 }
 0xcb5   :  { %v8782_v13 = vadd.f32 %v10112_v23, %v18043_v44  ;;  %v10193_v51 = vpop.f32.mrf.mxu1 }
 0xcb6   :  { %v10114_v63 = vpop.f32.mrf.mxu0 }
 0xcb7   :  { %v8927_v40 = vadd.f32 %v10192_v4, %v8782_v13  ;;  %v10115_v39 = vadd.f32 %v10114_v63, %v10113_v60  ;;  %v10194_v29 = vpop.f32.mrf.mxu1 }
 0xcb8   :  { %v10116_v46 = vpop.f32.mrf.mxu0  ;;  %v10195_v53 = vadd.f32 %v10194_v29, %v10193_v51 }
 0xcb9   :  { %8953 = vst [vmem:[#allocation6 + $0x68] sm:$0xff] %v8927_v40  ;;  %v8787_v35 = vadd.f32 %v10115_v39, %v18043_v44  ;;  %v10196_v11 = vpop.f32.mrf.mxu1 }
 0xcba   :  { %v10117_v27 = vpop.f32.mrf.mxu0 }
 0xcbb   :  { %v8932_v16 = vadd.f32 %v10195_v53, %v8787_v35  ;;  %v10118_v57 = vadd.f32 %v10117_v27, %v10116_v46  ;;  %v10197_v55 = vpop.f32.mrf.mxu1 }
 0xcbc   :  { %v10198_v56 = vadd.f32 %v10197_v55, %v10196_v11 }
 0xcbd   :  { %8954 = vst [vmem:[#allocation6 + $0x70] sm:$0xff] %v8932_v16  ;;  %v8792_v50 = vadd.f32 %v10118_v57, %v18043_v44 }
 0xcbf   :  { %v8937_v9 = vadd.f32 %v10198_v56, %v8792_v50 }
 0xcc1   :  { %8955 = vst [vmem:[#allocation6 + $0x78] sm:$0xff] %v8937_v9 }
 0xcc2   :  { %12048 = shalt.err (!%p12045_p5)
}
 0xcc3   :  { %s12207_s4 = smov 128   ;;  %s12208_s30 = smov 8  }
 0xcc4   :  { %8967 = dma.vmem_to_hbm [thread:$0]  %s8962_s27, 2048, %s18084_s20, [#allocation7], %s12207_s4, %s12207_s4, %s12208_s30  }
 0xcc5   :  { %12125 = dma.done.wait [#allocation7], 2048  }
 0xcc6   :  { %12126 = vsyncadd [#allocation7], 4294965248 }
 0xcc7   :  { %8971 = vsyncpa [#allocation7], 1 }

</bundles_post_ra>
